<compile_context>
chip_gen: v7x
topology: tpu7x:2x2x1
jax: 0.10.0
libtpu: 0.0.40
codegen_flags: <defaults>
</compile_context>

<pallas_src>
import functools

import jax
import jax.numpy as jnp
from jax.experimental import pallas as pl
from jax.experimental.pallas import tpu as pltpu

DIST_MARGIN = 0.01     # F.relu(dist - 0.01)
BANDWIDTH = 1.0        # compute_density_loss(..., 1)
DENS_SCALE = 1.0 / (2.5 * BANDWIDTH)
DENS_EXP = -1.0 / (2.0 * BANDWIDTH * BANDWIDTH)


def _pairwise_sqdist(a_t, b):
    """a_t: (TI, 3) points as rows; b: (3, TJ) points as columns.

    D[i, j] = |a_i|^2 + |b_j|^2 - 2 a_i . b_j   (matches square_distance()).
    K=3 cross term is done with three broadcast FMAs on the VPU (an MXU
    matmul with K=3 would be ~98% padding anyway).
    """
    sq_a = jnp.sum(a_t * a_t, axis=1, keepdims=True)          # (TI, 1)
    sq_b = jnp.sum(b * b, axis=0, keepdims=True)               # (1, TJ)
    cross = (a_t[:, 0:1] * b[0:1, :]
             + a_t[:, 1:2] * b[1:2, :]
             + a_t[:, 2:3] * b[2:3, :])                        # (TI, TJ)
    return sq_a + sq_b - 2.0 * cross


def _soft_chamfer_kernel(n1, n2, zeta,
                         pc1_ref, pc2_ref, pc1w_ref,           # inputs
                         out_ref,                              # SMEM (B, 2)
                         dens1_col, min1_col,                  # VMEM (TI, 1)
                         dens2_acc, min2_acc,                  # VMEM (NJ, 1, TJ)
                         l1_acc, l2_acc):                      # VMEM (TI,1)/(1,TJ)
    b = pl.program_id(0)
    i = pl.program_id(1)
    j = pl.program_id(2)
    ni = pl.num_programs(1)
    nj = pl.num_programs(2)

    p1 = pc1_ref[0]       # (TI, 3)  pc1 tile (row-major points)
    p1w = pc1w_ref[0]     # (TI, 3)  pc1_warp tile
    p2 = pc2_ref[0]       # (3, TJ)  pc2 tile (points on lanes)

    # --- Gaussian density term between pc1 and pc2 --------------------------
    d11 = _pairwise_sqdist(p1, p2)                             # (TI, TJ)
    g = jnp.exp(d11 * DENS_EXP) * DENS_SCALE
    g_i = jnp.sum(g, axis=1, keepdims=True)                    # (TI, 1)
    g_j = jnp.sum(g, axis=0, keepdims=True)                    # (1, TJ)

    # --- chamfer term between pc1_warp and pc2 -------------------------------
    dw = _pairwise_sqdist(p1w, p2)                             # (TI, TJ)
    w_i = jnp.min(dw, axis=1, keepdims=True)                   # (TI, 1)
    w_j = jnp.min(dw, axis=0, keepdims=True)                   # (1, TJ)

    # per-batch loss vector accumulators
    @pl.when(jnp.logical_and(i == 0, j == 0))
    def _():
        l1_acc[...] = jnp.zeros_like(l1_acc)
        l2_acc[...] = jnp.zeros_like(l2_acc)

    # accumulate i-side quantities across the j (pc2) grid axis
    @pl.when(j == 0)
    def _():
        dens1_col[...] = g_i
        min1_col[...] = w_i

    @pl.when(j > 0)
    def _():
        dens1_col[...] += g_i
        min1_col[...] = jnp.minimum(min1_col[...], w_i)

    # accumulate j-side quantities across the i (pc1) grid axis
    @pl.when(i == 0)
    def _():
        dens2_acc[j] = g_j
        min2_acc[j] = w_j

    @pl.when(i > 0)
    def _():
        dens2_acc[j] = dens2_acc[j] + g_j
        min2_acc[j] = jnp.minimum(min2_acc[j], w_j)

    # finalize the current i-tile once all of pc2 has been seen
    @pl.when(j == nj - 1)
    def _():
        mask1 = (dens1_col[...] * (1.0 / n2) > zeta).astype(jnp.float32)
        l1_acc[...] += jnp.maximum(min1_col[...] - DIST_MARGIN, 0.0) * mask1

    # finalize the current j-tile once all of pc1 / pc1_warp has been seen
    @pl.when(i == ni - 1)
    def _():
        mask2 = (dens2_acc[j] * (1.0 / n1) > zeta).astype(jnp.float32)
        l2_acc[...] += jnp.maximum(min2_acc[j] - DIST_MARGIN, 0.0) * mask2

    # batch epilogue: single cross-lane reduce + SMEM store per batch
    @pl.when(jnp.logical_and(i == ni - 1, j == nj - 1))
    def _():
        out_ref[b, 0] = jnp.sum(l1_acc[...])
        out_ref[b, 1] = jnp.sum(l2_acc[...])


def soft_chamfer_loss(pc1, pc2, pc1_warp, *, zeta=0.005, ti=256, tj=256):
    """pc1, pc2, pc1_warp: [B, 3, N] -> scalar soft chamfer loss."""
    B, C, N = pc1.shape
    assert C == 3
    assert N % ti == 0 and N % tj == 0, "N must be a multiple of the tiles"
    ni, nj = N // ti, N // tj

    # glue: same permute the PyTorch module performs for the i-side operands
    pc1_t = jnp.transpose(pc1, (0, 2, 1)).astype(jnp.float32)       # [B, N, 3]
    pc1w_t = jnp.transpose(pc1_warp, (0, 2, 1)).astype(jnp.float32)  # [B, N, 3]
    pc2_f = pc2.astype(jnp.float32)                                  # [B, 3, N]

    kernel = functools.partial(_soft_chamfer_kernel, N, N, zeta)

    parts = pl.pallas_call(
        kernel,
        out_shape=jax.ShapeDtypeStruct((B, 2), jnp.float32),
        grid=(B, ni, nj),
        in_specs=[
            pl.BlockSpec((1, ti, 3), lambda b, i, j: (b, i, 0)),   # pc1
            pl.BlockSpec((1, 3, tj), lambda b, i, j: (b, 0, j)),   # pc2
            pl.BlockSpec((1, ti, 3), lambda b, i, j: (b, i, 0)),   # pc1_warp
        ],
        out_specs=pl.BlockSpec(memory_space=pltpu.MemorySpace.SMEM),
        scratch_shapes=[
            pltpu.VMEM((ti, 1), jnp.float32),       # dens1_col
            pltpu.VMEM((ti, 1), jnp.float32),       # min1_col
            pltpu.VMEM((nj, 1, tj), jnp.float32),   # dens2_acc (all j tiles)
            pltpu.VMEM((nj, 1, tj), jnp.float32),   # min2_acc  (all j tiles)
            pltpu.VMEM((ti, 1), jnp.float32),       # l1_acc
            pltpu.VMEM((1, tj), jnp.float32),       # l2_acc
        ],
        compiler_params=pltpu.CompilerParams(
            dimension_semantics=("arbitrary", "arbitrary", "arbitrary")),
    )(pc1_t, pc2_f, pc1w_t)

    # loss = mean(dist1_w) + mean(dist2_w), both means over [B, N]
    return (jnp.sum(parts[:, 0]) + jnp.sum(parts[:, 1])) / (B * N)


def _reference_soft_chamfer(pc1, pc2, pc1_warp, zeta=0.005):
    """Pure-JAX reference mirroring the PyTorch forward."""
    p1 = jnp.transpose(pc1, (0, 2, 1))
    p2 = jnp.transpose(pc2, (0, 2, 1))
    p1w = jnp.transpose(pc1_warp, (0, 2, 1))

    def square_distance(src, dst):
        cross = jnp.einsum('bnc,bmc->bnm', src, dst,
                           precision=jax.lax.Precision.HIGHEST)
        return (jnp.sum(src ** 2, -1)[:, :, None]
                + jnp.sum(dst ** 2, -1)[:, None, :] - 2.0 * cross)

    def density(a, b, bw=1.0):
        d = square_distance(a, b)
        g = jnp.exp(-d / (2.0 * bw * bw)) / (2.5 * bw)
        return jnp.mean(g, axis=-1)

    dens12 = density(p1, p2)
    dens21 = density(p2, p1)
    mask1 = (dens12 > zeta).astype(jnp.float32)
    mask2 = (dens21 > zeta).astype(jnp.float32)

    dw = square_distance(p1w, p2)
    dist1 = jnp.min(dw, axis=-1)
    dist2 = jnp.min(dw, axis=1)
    dist1 = jnp.maximum(dist1 - DIST_MARGIN, 0.0) * mask1
    dist2 = jnp.maximum(dist2 - DIST_MARGIN, 0.0) * mask2
    return jnp.mean(dist1) + jnp.mean(dist2)


if __name__ == "__main__":
    key = jax.random.PRNGKey(0)
    k1, k2, k3 = jax.random.split(key, 3)

    B, N = 2, 512
    pc1 = jax.random.uniform(k1, (B, 3, N), minval=0.0, maxval=8.0,
                             dtype=jnp.float32)
    pc2 = pc1 + 0.3 * jax.random.normal(k2, (B, 3, N), dtype=jnp.float32)
    pc1_warp = pc1 + 0.2 * jax.random.normal(k3, (B, 3, N), dtype=jnp.float32)

    loss = soft_chamfer_loss(pc1, pc2, pc1_warp)
    loss = jax.block_until_ready(loss)

    ref = _reference_soft_chamfer(pc1, pc2, pc1_warp)
    assert bool(jnp.isfinite(loss)), loss
    assert jnp.allclose(loss, ref, rtol=1e-3, atol=1e-6), (loss, ref)

    print("KERNEL_OK")
</pallas_src>

<mosaic_0001>
module attributes {stable_mosaic.version = 11 : i64} {
  func.func @_soft_chamfer_kernel(%arg0: i32, %arg1: i32, %arg2: i32, %arg3: memref<1x256x3xf32, #tpu.memory_space<vmem>>, %arg4: memref<1x3x256xf32, #tpu.memory_space<vmem>>, %arg5: memref<1x256x3xf32, #tpu.memory_space<vmem>>, %arg6: memref<2x2xf32, #tpu.memory_space<smem>>, %arg7: memref<256x1xf32, #tpu.memory_space<vmem>>, %arg8: memref<256x1xf32, #tpu.memory_space<vmem>>, %arg9: memref<2x1x256xf32, #tpu.memory_space<vmem>>, %arg10: memref<2x1x256xf32, #tpu.memory_space<vmem>>, %arg11: memref<256x1xf32, #tpu.memory_space<vmem>>, %arg12: memref<1x256xf32, #tpu.memory_space<vmem>>) attributes {dimension_semantics = [#tpu.dimension_semantics<arbitrary>, #tpu.dimension_semantics<arbitrary>, #tpu.dimension_semantics<arbitrary>], iteration_bounds = array<i64: 2, 2, 2>, scalar_prefetch = 0 : i64, scratch_operands = 6 : i64, tpu.core_type = #tpu.core_type<tc>, window_params = [{transform_indices = @transform_0, window_bounds = array<i64: 1, 256, 3>}, {transform_indices = @transform_1, window_bounds = array<i64: 1, 3, 256>}, {transform_indices = @transform_2, window_bounds = array<i64: 1, 256, 3>}, {transform_indices = @transform_3, window_bounds = array<i64: 2, 2>}]} {
    %c0 = arith.constant 0 : index
    %c0_0 = arith.constant 0 : index
    %c0_1 = arith.constant 0 : index
    %0 = vector.load %arg3[%c0, %c0_0, %c0_1] : memref<1x256x3xf32, #tpu.memory_space<vmem>>, vector<1x256x3xf32>
    %1 = vector.shape_cast %0 : vector<1x256x3xf32> to vector<256x3xf32>
    %c0_2 = arith.constant 0 : index
    %c0_3 = arith.constant 0 : index
    %c0_4 = arith.constant 0 : index
    %2 = vector.load %arg5[%c0_2, %c0_3, %c0_4] : memref<1x256x3xf32, #tpu.memory_space<vmem>>, vector<1x256x3xf32>
    %3 = vector.shape_cast %2 : vector<1x256x3xf32> to vector<256x3xf32>
    %c0_5 = arith.constant 0 : index
    %c0_6 = arith.constant 0 : index
    %c0_7 = arith.constant 0 : index
    %4 = vector.load %arg4[%c0_5, %c0_6, %c0_7] : memref<1x3x256xf32, #tpu.memory_space<vmem>>, vector<1x3x256xf32>
    %5 = vector.shape_cast %4 : vector<1x3x256xf32> to vector<3x256xf32>
    %6 = arith.mulf %1, %1 : vector<256x3xf32>
    %cst = arith.constant dense<0.000000e+00> : vector<256xf32>
    %7 = vector.multi_reduction <add>, %6, %cst [1] : vector<256x3xf32> to vector<256xf32>
    %8 = vector.shape_cast %7 : vector<256xf32> to vector<256x1xf32>
    %9 = arith.mulf %5, %5 : vector<3x256xf32>
    %cst_8 = arith.constant dense<0.000000e+00> : vector<256xf32>
    %10 = vector.multi_reduction <add>, %9, %cst_8 [0] : vector<3x256xf32> to vector<256xf32>
    %11 = vector.shape_cast %10 : vector<256xf32> to vector<1x256xf32>
    %12 = vector.extract_strided_slice %1 {offsets = [0, 0], sizes = [256, 1], strides = [1, 1]} : vector<256x3xf32> to vector<256x1xf32>
    %13 = vector.extract_strided_slice %5 {offsets = [0, 0], sizes = [1, 256], strides = [1, 1]} : vector<3x256xf32> to vector<1x256xf32>
    %14 = vector.broadcast %12 : vector<256x1xf32> to vector<256x256xf32>
    %15 = vector.broadcast %13 : vector<1x256xf32> to vector<256x256xf32>
    %16 = arith.mulf %14, %15 : vector<256x256xf32>
    %17 = vector.extract_strided_slice %1 {offsets = [0, 1], sizes = [256, 1], strides = [1, 1]} : vector<256x3xf32> to vector<256x1xf32>
    %18 = vector.extract_strided_slice %5 {offsets = [1, 0], sizes = [1, 256], strides = [1, 1]} : vector<3x256xf32> to vector<1x256xf32>
    %19 = vector.broadcast %17 : vector<256x1xf32> to vector<256x256xf32>
    %20 = vector.broadcast %18 : vector<1x256xf32> to vector<256x256xf32>
    %21 = arith.mulf %19, %20 : vector<256x256xf32>
    %22 = arith.addf %16, %21 : vector<256x256xf32>
    %23 = vector.extract_strided_slice %1 {offsets = [0, 2], sizes = [256, 1], strides = [1, 1]} : vector<256x3xf32> to vector<256x1xf32>
    %24 = vector.extract_strided_slice %5 {offsets = [2, 0], sizes = [1, 256], strides = [1, 1]} : vector<3x256xf32> to vector<1x256xf32>
    %25 = vector.broadcast %23 : vector<256x1xf32> to vector<256x256xf32>
    %26 = vector.broadcast %24 : vector<1x256xf32> to vector<256x256xf32>
    %27 = arith.mulf %25, %26 : vector<256x256xf32>
    %28 = arith.addf %22, %27 : vector<256x256xf32>
    %29 = vector.broadcast %8 : vector<256x1xf32> to vector<256x256xf32>
    %30 = vector.broadcast %11 : vector<1x256xf32> to vector<256x256xf32>
    %31 = arith.addf %29, %30 : vector<256x256xf32>
    %cst_9 = arith.constant 2.000000e+00 : f32
    %32 = vector.broadcast %cst_9 : f32 to vector<256x256xf32>
    %33 = arith.mulf %32, %28 : vector<256x256xf32>
    %34 = arith.subf %31, %33 : vector<256x256xf32>
    %cst_10 = arith.constant -5.000000e-01 : f32
    %35 = vector.broadcast %cst_10 : f32 to vector<256x256xf32>
    %36 = arith.mulf %34, %35 : vector<256x256xf32>
    %37 = math.exp %36 : vector<256x256xf32>
    %cst_11 = arith.constant 4.000000e-01 : f32
    %38 = vector.broadcast %cst_11 : f32 to vector<256x256xf32>
    %39 = arith.mulf %37, %38 : vector<256x256xf32>
    %cst_12 = arith.constant dense<0.000000e+00> : vector<256xf32>
    %40 = vector.multi_reduction <add>, %39, %cst_12 [1] : vector<256x256xf32> to vector<256xf32>
    %41 = vector.shape_cast %40 : vector<256xf32> to vector<256x1xf32>
    %cst_13 = arith.constant dense<0.000000e+00> : vector<256xf32>
    %42 = vector.multi_reduction <add>, %39, %cst_13 [0] : vector<256x256xf32> to vector<256xf32>
    %43 = vector.shape_cast %42 : vector<256xf32> to vector<1x256xf32>
    %44 = arith.mulf %3, %3 : vector<256x3xf32>
    %cst_14 = arith.constant dense<0.000000e+00> : vector<256xf32>
    %45 = vector.multi_reduction <add>, %44, %cst_14 [1] : vector<256x3xf32> to vector<256xf32>
    %46 = vector.shape_cast %45 : vector<256xf32> to vector<256x1xf32>
    %47 = arith.mulf %5, %5 : vector<3x256xf32>
    %cst_15 = arith.constant dense<0.000000e+00> : vector<256xf32>
    %48 = vector.multi_reduction <add>, %47, %cst_15 [0] : vector<3x256xf32> to vector<256xf32>
    %49 = vector.shape_cast %48 : vector<256xf32> to vector<1x256xf32>
    %50 = vector.extract_strided_slice %3 {offsets = [0, 0], sizes = [256, 1], strides = [1, 1]} : vector<256x3xf32> to vector<256x1xf32>
    %51 = vector.extract_strided_slice %5 {offsets = [0, 0], sizes = [1, 256], strides = [1, 1]} : vector<3x256xf32> to vector<1x256xf32>
    %52 = vector.broadcast %50 : vector<256x1xf32> to vector<256x256xf32>
    %53 = vector.broadcast %51 : vector<1x256xf32> to vector<256x256xf32>
    %54 = arith.mulf %52, %53 : vector<256x256xf32>
    %55 = vector.extract_strided_slice %3 {offsets = [0, 1], sizes = [256, 1], strides = [1, 1]} : vector<256x3xf32> to vector<256x1xf32>
    %56 = vector.extract_strided_slice %5 {offsets = [1, 0], sizes = [1, 256], strides = [1, 1]} : vector<3x256xf32> to vector<1x256xf32>
    %57 = vector.broadcast %55 : vector<256x1xf32> to vector<256x256xf32>
    %58 = vector.broadcast %56 : vector<1x256xf32> to vector<256x256xf32>
    %59 = arith.mulf %57, %58 : vector<256x256xf32>
    %60 = arith.addf %54, %59 : vector<256x256xf32>
    %61 = vector.extract_strided_slice %3 {offsets = [0, 2], sizes = [256, 1], strides = [1, 1]} : vector<256x3xf32> to vector<256x1xf32>
    %62 = vector.extract_strided_slice %5 {offsets = [2, 0], sizes = [1, 256], strides = [1, 1]} : vector<3x256xf32> to vector<1x256xf32>
    %63 = vector.broadcast %61 : vector<256x1xf32> to vector<256x256xf32>
    %64 = vector.broadcast %62 : vector<1x256xf32> to vector<256x256xf32>
    %65 = arith.mulf %63, %64 : vector<256x256xf32>
    %66 = arith.addf %60, %65 : vector<256x256xf32>
    %67 = vector.broadcast %46 : vector<256x1xf32> to vector<256x256xf32>
    %68 = vector.broadcast %49 : vector<1x256xf32> to vector<256x256xf32>
    %69 = arith.addf %67, %68 : vector<256x256xf32>
    %cst_16 = arith.constant 2.000000e+00 : f32
    %70 = vector.broadcast %cst_16 : f32 to vector<256x256xf32>
    %71 = arith.mulf %70, %66 : vector<256x256xf32>
    %72 = arith.subf %69, %71 : vector<256x256xf32>
    %cst_17 = arith.constant dense<0x7F800000> : vector<256xf32>
    %73 = vector.multi_reduction <minimumf>, %72, %cst_17 [1] : vector<256x256xf32> to vector<256xf32>
    %74 = vector.shape_cast %73 : vector<256xf32> to vector<256x1xf32>
    %cst_18 = arith.constant dense<0x7F800000> : vector<256xf32>
    %75 = vector.multi_reduction <minimumf>, %72, %cst_18 [0] : vector<256x256xf32> to vector<256xf32>
    %76 = vector.shape_cast %75 : vector<256xf32> to vector<1x256xf32>
    %c0_i32 = arith.constant 0 : i32
    %77 = arith.cmpi eq, %arg1, %c0_i32 : i32
    %c0_i32_19 = arith.constant 0 : i32
    %78 = arith.cmpi eq, %arg2, %c0_i32_19 : i32
    %79 = arith.andi %77, %78 : i1
    %80 = arith.extui %79 : i1 to i32
    %c0_i32_20 = arith.constant 0 : i32
    %81 = arith.cmpi ne, %80, %c0_i32_20 : i32
    scf.if %81 {
      %cst_35 = arith.constant 0.000000e+00 : f32
      %105 = vector.broadcast %cst_35 : f32 to vector<256x1xf32>
      %c0_36 = arith.constant 0 : index
      %c0_37 = arith.constant 0 : index
      %106 = vector.load %arg11[%c0_36, %c0_37] : memref<256x1xf32, #tpu.memory_space<vmem>>, vector<256x1xf32>
      tpu.vector_store %arg11[%c0_36, %c0_37], %105 {strides = array<i32>} : memref<256x1xf32, #tpu.memory_space<vmem>>, vector<256x1xf32>,
      %cst_38 = arith.constant 0.000000e+00 : f32
      %107 = vector.broadcast %cst_38 : f32 to vector<1x256xf32>
      %c0_39 = arith.constant 0 : index
      %c0_40 = arith.constant 0 : index
      %108 = vector.load %arg12[%c0_39, %c0_40] : memref<1x256xf32, #tpu.memory_space<vmem>>, vector<1x256xf32>
      tpu.vector_store %arg12[%c0_39, %c0_40], %107 {strides = array<i32>} : memref<1x256xf32, #tpu.memory_space<vmem>>, vector<1x256xf32>,
    } else {
    }
    %c0_i32_21 = arith.constant 0 : i32
    %82 = arith.cmpi eq, %arg2, %c0_i32_21 : i32
    %83 = arith.extui %82 : i1 to i32
    %c0_i32_22 = arith.constant 0 : i32
    %84 = arith.cmpi ne, %83, %c0_i32_22 : i32
    scf.if %84 {
      %c0_35 = arith.constant 0 : index
      %c0_36 = arith.constant 0 : index
      %105 = vector.load %arg7[%c0_35, %c0_36] : memref<256x1xf32, #tpu.memory_space<vmem>>, vector<256x1xf32>
      tpu.vector_store %arg7[%c0_35, %c0_36], %41 {strides = array<i32>} : memref<256x1xf32, #tpu.memory_space<vmem>>, vector<256x1xf32>,
      %c0_37 = arith.constant 0 : index
      %c0_38 = arith.constant 0 : index
      %106 = vector.load %arg8[%c0_37, %c0_38] : memref<256x1xf32, #tpu.memory_space<vmem>>, vector<256x1xf32>
      tpu.vector_store %arg8[%c0_37, %c0_38], %74 {strides = array<i32>} : memref<256x1xf32, #tpu.memory_space<vmem>>, vector<256x1xf32>,
    } else {
    }
    %c0_i32_23 = arith.constant 0 : i32
    %85 = arith.cmpi sgt, %arg2, %c0_i32_23 : i32
    %86 = arith.extui %85 : i1 to i32
    %c0_i32_24 = arith.constant 0 : i32
    %87 = arith.cmpi ne, %86, %c0_i32_24 : i32
    scf.if %87 {
      %c0_35 = arith.constant 0 : index
      %c0_36 = arith.constant 0 : index
      %105 = vector.load %arg7[%c0_35, %c0_36] : memref<256x1xf32, #tpu.memory_space<vmem>>, vector<256x1xf32>
      %106 = arith.addf %105, %41 : vector<256x1xf32>
      %c0_37 = arith.constant 0 : index
      %c0_38 = arith.constant 0 : index
      %107 = vector.load %arg7[%c0_37, %c0_38] : memref<256x1xf32, #tpu.memory_space<vmem>>, vector<256x1xf32>
      tpu.vector_store %arg7[%c0_37, %c0_38], %106 {strides = array<i32>} : memref<256x1xf32, #tpu.memory_space<vmem>>, vector<256x1xf32>,
      %c0_39 = arith.constant 0 : index
      %c0_40 = arith.constant 0 : index
      %108 = vector.load %arg8[%c0_39, %c0_40] : memref<256x1xf32, #tpu.memory_space<vmem>>, vector<256x1xf32>
      %109 = arith.minimumf %108, %74 : vector<256x1xf32>
      %c0_41 = arith.constant 0 : index
      %c0_42 = arith.constant 0 : index
      %110 = vector.load %arg8[%c0_41, %c0_42] : memref<256x1xf32, #tpu.memory_space<vmem>>, vector<256x1xf32>
      tpu.vector_store %arg8[%c0_41, %c0_42], %109 {strides = array<i32>} : memref<256x1xf32, #tpu.memory_space<vmem>>, vector<256x1xf32>,
    } else {
    }
    %c0_i32_25 = arith.constant 0 : i32
    %88 = arith.cmpi eq, %arg1, %c0_i32_25 : i32
    %89 = arith.extui %88 : i1 to i32
    %c0_i32_26 = arith.constant 0 : i32
    %90 = arith.cmpi ne, %89, %c0_i32_26 : i32
    scf.if %90 {
      %105 = arith.index_cast %arg2 : i32 to index
      %c0_35 = arith.constant 0 : index
      %c0_36 = arith.constant 0 : index
      %106 = vector.load %arg9[%105, %c0_35, %c0_36] : memref<2x1x256xf32, #tpu.memory_space<vmem>>, vector<1x1x256xf32>
      %107 = vector.shape_cast %106 : vector<1x1x256xf32> to vector<1x256xf32>
      %108 = vector.shape_cast %43 : vector<1x256xf32> to vector<1x1x256xf32>
      tpu.vector_store %arg9[%105, %c0_35, %c0_36], %108 {strides = array<i32>} : memref<2x1x256xf32, #tpu.memory_space<vmem>>, vector<1x1x256xf32>,
      %109 = arith.index_cast %arg2 : i32 to index
      %c0_37 = arith.constant 0 : index
      %c0_38 = arith.constant 0 : index
      %110 = vector.load %arg10[%109, %c0_37, %c0_38] : memref<2x1x256xf32, #tpu.memory_space<vmem>>, vector<1x1x256xf32>
      %111 = vector.shape_cast %110 : vector<1x1x256xf32> to vector<1x256xf32>
      %112 = vector.shape_cast %76 : vector<1x256xf32> to vector<1x1x256xf32>
      tpu.vector_store %arg10[%109, %c0_37, %c0_38], %112 {strides = array<i32>} : memref<2x1x256xf32, #tpu.memory_space<vmem>>, vector<1x1x256xf32>,
    } else {
    }
    %c0_i32_27 = arith.constant 0 : i32
    %91 = arith.cmpi sgt, %arg1, %c0_i32_27 : i32
    %92 = arith.extui %91 : i1 to i32
    %c0_i32_28 = arith.constant 0 : i32
    %93 = arith.cmpi ne, %92, %c0_i32_28 : i32
    scf.if %93 {
      %105 = arith.index_cast %arg2 : i32 to index
      %c0_35 = arith.constant 0 : index
      %c0_36 = arith.constant 0 : index
      %106 = vector.load %arg9[%105, %c0_35, %c0_36] : memref<2x1x256xf32, #tpu.memory_space<vmem>>, vector<1x1x256xf32>
      %107 = vector.shape_cast %106 : vector<1x1x256xf32> to vector<1x256xf32>
      %108 = arith.addf %107, %43 : vector<1x256xf32>
      %109 = arith.index_cast %arg2 : i32 to index
      %c0_37 = arith.constant 0 : index
      %c0_38 = arith.constant 0 : index
      %110 = vector.load %arg9[%109, %c0_37, %c0_38] : memref<2x1x256xf32, #tpu.memory_space<vmem>>, vector<1x1x256xf32>
      %111 = vector.shape_cast %110 : vector<1x1x256xf32> to vector<1x256xf32>
      %112 = vector.shape_cast %108 : vector<1x256xf32> to vector<1x1x256xf32>
      tpu.vector_store %arg9[%109, %c0_37, %c0_38], %112 {strides = array<i32>} : memref<2x1x256xf32, #tpu.memory_space<vmem>>, vector<1x1x256xf32>,
      %113 = arith.index_cast %arg2 : i32 to index
      %c0_39 = arith.constant 0 : index
      %c0_40 = arith.constant 0 : index
      %114 = vector.load %arg10[%113, %c0_39, %c0_40] : memref<2x1x256xf32, #tpu.memory_space<vmem>>, vector<1x1x256xf32>
      %115 = vector.shape_cast %114 : vector<1x1x256xf32> to vector<1x256xf32>
      %116 = arith.minimumf %115, %76 : vector<1x256xf32>
      %117 = arith.index_cast %arg2 : i32 to index
      %c0_41 = arith.constant 0 : index
      %c0_42 = arith.constant 0 : index
      %118 = vector.load %arg10[%117, %c0_41, %c0_42] : memref<2x1x256xf32, #tpu.memory_space<vmem>>, vector<1x1x256xf32>
      %119 = vector.shape_cast %118 : vector<1x1x256xf32> to vector<1x256xf32>
      %120 = vector.shape_cast %116 : vector<1x256xf32> to vector<1x1x256xf32>
      tpu.vector_store %arg10[%117, %c0_41, %c0_42], %120 {strides = array<i32>} : memref<2x1x256xf32, #tpu.memory_space<vmem>>, vector<1x1x256xf32>,
    } else {
    }
    %c1_i32 = arith.constant 1 : i32
    %94 = arith.cmpi eq, %arg2, %c1_i32 : i32
    %95 = arith.extui %94 : i1 to i32
    %c0_i32_29 = arith.constant 0 : i32
    %96 = arith.cmpi ne, %95, %c0_i32_29 : i32
    scf.if %96 {
      %c0_35 = arith.constant 0 : index
      %c0_36 = arith.constant 0 : index
      %105 = vector.load %arg7[%c0_35, %c0_36] : memref<256x1xf32, #tpu.memory_space<vmem>>, vector<256x1xf32>
      %cst_37 = arith.constant 0.001953125 : f32
      %106 = vector.broadcast %cst_37 : f32 to vector<256x1xf32>
      %107 = arith.mulf %105, %106 : vector<256x1xf32>
      %cst_38 = arith.constant 5.000000e-03 : f32
      %108 = vector.broadcast %cst_38 : f32 to vector<256x1xf32>
      %109 = arith.cmpf ogt, %107, %108 : vector<256x1xf32>
      %110 = arith.extui %109 : vector<256x1xi1> to vector<256x1xi32>
      %111 = arith.sitofp %110 : vector<256x1xi32> to vector<256x1xf32>
      %c0_39 = arith.constant 0 : index
      %c0_40 = arith.constant 0 : index
      %112 = vector.load %arg11[%c0_39, %c0_40] : memref<256x1xf32, #tpu.memory_space<vmem>>, vector<256x1xf32>
      %c0_41 = arith.constant 0 : index
      %c0_42 = arith.constant 0 : index
      %113 = vector.load %arg8[%c0_41, %c0_42] : memref<256x1xf32, #tpu.memory_space<vmem>>, vector<256x1xf32>
      %cst_43 = arith.constant 0.00999999977 : f32
      %114 = vector.broadcast %cst_43 : f32 to vector<256x1xf32>
      %115 = arith.subf %113, %114 : vector<256x1xf32>
      %cst_44 = arith.constant 0.000000e+00 : f32
      %116 = vector.broadcast %cst_44 : f32 to vector<256x1xf32>
      %117 = arith.maximumf %115, %116 : vector<256x1xf32>
      %118 = arith.mulf %117, %111 : vector<256x1xf32>
      %119 = arith.addf %112, %118 : vector<256x1xf32>
      %c0_45 = arith.constant 0 : index
      %c0_46 = arith.constant 0 : index
      %120 = vector.load %arg11[%c0_45, %c0_46] : memref<256x1xf32, #tpu.memory_space<vmem>>, vector<256x1xf32>
      tpu.vector_store %arg11[%c0_45, %c0_46], %119 {strides = array<i32>} : memref<256x1xf32, #tpu.memory_space<vmem>>, vector<256x1xf32>,
    } else {
    }
    %c1_i32_30 = arith.constant 1 : i32
    %97 = arith.cmpi eq, %arg1, %c1_i32_30 : i32
    %98 = arith.extui %97 : i1 to i32
    %c0_i32_31 = arith.constant 0 : i32
    %99 = arith.cmpi ne, %98, %c0_i32_31 : i32
    scf.if %99 {
      %105 = arith.index_cast %arg2 : i32 to index
      %c0_35 = arith.constant 0 : index
      %c0_36 = arith.constant 0 : index
      %106 = vector.load %arg9[%105, %c0_35, %c0_36] : memref<2x1x256xf32, #tpu.memory_space<vmem>>, vector<1x1x256xf32>
      %107 = vector.shape_cast %106 : vector<1x1x256xf32> to vector<1x256xf32>
      %cst_37 = arith.constant 0.001953125 : f32
      %108 = vector.broadcast %cst_37 : f32 to vector<1x256xf32>
      %109 = arith.mulf %107, %108 : vector<1x256xf32>
      %cst_38 = arith.constant 5.000000e-03 : f32
      %110 = vector.broadcast %cst_38 : f32 to vector<1x256xf32>
      %111 = arith.cmpf ogt, %109, %110 : vector<1x256xf32>
      %112 = arith.extui %111 : vector<1x256xi1> to vector<1x256xi32>
      %113 = arith.sitofp %112 : vector<1x256xi32> to vector<1x256xf32>
      %c0_39 = arith.constant 0 : index
      %c0_40 = arith.constant 0 : index
      %114 = vector.load %arg12[%c0_39, %c0_40] : memref<1x256xf32, #tpu.memory_space<vmem>>, vector<1x256xf32>
      %115 = arith.index_cast %arg2 : i32 to index
      %c0_41 = arith.constant 0 : index
      %c0_42 = arith.constant 0 : index
      %116 = vector.load %arg10[%115, %c0_41, %c0_42] : memref<2x1x256xf32, #tpu.memory_space<vmem>>, vector<1x1x256xf32>
      %117 = vector.shape_cast %116 : vector<1x1x256xf32> to vector<1x256xf32>
      %cst_43 = arith.constant 0.00999999977 : f32
      %118 = vector.broadcast %cst_43 : f32 to vector<1x256xf32>
      %119 = arith.subf %117, %118 : vector<1x256xf32>
      %cst_44 = arith.constant 0.000000e+00 : f32
      %120 = vector.broadcast %cst_44 : f32 to vector<1x256xf32>
      %121 = arith.maximumf %119, %120 : vector<1x256xf32>
      %122 = arith.mulf %121, %113 : vector<1x256xf32>
      %123 = arith.addf %114, %122 : vector<1x256xf32>
      %c0_45 = arith.constant 0 : index
      %c0_46 = arith.constant 0 : index
      %124 = vector.load %arg12[%c0_45, %c0_46] : memref<1x256xf32, #tpu.memory_space<vmem>>, vector<1x256xf32>
      tpu.vector_store %arg12[%c0_45, %c0_46], %123 {strides = array<i32>} : memref<1x256xf32, #tpu.memory_space<vmem>>, vector<1x256xf32>,
    } else {
    }
    %c1_i32_32 = arith.constant 1 : i32
    %100 = arith.cmpi eq, %arg1, %c1_i32_32 : i32
    %c1_i32_33 = arith.constant 1 : i32
    %101 = arith.cmpi eq, %arg2, %c1_i32_33 : i32
    %102 = arith.andi %100, %101 : i1
    %103 = arith.extui %102 : i1 to i32
    %c0_i32_34 = arith.constant 0 : i32
    %104 = arith.cmpi ne, %103, %c0_i32_34 : i32
    scf.if %104 {
      %c0_35 = arith.constant 0 : index
      %c0_36 = arith.constant 0 : index
      %105 = vector.load %arg11[%c0_35, %c0_36] : memref<256x1xf32, #tpu.memory_space<vmem>>, vector<256x1xf32>
      %106 = vector.shape_cast %105 : vector<256x1xf32> to vector<1x256x1xf32>
      %cst_37 = arith.constant dense<0.000000e+00> : vector<1xf32>
      %107 = vector.multi_reduction <add>, %106, %cst_37 [1, 2] : vector<1x256x1xf32> to vector<1xf32>
      %108 = vector.shape_cast %107 : vector<1xf32> to vector<1x1x1xf32>
      %109 = vector.extract %108[0, 0, 0] : f32 from vector<1x1x1xf32>
      %110 = arith.index_cast %arg0 : i32 to index
      %c0_38 = arith.constant 0 : index
      %111 = memref.load %arg6[%110, %c0_38] : memref<2x2xf32, #tpu.memory_space<smem>>
      memref.store %109, %arg6[%110, %c0_38] : memref<2x2xf32, #tpu.memory_space<smem>>
      %c0_39 = arith.constant 0 : index
      %c0_40 = arith.constant 0 : index
      %112 = vector.load %arg12[%c0_39, %c0_40] : memref<1x256xf32, #tpu.memory_space<vmem>>, vector<1x256xf32>
      %113 = vector.shape_cast %112 : vector<1x256xf32> to vector<1x1x256xf32>
      %cst_41 = arith.constant dense<0.000000e+00> : vector<1xf32>
      %114 = vector.multi_reduction <add>, %113, %cst_41 [1, 2] : vector<1x1x256xf32> to vector<1xf32>
      %115 = vector.shape_cast %114 : vector<1xf32> to vector<1x1x1xf32>
      %116 = vector.extract %115[0, 0, 0] : f32 from vector<1x1x1xf32>
      %117 = arith.index_cast %arg0 : i32 to index
      %c1 = arith.constant 1 : index
      %118 = memref.load %arg6[%117, %c1] : memref<2x2xf32, #tpu.memory_space<smem>>
      memref.store %116, %arg6[%117, %c1] : memref<2x2xf32, #tpu.memory_space<smem>>
    } else {
    }
    return
  }
  func.func @transform_0(%arg0: i32, %arg1: i32, %arg2: i32) -> (i32, i32, i32) {
    %c0_i32 = arith.constant 0 : i32
    %c0_i32_0 = arith.constant 0 : i32
    return %arg0, %arg1, %c0_i32 : i32, i32, i32
  }
  func.func @transform_1(%arg0: i32, %arg1: i32, %arg2: i32) -> (i32, i32, i32) {
    %c0_i32 = arith.constant 0 : i32
    %c0_i32_0 = arith.constant 0 : i32
    return %arg0, %c0_i32, %arg2 : i32, i32, i32
  }
  func.func @transform_2(%arg0: i32, %arg1: i32, %arg2: i32) -> (i32, i32, i32) {
    %c0_i32 = arith.constant 0 : i32
    %c0_i32_0 = arith.constant 0 : i32
    return %arg0, %arg1, %c0_i32 : i32, i32, i32
  }
  func.func @transform_3(%arg0: i32, %arg1: i32, %arg2: i32) -> (i32, i32) {
    %c0_i32 = arith.constant 0 : i32
    %c0_i32_0 = arith.constant 0 : i32
    %c0_i32_1 = arith.constant 0 : i32
    return %c0_i32, %c0_i32_0 : i32, i32
  }
}

</mosaic_0001>

<bundles_post_ra>
// kernel: tpu_custom_call.1
= control target key start
LH: loop header
LB: loop body
LE: loop exit
PB: predicated region body
PF: predicated region fallthrough
CT: control target
= control target key end

     0   :  { %8 = vsyncpa [#allocation9], 0  ;;  %s4605_s12 = smov 0   ;;  %s4607_s13 = smov 0   ;;  %s8655_s0 = inlined_call_operand.vmem [shape: f32[2,512,3], index: 0, kind: input, shape index: {}]   ;;  %s8656_s1 = inlined_call_operand.vmem [shape: f32[2,3,512], index: 1, kind: input, shape index: {}]   ;;  %s8657_s2 = inlined_call_operand.vmem [shape: f32[2,512,3], index: 2, kind: input, shape index: {}]   ;;  %s8658_s3 = inlined_call_operand.hbm [shape: f32[2,2], index: 3, kind: output, shape index: {}]  }
   0x1   :  { %s4609_s14 = smov 0   ;;  %s4611_s15 = smov 0  }
   0x2   :  { %s4613_s16 = smov 0   ;;  %s4615_s17 = smov 0  }
   0x3   :  { %s4617_s18 = smov 0  }
   0x4 LB: > { %s4196_s19 = sadd.s32 4294967295, %s4574_s18   ;;  %s26_s20 = sadd.s32 1, %s4562_s15  ;;  %s4574_s18 = sphi %s4617_s18, %s14_s18   ;;  %s4570_s17 = sphi %s4615_s17, %s9483_s17   ;;  %s4566_s16 = sphi %s4613_s16, %s9482_s16   ;;  %s4562_s15 = sphi %s4611_s15, %s9481_s15   ;;  %s4558_s14 = sphi %s4609_s14, %s9480_s14   ;;  %s4554_s13 = sphi %s4607_s13, %s9479_s13   ;;  %s4550_s12 = sphi %s4605_s12, %s9478_s12  }
   0x5   : > { %p27_p0 = scmp.ge.s32.totalorder %s26_s20, 2  ;;  %s29_s21 = sadd.s32 1, %s4566_s16 }
   0x6   : > { %p4199_p1 = scmp.ge.s32.totalorder %s4574_s18, 1  ;;  %p193_p2 = scmp.lt.s32.totalorder %s4574_s18, 9 }
   0x7   : > { %s9485_s20 = smov (%p27_p0, %s26_s20), 0  ;;  %s9487_s21 = smov (!%p27_p0, %s29_s21), %s4566_s16 }
   0x8   : > { %p31_p3 = scmp.ge.s32.totalorder %s9487_s21, 2  ;;  %s33_s22 = sadd.s32 1, %s4570_s17 }
   0x9   : > { %p194_p4 = pnand %p4199_p1, %p193_p2 }
   0xa   : > { %s9489_s21 = smov (%p31_p3, %s9487_s21), 0  ;;  %s9491_s22 = smov (!%p31_p3, %s33_s22), %s4570_s17 }
   0xb   : > { %p35_p5 = scmp.ge.s32.totalorder %s9491_s22, 2  ;;  %197 = sbr.rel (%p194_p4) target bundleno = 1601 (0x641), region = 32 }
   0xd   : > { %s9493_s22 = smov (%p35_p5, %s9491_s22), 0 }
  0x12   : > { %s4200_s23 = sshll.u32 %s4554_s13, 5  ;;  %p235_p6 = scmp.lt.s32.totalorder %s4558_s14, 1  ;;  %v8666_v0 = vmov 0   ;;  %v8659_v1 = vmov 1   ;;  %vm361_vm0 = vcmask 23552   ;;  %vm462_vm1 = vcmask 1042432  }
  0x13   : > { %p237_p7 = scmp.lt.s32.totalorder %s4200_s23, 63  ;;  %4365 = vset.pattern.permute.xlu1 %v8666_v0  ;;  %4367 = vset.pattern.permute.xlu0 %v8659_v1  ;;  %s5015_s4 = sshll.u32 %s4550_s12, 1 }
  0x14   : > { %s4658_s24 = scalar_select %p235_p6, %s4558_s14, 1 }
  0x15   : > { %s9495_s23 = smov (!%p237_p7, %s4200_s23), 63  ;;  %p247_p8 = scmp.lt.s32.totalorder %s5015_s4, 3 }
  0x16   : > { %s4201_s25 = sshll.u32 %s4658_s24, 6  ;;  %s4204_s6 = sshll.u32 %s4658_s24, 2 }
  0x17   : > { %s4662_s26 = sadd.s32 %s4201_s25, %s9495_s23  ;;  %p3112_p9 = scmp.eq.s32.totalorder %s4554_s13, 0 }
  0x18   : > { %s4202_s27 = sshll.u32 %s4662_s26, 3  ;;  %p3113_p10 = scmp.eq.s32.totalorder %s4550_s12, 0 }
  0x19   : > { %s4670_s30 = scalar_lea.vmem %s8655_s0, %s4202_s27  ;;  %s6433_s25 = scalar_lea.vmem %s8657_s2, %s4202_s27 }
  0x1a   : > { %v4673_v2 = vld [vmem:[%s4670_s30 + $0x10] sm:$0xff]  ;;  %v4676_v3 = vld [vmem:[%s4670_s30] sm:$0xff]  ;;  %v4679_v4 = vld [vmem:[%s4670_s30 + $0x18] sm:$0xff]  ;;  %s248_s5 = scalar_select %p247_p8, %s5015_s4, 3 }
  0x1b   : > { %v331_v5 = vmul.f32 %v4673_v2, %v4673_v2  ;;  %v329_v6 = vmul.f32 %v4676_v3, %v4676_v3  ;;  %v332_v7 = vmul.f32 %v4679_v4, %v4679_v4  ;;  %v4688_v8 = vld [vmem:[%s4670_s30 + $0x8] sm:$0xff]  ;;  %v4696_v11 = vld [vmem:[%s4670_s30 + $0x20] sm:$0xff]  ;;  %v4707_v18 = vld [vmem:[%s4670_s30 + $0x38] sm:$0xff]  ;;  %p8125_p11 = pnand %p3113_p10, %p3112_p9 }
  0x1c   : > { %v330_v9 = vmul.f32 %v4688_v8, %v4688_v8  ;;  %v4693_v10 = vld [vmem:[%s4670_s30 + $0x28] sm:$0xff]  ;;  %v333_v17 = vmul.f32 %v4696_v11, %v4696_v11  ;;  %v4710_v19 = vld [vmem:[%s4670_s30 + $0x30] sm:$0xff]  ;;  %v336_v22 = vmul.f32 %v4707_v18, %v4707_v18  ;;  %v4722_v25 = vld [vmem:[%s4670_s30 + $0x40] sm:$0xff]  ;;  %s250_s7 = sadd.s32 %s4204_s6, %s248_s5  ;;  %vm3118_vm2 = vcmask (!%p8125_p11), 7168  }
  0x1d   : > { %v368_v12 = vsel %vm361_vm0, %v331_v5, 0.0  ;;  %v362_v13 = vsel %vm361_vm0, %v329_v6, 0.0  ;;  %v371_v14 = vsel %vm361_vm0, %v332_v7, 0.0  ;;  %v334_v16 = vmul.f32 %v4693_v10, %v4693_v10  ;;  %v4719_v24 = vld [vmem:[%s4670_s30 + $0x48] sm:$0xff]  ;;  %v4731_v30 = vld [vmem:[%s4670_s30 + $0x58] sm:$0xff]  ;;  %v4734_v31 = vld [vmem:[%s4670_s30 + $0x50] sm:$0xff] }
  0x1e   : > { %369 = vadd.xlane.f32.xlu1 %v368_v12  ;;  %363 = vadd.xlane.f32.xlu0 %v362_v13  ;;  %v365_v15 = vsel %vm361_vm0, %v330_v9, 0.0  ;;  %v374_v21 = vsel %vm361_vm0, %v333_v17, 0.0  ;;  %v335_v23 = vmul.f32 %v4710_v19, %v4710_v19  ;;  %v383_v26 = vsel %vm361_vm0, %v336_v22, 0.0  ;;  %v4743_v36 = vld [vmem:[%s4670_s30 + $0x68] sm:$0xff]  ;;  %v4746_v37 = vld [vmem:[%s4670_s30 + $0x60] sm:$0xff]  ;;  %v4755_v42 = vld [vmem:[%s4670_s30 + $0x78] sm:$0xff] }
  0x1f   : > { %v377_v20 = vsel %vm361_vm0, %v334_v16, 0.0  ;;  %v338_v28 = vmul.f32 %v4719_v24, %v4719_v24  ;;  %v337_v29 = vmul.f32 %v4722_v25, %v4722_v25  ;;  %v340_v34 = vmul.f32 %v4731_v30, %v4731_v30  ;;  %v4758_v43 = vld [vmem:[%s4670_s30 + $0x70] sm:$0xff]  ;;  %v4767_v48 = vld [vmem:[%s4670_s30 + $0x88] sm:$0xff]  ;;  %v4770_v49 = vld [vmem:[%s4670_s30 + $0x80] sm:$0xff]  ;;  %s4205_s8 = sshll.u32 %s250_s7, 2 }
  0x20   : > { %v380_v27 = vsel %vm361_vm0, %v335_v23, 0.0  ;;  %v339_v35 = vmul.f32 %v4734_v31, %v4734_v31  ;;  %v342_v40 = vmul.f32 %v4743_v36, %v4743_v36  ;;  %v341_v41 = vmul.f32 %v4746_v37, %v4746_v37  ;;  %v4779_v54 = vld [vmem:[%s4670_s30 + $0x98] sm:$0xff]  ;;  %v4782_v55 = vld [vmem:[%s4670_s30 + $0x90] sm:$0xff]  ;;  %v4791_v60 = vld [vmem:[%s4670_s30 + $0xa8] sm:$0xff]  ;;  %s252_s11 = scalar_lea.vmem %s8656_s1, %s4205_s8 }
  0x21   : > { %v389_v32 = vsel %vm361_vm0, %v338_v28, 0.0  ;;  %v386_v33 = vsel %vm361_vm0, %v337_v29, 0.0  ;;  %v395_v38 = vsel %vm361_vm0, %v340_v34, 0.0  ;;  %v344_v46 = vmul.f32 %v4755_v42, %v4755_v42  ;;  %v4794_v61 = vld [vmem:[%s4670_s30 + $0xa0] sm:$0xff]  ;;  %v4803_v7 = vld [vmem:[%s4670_s30 + $0xb8] sm:$0xff]  ;;  %v4806_v9 = vld [vmem:[%s4670_s30 + $0xb0] sm:$0xff] }
  0x22   : > { %372 = vadd.xlane.f32.xlu1 %v371_v14  ;;  %366 = vadd.xlane.f32.xlu0 %v365_v15  ;;  %v392_v39 = vsel %vm361_vm0, %v339_v35, 0.0  ;;  %v401_v44 = vsel %vm361_vm0, %v342_v40, 0.0  ;;  %v398_v45 = vsel %vm361_vm0, %v341_v41, 0.0  ;;  %v343_v47 = vmul.f32 %v4758_v43, %v4758_v43  ;;  %v4815_v16 = vld [vmem:[%s4670_s30 + $0xc8] sm:$0xff]  ;;  %v4818_v17 = vld [vmem:[%s4670_s30 + $0xc0] sm:$0xff] }
  0x23   : > { %v407_v50 = vsel %vm361_vm0, %v344_v46, 0.0  ;;  %v346_v52 = vmul.f32 %v4767_v48, %v4767_v48  ;;  %v345_v53 = vmul.f32 %v4770_v49, %v4770_v49  ;;  %v348_v58 = vmul.f32 %v4779_v54, %v4779_v54  ;;  %v4839_v34 = vld [vmem:[%s4670_s30 + $0xe8] sm:$0xff]  ;;  %v4842_v35 = vld [vmem:[%s4670_s30 + $0xe0] sm:$0xff] }
  0x24   : > { %v404_v51 = vsel %vm361_vm0, %v343_v47, 0.0  ;;  %v347_v59 = vmul.f32 %v4782_v55, %v4782_v55  ;;  %v350_v5 = vmul.f32 %v4791_v60, %v4791_v60  ;;  %v349_v6 = vmul.f32 %v4794_v61, %v4794_v61 }
  0x25   : > { %v413_v56 = vsel %vm361_vm0, %v346_v52, 0.0  ;;  %v410_v57 = vsel %vm361_vm0, %v345_v53, 0.0  ;;  %v419_v62 = vsel %vm361_vm0, %v348_v58, 0.0  ;;  %v352_v14 = vmul.f32 %v4803_v7, %v4803_v7 }
  0x26   : > { %378 = vadd.xlane.f32.xlu1 %v377_v20  ;;  %375 = vadd.xlane.f32.xlu0 %v374_v21  ;;  %v416_v63 = vsel %vm361_vm0, %v347_v59, 0.0  ;;  %v425_v12 = vsel %vm361_vm0, %v350_v5, 0.0  ;;  %v422_v13 = vsel %vm361_vm0, %v349_v6, 0.0  ;;  %v351_v15 = vmul.f32 %v4806_v9, %v4806_v9 }
  0x27   : > { %v431_v20 = vsel %vm361_vm0, %v352_v14, 0.0  ;;  %v354_v22 = vmul.f32 %v4815_v16, %v4815_v16  ;;  %v353_v23 = vmul.f32 %v4818_v17, %v4818_v17  ;;  %v358_v40 = vmul.f32 %v4839_v34, %v4839_v34 }
  0x28   : > { %v428_v21 = vsel %vm361_vm0, %v351_v15, 0.0  ;;  %v357_v41 = vmul.f32 %v4842_v35, %v4842_v35  ;;  %v8661_v58 = vmov 2  }
  0x29   : > { %v437_v28 = vsel %vm361_vm0, %v354_v22, 0.0  ;;  %v434_v29 = vsel %vm361_vm0, %v353_v23, 0.0  ;;  %v449_v46 = vsel %vm361_vm0, %v358_v40, 0.0 }
  0x2a   : > { %384 = vadd.xlane.f32.xlu1 %v383_v26  ;;  %381 = vadd.xlane.f32.xlu0 %v380_v27  ;;  %v4827_v26 = vld [vmem:[%s4670_s30 + $0xd8] sm:$0xff]  ;;  %v4830_v27 = vld [vmem:[%s4670_s30 + $0xd0] sm:$0xff]  ;;  %v446_v47 = vsel %vm361_vm0, %v357_v41, 0.0 }
  0x2e   : > { %390 = vadd.xlane.f32.xlu1 %v389_v32  ;;  %387 = vadd.xlane.f32.xlu0 %v386_v33  ;;  %v356_v32 = vmul.f32 %v4827_v26, %v4827_v26  ;;  %v355_v33 = vmul.f32 %v4830_v27, %v4830_v27 }
  0x32   : > { %396 = vadd.xlane.f32.xlu1 %v395_v38  ;;  %393 = vadd.xlane.f32.xlu0 %v392_v39  ;;  %v443_v38 = vsel %vm361_vm0, %v356_v32, 0.0  ;;  %v440_v39 = vsel %vm361_vm0, %v355_v33, 0.0 }
  0x36   : > { %402 = vadd.xlane.f32.xlu1 %v401_v44  ;;  %399 = vadd.xlane.f32.xlu0 %v398_v45  ;;  %v4851_v44 = vld [vmem:[%s4670_s30 + $0xf8] sm:$0xff]  ;;  %v4854_v45 = vld [vmem:[%s4670_s30 + $0xf0] sm:$0xff] }
  0x3a   : > { %408 = vadd.xlane.f32.xlu1 %v407_v50  ;;  %405 = vadd.xlane.f32.xlu0 %v404_v51  ;;  %v360_v50 = vmul.f32 %v4851_v44, %v4851_v44  ;;  %v359_v51 = vmul.f32 %v4854_v45, %v4854_v45 }
  0x3c   : > { %v455_v52 = vsel %vm361_vm0, %v360_v50, 0.0  ;;  %v452_v53 = vsel %vm361_vm0, %v359_v51, 0.0 }
  0x3e   : > { %414 = vadd.xlane.f32.xlu1 %v413_v56  ;;  %411 = vadd.xlane.f32.xlu0 %v410_v57 }
  0x42   : > { %420 = vadd.xlane.f32.xlu1 %v419_v62  ;;  %417 = vadd.xlane.f32.xlu0 %v416_v63 }
  0x46   : > { %426 = vadd.xlane.f32.xlu1 %v425_v12  ;;  %423 = vadd.xlane.f32.xlu0 %v422_v13 }
  0x4a   : > { %432 = vadd.xlane.f32.xlu1 %v431_v20  ;;  %429 = vadd.xlane.f32.xlu0 %v428_v21 }
  0x4e   : > { %438 = vadd.xlane.f32.xlu1 %v437_v28  ;;  %435 = vadd.xlane.f32.xlu0 %v434_v29 }
  0x52   : > { %444 = vadd.xlane.f32.xlu1 %v443_v38  ;;  %441 = vadd.xlane.f32.xlu0 %v440_v39 }
  0x56   : > { %450 = vadd.xlane.f32.xlu1 %v449_v46  ;;  %447 = vadd.xlane.f32.xlu0 %v446_v47 }
  0x5a   : > { %456 = vadd.xlane.f32.xlu1 %v455_v52  ;;  %453 = vadd.xlane.f32.xlu0 %v452_v53 }
  0x6b   : > { %484 = vperm.xlu1 %4365, %v4688_v8  }
  0x6f   : > { %489 = vperm.xlu1 %4365, %v4673_v2  }
  0x70   : > { %725 = vperm.xlu0 %4367, %v4688_v8  }
  0x73   : > { %494 = vperm.xlu1 %4365, %v4679_v4  }
  0x74   : > { %737 = vperm.xlu0 %4367, %v4696_v11  }
  0x77   : > { %499 = vperm.xlu1 %4365, %v4696_v11  }
  0x78   : > { %745 = vperm.xlu0 %4367, %v4710_v19  }
  0x7b   : > { %504 = vperm.xlu1 %4365, %v4693_v10  }
  0x7c   : > { %753 = vperm.xlu0 %4367, %v4722_v25  }
  0x7f   : > { %509 = vperm.xlu1 %4365, %v4710_v19  }
  0x80   : > { %761 = vperm.xlu0 %4367, %v4734_v31  }
  0x83   : > { %514 = vperm.xlu1 %4365, %v4707_v18  }
  0x84   : > { %769 = vperm.xlu0 %4367, %v4746_v37  }
  0x87   : > { %519 = vperm.xlu1 %4365, %v4722_v25  }
  0x88   : > { %777 = vperm.xlu0 %4367, %v4758_v43  }
  0x8b   : > { %529 = vperm.xlu1 %4365, %v4734_v31  }
  0x8c   : > { %785 = vperm.xlu0 %4367, %v4770_v49  }
  0x8f   : > { %539 = vperm.xlu1 %4365, %v4746_v37  }
  0x90   : > { %793 = vperm.xlu0 %4367, %v4782_v55  }
  0x93   : > { %549 = vperm.xlu1 %4365, %v4758_v43  }
  0x94   : > { %801 = vperm.xlu0 %4367, %v4794_v61  }
  0x97   : > { %559 = vperm.xlu1 %4365, %v4770_v49  }
  0x98   : > { %809 = vperm.xlu0 %4367, %v4806_v9  }
  0x9b   : > { %569 = vperm.xlu1 %4365, %v4782_v55  }
  0x9c   : > { %817 = vperm.xlu0 %4367, %v4818_v17  }
  0x9f   : > { %579 = vperm.xlu1 %4365, %v4794_v61  }
  0xa0   : > { %825 = vperm.xlu0 %4367, %v4830_v27  }
  0xa3   : > { %589 = vperm.xlu1 %4365, %v4806_v9  }
  0xa4   : > { %833 = vperm.xlu0 %4367, %v4842_v35  }
  0xa7   : > { %599 = vperm.xlu1 %4365, %v4818_v17  }
  0xa8   : > { %841 = vperm.xlu0 %4367, %v4854_v45  }
  0xab   : > { %v4895_v56 = vpop.xlane.xlu1 %369  ;;  %609 = vperm.xlu1 %4365, %v4830_v27   ;;  %v4898_v57 = vpop.xlane.xlu0 %363 }
  0xac   : > { %4368 = vset.pattern.permute.xlu0 %v8661_v58 }
  0xad   : > { %995 = vperm.xlu0 %4368, %v4676_v3  }
  0xaf   : > { %v4902_v59 = vpop.xlane.xlu1 %372  ;;  %619 = vperm.xlu1 %4365, %v4842_v35   ;;  %v4905_v62 = vpop.xlane.xlu0 %366 }
  0xb1   : > { %1007 = vperm.xlu0 %4368, %v4679_v4  }
  0xb3   : > { %v4908_v63 = vpop.xlane.xlu1 %378  ;;  %629 = vperm.xlu1 %4365, %v4854_v45   ;;  %v4911_v5 = vpop.xlane.xlu0 %375 }
  0xb5   : > { %1015 = vperm.xlu0 %4368, %v4693_v10  }
  0xb7   : > { %v4914_v6 = vpop.xlane.xlu1 %384  ;;  %4366 = vset.pattern.permute.xlu1 %v8659_v1  ;;  %v4917_v12 = vpop.xlane.xlu0 %381 }
  0xb8   : > { %721 = vperm.xlu1 %4366, %v4676_v3  }
  0xb9   : > { %1023 = vperm.xlu0 %4368, %v4707_v18  }
  0xbb   : > { %v4921_v13 = vpop.xlane.xlu1 %390  ;;  %v4923_v14 = vpop.xlane.xlu0 %387 }
  0xbc   : > { %729 = vperm.xlu1 %4366, %v4673_v2  }
  0xbd   : > { %1031 = vperm.xlu0 %4368, %v4719_v24  }
  0xbf   : > { %v4927_v15 = vpop.xlane.xlu1 %396  ;;  %v4929_v20 = vpop.xlane.xlu0 %393 }
  0xc0   : > { %733 = vperm.xlu1 %4366, %v4679_v4  }
  0xc1   : > { %1039 = vperm.xlu0 %4368, %v4731_v30  }
  0xc3   : > { %v4933_v21 = vpop.xlane.xlu1 %402  ;;  %v4935_v22 = vpop.xlane.xlu0 %399 }
  0xc4   : > { %741 = vperm.xlu1 %4366, %v4693_v10  }
  0xc5   : > { %1047 = vperm.xlu0 %4368, %v4743_v36  }
  0xc7   : > { %v4939_v23 = vpop.xlane.xlu1 %408  ;;  %v4941_v28 = vpop.xlane.xlu0 %405 }
  0xc8   : > { %749 = vperm.xlu1 %4366, %v4707_v18  }
  0xc9   : > { %1055 = vperm.xlu0 %4368, %v4755_v42  }
  0xcb   : > { %v4945_v29 = vpop.xlane.xlu1 %414  ;;  %v4947_v4 = vpop.xlane.xlu0 %411 }
  0xcc   : > { %757 = vperm.xlu1 %4366, %v4719_v24  }
  0xcd   : > { %1063 = vperm.xlu0 %4368, %v4767_v48  }
  0xcf   : > { %v4951_v32 = vpop.xlane.xlu1 %420  ;;  %v4953_v10 = vpop.xlane.xlu0 %417 }
  0xd0   : > { %765 = vperm.xlu1 %4366, %v4731_v30  }
  0xd1   : > { %1071 = vperm.xlu0 %4368, %v4779_v54  }
  0xd3   : > { %v4957_v33 = vpop.xlane.xlu1 %426  ;;  %v4959_v18 = vpop.xlane.xlu0 %423 }
  0xd4   : > { %773 = vperm.xlu1 %4366, %v4743_v36  }
  0xd5   : > { %1079 = vperm.xlu0 %4368, %v4791_v60  }
  0xd7   : > { %v4963_v38 = vpop.xlane.xlu1 %432  ;;  %v4965_v39 = vpop.xlane.xlu0 %429 }
  0xd8   : > { %781 = vperm.xlu1 %4366, %v4755_v42  }
  0xd9   : > { %1087 = vperm.xlu0 %4368, %v4803_v7  }
  0xdb   : > { %v4969_v40 = vpop.xlane.xlu1 %438  ;;  %v4971_v41 = vpop.xlane.xlu0 %435 }
  0xdc   : > { %789 = vperm.xlu1 %4366, %v4767_v48  }
  0xdd   : > { %1095 = vperm.xlu0 %4368, %v4815_v16  }
  0xdf   : > { %v4975_v46 = vpop.xlane.xlu1 %444  ;;  %v4977_v47 = vpop.xlane.xlu0 %441 }
  0xe0   : > { %797 = vperm.xlu1 %4366, %v4779_v54  }
  0xe1   : > { %1103 = vperm.xlu0 %4368, %v4827_v26  }
  0xe3   : > { %v4981_v50 = vpop.xlane.xlu1 %450  ;;  %v4984_v51 = vpop.xlane.xlu0 %447 }
  0xe4   : > { %8762 = vst [vmem:[#allocation11_spill] sm:$0xff] %v4981_v50  ;;  %805 = vperm.xlu1 %4366, %v4791_v60   ;;  %8763 = vst [vmem:[#allocation12_spill] sm:$0xff] %v4984_v51 }
  0xe5   : > { %1111 = vperm.xlu0 %4368, %v4839_v34  }
  0xe7   : > { %v4987_v52 = vpop.xlane.xlu1 %456  ;;  %v4991_v53 = vpop.xlane.xlu0 %453 }
  0xe8   : > { %8764 = vst [vmem:[#allocation13_spill] sm:$0xff] %v4987_v52  ;;  %813 = vperm.xlu1 %4366, %v4803_v7  }
  0xe9   : > { %1119 = vperm.xlu0 %4368, %v4851_v44  }
  0xeb   : > { %v4993_v1 = vpop.permute.xlu1 %484 }
  0xec   : > { %821 = vperm.xlu1 %4366, %v4815_v16  }
  0xed   : > { %4370 = vset.pattern.permute.xlu0 %v8666_v0 }
  0xee   : > { %479 = vperm.xlu0 %4370, %v4676_v3  }
  0xef   : > { %v4998_v58 = vpop.permute.xlu1 %489  ;;  %v5000_v51 = vpop.permute.xlu0 %725 }
  0xf0   : > { %829 = vperm.xlu1 %4366, %v4827_v26  }
  0xf2   : > { %524 = vperm.xlu0 %4370, %v4719_v24  }
  0xf3   : > { %v5004_v52 = vpop.permute.xlu1 %494  ;;  %v5006_v50 = vpop.permute.xlu0 %737 }
  0xf4   : > { %8765 = vst [vmem:[#allocation14_spill] sm:$0xff] %v5004_v52  ;;  %8766 = vst [vmem:[#allocation15_spill] sm:$0xff] %v5006_v50  ;;  %837 = vperm.xlu1 %4366, %v4839_v34   ;;  %v8769_v52 = vmov 2  }
  0xf6   : > { %534 = vperm.xlu0 %4370, %v4731_v30  }
  0xf7   : > { %v5010_v0 = vpop.permute.xlu1 %499  ;;  %v5012_v3 = vpop.permute.xlu0 %745 }
  0xf8   : > { %8767 = vst [vmem:[#allocation16_spill] sm:$0xff] %v5012_v3  ;;  %845 = vperm.xlu1 %4366, %v4851_v44  }
  0xfa   : > { %544 = vperm.xlu0 %4370, %v4743_v36  }
  0xfb   : > { %v5020_v24 = vpop.permute.xlu1 %504  ;;  %v5022_v50 = vpop.permute.xlu0 %753 }
  0xfc   : > { %8768 = vst [vmem:[#allocation17_spill] sm:$0xff] %v5022_v50  ;;  %4369 = vset.pattern.permute.xlu1 %v8769_v52 }
  0xfd   : > { %999 = vperm.xlu1 %4369, %v4688_v8  }
  0xfe   : > { %554 = vperm.xlu0 %4370, %v4755_v42  }
  0xff   : > { %v5028_v30 = vpop.permute.xlu1 %509  ;;  %v5030_v3 = vpop.permute.xlu0 %761 }
 0x101   : > { %1003 = vperm.xlu1 %4369, %v4673_v2  }
 0x102   : > { %564 = vperm.xlu0 %4370, %v4767_v48  }
 0x103   : > { %v5035_v36 = vpop.permute.xlu1 %514  ;;  %v5037_v50 = vpop.permute.xlu0 %769 }
 0x105   : > { %1011 = vperm.xlu1 %4369, %v4696_v11   ;;  %v5054_v11 = vld [vmem:[%s252_s11] sm:$0x77] }
 0x106   : > { %574 = vperm.xlu0 %4370, %v4779_v54   ;;  %v458_v54 = vmul.f32 %v5054_v11, %v5054_v11 }
 0x107   : > { %v5041_v8 = vpop.permute.xlu1 %519  ;;  %v5043_v42 = vpop.permute.xlu0 %777 }
 0x108   : > { %8770 = vst [vmem:[#allocation18_spill] sm:$0xff] %v5041_v8  ;;  %8771 = vst [vmem:[#allocation19_spill] sm:$0xff] %v5043_v42 }
 0x109   : > { %1019 = vperm.xlu1 %4369, %v4710_v19   ;;  %v460_v19 = vcombine.high %v458_v54, %v458_v54 }
 0x10a   : > { %584 = vperm.xlu0 %4370, %v4791_v60  }
 0x10b   : > { %v5050_v2 = vpop.permute.xlu1 %529  ;;  %v5052_v48 = vpop.permute.xlu0 %785 }
 0x10c   : > { %8772 = vst [vmem:[#allocation20_spill] sm:$0xff] %v5050_v2  ;;  %8773 = vst [vmem:[#allocation21_spill] sm:$0xff] %v5052_v48 }
 0x10d   : > { %1027 = vperm.xlu1 %4369, %v4722_v25   ;;  %v463_v25 = vsel %vm462_vm1, %v458_v54, 0.0 }
 0x10e   : > { %594 = vperm.xlu0 %4370, %v4803_v7   ;;  %v470_v7 = vsel %vm462_vm1, %v460_v19, 0.0 }
 0x10f   : > { %v5060_v52 = vpop.permute.xlu1 %539  ;;  %v5062_v42 = vpop.permute.xlu0 %793 }
 0x110   : > { %8774 = vst [vmem:[#allocation22_spill] sm:$0xff] %v5060_v52  ;;  %8775 = vst [vmem:[#allocation23_spill] sm:$0xff] %v5062_v42 }
 0x111   : > { %1035 = vperm.xlu1 %4369, %v4734_v31   ;;  %v464_v31 = vrot.slane %v463_v25, 4 }
 0x112   : > { %604 = vperm.xlu0 %4370, %v4815_v16   ;;  %v471_v16 = vrot.slane %v470_v7, 4 }
 0x113   : > { %v5066_v60 = vpop.permute.xlu1 %549  ;;  %v5068_v48 = vpop.permute.xlu0 %801 }
 0x114   : > { %8776 = vst [vmem:[#allocation24_spill] sm:$0xff] %v5066_v60  ;;  %8777 = vst [vmem:[#allocation25_spill] sm:$0xff] %v5068_v48 }
 0x115   : > { %1043 = vperm.xlu1 %4369, %v4746_v37   ;;  %v465_v37 = vadd.f32 %v464_v31, %v463_v25 }
 0x116   : > { %614 = vperm.xlu0 %4370, %v4827_v26   ;;  %v472_v26 = vadd.f32 %v471_v16, %v470_v7 }
 0x117   : > { %v5072_v2 = vpop.permute.xlu1 %559  ;;  %v5074_v52 = vpop.permute.xlu0 %809 }
 0x118   : > { %8778 = vst [vmem:[#allocation26_spill] sm:$0xff] %v5072_v2  ;;  %8779 = vst [vmem:[#allocation27_spill] sm:$0xff] %v5074_v52  ;;  %v8682_v52 = vlaneseq  ;;  %v473_v2 = vrot.slane %v472_v26, 2 }
 0x119   : > { %1051 = vperm.xlu1 %4369, %v4758_v43   ;;  %v466_v43 = vrot.slane %v465_v37, 2 }
 0x11a   : > { %624 = vperm.xlu0 %4370, %v4839_v34  }
 0x11b   : > { %v5078_v42 = vpop.permute.xlu1 %569  ;;  %v5080_v48 = vpop.permute.xlu0 %817 }
 0x11c   : > { %8780 = vst [vmem:[#allocation28_spill] sm:$0xff] %v5078_v42  ;;  %8781 = vst [vmem:[#allocation29_spill] sm:$0xff] %v5080_v48  ;;  %v5094_v48 = vshrl.u32 %v8682_v52, 7 }
 0x11d   : > { %1059 = vperm.xlu1 %4369, %v4770_v49   ;;  %v467_v49 = vadd.f32 %v466_v43, %v465_v37 }
 0x11e   : > { %634 = vperm.xlu0 %4370, %v4851_v44   ;;  %8786 = vst [vmem:[#allocation34_spill] sm:$0xff] %v5094_v48  ;;  %v474_v44 = vadd.f32 %v473_v2, %v472_v26  ;;  %v5102_v31 = vsub.s32 0, %v5094_v48  ;;  %v5106_v16 = vsub.s32 1, %v5094_v48  ;;  %v1124_v52 = vsub.s32 2, %v5094_v48 }
 0x11f   : > { %v5084_v54 = vpop.permute.xlu1 %579  ;;  %v5086_v19 = vpop.permute.xlu0 %825  ;;  %v468_v2 = vrot.slane %v467_v49, 1 }
 0x120   : > { %8782 = vst [vmem:[#allocation30_spill] sm:$0xff] %v5084_v54  ;;  %8783 = vst [vmem:[#allocation31_spill] sm:$0xff] %v5086_v19  ;;  %v475_v37 = vrot.slane %v474_v44, 1  ;;  %v641_v43 = vrot.slane %v5054_v11, %v5102_v31 }
 0x121   : > { %1067 = vperm.xlu1 %4369, %v4782_v55   ;;  %8789 = vst [vmem:[#allocation37_spill] sm:$0xff] %v5102_v31  ;;  %v644_v55 = vsub.s32 4, %v5094_v48  ;;  %8790 = vst [vmem:[#allocation38_spill] sm:$0xff] %v5106_v16  ;;  %v5125_v54 = vadd.f32 %v468_v2, %v467_v49 }
 0x123   : > { %v5089_v34 = vpop.permute.xlu1 %589  ;;  %v5091_v42 = vpop.permute.xlu0 %833  ;;  %8793 = vst [vmem:[#allocation41_spill] sm:$0xff] %v5125_v54 }
 0x124   : > { %8784 = vst [vmem:[#allocation32_spill] sm:$0xff] %v5089_v34  ;;  %8785 = vst [vmem:[#allocation33_spill] sm:$0xff] %v5091_v42  ;;  %v854_v42 = vsub.s32 5, %v5094_v48 }
 0x125   : > { %1075 = vperm.xlu1 %4369, %v4794_v61   ;;  %v1128_v61 = vsub.s32 6, %v5094_v48  ;;  %v1125_v48 = vrot.slane %v5054_v11, %v1124_v52 }
 0x126   : > { %v855_v19 = vrot.slane %v5054_v11, %v854_v42 }
 0x127   : > { %v5097_v25 = vpop.permute.xlu1 %599  ;;  %v5099_v7 = vpop.permute.xlu0 %841 }
 0x128   : > { %8787 = vst [vmem:[#allocation35_spill] sm:$0xff] %v5097_v25  ;;  %8788 = vst [vmem:[#allocation36_spill] sm:$0xff] %v5099_v7  ;;  %v645_v7 = vrot.slane %v5054_v11, %v644_v55  ;;  %v851_v25 = vrot.slane %v5054_v11, %v5106_v16  ;;  %v5132_v55 = vrot.slane %v641_v43, %v5102_v31 }
 0x129   : > { %1083 = vperm.xlu1 %4369, %v4806_v9   ;;  %v1129_v9 = vrot.slane %v5054_v11, %v1128_v61 }
 0x12a   : > { %8795 = vst [vmem:[#allocation43_spill] sm:$0xff] %v5132_v55  ;;  %v5135_v8 = vrot.slane %v645_v7, %v5102_v31  ;;  %v5138_v42 = vrot.slane %v851_v25, %v5106_v16 }
 0x12b   : > { %v5112_v26 = vpop.permute.xlu1 %609  ;;  %v5147_v49 = vrot.slane %v1129_v9, %v1124_v52  ;;  %v5212_v9 = vadd.f32 %v5125_v54, %v4917_v12 }
 0x12c   : > { %8791 = vst [vmem:[#allocation39_spill] sm:$0xff] %v5112_v26  ;;  %v5120_v34 = vpop.permute.xlu0 %995  ;;  %v5127_v26 = vadd.f32 %v475_v37, %v474_v44  ;;  %8796 = vst [vmem:[#allocation44_spill] sm:$0xff] %v5135_v8  ;;  %v5151_v44 = vadd.f32 %v5125_v54, %v4895_v56 }
 0x12d   : > { %8792 = vst [vmem:[#allocation40_spill] sm:$0xff] %v5120_v34  ;;  %1091 = vperm.xlu1 %4369, %v4818_v17   ;;  %8797 = vst [vmem:[#allocation45_spill] sm:$0xff] %v5138_v42  ;;  %v5141_v34 = vrot.slane %v855_v19, %v5106_v16  ;;  %v5145_v17 = vrot.slane %v1125_v48, %v1124_v52  ;;  %v5160_v19 = vadd.f32 %v5125_v54, %v4898_v57 }
 0x12e   : > { %8794 = vst [vmem:[#allocation42_spill] sm:$0xff] %v5127_v26  ;;  %8800 = vst [vmem:[#allocation48_spill] sm:$0xff] %v5147_v49  ;;  %v5155_v7 = vadd.f32 %v5127_v26, %v4895_v56  ;;  %v5164_v48 = vadd.f32 %v5127_v26, %v4898_v57  ;;  %v5168_v52 = vadd.f32 %v5125_v54, %v4902_v59 }
 0x12f   : > { %v5129_v60 = vpop.permute.xlu1 %619  ;;  %8798 = vst [vmem:[#allocation46_spill] sm:$0xff] %v5141_v34  ;;  %8799 = vst [vmem:[#allocation47_spill] sm:$0xff] %v5145_v17  ;;  %v5172_v25 = vadd.f32 %v5127_v26, %v4902_v59  ;;  %v5176_v56 = vadd.f32 %v5125_v54, %v4905_v62  ;;  %v5184_v57 = vadd.f32 %v5125_v54, %v4908_v63 }
 0x130   : > { %v5143_v11 = vpop.permute.xlu0 %1007  ;;  %8801 = vst [vmem:[#allocation49_spill] sm:$0xff] %v5151_v44  ;;  %8802 = vst [vmem:[#allocation50_spill] sm:$0xff] %v5155_v7  ;;  %v5188_v61 = vadd.f32 %v5127_v26, %v4908_v63  ;;  %v5194_v59 = vadd.f32 %v5125_v54, %v4911_v5  ;;  %v5198_v37 = vadd.f32 %v5127_v26, %v4911_v5 }
 0x131   : > { %1099 = vperm.xlu1 %4369, %v4830_v27   ;;  %8803 = vst [vmem:[#allocation51_spill] sm:$0xff] %v5176_v56  ;;  %v5180_v27 = vadd.f32 %v5127_v26, %v4905_v62  ;;  %v5202_v62 = vadd.f32 %v5125_v54, %v4914_v6  ;;  %v5206_v43 = vadd.f32 %v5127_v26, %v4914_v6  ;;  %8807 = vst [vmem:[#allocation55_spill] sm:$0xff] %v5212_v9 }
 0x132   : > { %8805 = vst [vmem:[#allocation53_spill] sm:$0xff] %v5194_v59  ;;  %8806 = vst [vmem:[#allocation54_spill] sm:$0xff] %v5198_v37  ;;  %v5216_v16 = vadd.f32 %v5127_v26, %v4917_v12  ;;  %v5220_v5 = vadd.f32 %v5125_v54, %v4921_v13  ;;  %v5224_v31 = vadd.f32 %v5127_v26, %v4921_v13 }
 0x133   : > { %8804 = vst [vmem:[#allocation52_spill] sm:$0xff] %v5180_v27  ;;  %v5190_v2 = vpop.permute.xlu1 %629  ;;  %v5229_v6 = vadd.f32 %v5125_v54, %v4923_v14  ;;  %v5233_v9 = vadd.f32 %v5127_v26, %v4923_v14  ;;  %v5237_v12 = vadd.f32 %v5125_v54, %v4927_v15  ;;  %v5245_v13 = vadd.f32 %v5125_v54, %v4929_v20 }
 0x134   : > { %v5208_v63 = vpop.permute.xlu0 %1015  ;;  %8808 = vst [vmem:[#allocation56_spill] sm:$0xff] %v5216_v16  ;;  %8809 = vst [vmem:[#allocation57_spill] sm:$0xff] %v5224_v31  ;;  %v5241_v16 = vadd.f32 %v5127_v26, %v4927_v15  ;;  %v5253_v14 = vadd.f32 %v5125_v54, %v4933_v21  ;;  %v5263_v15 = vadd.f32 %v5125_v54, %v4935_v22  ;;  %v8897_v31 = vld [vmem:[#allocation33_spill] sm:$0xff] }
 0x135   : > { %1107 = vperm.xlu1 %4369, %v4842_v35   ;;  %8810 = vst [vmem:[#allocation58_spill] sm:$0xff] %v5229_v6  ;;  %8811 = vst [vmem:[#allocation59_spill] sm:$0xff] %v5233_v9  ;;  %v5249_v35 = vadd.f32 %v5127_v26, %v4929_v20  ;;  %v5257_v9 = vadd.f32 %v5127_v26, %v4933_v21  ;;  %v5271_v20 = vadd.f32 %v5125_v54, %v4939_v23 }
 0x136   : > { %8812 = vst [vmem:[#allocation60_spill] sm:$0xff] %v5237_v12  ;;  %8813 = vst [vmem:[#allocation61_spill] sm:$0xff] %v5241_v16  ;;  %v5281_v37 = vadd.f32 %v5125_v54, %v4941_v28  ;;  %v667_v59 = vmul.f32 %v5135_v8, %v5020_v24 }
 0x137   : > { %8814 = vst [vmem:[#allocation62_spill] sm:$0xff] %v5245_v13  ;;  %8815 = vst [vmem:[#allocation63_spill] sm:$0xff] %v5249_v35  ;;  %v5259_v6 = vpop.permute.xlu1 %721  ;;  %v5267_v13 = vadd.f32 %v5127_v26, %v4935_v22  ;;  %v5275_v35 = vadd.f32 %v5127_v26, %v4939_v23  ;;  %v5289_v22 = vadd.f32 %v5125_v54, %v4945_v29 }
 0x138   : > { %8816 = vst [vmem:[#allocation64_spill] sm:$0xff] %v5253_v14  ;;  %8817 = vst [vmem:[#allocation65_spill] sm:$0xff] %v5257_v9  ;;  %v5277_v21 = vpop.permute.xlu0 %1023  ;;  %v5298_v23 = vadd.f32 %v5125_v54, %v4947_v4  ;;  %v671_v14 = vmul.f32 %v5135_v8, %v5035_v36 }
 0x139   : > { %8818 = vst [vmem:[#allocation66_spill] sm:$0xff] %v5263_v15  ;;  %8819 = vst [vmem:[#allocation67_spill] sm:$0xff] %v5267_v13  ;;  %v5285_v15 = vadd.f32 %v5127_v26, %v4941_v28  ;;  %v5293_v13 = vadd.f32 %v5127_v26, %v4945_v29  ;;  %1115 = vperm.xlu1 %4369, %v4854_v45   ;;  %v5306_v28 = vadd.f32 %v5125_v54, %v4951_v32 }
 0x13a   : > { %8820 = vst [vmem:[#allocation68_spill] sm:$0xff] %v5271_v20  ;;  %8821 = vst [vmem:[#allocation69_spill] sm:$0xff] %v5275_v35  ;;  %v5314_v29 = vadd.f32 %v5125_v54, %v4953_v10  ;;  %v5318_v45 = vadd.f32 %v5127_v26, %v4953_v10  ;;  %v5340_v10 = vadd.f32 %v5125_v54, %v4963_v38  ;;  %v8865_v35 = vld [vmem:[#allocation17_spill] sm:$0xff] }
 0x13b   : > { %8822 = vst [vmem:[#allocation70_spill] sm:$0xff] %v5281_v37  ;;  %8823 = vst [vmem:[#allocation71_spill] sm:$0xff] %v5285_v15  ;;  %v5302_v37 = vadd.f32 %v5127_v26, %v4947_v4  ;;  %v5310_v15 = vadd.f32 %v5127_v26, %v4951_v32  ;;  %v5322_v4 = vadd.f32 %v5125_v54, %v4957_v33 }
 0x13c   : > { %8824 = vst [vmem:[#allocation72_spill] sm:$0xff] %v5289_v22  ;;  %8825 = vst [vmem:[#allocation73_spill] sm:$0xff] %v5293_v13  ;;  %v5332_v32 = vadd.f32 %v5125_v54, %v4959_v18  ;;  %v666_v22 = vmul.f32 %v5132_v55, %v5020_v24  ;;  %v1154_v27 = vmul.f32 %v5145_v17, %v5277_v21 }
 0x13d   : > { %8826 = vst [vmem:[#allocation74_spill] sm:$0xff] %v5298_v23  ;;  %8827 = vst [vmem:[#allocation75_spill] sm:$0xff] %v5302_v37  ;;  %v5326_v37 = vadd.f32 %v5127_v26, %v4957_v33  ;;  %v5328_v23 = vpop.permute.xlu1 %729  ;;  %v5346_v33 = vpop.permute.xlu0 %1031 }
 0x13e   : > { %8828 = vst [vmem:[#allocation76_spill] sm:$0xff] %v5306_v28  ;;  %8829 = vst [vmem:[#allocation77_spill] sm:$0xff] %v5310_v15 }
 0x13f   : > { %8830 = vst [vmem:[#allocation78_spill] sm:$0xff] %v5314_v29  ;;  %8831 = vst [vmem:[#allocation79_spill] sm:$0xff] %v5318_v45  ;;  %v5336_v29 = vadd.f32 %v5127_v26, %v4959_v18  ;;  %v5344_v45 = vadd.f32 %v5127_v26, %v4963_v38  ;;  %v5358_v18 = vadd.f32 %v5125_v54, %v4969_v40  ;;  %v8842_v38 = vmov 0  }
 0x140   : > { %8832 = vst [vmem:[#allocation80_spill] sm:$0xff] %v5322_v4  ;;  %8833 = vst [vmem:[#allocation81_spill] sm:$0xff] %v5326_v37  ;;  %v5350_v37 = vadd.f32 %v5125_v54, %v4965_v39  ;;  %4371 = vset.pattern.permute.xlu1 %v8842_v38  ;;  %v659_v38 = vmul.f32 %v5135_v8, %v4993_v1 }
 0x141   : > { %8834 = vst [vmem:[#allocation82_spill] sm:$0xff] %v5332_v32  ;;  %8835 = vst [vmem:[#allocation83_spill] sm:$0xff] %v5336_v29  ;;  %v5354_v32 = vadd.f32 %v5127_v26, %v4965_v39  ;;  %v5362_v29 = vadd.f32 %v5127_v26, %v4969_v40  ;;  %v5375_v39 = vadd.f32 %v5125_v54, %v4975_v46 }
 0x142   : > { %8836 = vst [vmem:[#allocation84_spill] sm:$0xff] %v5340_v10  ;;  %8837 = vst [vmem:[#allocation85_spill] sm:$0xff] %v5344_v45  ;;  %v5367_v45 = vadd.f32 %v5125_v54, %v4971_v41  ;;  %v658_v40 = vmul.f32 %v5132_v55, %v4993_v1 }
 0x143   : > { %8838 = vst [vmem:[#allocation86_spill] sm:$0xff] %v5350_v37  ;;  %8839 = vst [vmem:[#allocation87_spill] sm:$0xff] %v5354_v32  ;;  %v5371_v37 = vadd.f32 %v5127_v26, %v4971_v41  ;;  %v5379_v32 = vadd.f32 %v5127_v26, %v4975_v46  ;;  %v869_v41 = vmul.f32 %v5141_v34, %v5000_v51 }
 0x144   : > { %8840 = vst [vmem:[#allocation88_spill] sm:$0xff] %v5358_v18  ;;  %8841 = vst [vmem:[#allocation89_spill] sm:$0xff] %v5362_v29  ;;  %v5395_v46 = vadd.f32 %v5127_v26, %v4977_v47  ;;  %v5405_v18 = vpop.permute.xlu0 %1039 }
 0x145   : > { %8843 = vst [vmem:[#allocation90_spill] sm:$0xff] %v5367_v45  ;;  %8844 = vst [vmem:[#allocation91_spill] sm:$0xff] %v5371_v37  ;;  %v868_v45 = vmul.f32 %v5138_v42, %v5000_v51  ;;  %v734_v37 = vpop.permute.xlu1 %733  ;;  %v8852_v51 = vld [vmem:[#allocation12_spill] sm:$0xff] }
 0x146   : > { %8845 = vst [vmem:[#allocation92_spill] sm:$0xff] %v5375_v39  ;;  %8846 = vst [vmem:[#allocation93_spill] sm:$0xff] %v5379_v32  ;;  %v5391_v39 = vadd.f32 %v5125_v54, %v4977_v47  ;;  %v8849_v32 = vld [vmem:[#allocation11_spill] sm:$0xff]  ;;  %v5409_v10 = vadd.f32 %v5125_v54, %v8852_v51  ;;  %v8855_v47 = vld [vmem:[#allocation13_spill] sm:$0xff]  ;;  %v873_v13 = vmul.f32 %v5141_v34, %v734_v37 }
 0x147   : > { %8848 = vst [vmem:[#allocation95_spill] sm:$0xff] %v5395_v46  ;;  %v5399_v29 = vadd.f32 %v5125_v54, %v8849_v32  ;;  %v5403_v1 = vadd.f32 %v5127_v26, %v8849_v32  ;;  %v5417_v46 = vadd.f32 %v5125_v54, %v8855_v47  ;;  %v5425_v32 = vadd.f32 %v5125_v54, %v4991_v53 }
 0x148   : > { %8847 = vst [vmem:[#allocation94_spill] sm:$0xff] %v5391_v39  ;;  %8853 = vst [vmem:[#allocation12_spill] sm:$0xff] %v5409_v10  ;;  %v5413_v39 = vadd.f32 %v5127_v26, %v8852_v51  ;;  %v664_v51 = vmul.f32 %v5132_v55, %v5010_v0  ;;  %v5437_v10 = vmul.f32 %v5132_v55, %v4998_v58  ;;  %v5455_v15 = vpop.permute.xlu0 %1047 }
 0x149   : > { %8850 = vst [vmem:[#allocation11_spill] sm:$0xff] %v5399_v29  ;;  %8851 = vst [vmem:[#allocation96_spill] sm:$0xff] %v5403_v1  ;;  %v5421_v29 = vadd.f32 %v5127_v26, %v8855_v47  ;;  %v5429_v1 = vadd.f32 %v5127_v26, %v4991_v53  ;;  %v5441_v47 = vmul.f32 %v5135_v8, %v4998_v58  ;;  %v742_v53 = vpop.permute.xlu1 %741  ;;  %v8860_v26 = vld [vmem:[#allocation14_spill] sm:$0xff]  ;;  %v8862_v58 = vld [vmem:[#allocation16_spill] sm:$0xff] }
 0x14a   : > { %8854 = vst [vmem:[#allocation97_spill] sm:$0xff] %v5413_v39  ;;  %8856 = vst [vmem:[#allocation13_spill] sm:$0xff] %v5417_v46  ;;  %v665_v39 = vmul.f32 %v5135_v8, %v5010_v0  ;;  %v5443_v54 = vadd.f32 %v868_v45, %v658_v40  ;;  %v8861_v0 = vld [vmem:[#allocation15_spill] sm:$0xff]  ;;  %v878_v45 = vmul.f32 %v5138_v42, %v8862_v58 }
 0x14b   : > { %8857 = vst [vmem:[#allocation98_spill] sm:$0xff] %v5421_v29  ;;  %8858 = vst [vmem:[#allocation99_spill] sm:$0xff] %v5425_v32  ;;  %v5445_v32 = vadd.f32 %v869_v41, %v659_v38  ;;  %v663_v29 = vmul.f32 %v5135_v8, %v8860_v26  ;;  %v874_v46 = vmul.f32 %v5138_v42, %v8861_v0 }
 0x14c   : > { %8859 = vst [vmem:[#allocation100_spill] sm:$0xff] %v5429_v1  ;;  %v662_v1 = vmul.f32 %v5132_v55, %v8860_v26  ;;  %v875_v4 = vmul.f32 %v5141_v34, %v8861_v0  ;;  %v668_v40 = vmul.f32 %v5132_v55, %v5028_v30  ;;  %v669_v38 = vmul.f32 %v5135_v8, %v5028_v30 }
 0x14d   : > { %v872_v41 = vmul.f32 %v5138_v42, %v734_v37  ;;  %v5464_v26 = vadd.f32 %v874_v46, %v664_v51  ;;  %v879_v0 = vmul.f32 %v5141_v34, %v8862_v58  ;;  %v882_v30 = vmul.f32 %v5138_v42, %v8865_v35  ;;  %v750_v46 = vpop.permute.xlu1 %749  ;;  %v5485_v58 = vpop.permute.xlu0 %1055 }
 0x14e   : > { %v5466_v28 = vadd.f32 %v875_v4, %v665_v39  ;;  %v876_v20 = vmul.f32 %v5138_v42, %v742_v53  ;;  %v883_v4 = vmul.f32 %v5141_v34, %v8865_v35  ;;  %v886_v39 = vmul.f32 %v5138_v42, %v5030_v3 }
 0x14f   : > { %8863 = vst [vmem:[#allocation14_spill] sm:$0xff] %v5464_v26  ;;  %v887_v37 = vmul.f32 %v5141_v34, %v5030_v3  ;;  %v877_v51 = vmul.f32 %v5141_v34, %v742_v53  ;;  %v5487_v24 = vadd.f32 %v878_v45, %v668_v40  ;;  %v936_v26 = vadd.f32 %v872_v41, %v662_v1  ;;  %v8868_v41 = vld [vmem:[#allocation18_spill] sm:$0xff] }
 0x150   : > { %8864 = vst [vmem:[#allocation15_spill] sm:$0xff] %v5466_v28  ;;  %v5489_v28 = vadd.f32 %v879_v0, %v669_v38  ;;  %v880_v9 = vmul.f32 %v5138_v42, %v750_v46  ;;  %v670_v35 = vmul.f32 %v5132_v55, %v5035_v36  ;;  %v937_v7 = vadd.f32 %v873_v13, %v663_v29 }
 0x151   : > { %8866 = vst [vmem:[#allocation16_spill] sm:$0xff] %v5487_v24  ;;  %v881_v3 = vmul.f32 %v5141_v34, %v750_v46  ;;  %v890_v53 = vmul.f32 %v5138_v42, %v5037_v50  ;;  %v891_v45 = vmul.f32 %v5141_v34, %v5037_v50  ;;  %v1146_v1 = vmul.f32 %v5145_v17, %v5143_v11  ;;  %v5503_v38 = vpop.permute.xlu1 %757  ;;  %v5511_v46 = vpop.permute.xlu0 %1063 }
 0x152   : > { %8867 = vst [vmem:[#allocation17_spill] sm:$0xff] %v5489_v28  ;;  %v940_v40 = vadd.f32 %v876_v20, %v666_v22  ;;  %v672_v0 = vmul.f32 %v5132_v55, %v8868_v41  ;;  %v673_v36 = vmul.f32 %v5135_v8, %v8868_v41  ;;  %v1147_v13 = vmul.f32 %v5147_v49, %v5143_v11  ;;  %v8869_v28 = vld [vmem:[#allocation19_spill] sm:$0xff]  ;;  %v8870_v11 = vld [vmem:[#allocation20_spill] sm:$0xff] }
 0x153   : > { %v941_v29 = vadd.f32 %v877_v51, %v667_v59  ;;  %v894_v50 = vmul.f32 %v5138_v42, %v8869_v28  ;;  %v1150_v20 = vmul.f32 %v5145_v17, %v5208_v63  ;;  %v1210_v22 = vadd.f32 %v1146_v1, %v936_v26 }
 0x154   : > { %v944_v24 = vadd.f32 %v880_v9, %v670_v35  ;;  %v895_v44 = vmul.f32 %v5141_v34, %v8869_v28  ;;  %v1151_v41 = vmul.f32 %v5147_v49, %v5208_v63  ;;  %v1211_v16 = vadd.f32 %v1147_v13, %v937_v7  ;;  %v8873_v35 = vld [vmem:[#allocation22_spill] sm:$0xff] }
 0x155   : > { %v945_v12 = vadd.f32 %v881_v3, %v671_v14  ;;  %v676_v59 = vmul.f32 %v5132_v55, %v8870_v11  ;;  %v677_v51 = vmul.f32 %v5135_v8, %v8870_v11  ;;  %v1214_v56 = vadd.f32 %v1150_v20, %v940_v40  ;;  %v5527_v26 = vpop.permute.xlu1 %765  ;;  %v5535_v14 = vpop.permute.xlu0 %1071  ;;  %v8874_v20 = vld [vmem:[#allocation21_spill] sm:$0xff] }
 0x156   : > { %v5529_v9 = vadd.f32 %v882_v30, %v672_v0  ;;  %v5531_v28 = vadd.f32 %v883_v4, %v673_v36  ;;  %v1155_v7 = vmul.f32 %v5147_v49, %v5277_v21  ;;  %v1215_v63 = vadd.f32 %v1151_v41, %v941_v29  ;;  %v8877_v41 = vld [vmem:[#allocation24_spill] sm:$0xff] }
 0x157   : > { %v680_v3 = vmul.f32 %v5132_v55, %v8873_v35  ;;  %v681_v1 = vmul.f32 %v5135_v8, %v8873_v35  ;;  %v1338_v13 = vmul.f32 2.0, %v1210_v22  ;;  %v1218_v40 = vadd.f32 %v1154_v27, %v944_v24  ;;  %v8878_v22 = vld [vmem:[#allocation23_spill] sm:$0xff] }
 0x158   : > { %8871 = vst [vmem:[#allocation18_spill] sm:$0xff] %v5529_v9  ;;  %8872 = vst [vmem:[#allocation19_spill] sm:$0xff] %v5531_v28  ;;  %v898_v30 = vmul.f32 %v5138_v42, %v8874_v20  ;;  %v899_v4 = vmul.f32 %v5141_v34, %v8874_v20  ;;  %v1339_v0 = vmul.f32 2.0, %v1211_v16  ;;  %v1219_v36 = vadd.f32 %v1155_v7, %v945_v12  ;;  %v8881_v7 = vld [vmem:[#allocation26_spill] sm:$0xff] }
 0x159   : > { %v5545_v21 = vadd.f32 %v886_v39, %v676_v59  ;;  %v5547_v29 = vadd.f32 %v887_v37, %v677_v51  ;;  %v684_v11 = vmul.f32 %v5132_v55, %v8877_v41  ;;  %v1342_v28 = vmul.f32 2.0, %v1214_v56  ;;  %v5551_v9 = vpop.permute.xlu1 %773  ;;  %v5559_v39 = vpop.permute.xlu0 %1079 }
 0x15a   : > { %v902_v27 = vmul.f32 %v5138_v42, %v8878_v22  ;;  %v903_v24 = vmul.f32 %v5141_v34, %v8878_v22  ;;  %v685_v16 = vmul.f32 %v5135_v8, %v8877_v41  ;;  %v1343_v12 = vmul.f32 2.0, %v1215_v63  ;;  %v8883_v63 = vld [vmem:[#allocation25_spill] sm:$0xff] }
 0x15b   : > { %8875 = vst [vmem:[#allocation20_spill] sm:$0xff] %v5545_v21  ;;  %8876 = vst [vmem:[#allocation22_spill] sm:$0xff] %v5547_v29  ;;  %v5561_v37 = vadd.f32 %v890_v53, %v680_v3  ;;  %v5563_v59 = vadd.f32 %v891_v45, %v681_v1  ;;  %v1402_v56 = vsub.f32 %v5168_v52, %v1338_v13  ;;  %v1346_v51 = vmul.f32 2.0, %v1218_v40  ;;  %v8885_v13 = vld [vmem:[#allocation27_spill] sm:$0xff] }
 0x15c   : > { %v688_v35 = vmul.f32 %v5132_v55, %v8881_v7  ;;  %v689_v20 = vmul.f32 %v5135_v8, %v8881_v7  ;;  %v1403_v22 = vsub.f32 %v5172_v25, %v1339_v0  ;;  %v1347_v29 = vmul.f32 2.0, %v1219_v36  ;;  %v8886_v36 = vld [vmem:[#allocation28_spill] sm:$0xff] }
 0x15d   : > { %8879 = vst [vmem:[#allocation21_spill] sm:$0xff] %v5561_v37  ;;  %8880 = vst [vmem:[#allocation24_spill] sm:$0xff] %v5563_v59  ;;  %v5571_v41 = vadd.f32 %v894_v50, %v684_v11  ;;  %v906_v53 = vmul.f32 %v5138_v42, %v8883_v63  ;;  %v907_v45 = vmul.f32 %v5141_v34, %v8883_v63  ;;  %v5578_v3 = vpop.permute.xlu1 %781  ;;  %v5587_v0 = vpop.permute.xlu0 %1087 }
 0x15e   : > { %v1406_v52 = vsub.f32 %v5184_v57, %v1342_v28  ;;  %v5580_v1 = vadd.f32 %v895_v44, %v685_v16  ;;  %v910_v40 = vmul.f32 %v5138_v42, %v8885_v13  ;;  %v911_v25 = vmul.f32 %v5141_v34, %v8885_v13 }
 0x15f   : > { %8882 = vst [vmem:[#allocation23_spill] sm:$0xff] %v5571_v41  ;;  %v1407_v50 = vsub.f32 %v5188_v61, %v1343_v12  ;;  %v692_v11 = vmul.f32 %v5132_v55, %v8886_v36  ;;  %v693_v57 = vmul.f32 %v5135_v8, %v8886_v36  ;;  %v1410_v28 = vsub.f32 %v5202_v62, %v1346_v51  ;;  %v8890_v12 = vld [vmem:[#allocation30_spill] sm:$0xff] }
 0x160   : > { %8884 = vst [vmem:[#allocation26_spill] sm:$0xff] %v5580_v1  ;;  %v1466_v44 = vmul.f32 -0.5, %v1402_v56  ;;  %v5594_v16 = vadd.f32 %v898_v30, %v688_v35  ;;  %v5596_v7 = vadd.f32 %v899_v4, %v689_v20  ;;  %v1411_v63 = vsub.f32 %v5206_v43, %v1347_v29  ;;  %v8889_v1 = vld [vmem:[#allocation29_spill] sm:$0xff]  ;;  %v8891_v4 = vld [vmem:[#allocation32_spill] sm:$0xff] }
 0x161   : > { %v1467_v13 = vmul.f32 -0.5, %v1403_v22  ;;  %v914_v61 = vmul.f32 %v5138_v42, %v8889_v1  ;;  %v696_v41 = vmul.f32 %v5132_v55, %v8890_v12  ;;  %v697_v59 = vmul.f32 %v5135_v8, %v8890_v12  ;;  %v5605_v36 = vpop.permute.xlu1 %789  ;;  %v5613_v29 = vpop.permute.xlu0 %1095 }
 0x162   : > { %8887 = vst [vmem:[#allocation25_spill] sm:$0xff] %v5594_v16  ;;  %8888 = vst [vmem:[#allocation27_spill] sm:$0xff] %v5596_v7  ;;  %v1470_v62 = vmul.f32 -0.5, %v1406_v52  ;;  %v915_v30 = vmul.f32 %v5141_v34, %v8889_v1  ;;  %v700_v56 = vmul.f32 %v5132_v55, %v8891_v4  ;;  %v701_v43 = vmul.f32 %v5135_v8, %v8891_v4  ;;  %v8894_v7 = vld [vmem:[#allocation31_spill] sm:$0xff] }
 0x163   : > { %v1471_v51 = vmul.f32 -0.5, %v1407_v50  ;;  %v5615_v35 = vadd.f32 %v902_v27, %v692_v11  ;;  %v5617_v20 = vadd.f32 %v903_v24, %v693_v57  ;;  %v1536_v22 = vmul.f32 1.442695, %v1466_v44 }
 0x164   : > { %v1474_v12 = vmul.f32 -0.5, %v1410_v28  ;;  %v918_v52 = vmul.f32 %v5138_v42, %v8894_v7  ;;  %v919_v1 = vmul.f32 %v5141_v34, %v8894_v7  ;;  %v1538_v16 = vmul.f32 1.442695, %v1467_v13  ;;  %v8902_v13 = vld [vmem:[#allocation39_spill] sm:$0xff] }
 0x165   : > { %8892 = vst [vmem:[#allocation28_spill] sm:$0xff] %v5615_v35  ;;  %8893 = vst [vmem:[#allocation29_spill] sm:$0xff] %v5617_v20  ;;  %v1475_v37 = vmul.f32 -0.5, %v1411_v63  ;;  %v5623_v21 = vadd.f32 %v906_v53, %v696_v41  ;;  %v5625_v4 = vadd.f32 %v907_v45, %v697_v59  ;;  %v922_v27 = vmul.f32 %v5138_v42, %v8897_v31  ;;  %v5629_v50 = vpop.permute.xlu1 %797  ;;  %v5637_v44 = vpop.permute.xlu0 %1103  ;;  %v8900_v41 = vld [vmem:[#allocation35_spill] sm:$0xff]  ;;  %v8901_v63 = vld [vmem:[#allocation36_spill] sm:$0xff] }
 0x166   : > { %v1544_v24 = vmul.f32 1.442695, %v1470_v62  ;;  %v5631_v11 = vadd.f32 %v910_v40, %v700_v56  ;;  %v5633_v57 = vadd.f32 %v911_v25, %v701_v43  ;;  %v923_v28 = vmul.f32 %v5141_v34, %v8897_v31 }
 0x167   : > { %8895 = vst [vmem:[#allocation30_spill] sm:$0xff] %v5623_v21  ;;  %8896 = vst [vmem:[#allocation32_spill] sm:$0xff] %v5625_v4  ;;  %v1546_v7 = vmul.f32 1.442695, %v1471_v51  ;;  %v704_v59 = vmul.f32 %v5132_v55, %v8900_v41  ;;  %v705_v53 = vmul.f32 %v5135_v8, %v8900_v41  ;;  %4376 = vpow2.f32 %v1536_v22 }
 0x168   : > { %8898 = vst [vmem:[#allocation31_spill] sm:$0xff] %v5631_v11  ;;  %8899 = vst [vmem:[#allocation33_spill] sm:$0xff] %v5633_v57  ;;  %v1552_v45 = vmul.f32 1.442695, %v1474_v12  ;;  %v926_v40 = vmul.f32 %v5138_v42, %v8901_v63  ;;  %v708_v25 = vmul.f32 %v5132_v55, %v8902_v13  ;;  %4378 = vpow2.f32 %v1538_v16 }
 0x169   : > { %v1554_v62 = vmul.f32 1.442695, %v1475_v37  ;;  %v709_v31 = vmul.f32 %v5135_v8, %v8902_v13  ;;  %v712_v56 = vmul.f32 %v5132_v55, %v5129_v60  ;;  %v713_v43 = vmul.f32 %v5135_v8, %v5129_v60  ;;  %v5653_v51 = vpop.permute.xlu1 %805  ;;  %v5661_v16 = vpop.permute.xlu0 %1111 }
 0x16a   : > { %4380 = vpow2.f32 %v1544_v24  ;;  %v927_v22 = vmul.f32 %v5141_v34, %v8901_v63  ;;  %v716_v12 = vmul.f32 %v5132_v55, %v5190_v2  ;;  %v717_v37 = vmul.f32 %v5135_v8, %v5190_v2  ;;  %v8905_v63 = vld [vmem:[#allocation40_spill] sm:$0xff] }
 0x16b   : > { %4382 = vpow2.f32 %v1546_v7  ;;  %v5663_v41 = vadd.f32 %v914_v61, %v704_v59  ;;  %v870_v60 = vmul.f32 %v5138_v42, %v5328_v23  ;;  %v871_v24 = vmul.f32 %v5141_v34, %v5328_v23 }
 0x16c   : > { %4384 = vpow2.f32 %v1552_v45  ;;  %v5669_v13 = vadd.f32 %v915_v30, %v705_v53  ;;  %v5673_v57 = vmul.f32 %v5145_v17, %v8905_v63  ;;  %v5677_v2 = vmul.f32 %v5147_v49, %v8905_v63 }
 0x16d   : > { %8903 = vst [vmem:[#allocation35_spill] sm:$0xff] %v5663_v41  ;;  %4386 = vpow2.f32 %v1554_v62  ;;  %v5679_v61 = vadd.f32 %v918_v52, %v708_v25  ;;  %v5681_v7 = vadd.f32 %v919_v1, %v709_v31  ;;  %v5683_v59 = vadd.f32 %v922_v27, %v712_v56  ;;  %v5687_v23 = vpop.permute.xlu1 %813  ;;  %v5697_v52 = vpop.permute.xlu0 %1119 }
 0x16e   : > { %8904 = vst [vmem:[#allocation36_spill] sm:$0xff] %v5669_v13  ;;  %v5685_v41 = vadd.f32 %v923_v28, %v713_v43  ;;  %v5689_v30 = vadd.f32 %v926_v40, %v716_v12  ;;  %v5691_v53 = vadd.f32 %v927_v22, %v717_v37  ;;  %v866_v45 = vmul.f32 %v5138_v42, %v5259_v6 }
 0x16f   : > { %8906 = vst [vmem:[#allocation39_spill] sm:$0xff] %v5679_v61  ;;  %8907 = vst [vmem:[#allocation40_spill] sm:$0xff] %v5681_v7  ;;  %v867_v62 = vmul.f32 %v5141_v34, %v5259_v6  ;;  %v5700_v1 = vadd.f32 %v870_v60, %v5437_v10  ;;  %v5703_v27 = vadd.f32 %v871_v24, %v5441_v47 }
 0x170   : > { %8908 = vst [vmem:[#allocation101_spill] sm:$0xff] %v5683_v59  ;;  %8909 = vst [vmem:[#allocation102_spill] sm:$0xff] %v5685_v41  ;;  %v5707_v28 = vmul.f32 %v5145_v17, %v5346_v33  ;;  %v5711_v40 = vmul.f32 %v5147_v49, %v5346_v33  ;;  %v5715_v25 = vmul.f32 %v5145_v17, %v5405_v18 }
 0x171   : > { %8910 = vst [vmem:[#allocation103_spill] sm:$0xff] %v5689_v30  ;;  %8911 = vst [vmem:[#allocation104_spill] sm:$0xff] %v5691_v53  ;;  %v5719_v6 = vmul.f32 %v5147_v49, %v5405_v18  ;;  %v5723_v10 = vmul.f32 %v5145_v17, %v5455_v15  ;;  %v5727_v47 = vmul.f32 %v5147_v49, %v5455_v15  ;;  %v4377_v31 = vpop.eup %4376  ;;  %v5741_v22 = vpop.permute.xlu1 %821 }
 0x172   : > { %v5731_v33 = vmul.f32 %v5145_v17, %v5485_v58  ;;  %v5735_v56 = vmul.f32 %v5147_v49, %v5485_v58  ;;  %v884_v18 = vmul.f32 %v5138_v42, %v5503_v38  ;;  %v885_v43 = vmul.f32 %v5141_v34, %v5503_v38  ;;  %v4379_v12 = vpop.eup %4378  ;;  %v480_v30 = vpop.permute.xlu0 %479 }
 0x173   : > { %v5745_v15 = vmul.f32 %v5145_v17, %v5511_v46  ;;  %v5749_v37 = vmul.f32 %v5147_v49, %v5511_v46  ;;  %v5753_v58 = vmul.f32 %v5138_v42, %v5527_v26  ;;  %v5757_v60 = vmul.f32 %v5141_v34, %v5527_v26 }
 0x174   : > { %v4381_v38 = vpop.eup %4380  ;;  %v5761_v24 = vmul.f32 %v5145_v17, %v5535_v14  ;;  %v5765_v63 = vmul.f32 %v5147_v49, %v5535_v14  ;;  %v5769_v46 = vmul.f32 %v5138_v42, %v5551_v9  ;;  %v5773_v53 = vmul.f32 %v5141_v34, %v5551_v9 }
 0x175   : > { %v4383_v26 = vpop.eup %4382  ;;  %v5777_v41 = vmul.f32 %v5145_v17, %v5559_v39  ;;  %v5781_v59 = vmul.f32 %v5147_v49, %v5559_v39  ;;  %v656_v14 = vmul.f32 %v5132_v55, %v480_v30  ;;  %v657_v7 = vmul.f32 %v5135_v8, %v480_v30  ;;  %v830_v11 = vpop.permute.xlu1 %829 }
 0x176   : > { %8912 = vst [vmem:[#allocation105_spill] sm:$0xff] %v5765_v63  ;;  %v4385_v61 = vpop.eup %4384  ;;  %v5787_v13 = vmul.f32 %v5138_v42, %v5578_v3  ;;  %v5791_v9 = vmul.f32 %v5141_v34, %v5578_v3  ;;  %v5793_v4 = vmul.f32 0.4, %v4377_v31  ;;  %v5795_v21 = vmul.f32 0.4, %v4379_v12  ;;  %v525_v12 = vpop.permute.xlu0 %524 }
 0x177   : > { %8913 = vst [vmem:[#allocation106_spill] sm:$0xff] %v5777_v41  ;;  %8914 = vst [vmem:[#allocation107_spill] sm:$0xff] %v5781_v59  ;;  %v4387_v39 = vpop.eup %4386  ;;  %v5799_v20 = vmul.f32 %v5145_v17, %v5587_v0  ;;  %v5803_v30 = vmul.f32 %v5147_v49, %v5587_v0  ;;  %v930_v35 = vadd.f32 %v866_v45, %v656_v14  ;;  %v5813_v41 = vmul.f32 0.4, %v4381_v38 }
 0x178   : > { %8915 = vst [vmem:[#allocation108_spill] sm:$0xff] %v5793_v4  ;;  %8916 = vst [vmem:[#allocation109_spill] sm:$0xff] %v5795_v21  ;;  %v931_v59 = vadd.f32 %v867_v62, %v657_v7  ;;  %v5807_v3 = vmul.f32 %v5138_v42, %v5605_v36  ;;  %v5811_v31 = vmul.f32 %v5141_v34, %v5605_v36  ;;  %v5815_v63 = vmul.f32 0.4, %v4383_v26 }
 0x179   : > { %8917 = vst [vmem:[#allocation110_spill] sm:$0xff] %v5799_v20  ;;  %8918 = vst [vmem:[#allocation111_spill] sm:$0xff] %v5803_v30  ;;  %v5819_v20 = vmul.f32 %v5145_v17, %v5613_v29  ;;  %v5823_v0 = vmul.f32 %v5147_v49, %v5613_v29  ;;  %v674_v7 = vmul.f32 %v5132_v55, %v525_v12  ;;  %v838_v62 = vpop.permute.xlu1 %837  ;;  %v5832_v26 = vmul.f32 0.4, %v4385_v61 }
 0x17a   : > { %8919 = vst [vmem:[#allocation112_spill] sm:$0xff] %v5813_v41  ;;  %8920 = vst [vmem:[#allocation113_spill] sm:$0xff] %v5815_v63  ;;  %v675_v45 = vmul.f32 %v5135_v8, %v525_v12  ;;  %v1204_v36 = vadd.f32 %v5673_v57, %v930_v35  ;;  %v5830_v38 = vadd.f32 %v5795_v21, %v5793_v4  ;;  %v5834_v14 = vmul.f32 0.4, %v4387_v39  ;;  %v535_v39 = vpop.permute.xlu0 %534 }
 0x17b   : > { %8921 = vst [vmem:[#allocation114_spill] sm:$0xff] %v5819_v20  ;;  %8922 = vst [vmem:[#allocation115_spill] sm:$0xff] %v5823_v0  ;;  %v5838_v20 = vmul.f32 %v5138_v42, %v5629_v50  ;;  %v1205_v29 = vadd.f32 %v5677_v2, %v931_v59  ;;  %v948_v0 = vadd.f32 %v884_v18, %v674_v7 }
 0x17c   : > { %8923 = vst [vmem:[#allocation116_spill] sm:$0xff] %v5832_v26  ;;  %8924 = vst [vmem:[#allocation117_spill] sm:$0xff] %v5834_v14  ;;  %v949_v30 = vadd.f32 %v885_v43, %v675_v45  ;;  %v5843_v35 = vmul.f32 %v5141_v34, %v5629_v50  ;;  %v5847_v57 = vmul.f32 %v5145_v17, %v5637_v44  ;;  %v1332_v7 = vmul.f32 2.0, %v1204_v36 }
 0x17d   : > { %v5851_v61 = vmul.f32 %v5147_v49, %v5637_v44  ;;  %v5855_v12 = vadd.f32 %v5815_v63, %v5813_v41  ;;  %v5859_v2 = vmul.f32 %v5138_v42, %v5653_v51  ;;  %v5863_v50 = vmul.f32 %v5141_v34, %v5653_v51  ;;  %v846_v45 = vpop.permute.xlu1 %845 }
 0x17e   : > { %v5867_v59 = vmul.f32 %v5145_v17, %v5661_v16  ;;  %v5871_v44 = vmul.f32 %v5147_v49, %v5661_v16  ;;  %v5875_v18 = vmul.f32 %v5138_v42, %v5687_v23  ;;  %v5879_v43 = vmul.f32 %v5141_v34, %v5687_v23 }
 0x17f   : > { %v5883_v51 = vadd.f32 %v5834_v14, %v5832_v26  ;;  %v5887_v63 = vmul.f32 %v5145_v17, %v5697_v52  ;;  %v1333_v16 = vmul.f32 2.0, %v1205_v29  ;;  %v1222_v41 = vadd.f32 %v5707_v28, %v948_v0  ;;  %v545_v26 = vpop.permute.xlu0 %544 }
 0x180   : > { %8925 = vst [vmem:[#allocation118_spill] sm:$0xff] %v5867_v59  ;;  %8926 = vst [vmem:[#allocation119_spill] sm:$0xff] %v5871_v44  ;;  %v1223_v21 = vadd.f32 %v5711_v40, %v949_v30  ;;  %v5893_v4 = vmul.f32 %v5147_v49, %v5697_v52  ;;  %v5897_v23 = vmul.f32 %v5138_v42, %v5741_v22 }
 0x181   : > { %8927 = vst [vmem:[#allocation120_spill] sm:$0xff] %v5883_v51  ;;  %8928 = vst [vmem:[#allocation121_spill] sm:$0xff] %v5887_v63  ;;  %v678_v36 = vmul.f32 %v5132_v55, %v535_v39  ;;  %v679_v14 = vmul.f32 %v5135_v8, %v535_v39  ;;  %v5903_v29 = vmul.f32 %v5141_v34, %v5741_v22  ;;  %v1350_v63 = vmul.f32 2.0, %v1222_v41  ;;  %v1000_v51 = vpop.permute.xlu1 %999 }
 0x182   : > { %8929 = vst [vmem:[#allocation122_spill] sm:$0xff] %v5893_v4  ;;  %v5906_v28 = vmul.f32 %v5138_v42, %v830_v11  ;;  %v682_v40 = vmul.f32 %v5132_v55, %v545_v26  ;;  %v683_v52 = vmul.f32 %v5135_v8, %v545_v26  ;;  %v1396_v30 = vsub.f32 %v5160_v19, %v1332_v7 }
 0x183   : > { %v5912_v0 = vmul.f32 %v5141_v34, %v830_v11  ;;  %v5915_v4 = vmul.f32 %v5138_v42, %v838_v62  ;;  %v5918_v39 = vmul.f32 %v5141_v34, %v838_v62  ;;  %v1397_v22 = vsub.f32 %v5164_v48, %v1333_v16 }
 0x184   : > { %v1351_v44 = vmul.f32 2.0, %v1223_v21  ;;  %v5922_v59 = vmul.f32 %v5138_v42, %v846_v45  ;;  %v952_v26 = vadd.f32 %v5753_v58, %v678_v36  ;;  %v953_v19 = vadd.f32 %v5757_v60, %v679_v14 }
 0x185   : > { %8930 = vst [vmem:[#allocation123_spill] sm:$0xff] %v5915_v4  ;;  %8931 = vst [vmem:[#allocation124_spill] sm:$0xff] %v5918_v39  ;;  %v1142_v11 = vmul.f32 %v5145_v17, %v1000_v51  ;;  %v1143_v7 = vmul.f32 %v5147_v49, %v1000_v51  ;;  %v555_v4 = vpop.permute.xlu0 %554  ;;  %v956_v62 = vadd.f32 %v5769_v46, %v682_v40  ;;  %v1460_v14 = vmul.f32 -0.5, %v1396_v30  ;;  %v8932_v51 = vld [vmem:[#allocation57_spill] sm:$0xff]  ;;  %v1004_v40 = vpop.permute.xlu1 %1003 }
 0x186   : > { %v957_v39 = vadd.f32 %v5773_v53, %v683_v52  ;;  %v686_v48 = vmul.f32 %v5132_v55, %v555_v4  ;;  %v687_v21 = vmul.f32 %v5135_v8, %v555_v4  ;;  %v5933_v41 = vmul.f32 %v5141_v34, %v846_v45 }
 0x187   : > { %v1206_v58 = vadd.f32 %v1142_v11, %v5443_v54  ;;  %v1207_v60 = vadd.f32 %v1143_v7, %v5445_v32  ;;  %v1414_v16 = vsub.f32 %v5220_v5, %v1350_v63  ;;  %v1415_v36 = vsub.f32 %v8932_v51, %v1351_v44 }
 0x188   : > { %v960_v46 = vadd.f32 %v5787_v13, %v686_v48  ;;  %v1461_v53 = vmul.f32 -0.5, %v1397_v22  ;;  %v1226_v52 = vadd.f32 %v5715_v25, %v952_v26  ;;  %v1227_v4 = vadd.f32 %v5719_v6, %v953_v19  ;;  %v8933_v48 = vld [vmem:[#allocation51_spill] sm:$0xff] }
 0x189   : > { %v1144_v45 = vmul.f32 %v5145_v17, %v1004_v40  ;;  %v1145_v34 = vmul.f32 %v5147_v49, %v1004_v40  ;;  %v565_v54 = vpop.permute.xlu0 %564  ;;  %v1230_v32 = vadd.f32 %v5723_v10, %v956_v62  ;;  %v1231_v30 = vadd.f32 %v5727_v47, %v957_v39  ;;  %v1012_v19 = vpop.permute.xlu1 %1011 }
 0x18a   : > { %v1334_v5 = vmul.f32 2.0, %v1206_v58  ;;  %v961_v63 = vadd.f32 %v5791_v9, %v687_v21  ;;  %v1335_v44 = vmul.f32 2.0, %v1207_v60  ;;  %v1234_v13 = vadd.f32 %v5731_v33, %v960_v46  ;;  %v8934_v58 = vld [vmem:[#allocation52_spill] sm:$0xff] }
 0x18b   : > { %v1208_v22 = vadd.f32 %v1144_v45, %v5700_v1  ;;  %v1209_v25 = vadd.f32 %v1145_v34, %v5703_v27  ;;  %v690_v6 = vmul.f32 %v5132_v55, %v565_v54  ;;  %v691_v26 = vmul.f32 %v5135_v8, %v565_v54  ;;  %v8936_v45 = vld [vmem:[#allocation61_spill] sm:$0xff] }
 0x18c   : > { %v5952_v11 = vmul.f32 1.442695, %v1460_v14  ;;  %v5954_v10 = vmul.f32 1.442695, %v1461_v53  ;;  %v5956_v47 = vmul.f32 2.0, %v1226_v52  ;;  %v5958_v39 = vmul.f32 2.0, %v1227_v4 }
 0x18d   : > { %v1336_v9 = vmul.f32 2.0, %v1208_v22  ;;  %v1337_v7 = vmul.f32 2.0, %v1209_v25  ;;  %v575_v33 = vpop.permute.xlu0 %574  ;;  %v5960_v62 = vmul.f32 2.0, %v1230_v32  ;;  %v5962_v1 = vmul.f32 2.0, %v1231_v30  ;;  %v8937_v32 = vld [vmem:[#allocation49_spill] sm:$0xff] }
 0x18e   : > { %v5964_v34 = vmul.f32 -0.5, %v1414_v16  ;;  %v5966_v27 = vmul.f32 -0.5, %v1415_v36  ;;  %v1398_v21 = vsub.f32 %v8933_v48, %v1334_v5  ;;  %v1399_v60 = vsub.f32 %v8934_v58, %v1335_v44  ;;  %v1020_v16 = vpop.permute.xlu1 %1019  ;;  %v8935_v36 = vld [vmem:[#allocation60_spill] sm:$0xff]  ;;  %v8943_v58 = vld [vmem:[#allocation15_spill] sm:$0xff] }
 0x18f   : > { %v1235_v14 = vadd.f32 %v5735_v56, %v961_v63  ;;  %v5971_v51 = vmul.f32 2.0, %v1234_v13  ;;  %v964_v46 = vadd.f32 %v5807_v3, %v690_v6  ;;  %v965_v40 = vadd.f32 %v5811_v31, %v691_v26  ;;  %v8938_v56 = vld [vmem:[#allocation50_spill] sm:$0xff]  ;;  %v8939_v63 = vld [vmem:[#allocation64_spill] sm:$0xff]  ;;  %v8940_v31 = vld [vmem:[#allocation65_spill] sm:$0xff] }
 0x190   : > { %v1148_v53 = vmul.f32 %v5145_v17, %v1012_v19  ;;  %v1149_v52 = vmul.f32 %v5147_v49, %v1012_v19  ;;  %v1400_v30 = vsub.f32 %v8937_v32, %v1336_v9  ;;  %v1401_v5 = vsub.f32 %v8938_v56, %v1337_v7  ;;  %v8942_v19 = vld [vmem:[#allocation14_spill] sm:$0xff]  ;;  %v8944_v7 = vld [vmem:[#allocation68_spill] sm:$0xff] }
 0x191   : > { %v694_v13 = vmul.f32 %v5132_v55, %v575_v33  ;;  %v695_v22 = vmul.f32 %v5135_v8, %v575_v33  ;;  %v585_v25 = vpop.permute.xlu0 %584  ;;  %v1462_v6 = vmul.f32 -0.5, %v1398_v21  ;;  %v5989_v26 = vmul.f32 2.0, %v1235_v14 }
 0x192   : > { %v1212_v48 = vadd.f32 %v1148_v53, %v8942_v19  ;;  %v1213_v9 = vadd.f32 %v1149_v52, %v8943_v58  ;;  %v1463_v32 = vmul.f32 -0.5, %v1399_v60  ;;  %v1238_v3 = vadd.f32 %v5745_v15, %v964_v46  ;;  %v1028_v19 = vpop.permute.xlu1 %1027 }
 0x193   : > { %8941 = vst [vmem:[#allocation57_spill] sm:$0xff] %v5989_v26  ;;  %v1239_v44 = vadd.f32 %v5749_v37, %v965_v40  ;;  %v1464_v54 = vmul.f32 -0.5, %v1400_v30  ;;  %v1465_v4 = vmul.f32 -0.5, %v1401_v5  ;;  %v1152_v33 = vmul.f32 %v5145_v17, %v1020_v16  ;;  %v8946_v40 = vld [vmem:[#allocation16_spill] sm:$0xff]  ;;  %v8961_v26 = vld [vmem:[#allocation19_spill] sm:$0xff] }
 0x194   : > { %v1153_v21 = vmul.f32 %v5147_v49, %v1020_v16  ;;  %v968_v14 = vadd.f32 %v5838_v20, %v694_v13  ;;  %v969_v53 = vadd.f32 %v5843_v35, %v695_v22  ;;  %v698_v52 = vmul.f32 %v5132_v55, %v585_v25  ;;  %v8947_v16 = vld [vmem:[#allocation17_spill] sm:$0xff] }
 0x195   : > { %v699_v60 = vmul.f32 %v5135_v8, %v585_v25  ;;  %v1340_v46 = vmul.f32 2.0, %v1212_v48  ;;  %v1341_v37 = vmul.f32 2.0, %v1213_v9  ;;  %v1216_v30 = vadd.f32 %v1152_v33, %v8946_v40  ;;  %v595_v13 = vpop.permute.xlu0 %594  ;;  %v8950_v9 = vld [vmem:[#allocation105_spill] sm:$0xff] }
 0x196   : > { %v6006_v5 = vmul.f32 1.442695, %v1462_v6  ;;  %v6008_v56 = vmul.f32 1.442695, %v1463_v32  ;;  %v1217_v20 = vadd.f32 %v1153_v21, %v8947_v16  ;;  %v972_v35 = vadd.f32 %v5859_v2, %v698_v52  ;;  %v8951_v40 = vld [vmem:[#allocation53_spill] sm:$0xff]  ;;  %v8952_v16 = vld [vmem:[#allocation54_spill] sm:$0xff] }
 0x197   : > { %v6012_v22 = vmul.f32 1.442695, %v1464_v54  ;;  %v6014_v25 = vmul.f32 1.442695, %v1465_v4  ;;  %v6016_v42 = vmul.f32 2.0, %v1238_v3  ;;  %v6018_v15 = vmul.f32 2.0, %v1239_v44  ;;  %v1036_v44 = vpop.permute.xlu1 %1035 }
 0x198   : > { %v1242_v48 = vadd.f32 %v5761_v24, %v968_v14  ;;  %v1243_v6 = vadd.f32 %v8950_v9, %v969_v53  ;;  %v1344_v33 = vmul.f32 2.0, %v1216_v30  ;;  %v973_v32 = vadd.f32 %v5863_v50, %v699_v60  ;;  %v8953_v3 = vld [vmem:[#allocation106_spill] sm:$0xff]  ;;  %v8962_v60 = vld [vmem:[#allocation56_spill] sm:$0xff] }
 0x199   : > { %8948 = vst [vmem:[#allocation51_spill] sm:$0xff] %v6016_v42  ;;  %8949 = vst [vmem:[#allocation52_spill] sm:$0xff] %v6018_v15  ;;  %v1404_v21 = vsub.f32 %v8951_v40, %v1340_v46  ;;  %v1405_v2 = vsub.f32 %v8952_v16, %v1341_v37  ;;  %4388 = vpow2.f32 %v5952_v11  ;;  %v1156_v4 = vmul.f32 %v5145_v17, %v1028_v19  ;;  %v8956_v46 = vld [vmem:[#allocation18_spill] sm:$0xff] }
 0x19a   : > { %v1345_v54 = vmul.f32 2.0, %v1217_v20  ;;  %v1246_v52 = vadd.f32 %v8953_v3, %v972_v35  ;;  %4390 = vpow2.f32 %v5954_v10  ;;  %v1157_v24 = vmul.f32 %v5147_v49, %v1028_v19  ;;  %v8959_v35 = vld [vmem:[#allocation55_spill] sm:$0xff]  ;;  %v605_v19 = vpop.permute.xlu0 %604 }
 0x19b   : > { %v1220_v37 = vadd.f32 %v1156_v4, %v8956_v46  ;;  %v702_v11 = vmul.f32 %v5132_v55, %v595_v13  ;;  %v6036_v30 = vmul.f32 2.0, %v1242_v48  ;;  %v6038_v20 = vmul.f32 2.0, %v1243_v6  ;;  %v8960_v10 = vld [vmem:[#allocation107_spill] sm:$0xff] }
 0x19c   : > { %v1408_v9 = vsub.f32 %v8959_v35, %v1344_v33  ;;  %v1247_v40 = vadd.f32 %v8960_v10, %v973_v32  ;;  %v1468_v16 = vmul.f32 -0.5, %v1404_v21  ;;  %v1469_v3 = vmul.f32 -0.5, %v1405_v2  ;;  %v8971_v2 = vld [vmem:[#allocation110_spill] sm:$0xff] }
 0x19d   : > { %8957 = vst [vmem:[#allocation60_spill] sm:$0xff] %v6036_v30  ;;  %8958 = vst [vmem:[#allocation61_spill] sm:$0xff] %v6038_v20  ;;  %v1221_v53 = vadd.f32 %v1157_v24, %v8961_v26  ;;  %v703_v42 = vmul.f32 %v5135_v8, %v595_v13  ;;  %v1409_v15 = vsub.f32 %v8962_v60, %v1345_v54  ;;  %v6045_v4 = vmul.f32 2.0, %v1246_v52  ;;  %v8966_v54 = vld [vmem:[#allocation20_spill] sm:$0xff]  ;;  %v1044_v60 = vpop.permute.xlu1 %1043 }
 0x19e   : > { %v1160_v48 = vmul.f32 %v5145_v17, %v1036_v44  ;;  %v1161_v6 = vmul.f32 %v5147_v49, %v1036_v44  ;;  %v1348_v46 = vmul.f32 2.0, %v1220_v37  ;;  %v976_v33 = vadd.f32 %v5875_v18, %v702_v11  ;;  %v8968_v18 = vld [vmem:[#allocation22_spill] sm:$0xff] }
 0x19f   : > { %8963 = vst [vmem:[#allocation49_spill] sm:$0xff] %v6045_v4  ;;  %v706_v32 = vmul.f32 %v5132_v55, %v605_v19  ;;  %v707_v21 = vmul.f32 %v5135_v8, %v605_v19  ;;  %v1472_v24 = vmul.f32 -0.5, %v1408_v9  ;;  %v6054_v13 = vmul.f32 2.0, %v1247_v40  ;;  %v8974_v4 = vld [vmem:[#allocation111_spill] sm:$0xff] }
 0x1a0   : > { %v1224_v52 = vadd.f32 %v1160_v48, %v8966_v54  ;;  %v1349_v44 = vmul.f32 2.0, %v1221_v53  ;;  %v977_v37 = vadd.f32 %v5879_v43, %v703_v42  ;;  %v1225_v11 = vadd.f32 %v1161_v6, %v8968_v18  ;;  %v8970_v54 = vld [vmem:[#allocation58_spill] sm:$0xff]  ;;  %v615_v42 = vpop.permute.xlu0 %614  ;;  %v8973_v18 = vld [vmem:[#allocation59_spill] sm:$0xff] }
 0x1a1   : > { %8965 = vst [vmem:[#allocation50_spill] sm:$0xff] %v6054_v13  ;;  %v6061_v50 = vmul.f32 1.442695, %v1468_v16  ;;  %v6063_v19 = vmul.f32 1.442695, %v1469_v3  ;;  %v1473_v14 = vmul.f32 -0.5, %v1409_v15  ;;  %v980_v9 = vadd.f32 %v5897_v23, %v706_v32  ;;  %v1052_v26 = vpop.permute.xlu1 %1051 }
 0x1a2   : > { %v1412_v30 = vsub.f32 %v8970_v54, %v1348_v46  ;;  %v1250_v10 = vadd.f32 %v8971_v2, %v976_v33  ;;  %v981_v53 = vadd.f32 %v5903_v29, %v707_v21  ;;  %v6071_v6 = vmul.f32 1.442695, %v1472_v24  ;;  %v8975_v33 = vld [vmem:[#allocation114_spill] sm:$0xff]  ;;  %v8976_v3 = vld [vmem:[#allocation115_spill] sm:$0xff] }
 0x1a3   : > { %v4389_v40 = vpop.eup %4388  ;;  %v1352_v23 = vmul.f32 2.0, %v1224_v52  ;;  %v1413_v48 = vsub.f32 %v8973_v18, %v1349_v44  ;;  %v1251_v46 = vadd.f32 %v8974_v4, %v977_v37  ;;  %v1353_v54 = vmul.f32 2.0, %v1225_v11  ;;  %v8977_v18 = vld [vmem:[#allocation62_spill] sm:$0xff]  ;;  %v8978_v37 = vld [vmem:[#allocation21_spill] sm:$0xff] }
 0x1a4   : > { %v4391_v43 = vpop.eup %4390  ;;  %v6075_v15 = vmul.f32 0.4, %v4389_v40  ;;  %v1254_v2 = vadd.f32 %v8975_v33, %v980_v9  ;;  %v1164_v29 = vmul.f32 %v5145_v17, %v1044_v60  ;;  %v1165_v21 = vmul.f32 %v5147_v49, %v1044_v60  ;;  %v8979_v9 = vld [vmem:[#allocation24_spill] sm:$0xff]  ;;  %v8980_v60 = vld [vmem:[#allocation63_spill] sm:$0xff] }
 0x1a5   : > { %v6077_v32 = vmul.f32 0.4, %v4391_v43  ;;  %v710_v24 = vmul.f32 %v5132_v55, %v615_v42  ;;  %v1476_v52 = vmul.f32 -0.5, %v1412_v30  ;;  %v6087_v43 = vmul.f32 2.0, %v1250_v10 }
 0x1a6   : > { %v1255_v44 = vadd.f32 %v8976_v3, %v981_v53  ;;  %v1416_v4 = vsub.f32 %v8977_v18, %v1352_v23  ;;  %v1228_v11 = vadd.f32 %v1164_v29, %v8978_v37  ;;  %v1229_v33 = vadd.f32 %v1165_v21, %v8979_v9  ;;  %v8981_v23 = vld [vmem:[#allocation23_spill] sm:$0xff] }
 0x1a7   : > { %v1716_v40 = vadd.f32 %v6077_v32, %v6075_v15  ;;  %v711_v13 = vmul.f32 %v5135_v8, %v615_v42  ;;  %v1417_v16 = vsub.f32 %v8980_v60, %v1353_v54  ;;  %v984_v20 = vadd.f32 %v5906_v28, %v710_v24  ;;  %v8982_v42 = vld [vmem:[#allocation26_spill] sm:$0xff]  ;;  %v625_v54 = vpop.permute.xlu0 %624 }
 0x1a8   : > { %v1168_v35 = vmul.f32 %v5145_v17, %v1052_v26  ;;  %v1169_v30 = vmul.f32 %v5147_v49, %v1052_v26  ;;  %v1477_v10 = vmul.f32 -0.5, %v1413_v48  ;;  %v6098_v58 = vmul.f32 2.0, %v1251_v46 }
 0x1a9   : > { %1717 = vadd.xlane.f32.xlu1 %v1716_v40  ;;  %v6100_v53 = vmul.f32 2.0, %v1254_v2  ;;  %4392 = vpow2.f32 %v6006_v5  ;;  %v1356_v3 = vmul.f32 2.0, %v1228_v11  ;;  %v1480_v28 = vmul.f32 -0.5, %v1416_v4  ;;  %v8994_v4 = vld [vmem:[#allocation120_spill] sm:$0xff] }
 0x1aa   : > { %v1232_v29 = vadd.f32 %v1168_v35, %v8981_v23  ;;  %v1233_v21 = vadd.f32 %v1169_v30, %v8982_v42  ;;  %4394 = vpow2.f32 %v6008_v56  ;;  %v6106_v24 = vmul.f32 2.0, %v1255_v44  ;;  %v8983_v56 = vld [vmem:[#allocation84_spill] sm:$0xff]  ;;  %v8984_v44 = vld [vmem:[#allocation85_spill] sm:$0xff]  ;;  %v8989_v42 = vld [vmem:[#allocation123_spill] sm:$0xff] }
 0x1ab   : > { %v1357_v40 = vmul.f32 2.0, %v1229_v33  ;;  %v985_v26 = vadd.f32 %v5912_v0, %v711_v13  ;;  %v6109_v48 = vmul.f32 1.442695, %v1473_v14  ;;  %v6111_v46 = vmul.f32 1.442695, %v1476_v52  ;;  %v8985_v0 = vld [vmem:[#allocation88_spill] sm:$0xff] }
 0x1ac   : > { %v1481_v5 = vmul.f32 -0.5, %v1417_v16  ;;  %v1258_v35 = vadd.f32 %v5847_v57, %v984_v20  ;;  %v6115_v2 = vmul.f32 1.442695, %v1477_v10  ;;  %v714_v37 = vmul.f32 %v5132_v55, %v625_v54  ;;  %v8986_v13 = vld [vmem:[#allocation66_spill] sm:$0xff]  ;;  %v1060_v16 = vpop.permute.xlu1 %1059  ;;  %v8987_v57 = vld [vmem:[#allocation89_spill] sm:$0xff]  ;;  %v8988_v33 = vld [vmem:[#allocation67_spill] sm:$0xff] }
 0x1ad   : > { %1726 = vadd.xlane.f32.xlu1 %v5830_v38  ;;  %v1420_v52 = vsub.f32 %v8986_v13, %v1356_v3  ;;  %v1360_v11 = vmul.f32 2.0, %v1232_v29  ;;  %v1361_v38 = vmul.f32 2.0, %v1233_v21  ;;  %v6125_v9 = vmul.f32 1.442695, %v1480_v28 }
 0x1ae   : > { %v1421_v60 = vsub.f32 %v8988_v33, %v1357_v40  ;;  %v1259_v30 = vadd.f32 %v5851_v61, %v985_v26  ;;  %v6131_v10 = vmul.f32 1.442695, %v1481_v5  ;;  %v6134_v23 = vmul.f32 2.0, %v1258_v35  ;;  %v8990_v61 = vld [vmem:[#allocation70_spill] sm:$0xff]  ;;  %v8991_v5 = vld [vmem:[#allocation71_spill] sm:$0xff] }
 0x1af   : > { %v715_v3 = vmul.f32 %v5135_v8, %v625_v54  ;;  %v1560_v29 = vmul.f32 1.442695, %v5964_v34  ;;  %v988_v21 = vadd.f32 %v8989_v42, %v714_v37  ;;  %v1562_v28 = vmul.f32 1.442695, %v5966_v27  ;;  %v8992_v34 = vld [vmem:[#allocation25_spill] sm:$0xff]  ;;  %v8993_v27 = vld [vmem:[#allocation92_spill] sm:$0xff] }
 0x1b0   : > { %v1172_v13 = vmul.f32 %v5145_v17, %v1060_v16  ;;  %v1173_v40 = vmul.f32 %v5147_v49, %v1060_v16  ;;  %v1484_v33 = vmul.f32 -0.5, %v1420_v52  ;;  %v1424_v26 = vsub.f32 %v8990_v61, %v1360_v11  ;;  %v8995_v52 = vld [vmem:[#allocation124_spill] sm:$0xff]  ;;  %v635_v11 = vpop.permute.xlu0 %634 }
 0x1b1   : > { %1732 = vadd.xlane.f32.xlu1 %v5855_v12  ;;  %v1425_v20 = vsub.f32 %v8991_v5, %v1361_v38  ;;  %4396 = vpow2.f32 %v1560_v29  ;;  %v1485_v35 = vmul.f32 -0.5, %v1421_v60  ;;  %v6144_v14 = vmul.f32 2.0, %v1259_v30  ;;  %v8996_v29 = vld [vmem:[#allocation118_spill] sm:$0xff]  ;;  %v8997_v30 = vld [vmem:[#allocation27_spill] sm:$0xff] }
 0x1b2   : > { %4398 = vpow2.f32 %v1562_v28  ;;  %v1236_v54 = vadd.f32 %v1172_v13, %v8992_v34  ;;  %v989_v18 = vadd.f32 %v8995_v52, %v715_v3  ;;  %v1262_v60 = vadd.f32 %v8996_v29, %v988_v21  ;;  %v1068_v52 = vpop.permute.xlu1 %1067 }
 0x1b3   : > { %v4393_v12 = vpop.eup %4392  ;;  %4400 = vpow2.f32 %v6012_v22  ;;  %v1237_v61 = vadd.f32 %v1173_v40, %v8997_v30  ;;  %v1488_v28 = vmul.f32 -0.5, %v1424_v26  ;;  %v1489_v13 = vmul.f32 -0.5, %v1425_v20  ;;  %v8999_v40 = vld [vmem:[#allocation119_spill] sm:$0xff] }
 0x1b4   : > { %v4395_v37 = vpop.eup %4394  ;;  %v1654_v16 = vmul.f32 0.4, %v4393_v12  ;;  %4402 = vpow2.f32 %v6014_v25  ;;  %v1364_v22 = vmul.f32 2.0, %v1236_v54  ;;  %v6161_v21 = vmul.f32 1.442695, %v1484_v33 }
 0x1b5   : > { %1738 = vadd.xlane.f32.xlu1 %v8994_v4  ;;  %v1655_v38 = vmul.f32 0.4, %v4395_v37  ;;  %v8998_v4 = vsub.f32 %v8935_v36, %v5956_v47  ;;  %v718_v37 = vmul.f32 %v5132_v55, %v635_v11  ;;  %v1263_v29 = vadd.f32 %v8999_v40, %v989_v18  ;;  %v9001_v47 = vld [vmem:[#allocation93_spill] sm:$0xff]  ;;  %v9031_v36 = vld [vmem:[#allocation52_spill] sm:$0xff] }
 0x1b6   : > { %v1812_v5 = vadd.f32 %v1654_v16, %v6075_v15  ;;  %v9000_v25 = vsub.f32 %v8936_v45, %v5958_v39  ;;  %v6167_v26 = vmul.f32 1.442695, %v1485_v35  ;;  %v719_v54 = vmul.f32 %v5135_v8, %v635_v11  ;;  %v9002_v45 = vld [vmem:[#allocation74_spill] sm:$0xff] }
 0x1b7   : > { %v1482_v12 = vmul.f32 -0.5, %v8998_v4  ;;  %v1719_v34 = vadd.f32 %v1655_v38, %v1654_v16  ;;  %v1849_v3 = vadd.f32 %v1655_v38, %v6077_v32  ;;  %v1365_v32 = vmul.f32 2.0, %v1237_v61 }
 0x1b8   : > { %v1483_v20 = vmul.f32 -0.5, %v9000_v25  ;;  %v6172_v16 = vmul.f32 2.0, %v1262_v60  ;;  %v1176_v18 = vmul.f32 %v5145_v17, %v1068_v52  ;;  %v6175_v38 = vmul.f32 1.442695, %v1488_v28  ;;  %v9004_v28 = vld [vmem:[#allocation75_spill] sm:$0xff] }
 0x1b9   : > { %v1568_v15 = vmul.f32 1.442695, %v1482_v12  ;;  %1720 = vadd.xlane.f32.xlu0 %v1719_v34  ;;  %v6177_v39 = vmul.f32 1.442695, %v1489_v13  ;;  %v1428_v35 = vsub.f32 %v9002_v45, %v1364_v22  ;;  %v992_v30 = vadd.f32 %v5922_v59, %v718_v37  ;;  %v9005_v37 = vld [vmem:[#allocation28_spill] sm:$0xff] }
 0x1ba   : > { %v1570_v33 = vmul.f32 1.442695, %v1483_v20  ;;  %v6181_v12 = vmul.f32 2.0, %v1263_v29  ;;  %v1177_v11 = vmul.f32 %v5147_v49, %v1068_v52  ;;  %v9003_v60 = vsub.f32 %v8939_v63, %v5960_v62 }
 0x1bb   : > { %4404 = vpow2.f32 %v1568_v15  ;;  %v4397_v4 = vpop.eup %4396  ;;  %v1429_v13 = vsub.f32 %v9004_v28, %v1365_v32  ;;  %v993_v25 = vadd.f32 %v5933_v41, %v719_v54  ;;  %v1240_v29 = vadd.f32 %v1176_v18, %v9005_v37  ;;  %v9008_v54 = vld [vmem:[#allocation29_spill] sm:$0xff]  ;;  %v9009_v18 = vld [vmem:[#allocation11_spill] sm:$0xff] }
 0x1bc   : > { %4406 = vpow2.f32 %v1570_v33  ;;  %v1486_v61 = vmul.f32 -0.5, %v9003_v60  ;;  %v4399_v34 = vpop.eup %4398  ;;  %v6187_v40 = vmul.f32 0.4, %v4397_v4  ;;  %v9006_v62 = vsub.f32 %v8940_v31, %v5962_v1  ;;  %v9007_v33 = vld [vmem:[#allocation121_spill] sm:$0xff]  ;;  %v1076_v1 = vpop.permute.xlu1 %1075 }
 0x1bd   : > { %4408 = vpow2.f32 %v6061_v50  ;;  %v4401_v59 = vpop.eup %4400  ;;  %v6192_v22 = vmul.f32 0.4, %v4399_v34  ;;  %v1492_v20 = vmul.f32 -0.5, %v1428_v35  ;;  %v1266_v32 = vadd.f32 %v9007_v33, %v992_v30  ;;  %v9010_v30 = vld [vmem:[#allocation96_spill] sm:$0xff]  ;;  %v9015_v33 = vld [vmem:[#allocation57_spill] sm:$0xff] }
 0x1be   : > { %4410 = vpow2.f32 %v6063_v19  ;;  %v1487_v63 = vmul.f32 -0.5, %v9006_v62  ;;  %v4403_v52 = vpop.eup %4402  ;;  %v1656_v15 = vmul.f32 0.4, %v4401_v59  ;;  %v1576_v45 = vmul.f32 1.442695, %v1486_v61  ;;  %v9011_v62 = vld [vmem:[#allocation122_spill] sm:$0xff] }
 0x1bf   : > { %v1743_v41 = vadd.f32 %v6192_v22, %v6187_v40  ;;  %v1657_v50 = vmul.f32 0.4, %v4403_v52  ;;  %v1241_v4 = vadd.f32 %v1177_v11, %v9008_v54  ;;  %v1493_v34 = vmul.f32 -0.5, %v1429_v13  ;;  %v9017_v54 = vld [vmem:[#allocation78_spill] sm:$0xff] }
 0x1c0   : > { %v1578_v60 = vmul.f32 1.442695, %v1487_v63  ;;  %v1813_v28 = vadd.f32 %v1812_v5, %v1656_v15  ;;  %4412 = vpow2.f32 %v1576_v45  ;;  %v1368_v59 = vmul.f32 2.0, %v1240_v29 }
 0x1c1   : > { %1744 = vadd.xlane.f32.xlu1 %v1743_v41  ;;  %v1722_v31 = vadd.f32 %v1657_v50, %v1656_v15  ;;  %v1850_v35 = vadd.f32 %v1849_v3, %v1657_v50  ;;  %v6207_v37 = vmul.f32 1.442695, %v1492_v20  ;;  %v1267_v11 = vadd.f32 %v9011_v62, %v993_v25  ;;  %v9014_v25 = vld [vmem:[#allocation69_spill] sm:$0xff] }
 0x1c2   : > { %4414 = vpow2.f32 %v1578_v60  ;;  %v6210_v63 = vmul.f32 2.0, %v1266_v32  ;;  %v1369_v13 = vmul.f32 2.0, %v1241_v4  ;;  %v1180_v5 = vmul.f32 %v5145_v17, %v1076_v1  ;;  %v9019_v62 = vld [vmem:[#allocation109_spill] sm:$0xff] }
 0x1c3   : > { %1723 = vadd.xlane.f32.xlu0 %v1722_v31  ;;  %4416 = vpow2.f32 %v6071_v6  ;;  %v9013_v3 = vsub.f32 %v8944_v7, %v5971_v51  ;;  %v1181_v20 = vmul.f32 %v5147_v49, %v1076_v1  ;;  %v9016_v32 = vsub.f32 %v9014_v25, %v9015_v33  ;;  %v9018_v6 = vld [vmem:[#allocation108_spill] sm:$0xff]  ;;  %v9020_v25 = vld [vmem:[#allocation79_spill] sm:$0xff] }
 0x1c4   : > { %9012 = vst [vmem:[#allocation64_spill] sm:$0xff] %v6210_v63  ;;  %4418 = vpow2.f32 %v6109_v48  ;;  %v6224_v50 = vmul.f32 1.442695, %v1493_v34  ;;  %v1432_v4 = vsub.f32 %v9017_v54, %v1368_v59  ;;  %v1814_v60 = vadd.f32 %v1813_v28, %v9018_v6  ;;  %v9021_v34 = vld [vmem:[#allocation30_spill] sm:$0xff] }
 0x1c5   : > { %v4405_v52 = vpop.eup %4404  ;;  %v1490_v29 = vmul.f32 -0.5, %v9013_v3  ;;  %v1491_v45 = vmul.f32 -0.5, %v9016_v32  ;;  %v1084_v3 = vpop.permute.xlu1 %1083  ;;  %4420 = vpow2.f32 %v6111_v46  ;;  %v1433_v33 = vsub.f32 %v9020_v25, %v1369_v13  ;;  %v9024_v25 = vld [vmem:[#allocation112_spill] sm:$0xff] }
 0x1c6   : > { %v6217_v15 = vmul.f32 0.4, %v4405_v52  ;;  %v4407_v41 = vpop.eup %4406  ;;  %v1851_v52 = vadd.f32 %v1850_v35, %v9019_v62  ;;  %v1244_v61 = vadd.f32 %v1180_v5, %v9021_v34  ;;  %v6237_v54 = vmul.f32 2.0, %v1267_v11 }
 0x1c7   : > { %v1584_v31 = vmul.f32 1.442695, %v1490_v29  ;;  %v4409_v51 = vpop.eup %4408  ;;  %v6228_v7 = vmul.f32 0.4, %v4407_v41  ;;  %v1586_v1 = vmul.f32 1.442695, %v1491_v45  ;;  %v1184_v46 = vmul.f32 %v5145_v17, %v1084_v3 }
 0x1c8   : > { %v4411_v48 = vpop.eup %4410  ;;  %v1660_v32 = vmul.f32 0.4, %v4409_v51  ;;  %v9022_v29 = vld [vmem:[#allocation32_spill] sm:$0xff]  ;;  %v1496_v35 = vmul.f32 -0.5, %v1432_v4  ;;  %v1185_v5 = vmul.f32 %v5147_v49, %v1084_v3  ;;  %v1372_v11 = vmul.f32 2.0, %v1244_v61 }
 0x1c9   : > { %4422 = vpow2.f32 %v1584_v31  ;;  %v1749_v28 = vadd.f32 %v6228_v7, %v6217_v15  ;;  %v1661_v59 = vmul.f32 0.4, %v4411_v48  ;;  %v1245_v41 = vadd.f32 %v1181_v20, %v9022_v29  ;;  %v9028_v29 = vld [vmem:[#allocation113_spill] sm:$0xff]  ;;  %v9029_v48 = vld [vmem:[#allocation31_spill] sm:$0xff] }
 0x1ca   : > { %4424 = vpow2.f32 %v1586_v1  ;;  %v1815_v45 = vadd.f32 %v1814_v60, %v1660_v32  ;;  %v4413_v6 = vpop.eup %4412  ;;  %v1497_v20 = vmul.f32 -0.5, %v1433_v33  ;;  %v1248_v33 = vadd.f32 %v1184_v46, %v9029_v48  ;;  %v9036_v48 = vld [vmem:[#allocation83_spill] sm:$0xff] }
 0x1cb   : > { %1750 = vadd.xlane.f32.xlu1 %v1749_v28  ;;  %v1728_v13 = vadd.f32 %v1661_v59, %v1660_v32  ;;  %v1852_v51 = vadd.f32 %v1851_v52, %v1661_v59  ;;  %4426 = vpow2.f32 %v6115_v2  ;;  %v6244_v1 = vmul.f32 0.4, %v4413_v6  ;;  %v9025_v32 = vld [vmem:[#allocation72_spill] sm:$0xff]  ;;  %v9026_v52 = vld [vmem:[#allocation51_spill] sm:$0xff]  ;;  %v9030_v6 = vld [vmem:[#allocation73_spill] sm:$0xff] }
 0x1cc   : > { %v4415_v31 = vpop.eup %4414  ;;  %v1373_v60 = vmul.f32 2.0, %v1245_v41  ;;  %v1816_v34 = vadd.f32 %v1815_v45, %v9024_v25  ;;  %v9027_v28 = vsub.f32 %v9025_v32, %v9026_v52  ;;  %v6252_v2 = vmul.f32 1.442695, %v1496_v35  ;;  %v9033_v25 = vld [vmem:[#allocation33_spill] sm:$0xff]  ;;  %v9035_v35 = vld [vmem:[#allocation82_spill] sm:$0xff] }
 0x1cd   : > { %1729 = vadd.xlane.f32.xlu0 %v1728_v13  ;;  %v6246_v4 = vmul.f32 0.4, %v4415_v31  ;;  %v4417_v59 = vpop.eup %4416  ;;  %v1853_v19 = vadd.f32 %v1852_v51, %v9028_v29  ;;  %v9032_v61 = vsub.f32 %v9030_v6, %v9031_v36  ;;  %v1092_v31 = vpop.permute.xlu1 %1091  ;;  %v1249_v32 = vadd.f32 %v1185_v5, %v9033_v25 }
 0x1ce   : > { %v1494_v3 = vmul.f32 -0.5, %v9027_v28  ;;  %v4419_v42 = vpop.eup %4418  ;;  %v1664_v45 = vmul.f32 0.4, %v4417_v59  ;;  %v6262_v28 = vmul.f32 1.442695, %v1497_v20  ;;  %v1436_v8 = vsub.f32 %v9035_v35, %v1372_v11  ;;  %v9037_v11 = vld [vmem:[#allocation116_spill] sm:$0xff] }
 0x1cf   : > { %v1495_v13 = vmul.f32 -0.5, %v9032_v61  ;;  %v1755_v41 = vadd.f32 %v6246_v4, %v6244_v1  ;;  %v1665_v51 = vmul.f32 0.4, %v4419_v42  ;;  %v4421_v46 = vpop.eup %4420  ;;  %v1437_v36 = vsub.f32 %v9036_v48, %v1373_v60  ;;  %v9039_v60 = vld [vmem:[#allocation117_spill] sm:$0xff] }
 0x1d0   : > { %v1592_v52 = vmul.f32 1.442695, %v1494_v3  ;;  %9034 = vst [vmem:[#allocation65_spill] sm:$0xff] %v6262_v28  ;;  %v1817_v6 = vadd.f32 %v1816_v34, %v1664_v45  ;;  %v1188_v61 = vmul.f32 %v5145_v17, %v1092_v31  ;;  %v1376_v62 = vmul.f32 2.0, %v1248_v33  ;;  %v9049_v28 = vld [vmem:[#allocation87_spill] sm:$0xff] }
 0x1d1   : > { %v1594_v29 = vmul.f32 1.442695, %v1495_v13  ;;  %1756 = vadd.xlane.f32.xlu1 %v1755_v41  ;;  %v1734_v63 = vadd.f32 %v1665_v51, %v1664_v45  ;;  %v1854_v59 = vadd.f32 %v1853_v19, %v1665_v51  ;;  %v1668_v5 = vmul.f32 0.4, %v4421_v46  ;;  %v1100_v45 = vpop.permute.xlu1 %1099 }
 0x1d2   : > { %4428 = vpow2.f32 %v1592_v52  ;;  %v1377_v25 = vmul.f32 2.0, %v1249_v32  ;;  %v1818_v42 = vadd.f32 %v1817_v6, %v9037_v11  ;;  %v1189_v41 = vmul.f32 %v5147_v49, %v1092_v31  ;;  %v9040_v52 = vld [vmem:[#allocation35_spill] sm:$0xff]  ;;  %v9042_v32 = vld [vmem:[#allocation60_spill] sm:$0xff]  ;;  %v9044_v6 = vld [vmem:[#allocation77_spill] sm:$0xff] }
 0x1d3   : > { %v4423_v55 = vpop.eup %4422  ;;  %4430 = vpow2.f32 %v1594_v29  ;;  %1735 = vadd.xlane.f32.xlu0 %v1734_v63  ;;  %v1855_v34 = vadd.f32 %v1854_v59, %v9039_v60  ;;  %v1252_v35 = vadd.f32 %v1188_v61, %v9040_v52  ;;  %v1500_v63 = vmul.f32 -0.5, %v1436_v8  ;;  %v9045_v31 = vld [vmem:[#allocation61_spill] sm:$0xff] }
 0x1d4   : > { %v4425_v3 = vpop.eup %4424  ;;  %v6267_v20 = vmul.f32 0.4, %v4423_v55  ;;  %4432 = vpow2.f32 %v6125_v9  ;;  %v1819_v33 = vadd.f32 %v1818_v42, %v1668_v5  ;;  %v9041_v55 = vld [vmem:[#allocation76_spill] sm:$0xff]  ;;  %v9046_v59 = vsub.f32 %v9044_v6, %v9045_v31 }
 0x1d5   : > { %v6270_v13 = vmul.f32 0.4, %v4425_v3  ;;  %v4427_v19 = vpop.eup %4426  ;;  %4434 = vpow2.f32 %v6131_v10  ;;  %v9043_v51 = vsub.f32 %v9041_v55, %v9042_v32  ;;  %v9047_v3 = vld [vmem:[#allocation86_spill] sm:$0xff]  ;;  %v1192_v10 = vmul.f32 %v5145_v17, %v1100_v45  ;;  %v9048_v55 = vld [vmem:[#allocation36_spill] sm:$0xff] }
 0x1d6   : > { %v1669_v48 = vmul.f32 0.4, %v4427_v19  ;;  %v1499_v9 = vmul.f32 -0.5, %v9046_v59  ;;  %v1440_v11 = vsub.f32 %v9047_v3, %v1376_v62  ;;  %v1820_v42 = vadd.f32 %v1819_v33, %v6187_v40  ;;  %v9050_v62 = vld [vmem:[#allocation80_spill] sm:$0xff]  ;;  %v9051_v33 = vld [vmem:[#allocation49_spill] sm:$0xff] }
 0x1d7   : > { %9038 = vst [vmem:[#allocation14_spill] sm:$0xff] %v6270_v13  ;;  %v1498_v29 = vmul.f32 -0.5, %v9043_v51  ;;  %v1761_v46 = vadd.f32 %v6270_v13, %v6267_v20  ;;  %v1253_v8 = vadd.f32 %v1189_v41, %v9048_v55  ;;  %v1501_v51 = vmul.f32 -0.5, %v1437_v36  ;;  %v9054_v36 = vld [vmem:[#allocation81_spill] sm:$0xff] }
 0x1d8   : > { %v1740_v60 = vadd.f32 %v1669_v48, %v1668_v5  ;;  %v1856_v52 = vadd.f32 %v1855_v34, %v1669_v48  ;;  %v1602_v32 = vmul.f32 1.442695, %v1499_v9  ;;  %v1441_v19 = vsub.f32 %v9049_v28, %v1377_v25  ;;  %v9053_v48 = vld [vmem:[#allocation39_spill] sm:$0xff]  ;;  %v9055_v28 = vld [vmem:[#allocation50_spill] sm:$0xff] }
 0x1d9   : > { %v1600_v61 = vmul.f32 1.442695, %v1498_v29  ;;  %1762 = vadd.xlane.f32.xlu1 %v1761_v46  ;;  %v1380_v13 = vmul.f32 2.0, %v1252_v35  ;;  %v1193_v40 = vmul.f32 %v5147_v49, %v1100_v45  ;;  %v9052_v29 = vsub.f32 %v9050_v62, %v9051_v33  ;;  %v9057_v9 = vld [vmem:[#allocation98_spill] sm:$0xff] }
 0x1da   : > { %1741 = vadd.xlane.f32.xlu0 %v1740_v60  ;;  %v1857_v6 = vadd.f32 %v1856_v52, %v6192_v22  ;;  %v1504_v34 = vmul.f32 -0.5, %v1440_v11  ;;  %v1256_v41 = vadd.f32 %v1192_v10, %v9053_v48  ;;  %v9056_v25 = vsub.f32 %v9054_v36, %v9055_v28  ;;  %v9058_v52 = vld [vmem:[#allocation90_spill] sm:$0xff] }
 0x1db   : > { %4436 = vpow2.f32 %v1600_v61  ;;  %v1502_v46 = vmul.f32 -0.5, %v9052_v29  ;;  %v1381_v22 = vmul.f32 2.0, %v1253_v8  ;;  %v1459_v3 = vsub.f32 %v9057_v9, %v6237_v54  ;;  %v1108_v8 = vpop.permute.xlu1 %1107 }
 0x1dc   : > { %4438 = vpow2.f32 %v1602_v32  ;;  %v4429_v5 = vpop.eup %4428  ;;  %v1503_v35 = vmul.f32 -0.5, %v9056_v25  ;;  %v6305_v61 = vmul.f32 1.442695, %v1500_v63  ;;  %v6307_v11 = vmul.f32 1.442695, %v1501_v51  ;;  %v9059_v32 = vld [vmem:[#allocation40_spill] sm:$0xff] }
 0x1dd   : > { %4440 = vpow2.f32 %v6161_v21  ;;  %v6300_v31 = vmul.f32 0.4, %v4429_v5  ;;  %v1608_v45 = vmul.f32 1.442695, %v1502_v46  ;;  %v4431_v59 = vpop.eup %4430  ;;  %v1444_v55 = vsub.f32 %v9058_v52, %v1380_v13  ;;  %v9060_v51 = vld [vmem:[#allocation91_spill] sm:$0xff] }
 0x1de   : > { %4442 = vpow2.f32 %v6167_v26  ;;  %v1610_v10 = vmul.f32 1.442695, %v1503_v35  ;;  %v4433_v21 = vpop.eup %4432  ;;  %v6309_v60 = vmul.f32 0.4, %v4431_v59  ;;  %v1257_v62 = vadd.f32 %v1193_v40, %v9059_v32  ;;  %v9062_v59 = vld [vmem:[#allocation94_spill] sm:$0xff] }
 0x1df   : > { %4444 = vpow2.f32 %v1608_v45  ;;  %v4435_v26 = vpop.eup %4434  ;;  %v1505_v33 = vmul.f32 -0.5, %v1441_v19  ;;  %v1672_v29 = vmul.f32 0.4, %v4433_v21  ;;  %v1384_v46 = vmul.f32 2.0, %v1256_v41 }
 0x1e0   : > { %4446 = vpow2.f32 %v1610_v10  ;;  %v6313_v5 = vmul.f32 1.442695, %v1504_v34  ;;  %v1767_v63 = vadd.f32 %v6309_v60, %v6300_v31  ;;  %v1445_v48 = vsub.f32 %v9060_v51, %v1381_v22 }
 0x1e1   : > { %v1673_v36 = vmul.f32 0.4, %v4435_v26  ;;  %v1821_v28 = vadd.f32 %v1820_v42, %v1672_v29  ;;  %v1196_v13 = vmul.f32 %v5145_v17, %v1108_v8  ;;  %4448 = vpow2.f32 %v6175_v38 }
 0x1e2   : > { %v9061_v40 = vsub.f32 %v8983_v56, %v6087_v43  ;;  %1768 = vadd.xlane.f32.xlu1 %v1767_v63  ;;  %v1508_v41 = vmul.f32 -0.5, %v1444_v55  ;;  %v1385_v35 = vmul.f32 2.0, %v1257_v62  ;;  %v1448_v10 = vsub.f32 %v9062_v59, %v1384_v46  ;;  %v9065_v46 = vld [vmem:[#allocation95_spill] sm:$0xff] }
 0x1e3   : > { %v1746_v25 = vadd.f32 %v1673_v36, %v1672_v29  ;;  %v1858_v34 = vadd.f32 %v1857_v6, %v1673_v36  ;;  %v1822_v22 = vadd.f32 %v1821_v28, %v6217_v15  ;;  %4450 = vpow2.f32 %v6177_v39  ;;  %v9064_v15 = vld [vmem:[#allocation101_spill] sm:$0xff]  ;;  %v1116_v29 = vpop.permute.xlu1 %1115 }
 0x1e4   : > { %v1506_v19 = vmul.f32 -0.5, %v9061_v40  ;;  %v9063_v42 = vsub.f32 %v8984_v44, %v6098_v58  ;;  %v6329_v52 = vmul.f32 1.442695, %v1505_v33  ;;  %v1197_v6 = vmul.f32 %v5147_v49, %v1108_v8  ;;  %v9066_v40 = vld [vmem:[#allocation102_spill] sm:$0xff] }
 0x1e5   : > { %v4437_v45 = vpop.eup %4436  ;;  %1747 = vadd.xlane.f32.xlu0 %v1746_v25  ;;  %v1859_v56 = vadd.f32 %v1858_v34, %v6228_v7  ;;  %v1260_v62 = vadd.f32 %v1196_v13, %v9064_v15  ;;  %v6338_v44 = vmul.f32 -0.5, %v1445_v48  ;;  %v6340_v33 = vmul.f32 1.442695, %v1508_v41  ;;  %v9068_v15 = vld [vmem:[#allocation103_spill] sm:$0xff] }
 0x1e6   : > { %v1507_v38 = vmul.f32 -0.5, %v9063_v42  ;;  %v4439_v21 = vpop.eup %4438  ;;  %v6331_v43 = vmul.f32 0.4, %v4437_v45  ;;  %v1616_v39 = vmul.f32 1.442695, %v1506_v19  ;;  %v1449_v63 = vsub.f32 %v9065_v46, %v1385_v35  ;;  %v9071_v46 = vld [vmem:[#allocation104_spill] sm:$0xff] }
 0x1e7   : > { %v4441_v55 = vpop.eup %4440  ;;  %v6335_v32 = vmul.f32 0.4, %v4439_v21  ;;  %v6345_v8 = vmul.f32 -0.5, %v1448_v10  ;;  %v1261_v19 = vadd.f32 %v1197_v6, %v9066_v40  ;;  %v1200_v48 = vmul.f32 %v5145_v17, %v1116_v29 }
 0x1e8   : > { %v1618_v26 = vmul.f32 1.442695, %v1507_v38  ;;  %v4443_v58 = vpop.eup %4442  ;;  %v1676_v51 = vmul.f32 0.4, %v4441_v55  ;;  %4452 = vpow2.f32 %v1616_v39  ;;  %v1388_v45 = vmul.f32 2.0, %v1260_v62 }
 0x1e9   : > { %v1773_v7 = vadd.f32 %v6335_v32, %v6331_v43  ;;  %v1677_v36 = vmul.f32 0.4, %v4443_v58  ;;  %v4445_v28 = vpop.eup %4444  ;;  %v1201_v42 = vmul.f32 %v5147_v49, %v1116_v29  ;;  %v6356_v38 = vmul.f32 -0.5, %v1449_v63 }
 0x1ea   : > { %v1823_v13 = vadd.f32 %v1822_v22, %v1676_v51  ;;  %4454 = vpow2.f32 %v1618_v26  ;;  %v4447_v25 = vpop.eup %4446  ;;  %v6349_v35 = vmul.f32 0.4, %v4445_v28  ;;  %v1264_v62 = vadd.f32 %v1200_v48, %v9068_v15 }
 0x1eb   : > { %1774 = vadd.xlane.f32.xlu1 %v1773_v7  ;;  %v1752_v41 = vadd.f32 %v1677_v36, %v1676_v51  ;;  %v1860_v34 = vadd.f32 %v1859_v56, %v1677_v36  ;;  %v6351_v59 = vmul.f32 0.4, %v4447_v25  ;;  %4456 = vpow2.f32 %v6207_v37  ;;  %v4449_v22 = vpop.eup %4448  ;;  %v9072_v7 = vld [vmem:[#allocation12_spill] sm:$0xff] }
 0x1ec   : > { %v1824_v10 = vadd.f32 %v1823_v13, %v6244_v1  ;;  %4458 = vpow2.f32 %v6224_v50  ;;  %v9067_v56 = vsub.f32 %v8985_v0, %v6100_v53  ;;  %v1680_v1 = vmul.f32 0.4, %v4449_v22  ;;  %v9077_v22 = vld [vmem:[#allocation65_spill] sm:$0xff] }
 0x1ed   : > { %1753 = vadd.xlane.f32.xlu0 %v1752_v41  ;;  %v1861_v21 = vadd.f32 %v1860_v34, %v6246_v4  ;;  %v1779_v55 = vadd.f32 %v6351_v59, %v6349_v35  ;;  %v9069_v37 = vsub.f32 %v8987_v57, %v6106_v24  ;;  %v4451_v26 = vpop.eup %4450  ;;  %v1389_v29 = vmul.f32 2.0, %v1261_v19 }
 0x1ee   : > { %v1510_v6 = vmul.f32 -0.5, %v9067_v56  ;;  %4460 = vpow2.f32 %v6252_v2  ;;  %v9070_v50 = vsub.f32 %v8993_v27, %v6134_v23  ;;  %v1681_v0 = vmul.f32 0.4, %v4451_v26  ;;  %v9078_v56 = vld [vmem:[#allocation13_spill] sm:$0xff] }
 0x1ef   : > { %v1511_v39 = vmul.f32 -0.5, %v9069_v37  ;;  %1780 = vadd.xlane.f32.xlu1 %v1779_v55  ;;  %v1825_v4 = vadd.f32 %v1824_v10, %v1680_v1  ;;  %v1265_v63 = vadd.f32 %v1201_v42, %v9071_v46  ;;  %v1452_v36 = vsub.f32 %v9072_v7, %v1388_v45  ;;  %v9076_v10 = vld [vmem:[#allocation14_spill] sm:$0xff] }
 0x1f0   : > { %v1624_v58 = vmul.f32 1.442695, %v1510_v6  ;;  %v1514_v53 = vmul.f32 -0.5, %v9070_v50  ;;  %v9073_v24 = vsub.f32 %v9001_v47, %v6144_v14  ;;  %v1758_v13 = vadd.f32 %v1681_v0, %v1680_v1 }
 0x1f1   : > { %v1626_v51 = vmul.f32 1.442695, %v1511_v39  ;;  %v1862_v2 = vadd.f32 %v1861_v21, %v1681_v0  ;;  %v1392_v40 = vmul.f32 2.0, %v1264_v62  ;;  %v1826_v23 = vadd.f32 %v1825_v4, %v6267_v20 }
 0x1f2   : > { %4462 = vpow2.f32 %v1624_v58  ;;  %v1515_v57 = vmul.f32 -0.5, %v9073_v24  ;;  %v1632_v28 = vmul.f32 1.442695, %v1514_v53  ;;  %v4453_v27 = vpop.eup %4452  ;;  %v9074_v48 = vsub.f32 %v9009_v18, %v6172_v16  ;;  %1759 = vadd.xlane.f32.xlu0 %v1758_v13  ;;  %v9079_v16 = vld [vmem:[#allocation64_spill] sm:$0xff]  ;;  %v9082_v58 = vld [vmem:[#allocation99_spill] sm:$0xff] }
 0x1f3   : > { %4464 = vpow2.f32 %v1626_v51  ;;  %v9075_v41 = vsub.f32 %v9010_v30, %v6181_v12  ;;  %v6385_v14 = vmul.f32 0.4, %v4453_v27  ;;  %v1393_v47 = vmul.f32 2.0, %v1265_v63  ;;  %v9081_v12 = vld [vmem:[#allocation97_spill] sm:$0xff]  ;;  %v9083_v53 = vld [vmem:[#allocation100_spill] sm:$0xff] }
 0x1f4   : > { %v1634_v19 = vmul.f32 1.442695, %v1515_v57  ;;  %v1518_v25 = vmul.f32 -0.5, %v9074_v48  ;;  %v4455_v45 = vpop.eup %4454  ;;  %v1863_v42 = vadd.f32 %v1862_v2, %v9076_v10  ;;  %4466 = vpow2.f32 %v9077_v22 }
 0x1f5   : > { %v1519_v34 = vmul.f32 -0.5, %v9075_v41  ;;  %v6389_v20 = vmul.f32 0.4, %v4455_v45  ;;  %4468 = vpow2.f32 %v1632_v28  ;;  %v9080_v18 = vsub.f32 %v9078_v56, %v9079_v16  ;;  %v4457_v55 = vpop.eup %4456 }
 0x1f6   : > { %v1640_v21 = vmul.f32 1.442695, %v1518_v25  ;;  %v1453_v30 = vsub.f32 %v9081_v12, %v1389_v29  ;;  %4470 = vpow2.f32 %v1634_v19  ;;  %v1523_v15 = vmul.f32 -0.5, %v1459_v3  ;;  %v4459_v62 = vpop.eup %4458 }
 0x1f7   : > { %v1522_v6 = vmul.f32 -0.5, %v9080_v18  ;;  %v1642_v1 = vmul.f32 1.442695, %v1519_v34  ;;  %v1516_v37 = vmul.f32 -0.5, %v1452_v36  ;;  %v1785_v39 = vadd.f32 %v6389_v20, %v6385_v14 }
 0x1f8   : > { %v1684_v26 = vmul.f32 0.4, %v4457_v55  ;;  %4472 = vpow2.f32 %v6305_v61  ;;  %v1456_v50 = vsub.f32 %v9082_v58, %v1392_v40  ;;  %v1457_v0 = vsub.f32 %v9083_v53, %v1393_v47  ;;  %v4461_v29 = vpop.eup %4460 }
 0x1f9   : > { %v1685_v4 = vmul.f32 0.4, %v4459_v62  ;;  %4474 = vpow2.f32 %v6307_v11  ;;  %1786 = vadd.xlane.f32.xlu1 %v1785_v39  ;;  %v1648_v54 = vmul.f32 1.442695, %v1522_v6  ;;  %v1650_v9 = vmul.f32 1.442695, %v1523_v15 }
 0x1fa   : > { %v1827_v46 = vadd.f32 %v1826_v23, %v1684_v26  ;;  %4476 = vpow2.f32 %v1640_v21  ;;  %v1688_v51 = vmul.f32 0.4, %v4461_v29  ;;  %v1622_v61 = vmul.f32 1.442695, %v6338_v44 }
 0x1fb   : > { %v1764_v3 = vadd.f32 %v1685_v4, %v1684_v26  ;;  %v1864_v63 = vadd.f32 %v1863_v42, %v1685_v4  ;;  %4478 = vpow2.f32 %v1642_v1  ;;  %v1517_v36 = vmul.f32 -0.5, %v1453_v30 }
 0x1fc   : > { %v4463_v7 = vpop.eup %4462  ;;  %v1828_v24 = vadd.f32 %v1827_v46, %v6300_v31  ;;  %4480 = vpow2.f32 %v6313_v5  ;;  %v1520_v57 = vmul.f32 -0.5, %v1456_v50  ;;  %v1628_v2 = vmul.f32 1.442695, %v6345_v8  ;;  %v6440_v50 = vld [vmem:[%s6433_s25 + $0x8] sm:$0xff] }
 0x1fd   : > { %1765 = vadd.xlane.f32.xlu0 %v1764_v3  ;;  %v6407_v11 = vmul.f32 0.4, %v4463_v7  ;;  %v1865_v28 = vadd.f32 %v1864_v63, %v6309_v60  ;;  %4482 = vpow2.f32 %v6329_v52  ;;  %v4465_v13 = vpop.eup %4464  ;;  %v1630_v40 = vmul.f32 1.442695, %v6356_v38 }
 0x1fe   : > { %v1829_v23 = vadd.f32 %v1828_v24, %v1688_v51  ;;  %4484 = vpow2.f32 %v1648_v54  ;;  %v4467_v44 = vpop.eup %4466  ;;  %v1636_v27 = vmul.f32 1.442695, %v1516_v37  ;;  %v1521_v31 = vmul.f32 -0.5, %v1457_v0  ;;  %v6451_v24 = vld [vmem:[%s6433_s25 + $0x18] sm:$0xff] }
 0x1ff   : > { %v6413_v19 = vmul.f32 0.4, %v4465_v13  ;;  %4486 = vpow2.f32 %v1650_v9  ;;  %v4469_v5 = vpop.eup %4468  ;;  %v1638_v48 = vmul.f32 1.442695, %v1517_v36  ;;  %v1689_v25 = vmul.f32 0.4, %v4467_v44 }
 0x200   : > { %v1830_v60 = vadd.f32 %v1829_v23, %v6331_v43  ;;  %4488 = vpow2.f32 %v6340_v33  ;;  %v4471_v52 = vpop.eup %4470  ;;  %v1644_v41 = vmul.f32 1.442695, %v1520_v57  ;;  %v6419_v38 = vmul.f32 0.4, %v4469_v5 }
 0x201   : > { %v1791_v8 = vadd.f32 %v6413_v19, %v6407_v11  ;;  %4490 = vpow2.f32 %v1622_v61  ;;  %v1770_v45 = vadd.f32 %v1689_v25, %v1688_v51  ;;  %v1866_v47 = vadd.f32 %v1865_v28, %v1689_v25 }
 0x202   : > { %v4473_v34 = vpop.eup %4472  ;;  %v6421_v10 = vmul.f32 0.4, %v4471_v52  ;;  %4492 = vpow2.f32 %v1628_v2  ;;  %v1646_v22 = vmul.f32 1.442695, %v1521_v31  ;;  %v9124_v17 = vmov 2  }
 0x203   : > { %v4475_v42 = vpop.eup %4474  ;;  %1792 = vadd.xlane.f32.xlu1 %v1791_v8  ;;  %v1692_v43 = vmul.f32 0.4, %v4473_v34  ;;  %4494 = vpow2.f32 %v1630_v40  ;;  %1771 = vadd.xlane.f32.xlu0 %v1770_v45  ;;  %v1867_v56 = vadd.f32 %v1866_v47, %v6335_v32  ;;  %v6460_v8 = vld [vmem:[%s6433_s25 + $0x28] sm:$0xff] }
 0x204   : > { %v4477_v33 = vpop.eup %4476  ;;  %v1693_v21 = vmul.f32 0.4, %v4475_v42  ;;  %4496 = vpow2.f32 %v1636_v27  ;;  %v1797_v18 = vadd.f32 %v6421_v10, %v6419_v38 }
 0x205   : > { %v4479_v16 = vpop.eup %4478  ;;  %v1831_v6 = vadd.f32 %v1830_v60, %v1692_v43  ;;  %v6426_v55 = vmul.f32 0.4, %v4477_v33  ;;  %4498 = vpow2.f32 %v1638_v48 }
 0x206   : > { %v4481_v12 = vpop.eup %4480  ;;  %v1776_v30 = vadd.f32 %v1693_v21, %v1692_v43  ;;  %v1868_v1 = vadd.f32 %v1867_v56, %v1693_v21  ;;  %v6435_v32 = vmul.f32 0.4, %v4479_v16  ;;  %4500 = vpow2.f32 %v1644_v41  ;;  %v6468_v16 = vld [vmem:[%s6433_s25 + $0x38] sm:$0xff] }
 0x207   : > { %v4483_v15 = vpop.eup %4482  ;;  %1798 = vadd.xlane.f32.xlu1 %v1797_v18  ;;  %v1696_v62 = vmul.f32 0.4, %v4481_v12  ;;  %v1832_v37 = vadd.f32 %v1831_v6, %v6349_v35  ;;  %4502 = vpow2.f32 %v1646_v22  ;;  %v1891_v22 = vmul.f32 %v6460_v8, %v6460_v8  ;;  %v6471_v6 = vld [vmem:[%s6433_s25] sm:$0xff] }
 0x208   : > { %v4485_v39 = vpop.eup %4484  ;;  %1777 = vadd.xlane.f32.xlu0 %v1776_v30  ;;  %v1697_v26 = vmul.f32 0.4, %v4483_v15  ;;  %v1869_v58 = vadd.f32 %v1868_v1, %v6351_v59  ;;  %v1803_v0 = vadd.f32 %v6435_v32, %v6426_v55  ;;  %v1887_v59 = vmul.f32 %v6440_v50, %v6440_v50 }
 0x209   : > { %v4487_v53 = vpop.eup %4486  ;;  %v1833_v4 = vadd.f32 %v1832_v37, %v1696_v62  ;;  %v6444_v29 = vmul.f32 0.4, %v4485_v39  ;;  %v1933_v12 = vsel %vm361_vm0, %v1891_v22, 0.0  ;;  %v6481_v37 = vld [vmem:[%s6433_s25 + $0x48] sm:$0xff] }
 0x20a   : > { %v4489_v46 = vpop.eup %4488  ;;  %v1782_v54 = vadd.f32 %v1697_v26, %v1696_v62  ;;  %v1870_v9 = vadd.f32 %v1869_v58, %v1697_v26  ;;  %v1715_v35 = vmul.f32 0.4, %v4487_v53  ;;  %v1921_v31 = vsel %vm361_vm0, %v1887_v59, 0.0  ;;  %v6484_v26 = vld [vmem:[%s6433_s25 + $0x10] sm:$0xff] }
 0x20b   : > { %v4491_v3 = vpop.eup %4490  ;;  %1804 = vadd.xlane.f32.xlu1 %v1803_v0  ;;  %v1700_v63 = vmul.f32 0.4, %v4489_v46  ;;  %v1834_v51 = vadd.f32 %v1833_v4, %v6385_v14  ;;  %v1886_v62 = vmul.f32 %v6471_v6, %v6471_v6  ;;  %v1895_v53 = vmul.f32 %v6481_v37, %v6481_v37 }
 0x20c   : > { %v4493_v7 = vpop.eup %4492  ;;  %1783 = vadd.xlane.f32.xlu0 %v1782_v54  ;;  %v1701_v61 = vmul.f32 0.4, %v4491_v3  ;;  %v1871_v36 = vadd.f32 %v1870_v9, %v6389_v20  ;;  %v1809_v28 = vadd.f32 %v1715_v35, %v6444_v29  ;;  %v1889_v20 = vmul.f32 %v6451_v24, %v6451_v24  ;;  %v6494_v54 = vld [vmem:[%s6433_s25 + $0x58] sm:$0xff]  ;;  %v6497_v3 = vld [vmem:[%s6433_s25 + $0x20] sm:$0xff] }
 0x20d   : > { %v4495_v57 = vpop.eup %4494  ;;  %v1835_v13 = vadd.f32 %v1834_v51, %v1700_v63  ;;  %v1704_v2 = vmul.f32 0.4, %v4493_v7  ;;  %v1918_v4 = vsel %vm361_vm0, %v1886_v62, 0.0  ;;  %v1888_v46 = vmul.f32 %v6484_v26, %v6484_v26 }
 0x20e   : > { %v4497_v40 = vpop.eup %4496  ;;  %v1788_v23 = vadd.f32 %v1701_v61, %v1700_v63  ;;  %v1872_v44 = vadd.f32 %v1871_v36, %v1701_v61  ;;  %v1705_v14 = vmul.f32 0.4, %v4495_v57  ;;  %v1945_v63 = vsel %vm361_vm0, %v1895_v53, 0.0  ;;  %v6506_v36 = vld [vmem:[%s6433_s25 + $0x68] sm:$0xff] }
 0x20f   : > { %v4499_v27 = vpop.eup %4498  ;;  %1810 = vadd.xlane.f32.xlu1 %v1809_v28  ;;  %v1836_v5 = vadd.f32 %v1835_v13, %v6407_v11  ;;  %v1708_v52 = vmul.f32 0.4, %v4497_v40  ;;  %v1927_v11 = vsel %vm361_vm0, %v1889_v20, 0.0  ;;  %v1897_v51 = vmul.f32 %v6494_v54, %v6494_v54  ;;  %v6509_v28 = vld [vmem:[%s6433_s25 + $0x30] sm:$0xff]  ;;  %v6521_v20 = vld [vmem:[%s6433_s25 + $0x40] sm:$0xff] }
 0x210   : > { %v4501_v48 = vpop.eup %4500  ;;  %1789 = vadd.xlane.f32.xlu0 %v1788_v23  ;;  %v1794_v25 = vadd.f32 %v1705_v14, %v1704_v2  ;;  %v1873_v60 = vadd.f32 %v1872_v44, %v6413_v19  ;;  %v1709_v41 = vmul.f32 0.4, %v4499_v27  ;;  %v1924_v7 = vsel %vm361_vm0, %v1888_v46, 0.0  ;;  %v6584_v46 = vld [vmem:[%s6433_s25 + $0xc8] sm:$0xff] }
 0x211   : > { %v4503_v34 = vpop.eup %4502  ;;  %v1837_v45 = vadd.f32 %v1836_v5, %v1704_v2  ;;  %v1712_v33 = vmul.f32 0.4, %v4501_v48  ;;  %v1890_v61 = vmul.f32 %v6497_v3, %v6497_v3  ;;  %v1951_v40 = vsel %vm361_vm0, %v1897_v51, 0.0 }
 0x212   : > { %v1874_v47 = vadd.f32 %v1873_v60, %v1705_v14  ;;  %v1800_v43 = vadd.f32 %v1709_v41, %v1708_v52  ;;  %v1713_v21 = vmul.f32 0.4, %v4503_v34  ;;  %v1899_v23 = vmul.f32 %v6506_v36, %v6506_v36 }
 0x213   : > { %1922 = vadd.xlane.f32.xlu1 %v1921_v31  ;;  %v1838_v42 = vadd.f32 %v1837_v45, %v6419_v38  ;;  %v1930_v14 = vsel %vm361_vm0, %v1890_v61, 0.0  ;;  %v1892_v27 = vmul.f32 %v6509_v28, %v6509_v28  ;;  %v6518_v31 = vld [vmem:[%s6433_s25 + $0x78] sm:$0xff]  ;;  %v1894_v34 = vmul.f32 %v6521_v20, %v6521_v20  ;;  %v6534_v45 = vld [vmem:[%s6433_s25 + $0x88] sm:$0xff]  ;;  %v6601_v61 = vld [vmem:[%s6433_s25 + $0xa0] sm:$0xff] }
 0x214   : > { %1795 = vadd.xlane.f32.xlu0 %v1794_v25  ;;  %v1875_v19 = vadd.f32 %v1874_v47, %v6421_v10  ;;  %v1806_v30 = vadd.f32 %v1713_v21, %v1712_v33  ;;  %v1893_v10 = vmul.f32 %v6468_v16, %v6468_v16  ;;  %v1957_v60 = vsel %vm361_vm0, %v1899_v23, 0.0  ;;  %v6537_v47 = vld [vmem:[%s6433_s25 + $0x50] sm:$0xff] }
 0x215   : > { %v1839_v56 = vadd.f32 %v1838_v42, %v1708_v52  ;;  %v1901_v52 = vmul.f32 %v6518_v31, %v6518_v31  ;;  %v1903_v42 = vmul.f32 %v6534_v45, %v6534_v45  ;;  %v1942_v22 = vsel %vm361_vm0, %v1894_v34, 0.0  ;;  %v6626_v34 = vld [vmem:[%s6433_s25 + $0xf8] sm:$0xff] }
 0x216   : > { %v1876_v18 = vadd.f32 %v1875_v19, %v1709_v41  ;;  %v1936_v41 = vsel %vm361_vm0, %v1892_v27, 0.0  ;;  %v6546_v19 = vld [vmem:[%s6433_s25 + $0x98] sm:$0xff]  ;;  %v1906_v23 = vmul.f32 %v6601_v61, %v6601_v61 }
 0x217   : > { %1928 = vadd.xlane.f32.xlu1 %v1927_v11  ;;  %v1840_v38 = vadd.f32 %v1839_v56, %v6426_v55  ;;  %v1963_v11 = vsel %vm361_vm0, %v1901_v52, 0.0  ;;  %v1905_v56 = vmul.f32 %v6546_v19, %v6546_v19 }
 0x218   : > { %1801 = vadd.xlane.f32.xlu0 %v1800_v43  ;;  %v1877_v1 = vadd.f32 %v1876_v18, %v6435_v32  ;;  %v1939_v32 = vsel %vm361_vm0, %v1893_v10, 0.0  ;;  %v1896_v43 = vmul.f32 %v6537_v47, %v6537_v47  ;;  %v1978_v52 = vsel %vm361_vm0, %v1906_v23, 0.0 }
 0x219   : > { %v1841_v15 = vadd.f32 %v1840_v38, %v1712_v33  ;;  %v6549_v33 = vld [vmem:[%s6433_s25 + $0x60] sm:$0xff] }
 0x21a   : > { %v1878_v39 = vadd.f32 %v1877_v1, %v1713_v21  ;;  %v1969_v21 = vsel %vm361_vm0, %v1903_v42, 0.0  ;;  %v1948_v18 = vsel %vm361_vm0, %v1896_v43, 0.0  ;;  %v1898_v38 = vmul.f32 %v6549_v33, %v6549_v33 }
 0x21b   : > { %1934 = vadd.xlane.f32.xlu1 %v1933_v12  ;;  %v1842_v55 = vadd.f32 %v1841_v15, %v6444_v29  ;;  %v6558_v12 = vld [vmem:[%s6433_s25 + $0xa8] sm:$0xff]  ;;  %v1975_v1 = vsel %vm361_vm0, %v1905_v56, 0.0 }
 0x21c   : > { %1807 = vadd.xlane.f32.xlu0 %v1806_v30  ;;  %v1879_v58 = vadd.f32 %v1878_v39, %v1715_v35  ;;  %v6561_v30 = vld [vmem:[%s6433_s25 + $0x70] sm:$0xff]  ;;  %v1907_v10 = vmul.f32 %v6558_v12, %v6558_v12  ;;  %v1954_v15 = vsel %vm361_vm0, %v1898_v38, 0.0  ;;  %v6570_v39 = vld [vmem:[%s6433_s25 + $0xb8] sm:$0xff] }
 0x21d   : > { %v1843_v0 = vrot.slane %v1842_v55, 4  ;;  %v1900_v62 = vmul.f32 %v6561_v30, %v6561_v30 }
 0x21e   : > { %v1880_v9 = vrot.slane %v1879_v58, 4 }
 0x21f   : > { %v1844_v29 = vadd.f32 %v1843_v0, %v1842_v55  ;;  %1940 = vadd.xlane.f32.xlu1 %v1939_v32  ;;  %v6573_v55 = vld [vmem:[%s6433_s25 + $0x80] sm:$0xff]  ;;  %v1909_v32 = vmul.f32 %v6570_v39, %v6570_v39  ;;  %v1960_v0 = vsel %vm361_vm0, %v1900_v62, 0.0 }
 0x220   : > { %v1881_v35 = vadd.f32 %v1880_v9, %v1879_v58  ;;  %1919 = vadd.xlane.f32.xlu0 %v1918_v4  ;;  %v1981_v58 = vsel %vm361_vm0, %v1907_v10, 0.0  ;;  %v1902_v4 = vmul.f32 %v6573_v55, %v6573_v55  ;;  %v6587_v9 = vld [vmem:[%s6433_s25 + $0x90] sm:$0xff] }
 0x221   : > { %v1845_v59 = vrot.slane %v1844_v29, 2 }
 0x222   : > { %v1882_v57 = vrot.slane %v1881_v35, 2  ;;  %v1966_v51 = vsel %vm361_vm0, %v1902_v4, 0.0 }
 0x223   : > { %v1846_v13 = vadd.f32 %v1845_v59, %v1844_v29  ;;  %1946 = vadd.xlane.f32.xlu1 %v1945_v63  ;;  %v1987_v29 = vsel %vm361_vm0, %v1909_v32, 0.0  ;;  %v1904_v59 = vmul.f32 %v6587_v9, %v6587_v9  ;;  %v6653_v32 = vld [vmem:[%s6433_s25 + $0xf0] sm:$0xff] }
 0x224   : > { %v1883_v2 = vadd.f32 %v1882_v57, %v1881_v35  ;;  %1925 = vadd.xlane.f32.xlu0 %v1924_v7  ;;  %v1911_v35 = vmul.f32 %v6584_v46, %v6584_v46  ;;  %v6598_v7 = vld [vmem:[%s6433_s25 + $0xd8] sm:$0xff] }
 0x225   : > { %v1847_v44 = vrot.slane %v1846_v13, 1 }
 0x226   : > { %v1884_v5 = vrot.slane %v1883_v2, 1  ;;  %v1993_v57 = vsel %vm361_vm0, %v1911_v35, 0.0  ;;  %v1916_v35 = vmul.f32 %v6653_v32, %v6653_v32 }
 0x227   : > { %v6523_v48 = vadd.f32 %v1847_v44, %v1846_v13  ;;  %1952 = vadd.xlane.f32.xlu1 %v1951_v40  ;;  %v1913_v13 = vmul.f32 %v6598_v7, %v6598_v7  ;;  %v1972_v40 = vsel %vm361_vm0, %v1904_v59, 0.0  ;;  %v6612_v44 = vld [vmem:[%s6433_s25 + $0xe8] sm:$0xff] }
 0x228   : > { %v6525_v25 = vadd.f32 %v1884_v5, %v1883_v2  ;;  %1931 = vadd.xlane.f32.xlu0 %v1930_v14  ;;  %v6615_v14 = vld [vmem:[%s6433_s25 + $0xb0] sm:$0xff]  ;;  %v1915_v5 = vmul.f32 %v6612_v44, %v6612_v44 }
 0x229   : > { %9084 = vst [vmem:[#allocation15_spill] sm:$0xff] %v6523_v48  ;;  %v1999_v27 = vsel %vm361_vm0, %v1913_v13, 0.0 }
 0x22a   : > { %9085 = vst [vmem:[#allocation68_spill] sm:$0xff] %v6525_v25  ;;  %v2005_v42 = vsel %vm361_vm0, %v1915_v5, 0.0 }
 0x22b   : > { %1958 = vadd.xlane.f32.xlu1 %v1957_v60 }
 0x22c   : > { %1937 = vadd.xlane.f32.xlu0 %v1936_v41  ;;  %v1908_v41 = vmul.f32 %v6615_v14, %v6615_v14 }
 0x22e   : > { %v1984_v43 = vsel %vm361_vm0, %v1908_v41, 0.0 }
 0x22f   : > { %1964 = vadd.xlane.f32.xlu1 %v1963_v11  ;;  %v6629_v11 = vld [vmem:[%s6433_s25 + $0xc0] sm:$0xff] }
 0x230   : > { %1943 = vadd.xlane.f32.xlu0 %v1942_v22  ;;  %v1917_v22 = vmul.f32 %v6626_v34, %v6626_v34 }
 0x232   : > { %v2011_v38 = vsel %vm361_vm0, %v1917_v22, 0.0 }
 0x233   : > { %1970 = vadd.xlane.f32.xlu1 %v1969_v21  ;;  %v1910_v21 = vmul.f32 %v6629_v11, %v6629_v11 }
 0x234   : > { %1949 = vadd.xlane.f32.xlu0 %v1948_v18  ;;  %v6640_v18 = vld [vmem:[%s6433_s25 + $0xd0] sm:$0xff] }
 0x235   : > { %v1912_v10 = vmul.f32 %v6640_v18, %v6640_v18 }
 0x236   : > { %v6578_v53 = vpop.xlane.xlu1 %1717 }
 0x237   : > { %1976 = vadd.xlane.f32.xlu1 %v1975_v1  ;;  %9086 = vst [vmem:[#allocation16_spill] sm:$0xff] %v6578_v53  ;;  %v1990_v1 = vsel %vm361_vm0, %v1910_v21, 0.0  ;;  %v1996_v62 = vsel %vm361_vm0, %v1912_v10, 0.0 }
 0x238   : > { %1955 = vadd.xlane.f32.xlu0 %v1954_v15  ;;  %v6647_v15 = vld [vmem:[%s6433_s25 + $0xe0] sm:$0xff] }
 0x23a   : > { %v6592_v63 = vpop.xlane.xlu1 %1726 }
 0x23b   : > { %1982 = vadd.xlane.f32.xlu1 %v1981_v58  ;;  %9087 = vst [vmem:[#allocation17_spill] sm:$0xff] %v6592_v63  ;;  %v1914_v58 = vmul.f32 %v6647_v15, %v6647_v15 }
 0x23c   : > { %1961 = vadd.xlane.f32.xlu0 %v1960_v0 }
 0x23e   : > { %v6606_v2 = vpop.xlane.xlu1 %1732 }
 0x23f   : > { %1988 = vadd.xlane.f32.xlu1 %v1987_v29  ;;  %9088 = vst [vmem:[#allocation105_spill] sm:$0xff] %v6606_v2  ;;  %v2002_v29 = vsel %vm361_vm0, %v1914_v58, 0.0 }
 0x240   : > { %1967 = vadd.xlane.f32.xlu0 %v1966_v51  ;;  %v2008_v51 = vsel %vm361_vm0, %v1916_v35, 0.0 }
 0x242   : > { %v6620_v60 = vpop.xlane.xlu1 %1738 }
 0x243   : > { %1994 = vadd.xlane.f32.xlu1 %v1993_v57  ;;  %9089 = vst [vmem:[#allocation53_spill] sm:$0xff] %v6620_v60 }
 0x244   : > { %1973 = vadd.xlane.f32.xlu0 %v1972_v40 }
 0x246   : > { %v6637_v56 = vpop.xlane.xlu0 %1720 }
 0x247   : > { %2000 = vadd.xlane.f32.xlu1 %v1999_v27  ;;  %9090 = vst [vmem:[#allocation54_spill] sm:$0xff] %v6637_v56 }
 0x248   : > { %1979 = vadd.xlane.f32.xlu0 %v1978_v52 }
 0x24b   : > { %2006 = vadd.xlane.f32.xlu1 %v2005_v42 }
 0x24c   : > { %1985 = vadd.xlane.f32.xlu0 %v1984_v43 }
 0x24e   : > { %v6655_v0 = vpop.xlane.xlu1 %1744 }
 0x24f   : > { %2012 = vadd.xlane.f32.xlu1 %v2011_v38  ;;  %9091 = vst [vmem:[#allocation106_spill] sm:$0xff] %v6655_v0 }
 0x250   : > { %1991 = vadd.xlane.f32.xlu0 %v1990_v1  ;;  %v6657_v4 = vpop.xlane.xlu0 %1723 }
 0x251   : > { %9092 = vst [vmem:[#allocation18_spill] sm:$0xff] %v6657_v4 }
 0x254   : > { %1997 = vadd.xlane.f32.xlu0 %v1996_v62 }
 0x258   : > { %2003 = vadd.xlane.f32.xlu0 %v2002_v29  ;;  %v6663_v59 = vpop.xlane.xlu1 %1750 }
 0x259   : > { %9093 = vst [vmem:[#allocation55_spill] sm:$0xff] %v6663_v59 }
 0x25a   : > { %v6665_v57 = vpop.xlane.xlu0 %1729 }
 0x25b   : > { %9094 = vst [vmem:[#allocation107_spill] sm:$0xff] %v6665_v57 }
 0x25c   : > { %2009 = vadd.xlane.f32.xlu0 %v2008_v51 }
 0x25e   : > { %v6668_v13 = vpop.xlane.xlu1 %1756 }
 0x25f   : > { %9095 = vst [vmem:[#allocation19_spill] sm:$0xff] %v6668_v13 }
 0x260   : > { %2021 = vperm.xlu1 %4371, %v6440_v50   ;;  %v6671_v40 = vpop.xlane.xlu0 %1735 }
 0x261   : > { %9096 = vst [vmem:[#allocation56_spill] sm:$0xff] %v6671_v40 }
 0x264   : > { %2026 = vperm.xlu1 %4371, %v6484_v26  }
 0x266   : > { %v6674_v23 = vpop.xlane.xlu1 %1762 }
 0x267   : > { %9097 = vst [vmem:[#allocation20_spill] sm:$0xff] %v6674_v23  ;;  %v6676_v27 = vpop.xlane.xlu0 %1741 }
 0x268   : > { %2031 = vperm.xlu1 %4371, %v6451_v24   ;;  %9098 = vst [vmem:[#allocation22_spill] sm:$0xff] %v6676_v27 }
 0x26c   : > { %2036 = vperm.xlu1 %4371, %v6497_v3  }
 0x26f   : > { %v6681_v5 = vpop.xlane.xlu1 %1768 }
 0x270   : > { %2041 = vperm.xlu1 %4371, %v6460_v8   ;;  %9099 = vst [vmem:[#allocation58_spill] sm:$0xff] %v6681_v5 }
 0x272   : > { %2016 = vperm.xlu0 %4370, %v6471_v6   ;;  %v6684_v52 = vpop.xlane.xlu0 %1747 }
 0x273   : > { %9100 = vst [vmem:[#allocation110_spill] sm:$0xff] %v6684_v52 }
 0x274   : > { %2046 = vperm.xlu1 %4371, %v6509_v28  }
 0x276   : > { %2061 = vperm.xlu0 %4370, %v6481_v37  }
 0x278   : > { %2051 = vperm.xlu1 %4371, %v6468_v16   ;;  %v6688_v41 = vpop.xlane.xlu1 %1774 }
 0x279   : > { %9101 = vst [vmem:[#allocation59_spill] sm:$0xff] %v6688_v41 }
 0x27a   : > { %2071 = vperm.xlu0 %4370, %v6494_v54   ;;  %v6691_v42 = vpop.xlane.xlu0 %1753 }
 0x27b   : > { %9102 = vst [vmem:[#allocation111_spill] sm:$0xff] %v6691_v42 }
 0x27c   : > { %2056 = vperm.xlu1 %4371, %v6521_v20   ;;  %v6695_v22 = vpop.xlane.xlu1 %1780 }
 0x27d   : > { %9103 = vst [vmem:[#allocation114_spill] sm:$0xff] %v6695_v22 }
 0x27e   : > { %2081 = vperm.xlu0 %4370, %v6506_v36  }
 0x27f   : > { %v6699_v43 = vpop.xlane.xlu0 %1759 }
 0x280   : > { %2066 = vperm.xlu1 %4371, %v6537_v47   ;;  %9104 = vst [vmem:[#allocation115_spill] sm:$0xff] %v6699_v43 }
 0x282   : > { %2091 = vperm.xlu0 %4370, %v6518_v31  }
 0x284   : > { %2076 = vperm.xlu1 %4371, %v6549_v33  }
 0x286   : > { %2101 = vperm.xlu0 %4370, %v6534_v45   ;;  %v6703_v21 = vpop.xlane.xlu1 %1786 }
 0x287   : > { %9105 = vst [vmem:[#allocation62_spill] sm:$0xff] %v6703_v21  ;;  %v9117_v21 = vmov 1  }
 0x288   : > { %2086 = vperm.xlu1 %4371, %v6561_v30  }
 0x28a   : > { %2111 = vperm.xlu0 %4370, %v6546_v19   ;;  %v6707_v38 = vpop.xlane.xlu0 %1765 }
 0x28b   : > { %9106 = vst [vmem:[#allocation21_spill] sm:$0xff] %v6707_v38 }
 0x28c   : > { %2096 = vperm.xlu1 %4371, %v6573_v55  }
 0x28e   : > { %2121 = vperm.xlu0 %4370, %v6558_v12  }
 0x290   : > { %v6711_v1 = vpop.xlane.xlu1 %1792  ;;  %2106 = vperm.xlu1 %4371, %v6587_v9   ;;  %v6714_v10 = vpop.xlane.xlu0 %1771 }
 0x291   : > { %9107 = vst [vmem:[#allocation24_spill] sm:$0xff] %v6711_v1  ;;  %9108 = vst [vmem:[#allocation63_spill] sm:$0xff] %v6714_v10 }
 0x292   : > { %2131 = vperm.xlu0 %4370, %v6570_v39  }
 0x294   : > { %v6717_v62 = vpop.xlane.xlu1 %1798  ;;  %2116 = vperm.xlu1 %4371, %v6601_v61  }
 0x295   : > { %9109 = vst [vmem:[#allocation23_spill] sm:$0xff] %v6717_v62  ;;  %v6720_v58 = vpop.xlane.xlu0 %1777 }
 0x296   : > { %9110 = vst [vmem:[#allocation26_spill] sm:$0xff] %v6720_v58  ;;  %2141 = vperm.xlu0 %4370, %v6584_v46  }
 0x298   : > { %v6723_v29 = vpop.xlane.xlu1 %1804  ;;  %2126 = vperm.xlu1 %4371, %v6615_v14  }
 0x299   : > { %9111 = vst [vmem:[#allocation84_spill] sm:$0xff] %v6723_v29  ;;  %v6726_v35 = vpop.xlane.xlu0 %1783 }
 0x29a   : > { %9112 = vst [vmem:[#allocation85_spill] sm:$0xff] %v6726_v35  ;;  %2151 = vperm.xlu0 %4370, %v6598_v7  }
 0x29c   : > { %2136 = vperm.xlu1 %4371, %v6629_v11   ;;  %v6730_v51 = vpop.xlane.xlu1 %1810 }
 0x29d   : > { %9113 = vst [vmem:[#allocation88_spill] sm:$0xff] %v6730_v51  ;;  %v6732_v48 = vpop.xlane.xlu0 %1789 }
 0x29e   : > { %9114 = vst [vmem:[#allocation66_spill] sm:$0xff] %v6732_v48  ;;  %2161 = vperm.xlu0 %4370, %v6612_v44  }
 0x2a0   : > { %2146 = vperm.xlu1 %4371, %v6640_v18   ;;  %v6736_v25 = vpop.xlane.xlu1 %1922 }
 0x2a1   : > { %v6738_v62 = vpop.xlane.xlu0 %1795 }
 0x2a2   : > { %9115 = vst [vmem:[#allocation89_spill] sm:$0xff] %v6738_v62  ;;  %2171 = vperm.xlu0 %4370, %v6626_v34  }
 0x2a4   : > { %2156 = vperm.xlu1 %4371, %v6647_v15   ;;  %v6742_v29 = vpop.xlane.xlu1 %1928 }
 0x2a5   : > { %v6744_v1 = vpop.xlane.xlu0 %1801 }
 0x2a6   : > { %9116 = vst [vmem:[#allocation67_spill] sm:$0xff] %v6744_v1  ;;  %4373 = vset.pattern.permute.xlu0 %v9117_v21 }
 0x2a7   : > { %2243 = vperm.xlu0 %4373, %v6440_v50  }
 0x2a8   : > { %2166 = vperm.xlu1 %4371, %v6653_v32   ;;  %v6749_v51 = vpop.xlane.xlu1 %1934 }
 0x2a9   : > { %v6751_v48 = vpop.xlane.xlu0 %1807 }
 0x2aa   : > { %9118 = vst [vmem:[#allocation123_spill] sm:$0xff] %v6751_v48 }
 0x2ab   : > { %2255 = vperm.xlu0 %4373, %v6497_v3  }
 0x2ac   : > { %4372 = vset.pattern.permute.xlu1 %v9117_v21  ;;  %v6755_v62 = vpop.xlane.xlu1 %1940 }
 0x2ad   : > { %2239 = vperm.xlu1 %4372, %v6471_v6   ;;  %v6758_v35 = vpop.xlane.xlu0 %1919 }
 0x2af   : > { %2263 = vperm.xlu0 %4373, %v6509_v28  }
 0x2b0   : > { %v6761_v1 = vpop.xlane.xlu1 %1946 }
 0x2b1   : > { %2247 = vperm.xlu1 %4372, %v6484_v26   ;;  %v6764_v22 = vpop.xlane.xlu0 %1925 }
 0x2b3   : > { %2271 = vperm.xlu0 %4373, %v6521_v20  }
 0x2b4   : > { %v6767_v48 = vpop.xlane.xlu1 %1952 }
 0x2b5   : > { %2251 = vperm.xlu1 %4372, %v6451_v24   ;;  %v6770_v21 = vpop.xlane.xlu0 %1931 }
 0x2b7   : > { %2279 = vperm.xlu0 %4373, %v6537_v47  }
 0x2b8   : > { %v6773_v58 = vpop.xlane.xlu1 %1958 }
 0x2b9   : > { %2259 = vperm.xlu1 %4372, %v6460_v8   ;;  %v6776_v41 = vpop.xlane.xlu0 %1937 }
 0x2bb   : > { %2287 = vperm.xlu0 %4373, %v6549_v33  }
 0x2bc   : > { %v6779_v10 = vpop.xlane.xlu1 %1964 }
 0x2bd   : > { %2267 = vperm.xlu1 %4372, %v6468_v16   ;;  %v6782_v5 = vpop.xlane.xlu0 %1943 }
 0x2bf   : > { %2295 = vperm.xlu0 %4373, %v6561_v30  }
 0x2c0   : > { %v6785_v38 = vpop.xlane.xlu1 %1970 }
 0x2c1   : > { %2275 = vperm.xlu1 %4372, %v6481_v37   ;;  %v6788_v23 = vpop.xlane.xlu0 %1949 }
 0x2c3   : > { %2303 = vperm.xlu0 %4373, %v6573_v55  }
 0x2c4   : > { %v6791_v43 = vpop.xlane.xlu1 %1976 }
 0x2c5   : > { %2283 = vperm.xlu1 %4372, %v6494_v54   ;;  %v6794_v13 = vpop.xlane.xlu0 %1955 }
 0x2c7   : > { %2311 = vperm.xlu0 %4373, %v6587_v9  }
 0x2c8   : > { %v6797_v42 = vpop.xlane.xlu1 %1982 }
 0x2c9   : > { %2291 = vperm.xlu1 %4372, %v6506_v36   ;;  %v6800_v59 = vpop.xlane.xlu0 %1961 }
 0x2cb   : > { %2319 = vperm.xlu0 %4373, %v6601_v61  }
 0x2cc   : > { %v6803_v52 = vpop.xlane.xlu1 %1988 }
 0x2cd   : > { %2299 = vperm.xlu1 %4372, %v6518_v31   ;;  %v6806_v0 = vpop.xlane.xlu0 %1967 }
 0x2cf   : > { %2327 = vperm.xlu0 %4373, %v6615_v14  }
 0x2d0   : > { %v6809_v27 = vpop.xlane.xlu1 %1994 }
 0x2d1   : > { %2307 = vperm.xlu1 %4372, %v6534_v45   ;;  %v6812_v60 = vpop.xlane.xlu0 %1973 }
 0x2d3   : > { %2335 = vperm.xlu0 %4373, %v6629_v11  }
 0x2d4   : > { %v6815_v40 = vpop.xlane.xlu1 %2000 }
 0x2d5   : > { %2315 = vperm.xlu1 %4372, %v6546_v19   ;;  %v6818_v2 = vpop.xlane.xlu0 %1979 }
 0x2d7   : > { %2343 = vperm.xlu0 %4373, %v6640_v18  }
 0x2d8   : > { %v6821_v57 = vpop.xlane.xlu1 %2006 }
 0x2d9   : > { %9119 = vst [vmem:[#allocation70_spill] sm:$0xff] %v6821_v57  ;;  %2323 = vperm.xlu1 %4372, %v6558_v12   ;;  %v6824_v63 = vpop.xlane.xlu0 %1985 }
 0x2da   : > { %9120 = vst [vmem:[#allocation71_spill] sm:$0xff] %v6824_v63 }
 0x2db   : > { %2351 = vperm.xlu0 %4373, %v6647_v15  }
 0x2dc   : > { %v6827_v4 = vpop.xlane.xlu1 %2012 }
 0x2dd   : > { %9121 = vst [vmem:[#allocation25_spill] sm:$0xff] %v6827_v4  ;;  %2331 = vperm.xlu1 %4372, %v6570_v39   ;;  %v6830_v56 = vpop.xlane.xlu0 %1991 }
 0x2de   : > { %9122 = vst [vmem:[#allocation92_spill] sm:$0xff] %v6830_v56 }
 0x2df   : > { %2359 = vperm.xlu0 %4373, %v6653_v32  }
 0x2e0   : > { %v6833_v53 = vpop.permute.xlu1 %2021 }
 0x2e1   : > { %9123 = vst [vmem:[#allocation120_spill] sm:$0xff] %v6833_v53  ;;  %2339 = vperm.xlu1 %4372, %v6584_v46   ;;  %v6836_v49 = vpop.xlane.xlu0 %1997 }
 0x2e3   : > { %4374 = vset.pattern.permute.xlu0 %v9124_v17 }
 0x2e4   : > { %v6839_v57 = vpop.permute.xlu1 %2026  ;;  %2495 = vperm.xlu0 %4374, %v6471_v6  }
 0x2e5   : > { %9125 = vst [vmem:[#allocation124_spill] sm:$0xff] %v6839_v57  ;;  %2347 = vperm.xlu1 %4372, %v6598_v7   ;;  %v6843_v4 = vpop.xlane.xlu0 %2003 }
 0x2e8   : > { %v6845_v63 = vpop.permute.xlu1 %2031  ;;  %2507 = vperm.xlu0 %4374, %v6451_v24  }
 0x2e9   : > { %2355 = vperm.xlu1 %4372, %v6612_v44   ;;  %v6849_v53 = vpop.xlane.xlu0 %2009 }
 0x2ea   : > { %9126 = vst [vmem:[#allocation118_spill] sm:$0xff] %v6849_v53 }
 0x2ec   : > { %v6851_v56 = vpop.permute.xlu1 %2036  ;;  %2515 = vperm.xlu0 %4374, %v6460_v8  }
 0x2ed   : > { %2363 = vperm.xlu1 %4372, %v6626_v34  }
 0x2f0   : > { %v6855_v57 = vpop.permute.xlu1 %2041  ;;  %2523 = vperm.xlu0 %4374, %v6468_v16  }
 0x2f1   : > { %9127 = vst [vmem:[#allocation27_spill] sm:$0xff] %v6855_v57  ;;  %4375 = vset.pattern.permute.xlu1 %v9124_v17  ;;  %v6859_v6 = vpop.permute.xlu0 %2016 }
 0x2f2   : > { %2499 = vperm.xlu1 %4375, %v6440_v50  }
 0x2f4   : > { %v6862_v24 = vpop.permute.xlu1 %2046  ;;  %2531 = vperm.xlu0 %4374, %v6481_v37  }
 0x2f5   : > { %v6865_v53 = vpop.permute.xlu0 %2061 }
 0x2f6   : > { %2503 = vperm.xlu1 %4375, %v6484_v26  }
 0x2f8   : > { %v6868_v8 = vpop.permute.xlu1 %2051  ;;  %2539 = vperm.xlu0 %4374, %v6494_v54  }
 0x2f9   : > { %v6871_v57 = vpop.permute.xlu0 %2071 }
 0x2fa   : > { %2511 = vperm.xlu1 %4375, %v6497_v3  }
 0x2fc   : > { %v6874_v17 = vpop.permute.xlu1 %2056  ;;  %2547 = vperm.xlu0 %4374, %v6506_v36  }
 0x2fd   : > { %v6877_v50 = vpop.permute.xlu0 %2081 }
 0x2fe   : > { %2519 = vperm.xlu1 %4375, %v6509_v28  }
 0x300   : > { %v6880_v16 = vpop.permute.xlu1 %2066  ;;  %2555 = vperm.xlu0 %4374, %v6518_v31  }
 0x301   : > { %v6883_v37 = vpop.permute.xlu0 %2091 }
 0x302   : > { %2527 = vperm.xlu1 %4375, %v6521_v20  }
 0x304   : > { %v6886_v26 = vpop.permute.xlu1 %2076  ;;  %2563 = vperm.xlu0 %4374, %v6534_v45  }
 0x305   : > { %v6889_v54 = vpop.permute.xlu0 %2101 }
 0x306   : > { %2535 = vperm.xlu1 %4375, %v6537_v47  }
 0x308   : > { %v6892_v3 = vpop.permute.xlu1 %2086  ;;  %2571 = vperm.xlu0 %4374, %v6546_v19  }
 0x309   : > { %v6895_v36 = vpop.permute.xlu0 %2111 }
 0x30a   : > { %2543 = vperm.xlu1 %4375, %v6549_v33  }
 0x30c   : > { %v6898_v28 = vpop.permute.xlu1 %2096  ;;  %2579 = vperm.xlu0 %4374, %v6558_v12  }
 0x30d   : > { %v6901_v31 = vpop.permute.xlu0 %2121 }
 0x30e   : > { %2551 = vperm.xlu1 %4375, %v6561_v30  }
 0x310   : > { %v6904_v20 = vpop.permute.xlu1 %2106  ;;  %2587 = vperm.xlu0 %4374, %v6570_v39  }
 0x311   : > { %v6907_v45 = vpop.permute.xlu0 %2131 }
 0x312   : > { %2559 = vperm.xlu1 %4375, %v6573_v55  }
 0x314   : > { %v6910_v47 = vpop.permute.xlu1 %2116  ;;  %2595 = vperm.xlu0 %4374, %v6584_v46  }
 0x315   : > { %v6913_v19 = vpop.permute.xlu0 %2141 }
 0x316   : > { %2567 = vperm.xlu1 %4375, %v6587_v9  }
 0x318   : > { %v6916_v33 = vpop.permute.xlu1 %2126  ;;  %2603 = vperm.xlu0 %4374, %v6598_v7  }
 0x319   : > { %v6919_v12 = vpop.permute.xlu0 %2151 }
 0x31a   : > { %2575 = vperm.xlu1 %4375, %v6601_v61  }
 0x31c   : > { %v6922_v30 = vpop.permute.xlu1 %2136  ;;  %2611 = vperm.xlu0 %4374, %v6612_v44  }
 0x31d   : > { %v6925_v39 = vpop.permute.xlu0 %2161 }
 0x31e   : > { %2583 = vperm.xlu1 %4375, %v6615_v14  }
 0x320   : > { %v6928_v55 = vpop.permute.xlu1 %2146  ;;  %2619 = vperm.xlu0 %4374, %v6626_v34  }
 0x321   : > { %9128 = vst [vmem:[#allocation119_spill] sm:$0xff] %v6928_v55  ;;  %v6931_v46 = vpop.permute.xlu0 %2171  ;;  %v9132_v55 = vld [vmem:[#allocation41_spill] sm:$0xff] }
 0x322   : > { %9129 = vst [vmem:[#allocation93_spill] sm:$0xff] %v6931_v46  ;;  %2591 = vperm.xlu1 %4375, %v6629_v11   ;;  %v6948_v34 = vadd.f32 %v6736_v25, %v9132_v55  ;;  %v9134_v46 = vld [vmem:[#allocation42_spill] sm:$0xff] }
 0x323   : > { %v6952_v11 = vadd.f32 %v6736_v25, %v9134_v46  ;;  %v6971_v25 = vadd.f32 %v6749_v51, %v9134_v46 }
 0x324   : > { %v6934_v9 = vpop.permute.xlu1 %2156  ;;  %9133 = vst [vmem:[#allocation28_spill] sm:$0xff] %v6948_v34  ;;  %v6983_v34 = vadd.f32 %v6758_v35, %v9132_v55 }
 0x325   : > { %9135 = vst [vmem:[#allocation121_spill] sm:$0xff] %v6952_v11  ;;  %9139 = vst [vmem:[#allocation122_spill] sm:$0xff] %v6971_v25  ;;  %v6975_v11 = vadd.f32 %v6755_v62, %v9132_v55  ;;  %v6995_v25 = vadd.f32 %v6758_v35, %v9134_v46  ;;  %v7017_v35 = vadd.f32 %v6770_v21, %v9132_v55 }
 0x326   : > { %2599 = vperm.xlu1 %4375, %v6640_v18   ;;  %v6937_v7 = vpop.permute.xlu0 %2243  ;;  %v6956_v18 = vadd.f32 %v6742_v29, %v9132_v55  ;;  %9142 = vst [vmem:[#allocation78_spill] sm:$0xff] %v6983_v34 }
 0x327   : > { %9140 = vst [vmem:[#allocation69_spill] sm:$0xff] %v6975_v11  ;;  %9145 = vst [vmem:[#allocation79_spill] sm:$0xff] %v6995_v25  ;;  %v7005_v11 = vadd.f32 %v6767_v48, %v9132_v55 }
 0x328   : > { %v6939_v61 = vpop.permute.xlu1 %2166  ;;  %9136 = vst [vmem:[#allocation29_spill] sm:$0xff] %v6956_v18  ;;  %9150 = vst [vmem:[#allocation51_spill] sm:$0xff] %v7017_v35 }
 0x329   : > { %9130 = vst [vmem:[#allocation74_spill] sm:$0xff] %v6939_v61  ;;  %v6960_v61 = vadd.f32 %v6742_v29, %v9134_v46  ;;  %v6979_v29 = vadd.f32 %v6755_v62, %v9134_v46  ;;  %v6999_v62 = vadd.f32 %v6764_v22, %v9132_v55  ;;  %9147 = vst [vmem:[#allocation32_spill] sm:$0xff] %v7005_v11 }
 0x32a   : > { %2607 = vperm.xlu1 %4375, %v6647_v15   ;;  %v6942_v44 = vpop.permute.xlu0 %2255  ;;  %v6964_v15 = vadd.f32 %v6749_v51, %v9132_v55  ;;  %v6991_v51 = vadd.f32 %v6761_v1, %v9134_v46  ;;  %v7039_v11 = vadd.f32 %v6779_v10, %v9132_v55 }
 0x32b   : > { %9137 = vst [vmem:[#allocation11_spill] sm:$0xff] %v6960_v61  ;;  %9141 = vst [vmem:[#allocation57_spill] sm:$0xff] %v6979_v29 }
 0x32c   : > { %v6944_v14 = vpop.permute.xlu1 %2239  ;;  %9138 = vst [vmem:[#allocation96_spill] sm:$0xff] %v6964_v15  ;;  %9144 = vst [vmem:[#allocation109_spill] sm:$0xff] %v6991_v51  ;;  %v7021_v51 = vadd.f32 %v6773_v58, %v9132_v55 }
 0x32d   : > { %9131 = vst [vmem:[#allocation75_spill] sm:$0xff] %v6944_v14  ;;  %9146 = vst [vmem:[#allocation30_spill] sm:$0xff] %v6999_v62  ;;  %v7025_v62 = vadd.f32 %v6773_v58, %v9134_v46  ;;  %v7047_v58 = vadd.f32 %v6776_v41, %v9134_v46 }
 0x32e   : > { %2615 = vperm.xlu1 %4375, %v6653_v32   ;;  %v6967_v14 = vpop.permute.xlu0 %2263  ;;  %v6987_v32 = vadd.f32 %v6761_v1, %v9132_v55  ;;  %v7013_v1 = vadd.f32 %v6764_v22, %v9134_v46  ;;  %9151 = vst [vmem:[#allocation113_spill] sm:$0xff] %v7021_v51  ;;  %v7033_v22 = vadd.f32 %v6776_v41, %v9132_v55  ;;  %9155 = vst [vmem:[#allocation33_spill] sm:$0xff] %v7039_v11 }
 0x32f   : > { %9152 = vst [vmem:[#allocation31_spill] sm:$0xff] %v7025_v62  ;;  %v7043_v51 = vadd.f32 %v6779_v10, %v9134_v46  ;;  %9157 = vst [vmem:[#allocation83_spill] sm:$0xff] %v7047_v58  ;;  %v7055_v62 = vadd.f32 %v6785_v38, %v9132_v55  ;;  %v7063_v10 = vadd.f32 %v6782_v5, %v9134_v46 }
 0x330   : > { %9143 = vst [vmem:[#allocation108_spill] sm:$0xff] %v6987_v32  ;;  %v7001_v29 = vpop.permute.xlu1 %2247  ;;  %v7009_v32 = vadd.f32 %v6767_v48, %v9134_v46  ;;  %9149 = vst [vmem:[#allocation72_spill] sm:$0xff] %v7013_v1  ;;  %v7029_v48 = vadd.f32 %v6770_v21, %v9134_v46  ;;  %v7051_v21 = vadd.f32 %v6782_v5, %v9132_v55 }
 0x331   : > { %9154 = vst [vmem:[#allocation52_spill] sm:$0xff] %v7033_v22  ;;  %9156 = vst [vmem:[#allocation82_spill] sm:$0xff] %v7043_v51  ;;  %v7059_v22 = vadd.f32 %v6785_v38, %v9134_v46  ;;  %v7067_v41 = vadd.f32 %v6788_v23, %v9132_v55  ;;  %v7073_v11 = vadd.f32 %v6791_v43, %v9132_v55 }
 0x332   : > { %9148 = vst [vmem:[#allocation112_spill] sm:$0xff] %v7009_v32  ;;  %9153 = vst [vmem:[#allocation73_spill] sm:$0xff] %v7029_v48  ;;  %v7035_v32 = vpop.permute.xlu0 %2271  ;;  %v7081_v38 = vadd.f32 %v6788_v23, %v9134_v46  ;;  %v7085_v5 = vadd.f32 %v6794_v13, %v9132_v55  ;;  %v7101_v23 = vadd.f32 %v6800_v59, %v9132_v55 }
 0x333   : > { %9158 = vst [vmem:[#allocation116_spill] sm:$0xff] %v7051_v21  ;;  %9159 = vst [vmem:[#allocation117_spill] sm:$0xff] %v7055_v62  ;;  %v7077_v62 = vadd.f32 %v6791_v43, %v9134_v46  ;;  %v7097_v43 = vadd.f32 %v6794_v13, %v9134_v46  ;;  %v7119_v13 = vadd.f32 %v6806_v0, %v9132_v55 }
 0x334   : > { %9160 = vst [vmem:[#allocation35_spill] sm:$0xff] %v7059_v22  ;;  %9161 = vst [vmem:[#allocation76_spill] sm:$0xff] %v7063_v10  ;;  %v7069_v51 = vpop.permute.xlu1 %2251  ;;  %v7089_v22 = vadd.f32 %v6797_v42, %v9132_v55 }
 0x335   : > { %9162 = vst [vmem:[#allocation60_spill] sm:$0xff] %v7067_v41  ;;  %9163 = vst [vmem:[#allocation77_spill] sm:$0xff] %v7073_v11  ;;  %v7093_v41 = vadd.f32 %v6797_v42, %v9134_v46  ;;  %v7107_v11 = vadd.f32 %v6803_v52, %v9132_v55  ;;  %v7115_v42 = vadd.f32 %v6800_v59, %v9134_v46 }
 0x336   : > { %9164 = vst [vmem:[#allocation61_spill] sm:$0xff] %v7077_v62  ;;  %9165 = vst [vmem:[#allocation86_spill] sm:$0xff] %v7081_v38  ;;  %v7103_v62 = vpop.permute.xlu0 %2279  ;;  %v7135_v59 = vadd.f32 %v6812_v60, %v9132_v55 }
 0x337   : > { %9166 = vst [vmem:[#allocation36_spill] sm:$0xff] %v7085_v5  ;;  %9167 = vst [vmem:[#allocation87_spill] sm:$0xff] %v7089_v22  ;;  %v7111_v22 = vadd.f32 %v6803_v52, %v9134_v46  ;;  %v7131_v52 = vadd.f32 %v6806_v0, %v9134_v46  ;;  %v7153_v0 = vadd.f32 %v6818_v2, %v9132_v55  ;;  %v9204_v5 = vld [vmem:[#allocation118_spill] sm:$0xff] }
 0x338   : > { %9168 = vst [vmem:[#allocation80_spill] sm:$0xff] %v7093_v41  ;;  %9169 = vst [vmem:[#allocation49_spill] sm:$0xff] %v7097_v43  ;;  %v7123_v41 = vadd.f32 %v6809_v27, %v9132_v55 }
 0x339   : > { %9170 = vst [vmem:[#allocation39_spill] sm:$0xff] %v7101_v23  ;;  %9171 = vst [vmem:[#allocation81_spill] sm:$0xff] %v7107_v11  ;;  %v7127_v23 = vadd.f32 %v6809_v27, %v9134_v46  ;;  %v7141_v11 = vadd.f32 %v6815_v40, %v9132_v55  ;;  %v7149_v27 = vadd.f32 %v6812_v60, %v9134_v46 }
 0x33a   : > { %9172 = vst [vmem:[#allocation50_spill] sm:$0xff] %v7111_v22  ;;  %9173 = vst [vmem:[#allocation98_spill] sm:$0xff] %v7115_v42  ;;  %v7137_v22 = vpop.permute.xlu1 %2259  ;;  %v9197_v42 = vld [vmem:[#allocation44_spill] sm:$0xff] }
 0x33b   : > { %9174 = vst [vmem:[#allocation90_spill] sm:$0xff] %v7119_v13  ;;  %9175 = vst [vmem:[#allocation40_spill] sm:$0xff] %v7123_v41  ;;  %v7145_v41 = vadd.f32 %v6815_v40, %v9134_v46  ;;  %v7165_v40 = vadd.f32 %v6818_v2, %v9134_v46  ;;  %v9193_v2 = vld [vmem:[#allocation92_spill] sm:$0xff]  ;;  %v7247_v38 = vmul.f32 %v6851_v56, %v9197_v42 }
 0x33c   : > { %9176 = vst [vmem:[#allocation91_spill] sm:$0xff] %v7127_v23  ;;  %9177 = vst [vmem:[#allocation94_spill] sm:$0xff] %v7131_v52  ;;  %v9183_v23 = vld [vmem:[#allocation70_spill] sm:$0xff]  ;;  %v7285_v10 = vmul.f32 %v6865_v53, %v9197_v42  ;;  %v7293_v21 = vmul.f32 %v6868_v8, %v9197_v42  ;;  %v7301_v58 = vmul.f32 %v6871_v57, %v9197_v42 }
 0x33d   : > { %9178 = vst [vmem:[#allocation101_spill] sm:$0xff] %v7135_v59  ;;  %9179 = vst [vmem:[#allocation95_spill] sm:$0xff] %v7141_v11  ;;  %v7157_v59 = vadd.f32 %v9183_v23, %v9132_v55  ;;  %v7161_v52 = vadd.f32 %v9183_v23, %v9134_v46  ;;  %v7171_v11 = vpop.permute.xlu0 %2287  ;;  %v7311_v35 = vmul.f32 %v6874_v17, %v9197_v42 }
 0x33e   : > { %9180 = vst [vmem:[#allocation102_spill] sm:$0xff] %v7145_v41  ;;  %9181 = vst [vmem:[#allocation103_spill] sm:$0xff] %v7149_v27  ;;  %v9187_v41 = vld [vmem:[#allocation71_spill] sm:$0xff]  ;;  %v7319_v1 = vmul.f32 %v6877_v50, %v9197_v42  ;;  %v7327_v15 = vmul.f32 %v6880_v16, %v9197_v42  ;;  %v7335_v61 = vmul.f32 %v6883_v37, %v9197_v42 }
 0x33f   : > { %9182 = vst [vmem:[#allocation104_spill] sm:$0xff] %v7153_v0  ;;  %9184 = vst [vmem:[#allocation12_spill] sm:$0xff] %v7157_v59  ;;  %v7169_v60 = vadd.f32 %v9187_v41, %v9132_v55  ;;  %v9189_v0 = vld [vmem:[#allocation25_spill] sm:$0xff]  ;;  %v7183_v23 = vadd.f32 %v9187_v41, %v9134_v46  ;;  %v7203_v41 = vadd.f32 %v6836_v49, %v9132_v55 }
 0x340   : > { %9185 = vst [vmem:[#allocation14_spill] sm:$0xff] %v7161_v52  ;;  %9186 = vst [vmem:[#allocation65_spill] sm:$0xff] %v7165_v40  ;;  %v7175_v27 = vadd.f32 %v9189_v0, %v9132_v55  ;;  %v7179_v59 = vadd.f32 %v9189_v0, %v9134_v46  ;;  %v7187_v52 = vadd.f32 %v9193_v2, %v9132_v55  ;;  %v9195_v40 = vld [vmem:[#allocation43_spill] sm:$0xff] }
 0x341   : > { %9188 = vst [vmem:[#allocation13_spill] sm:$0xff] %v7169_v60  ;;  %9192 = vst [vmem:[#allocation99_spill] sm:$0xff] %v7183_v23  ;;  %v9196_v60 = vld [vmem:[#allocation120_spill] sm:$0xff]  ;;  %v7199_v0 = vadd.f32 %v9193_v2, %v9134_v46  ;;  %v7221_v2 = vadd.f32 %v6843_v4, %v9132_v55  ;;  %v7345_v25 = vmul.f32 %v6886_v26, %v9197_v42 }
 0x342   : > { %9190 = vst [vmem:[#allocation64_spill] sm:$0xff] %v7175_v27  ;;  %9191 = vst [vmem:[#allocation97_spill] sm:$0xff] %v7179_v59  ;;  %v7191_v13 = vmul.f32 %v9196_v60, %v9195_v40  ;;  %v7195_v43 = vmul.f32 %v9196_v60, %v9197_v42  ;;  %v7205_v59 = vpop.permute.xlu1 %2267  ;;  %v9200_v27 = vld [vmem:[#allocation124_spill] sm:$0xff]  ;;  %v7217_v60 = vadd.f32 %v6836_v49, %v9134_v46 }
 0x343   : > { %9194 = vst [vmem:[#allocation100_spill] sm:$0xff] %v7187_v52  ;;  %9198 = vst [vmem:[#allocation41_spill] sm:$0xff] %v7199_v0  ;;  %v7209_v52 = vmul.f32 %v9200_v27, %v9195_v40  ;;  %v7213_v23 = vmul.f32 %v9200_v27, %v9197_v42  ;;  %v7229_v0 = vmul.f32 %v6845_v63, %v9197_v42 }
 0x344   : > { %9199 = vst [vmem:[#allocation42_spill] sm:$0xff] %v7203_v41  ;;  %9201 = vst [vmem:[#allocation70_spill] sm:$0xff] %v7217_v60  ;;  %v7225_v41 = vmul.f32 %v6845_v63, %v9195_v40  ;;  %v7233_v27 = vadd.f32 %v6843_v4, %v9134_v46  ;;  %v7237_v49 = vadd.f32 %v9204_v5, %v9132_v55  ;;  %v7239_v60 = vpop.permute.xlu0 %2295  ;;  %v9207_v4 = vld [vmem:[#allocation27_spill] sm:$0xff] }
 0x345   : > { %9202 = vst [vmem:[#allocation71_spill] sm:$0xff] %v7221_v2  ;;  %v7243_v2 = vmul.f32 %v6851_v56, %v9195_v40  ;;  %v7251_v63 = vadd.f32 %v9204_v5, %v9134_v46  ;;  %v7259_v55 = vmul.f32 %v9207_v4, %v9197_v42  ;;  %v7267_v56 = vmul.f32 %v6859_v6, %v9197_v42 }
 0x346   : > { %9203 = vst [vmem:[#allocation25_spill] sm:$0xff] %v7233_v27  ;;  %9205 = vst [vmem:[#allocation92_spill] sm:$0xff] %v7237_v49  ;;  %v7255_v27 = vmul.f32 %v9207_v4, %v9195_v40  ;;  %v7263_v49 = vmul.f32 %v6859_v6, %v9195_v40  ;;  %v7271_v46 = vmul.f32 %v6862_v24, %v9195_v40  ;;  %v7273_v5 = vpop.permute.xlu1 %2275 }
 0x347   : > { %9206 = vst [vmem:[#allocation43_spill] sm:$0xff] %v7251_v63  ;;  %v7277_v63 = vmul.f32 %v6862_v24, %v9197_v42  ;;  %v7281_v4 = vmul.f32 %v6865_v53, %v9195_v40  ;;  %v7289_v6 = vmul.f32 %v6868_v8, %v9195_v40  ;;  %v7297_v24 = vmul.f32 %v6871_v57, %v9195_v40 }
 0x348   : > { %v7305_v53 = vmul.f32 %v6874_v17, %v9195_v40  ;;  %v7307_v48 = vpop.permute.xlu0 %2303  ;;  %v7315_v8 = vmul.f32 %v6877_v50, %v9195_v40  ;;  %9209 = vst [vmem:[#allocation44_spill] sm:$0xff] %v7319_v1  ;;  %v7323_v57 = vmul.f32 %v6880_v16, %v9195_v40  ;;  %v7331_v17 = vmul.f32 %v6883_v37, %v9195_v40 }
 0x349   : > { %9211 = vst [vmem:[#allocation118_spill] sm:$0xff] %v7335_v61  ;;  %v7339_v50 = vmul.f32 %v6886_v26, %v9195_v40  ;;  %v7349_v16 = vmul.f32 %v6889_v54, %v9195_v40  ;;  %v7353_v34 = vmul.f32 %v6889_v54, %v9197_v42  ;;  %v7357_v37 = vmul.f32 %v6892_v3, %v9195_v40 }
 0x34a   : > { %9208 = vst [vmem:[#allocation120_spill] sm:$0xff] %v7315_v8  ;;  %9210 = vst [vmem:[#allocation124_spill] sm:$0xff] %v7331_v17  ;;  %v7341_v18 = vpop.permute.xlu1 %2283  ;;  %v7361_v61 = vmul.f32 %v6892_v3, %v9197_v42  ;;  %v7365_v26 = vmul.f32 %v6895_v36, %v9195_v40  ;;  %v7369_v17 = vmul.f32 %v6895_v36, %v9197_v42 }
 0x34b   : > { %9212 = vst [vmem:[#allocation27_spill] sm:$0xff] %v7349_v16  ;;  %9213 = vst [vmem:[#allocation125_spill] sm:$0xff] %v7353_v34  ;;  %v7373_v54 = vmul.f32 %v6898_v28, %v9195_v40  ;;  %v7379_v16 = vmul.f32 %v6898_v28, %v9197_v42  ;;  %v7383_v3 = vmul.f32 %v6901_v31, %v9195_v40 }
 0x34c   : > { %9214 = vst [vmem:[#allocation126_spill] sm:$0xff] %v7365_v26  ;;  %9215 = vst [vmem:[#allocation127_spill] sm:$0xff] %v7369_v17  ;;  %v7375_v34 = vpop.permute.xlu0 %2311  ;;  %v7387_v26 = vmul.f32 %v6901_v31, %v9197_v42  ;;  %v7391_v36 = vmul.f32 %v6904_v20, %v9195_v40  ;;  %v7395_v17 = vmul.f32 %v6904_v20, %v9197_v42 }
 0x34d   : > { %9216 = vst [vmem:[#allocation128_spill] sm:$0xff] %v7383_v3  ;;  %v7399_v28 = vmul.f32 %v6907_v45, %v9195_v40  ;;  %v7403_v1 = vmul.f32 %v6907_v45, %v9197_v42  ;;  %v7407_v31 = vmul.f32 %v6910_v47, %v9195_v40  ;;  %v7413_v3 = vmul.f32 %v6910_v47, %v9197_v42 }
 0x34e   : > { %9217 = vst [vmem:[#allocation129_spill] sm:$0xff] %v7387_v26  ;;  %9218 = vst [vmem:[#allocation130_spill] sm:$0xff] %v7395_v17  ;;  %v7409_v26 = vpop.permute.xlu1 %2291  ;;  %v7417_v20 = vmul.f32 %v6913_v19, %v9195_v40  ;;  %v7425_v45 = vmul.f32 %v6916_v33, %v9195_v40  ;;  %v7433_v47 = vmul.f32 %v6919_v12, %v9195_v40 }
 0x34f   : > { %9219 = vst [vmem:[#allocation131_spill] sm:$0xff] %v7399_v28  ;;  %9220 = vst [vmem:[#allocation132_spill] sm:$0xff] %v7403_v1  ;;  %v7421_v28 = vmul.f32 %v6913_v19, %v9197_v42  ;;  %v7429_v1 = vmul.f32 %v6916_v33, %v9197_v42  ;;  %v7449_v33 = vmul.f32 %v6922_v30, %v9197_v42 }
 0x350   : > { %9221 = vst [vmem:[#allocation133_spill] sm:$0xff] %v7407_v31  ;;  %9222 = vst [vmem:[#allocation134_spill] sm:$0xff] %v7413_v3  ;;  %v7437_v3 = vmul.f32 %v6919_v12, %v9197_v42  ;;  %v7457_v12 = vmul.f32 %v6925_v39, %v9197_v42 }
 0x351   : > { %9223 = vst [vmem:[#allocation135_spill] sm:$0xff] %v7417_v20  ;;  %9224 = vst [vmem:[#allocation136_spill] sm:$0xff] %v7421_v28  ;;  %v9229_v20 = vld [vmem:[#allocation45_spill] sm:$0xff]  ;;  %v7441_v28 = vpop.permute.xlu0 %2319 }
 0x352   : > { %9225 = vst [vmem:[#allocation137_spill] sm:$0xff] %v7425_v45  ;;  %9226 = vst [vmem:[#allocation138_spill] sm:$0xff] %v7429_v1  ;;  %v2368_v19 = vmul.f32 %v6937_v7, %v9229_v20  ;;  %v7445_v45 = vmul.f32 %v6922_v30, %v9195_v40  ;;  %v2382_v17 = vmul.f32 %v7035_v32, %v9229_v20 }
 0x353   : > { %9227 = vst [vmem:[#allocation139_spill] sm:$0xff] %v7433_v47  ;;  %9228 = vst [vmem:[#allocation140_spill] sm:$0xff] %v7437_v3  ;;  %v7453_v47 = vmul.f32 %v6925_v39, %v9195_v40  ;;  %v9234_v3 = vld [vmem:[#allocation119_spill] sm:$0xff] }
 0x354   : > { %9230 = vst [vmem:[#allocation45_spill] sm:$0xff] %v7445_v45  ;;  %9231 = vst [vmem:[#allocation141_spill] sm:$0xff] %v7449_v33  ;;  %v7461_v1 = vmul.f32 %v9234_v3, %v9195_v40  ;;  %v7465_v31 = vmul.f32 %v9234_v3, %v9197_v42  ;;  %v9237_v45 = vld [vmem:[#allocation93_spill] sm:$0xff]  ;;  %v9239_v33 = vld [vmem:[#allocation46_spill] sm:$0xff]  ;;  %v7485_v3 = vmul.f32 %v6934_v9, %v9197_v42 }
 0x355   : > { %9232 = vst [vmem:[#allocation142_spill] sm:$0xff] %v7453_v47  ;;  %9233 = vst [vmem:[#allocation143_spill] sm:$0xff] %v7457_v12  ;;  %v7469_v30 = vmul.f32 %v9237_v45, %v9195_v40  ;;  %v2369_v8 = vmul.f32 %v6937_v7, %v9239_v33  ;;  %v7473_v47 = vpop.permute.xlu1 %2299  ;;  %v7477_v39 = vmul.f32 %v9237_v45, %v9197_v42  ;;  %v9245_v45 = vld [vmem:[#allocation75_spill] sm:$0xff] }
 0x356   : > { %9235 = vst [vmem:[#allocation119_spill] sm:$0xff] %v7461_v1  ;;  %9236 = vst [vmem:[#allocation144_spill] sm:$0xff] %v7465_v31  ;;  %v7481_v12 = vmul.f32 %v6934_v9, %v9195_v40  ;;  %v7490_v31 = vadd.f32 %v2368_v19, %v7191_v13  ;;  %v2375_v7 = vmul.f32 %v6942_v44, %v9239_v33 }
 0x357   : > { %9238 = vst [vmem:[#allocation93_spill] sm:$0xff] %v7469_v30  ;;  %9240 = vst [vmem:[#allocation46_spill] sm:$0xff] %v7473_v47  ;;  %v2374_v30 = vmul.f32 %v6942_v44, %v9229_v20  ;;  %v2367_v1 = vmul.f32 %v9245_v45, %v9239_v33  ;;  %v2378_v9 = vmul.f32 %v6967_v14, %v9229_v20 }
 0x358   : > { %9241 = vst [vmem:[#allocation145_spill] sm:$0xff] %v7477_v39  ;;  %9242 = vst [vmem:[#allocation146_spill] sm:$0xff] %v7481_v12  ;;  %v2366_v39 = vmul.f32 %v9245_v45, %v9229_v20  ;;  %v7498_v12 = vpop.permute.xlu0 %2327  ;;  %v2370_v13 = vmul.f32 %v7001_v29, %v9229_v20  ;;  %v2371_v44 = vmul.f32 %v7001_v29, %v9239_v33 }
 0x359   : > { %9243 = vst [vmem:[#allocation147_spill] sm:$0xff] %v7485_v3  ;;  %9244 = vst [vmem:[#allocation148_spill] sm:$0xff] %v7490_v31  ;;  %v2379_v3 = vmul.f32 %v6967_v14, %v9239_v33  ;;  %v7509_v19 = vadd.f32 %v2369_v8, %v7195_v43  ;;  %v9248_v31 = vld [vmem:[#allocation74_spill] sm:$0xff]  ;;  %v7519_v14 = vpop.permute.xlu1 %2307  ;;  %v7526_v29 = vadd.f32 %v2374_v30, %v7243_v2 }
 0x35a   : > { %9246 = vst [vmem:[#allocation75_spill] sm:$0xff] %v7498_v12  ;;  %v7513_v45 = vmul.f32 %v9248_v31, %v9195_v40  ;;  %v2383_v12 = vmul.f32 %v7035_v32, %v9239_v33  ;;  %v7523_v47 = vmul.f32 %v9248_v31, %v9197_v42  ;;  %v2372_v43 = vmul.f32 %v7069_v51, %v9229_v20 }
 0x35b   : > { %9247 = vst [vmem:[#allocation149_spill] sm:$0xff] %v7509_v19  ;;  %v2373_v40 = vmul.f32 %v7069_v51, %v9239_v33  ;;  %v7533_v8 = vadd.f32 %v2375_v7, %v7247_v38  ;;  %v7536_v32 = vadd.f32 %v2366_v39, %v7263_v49  ;;  %v7539_v19 = vadd.f32 %v2367_v1, %v7267_v56 }
 0x35c   : > { %v2386_v42 = vmul.f32 %v7103_v62, %v9229_v20  ;;  %v7543_v2 = vpop.permute.xlu0 %2335  ;;  %v7546_v31 = vadd.f32 %v2378_v9, %v7271_v46  ;;  %v7549_v30 = vadd.f32 %v2379_v3, %v7277_v63  ;;  %v7552_v51 = vadd.f32 %v2370_v13, %v7209_v52 }
 0x35d   : > { %v7555_v38 = vadd.f32 %v2371_v44, %v7213_v23  ;;  %v7558_v1 = vadd.f32 %v2382_v17, %v7305_v53  ;;  %v7561_v49 = vadd.f32 %v2383_v12, %v7311_v35  ;;  %v2387_v56 = vmul.f32 %v7103_v62, %v9239_v33  ;;  %v7567_v63 = vpop.permute.xlu1 %2315 }
 0x35e   : > { %v2376_v46 = vmul.f32 %v7137_v22, %v9229_v20  ;;  %v7570_v52 = vadd.f32 %v2372_v43, %v7225_v41  ;;  %v7573_v23 = vadd.f32 %v2373_v40, %v7229_v0  ;;  %v2377_v53 = vmul.f32 %v7137_v22, %v9239_v33 }
 0x35f   : > { %v2390_v35 = vmul.f32 %v7171_v11, %v9229_v20  ;;  %v7580_v17 = vadd.f32 %v2386_v42, %v7323_v57  ;;  %v2391_v62 = vmul.f32 %v7171_v11, %v9239_v33  ;;  %v2380_v12 = vmul.f32 %v7205_v59, %v9229_v20 }
 0x360   : > { %v2381_v41 = vmul.f32 %v7205_v59, %v9239_v33  ;;  %v7588_v0 = vpop.permute.xlu0 %2343  ;;  %v2394_v22 = vmul.f32 %v7239_v60, %v9229_v20  ;;  %v2395_v39 = vmul.f32 %v7239_v60, %v9239_v33  ;;  %v2384_v57 = vmul.f32 %v7273_v5, %v9229_v20 }
 0x361   : > { %v2385_v11 = vmul.f32 %v7273_v5, %v9239_v33  ;;  %v7599_v3 = vadd.f32 %v2387_v56, %v7327_v15  ;;  %v7602_v7 = vadd.f32 %v2376_v46, %v7255_v27  ;;  %v2398_v59 = vmul.f32 %v7307_v48, %v9229_v20  ;;  %v7608_v13 = vpop.permute.xlu1 %2323 }
 0x362   : > { %v2399_v9 = vmul.f32 %v7307_v48, %v9239_v33  ;;  %v7611_v60 = vadd.f32 %v2377_v53, %v7259_v55  ;;  %v7614_v44 = vadd.f32 %v2390_v35, %v7339_v50  ;;  %v2388_v15 = vmul.f32 %v7341_v18, %v9229_v20  ;;  %v9253_v53 = vld [vmem:[#allocation46_spill] sm:$0xff] }
 0x363   : > { %v2389_v27 = vmul.f32 %v7341_v18, %v9239_v33  ;;  %v7621_v5 = vadd.f32 %v2391_v62, %v7345_v25  ;;  %v7624_v43 = vadd.f32 %v2380_v12, %v7289_v6  ;;  %v7627_v48 = vadd.f32 %v2381_v41, %v7293_v21  ;;  %v9254_v62 = vld [vmem:[#allocation75_spill] sm:$0xff] }
 0x364   : > { %v2402_v55 = vmul.f32 %v7375_v34, %v9229_v20  ;;  %v2352_v50 = vpop.permute.xlu0 %2351  ;;  %v7632_v40 = vadd.f32 %v2394_v22, %v7357_v37  ;;  %v7635_v42 = vadd.f32 %v2395_v39, %v7361_v61  ;;  %v7638_v18 = vadd.f32 %v2384_v57, %v7281_v4  ;;  %v9255_v22 = vld [vmem:[#allocation130_spill] sm:$0xff] }
 0x365   : > { %v7641_v25 = vadd.f32 %v2385_v11, %v7285_v10  ;;  %v7644_v6 = vadd.f32 %v2398_v59, %v7373_v54  ;;  %v7647_v21 = vadd.f32 %v2399_v9, %v7379_v16  ;;  %v2403_v56 = vmul.f32 %v7375_v34, %v9239_v33  ;;  %v2332_v61 = vpop.permute.xlu1 %2331 }
 0x366   : > { %9249 = vst [vmem:[#allocation74_spill] sm:$0xff] %v7635_v42  ;;  %v2392_v37 = vmul.f32 %v7409_v26, %v9229_v20  ;;  %v7654_v46 = vadd.f32 %v2388_v15, %v7297_v24  ;;  %v7657_v4 = vadd.f32 %v2389_v27, %v7301_v58  ;;  %v2393_v10 = vmul.f32 %v7409_v26, %v9239_v33  ;;  %v9258_v15 = vld [vmem:[#allocation44_spill] sm:$0xff] }
 0x367   : > { %9250 = vst [vmem:[#allocation150_spill] sm:$0xff] %v7644_v6  ;;  %9251 = vst [vmem:[#allocation151_spill] sm:$0xff] %v7647_v21  ;;  %v2406_v16 = vmul.f32 %v7441_v28, %v9229_v20  ;;  %v7664_v54 = vadd.f32 %v2402_v55, %v7391_v36  ;;  %v2407_v34 = vmul.f32 %v7441_v28, %v9239_v33  ;;  %v9257_v28 = vld [vmem:[#allocation120_spill] sm:$0xff]  ;;  %v9259_v55 = vld [vmem:[#allocation133_spill] sm:$0xff] }
 0x368   : > { %v2396_v35 = vmul.f32 %v9253_v53, %v9229_v20  ;;  %v2397_v24 = vmul.f32 %v9253_v53, %v9239_v33  ;;  %v2360_v58 = vpop.permute.xlu0 %2359  ;;  %v2410_v12 = vmul.f32 %v9254_v62, %v9229_v20  ;;  %v2411_v26 = vmul.f32 %v9254_v62, %v9239_v33 }
 0x369   : > { %9252 = vst [vmem:[#allocation152_spill] sm:$0xff] %v7664_v54  ;;  %v2426_v41 = vmul.f32 %v2360_v58, %v9229_v20  ;;  %v2427_v36 = vmul.f32 %v2360_v58, %v9239_v33  ;;  %v7679_v39 = vadd.f32 %v2403_v56, %v9255_v22  ;;  %v7682_v57 = vadd.f32 %v2392_v37, %v9257_v28  ;;  %v2340_v9 = vpop.permute.xlu1 %2339  ;;  %v9263_v37 = vld [vmem:[#allocation134_spill] sm:$0xff]  ;;  %v9265_v22 = vld [vmem:[#allocation124_spill] sm:$0xff] }
 0x36a   : > { %v2400_v11 = vmul.f32 %v7519_v14, %v9229_v20  ;;  %v2401_v59 = vmul.f32 %v7519_v14, %v9239_v33  ;;  %v7689_v27 = vadd.f32 %v2393_v10, %v9258_v15  ;;  %v7692_v53 = vadd.f32 %v2406_v16, %v9259_v55  ;;  %v9266_v16 = vld [vmem:[#allocation118_spill] sm:$0xff]  ;;  %v9271_v55 = vld [vmem:[#allocation27_spill] sm:$0xff] }
 0x36b   : > { %9256 = vst [vmem:[#allocation46_spill] sm:$0xff] %v7679_v39  ;;  %v7695_v58 = vadd.f32 %v2426_v41, %v7513_v45  ;;  %v7698_v56 = vadd.f32 %v2427_v36, %v7523_v47  ;;  %v7701_v62 = vadd.f32 %v2407_v34, %v9263_v37  ;;  %v7704_v28 = vadd.f32 %v2396_v35, %v9265_v22  ;;  %v9267_v45 = vld [vmem:[#allocation137_spill] sm:$0xff]  ;;  %v9269_v47 = vld [vmem:[#allocation138_spill] sm:$0xff] }
 0x36c   : > { %9260 = vst [vmem:[#allocation75_spill] sm:$0xff] %v7692_v53  ;;  %v2414_v14 = vmul.f32 %v7543_v2, %v9229_v20  ;;  %v2415_v10 = vmul.f32 %v7543_v2, %v9239_v33  ;;  %v7711_v15 = vadd.f32 %v2397_v24, %v9266_v16  ;;  %v7714_v41 = vadd.f32 %v2410_v12, %v9267_v45  ;;  %v2496_v35 = vpop.permute.xlu0 %2495  ;;  %v9272_v22 = vld [vmem:[#allocation125_spill] sm:$0xff]  ;;  %v9273_v2 = vld [vmem:[#allocation47_spill] sm:$0xff]  ;;  %v9274_v24 = vld [vmem:[#allocation48_spill] sm:$0xff] }
 0x36d   : > { %9261 = vst [vmem:[#allocation130_spill] sm:$0xff] %v7695_v58  ;;  %9262 = vst [vmem:[#allocation120_spill] sm:$0xff] %v7698_v56  ;;  %v7717_v36 = vadd.f32 %v2411_v26, %v9269_v47  ;;  %v2404_v34 = vmul.f32 %v7567_v63, %v9229_v20  ;;  %v7722_v37 = vadd.f32 %v2400_v11, %v9271_v55  ;;  %v9275_v47 = vld [vmem:[#allocation45_spill] sm:$0xff] }
 0x36e   : > { %9264 = vst [vmem:[#allocation44_spill] sm:$0xff] %v7701_v62  ;;  %9268 = vst [vmem:[#allocation133_spill] sm:$0xff] %v7714_v41  ;;  %v7725_v56 = vadd.f32 %v2401_v59, %v9272_v22  ;;  %v2622_v58 = vmul.f32 %v2496_v35, %v9273_v2  ;;  %v2623_v16 = vmul.f32 %v2496_v35, %v9274_v24  ;;  %v2348_v62 = vpop.permute.xlu1 %2347  ;;  %v9277_v55 = vld [vmem:[#allocation141_spill] sm:$0xff] }
 0x36f   : > { %9270 = vst [vmem:[#allocation134_spill] sm:$0xff] %v7717_v36  ;;  %v2405_v12 = vmul.f32 %v7567_v63, %v9239_v33  ;;  %v2418_v26 = vmul.f32 %v7588_v0, %v9229_v20  ;;  %v2419_v45 = vmul.f32 %v7588_v0, %v9239_v33  ;;  %v2408_v11 = vmul.f32 %v7608_v13, %v9229_v20  ;;  %v9279_v63 = vld [vmem:[#allocation126_spill] sm:$0xff] }
 0x370   : > { %v7738_v59 = vadd.f32 %v2414_v14, %v9275_v47  ;;  %v7741_v22 = vadd.f32 %v2415_v10, %v9277_v55  ;;  %v2686_v35 = vadd.f32 %v2622_v58, %v7536_v32  ;;  %v2687_v36 = vadd.f32 %v2623_v16, %v7539_v19  ;;  %v2508_v54 = vpop.permute.xlu0 %2507  ;;  %v9280_v58 = vld [vmem:[#allocation127_spill] sm:$0xff] }
 0x371   : > { %v7746_v41 = vadd.f32 %v2404_v34, %v9279_v63  ;;  %v2409_v53 = vmul.f32 %v7608_v13, %v9239_v33  ;;  %v2422_v0 = vmul.f32 %v2352_v50, %v9229_v20  ;;  %v2423_v39 = vmul.f32 %v2352_v50, %v9239_v33  ;;  %v9281_v34 = vld [vmem:[#allocation119_spill] sm:$0xff]  ;;  %v9283_v63 = vld [vmem:[#allocation144_spill] sm:$0xff] }
 0x372   : > { %9276 = vst [vmem:[#allocation124_spill] sm:$0xff] %v7738_v59  ;;  %9278 = vst [vmem:[#allocation118_spill] sm:$0xff] %v7741_v22  ;;  %v2814_v14 = vmul.f32 2.0, %v2686_v35  ;;  %v2815_v47 = vmul.f32 2.0, %v2687_v36  ;;  %v2628_v10 = vmul.f32 %v2508_v54, %v9273_v2  ;;  %v2629_v55 = vmul.f32 %v2508_v54, %v9274_v24  ;;  %v2356_v32 = vpop.permute.xlu1 %2355  ;;  %v9285_v22 = vld [vmem:[#allocation128_spill] sm:$0xff]  ;;  %v9286_v35 = vld [vmem:[#allocation78_spill] sm:$0xff] }
 0x373   : > { %v7755_v19 = vadd.f32 %v2405_v12, %v9280_v58  ;;  %v7758_v16 = vadd.f32 %v2418_v26, %v9281_v34  ;;  %v7761_v13 = vadd.f32 %v2419_v45, %v9283_v63  ;;  %v7764_v59 = vadd.f32 %v2408_v11, %v9285_v22  ;;  %v9287_v54 = vld [vmem:[#allocation79_spill] sm:$0xff]  ;;  %v9288_v12 = vld [vmem:[#allocation129_spill] sm:$0xff]  ;;  %v9289_v26 = vld [vmem:[#allocation146_spill] sm:$0xff] }
 0x374   : > { %v2412_v50 = vmul.f32 %v2332_v61, %v9229_v20  ;;  %v2413_v36 = vmul.f32 %v2332_v61, %v9239_v33  ;;  %v7769_v21 = vsub.f32 %v9286_v35, %v2814_v14  ;;  %v7772_v6 = vsub.f32 %v9287_v54, %v2815_v47  ;;  %v2516_v22 = vpop.permute.xlu0 %2515  ;;  %v9291_v63 = vld [vmem:[#allocation147_spill] sm:$0xff] }
 0x375   : > { %9282 = vst [vmem:[#allocation137_spill] sm:$0xff] %v7758_v16  ;;  %9284 = vst [vmem:[#allocation138_spill] sm:$0xff] %v7761_v13  ;;  %v7775_v58 = vadd.f32 %v2409_v53, %v9288_v12  ;;  %v7778_v34 = vadd.f32 %v2422_v0, %v9289_v26  ;;  %v2692_v45 = vadd.f32 %v2628_v10, %v7570_v52 }
 0x376   : > { %v2693_v11 = vadd.f32 %v2629_v55, %v7573_v23  ;;  %v7783_v13 = vadd.f32 %v2423_v39, %v9291_v63  ;;  %v2416_v61 = vmul.f32 %v2340_v9, %v9229_v20  ;;  %v2632_v14 = vmul.f32 %v2516_v22, %v9273_v2  ;;  %v2364_v35 = vpop.permute.xlu1 %2363  ;;  %v9293_v23 = vld [vmem:[#allocation131_spill] sm:$0xff]  ;;  %v9294_v39 = vld [vmem:[#allocation132_spill] sm:$0xff] }
 0x377   : > { %9290 = vst [vmem:[#allocation27_spill] sm:$0xff] %v7778_v34  ;;  %v2633_v47 = vmul.f32 %v2516_v22, %v9274_v24  ;;  %v2417_v53 = vmul.f32 %v2340_v9, %v9239_v33  ;;  %v2428_v0 = vmul.f32 %v2364_v35, %v9229_v20  ;;  %v2429_v54 = vmul.f32 %v2364_v35, %v9239_v33  ;;  %v9295_v9 = vld [vmem:[#allocation93_spill] sm:$0xff] }
 0x378   : > { %9292 = vst [vmem:[#allocation125_spill] sm:$0xff] %v7783_v13  ;;  %v2942_v52 = vmin.f32 %v7769_v21, %v7772_v6  ;;  %v7794_v10 = vadd.f32 %v2412_v50, %v9293_v23  ;;  %v7797_v55 = vadd.f32 %v2413_v36, %v9294_v39  ;;  %v2696_v12 = vadd.f32 %v2632_v14, %v7602_v7  ;;  %v9297_v34 = vld [vmem:[#allocation145_spill] sm:$0xff]  ;;  %v2524_v16 = vpop.permute.xlu0 %2523  ;;  %v9299_v39 = vld [vmem:[#allocation135_spill] sm:$0xff] }
 0x379   : > { %v2697_v26 = vadd.f32 %v2633_v47, %v7611_v60  ;;  %v2820_v22 = vmul.f32 2.0, %v2692_v45  ;;  %v2821_v63 = vmul.f32 2.0, %v2693_v11  ;;  %v7802_v13 = vadd.f32 %v2428_v0, %v9295_v9  ;;  %v9300_v60 = vld [vmem:[#allocation136_spill] sm:$0xff]  ;;  %v9302_v9 = vld [vmem:[#allocation11_spill] sm:$0xff] }
 0x37a   : > { %v7805_v35 = vadd.f32 %v2429_v54, %v9297_v34  ;;  %2943 = vmin.xlane.f32.xlu1 %v2942_v52  ;;  %v2824_v42 = vmul.f32 2.0, %v2696_v12  ;;  %v2636_v23 = vmul.f32 %v2524_v16, %v9273_v2  ;;  %v2637_v36 = vmul.f32 %v2524_v16, %v9274_v24  ;;  %v2500_v34 = vpop.permute.xlu1 %2499 }
 0x37b   : > { %9296 = vst [vmem:[#allocation47_spill] sm:$0xff] %v7802_v13  ;;  %v2825_v50 = vmul.f32 2.0, %v2697_v26  ;;  %v7810_v7 = vadd.f32 %v2416_v61, %v9299_v39  ;;  %v7813_v45 = vadd.f32 %v2417_v53, %v9300_v60  ;;  %v2420_v11 = vmul.f32 %v2348_v62, %v9229_v20  ;;  %v9301_v53 = vld [vmem:[#allocation29_spill] sm:$0xff]  ;;  %v9306_v13 = vld [vmem:[#allocation122_spill] sm:$0xff] }
 0x37c   : > { %9298 = vst [vmem:[#allocation48_spill] sm:$0xff] %v7805_v35  ;;  %v2421_v14 = vmul.f32 %v2348_v62, %v9239_v33  ;;  %v2424_v47 = vmul.f32 %v2356_v32, %v9229_v20  ;;  %v2700_v0 = vadd.f32 %v2636_v23, %v7624_v43  ;;  %v2624_v54 = vmul.f32 %v2500_v34, %v9273_v2  ;;  %v2532_v12 = vpop.permute.xlu0 %2531  ;;  %v9303_v62 = vld [vmem:[#allocation148_spill] sm:$0xff]  ;;  %v9304_v20 = vld [vmem:[#allocation149_spill] sm:$0xff] }
 0x37d   : > { %v2625_v52 = vmul.f32 %v2500_v34, %v9274_v24  ;;  %v2425_v16 = vmul.f32 %v2356_v32, %v9239_v33  ;;  %v2701_v61 = vadd.f32 %v2637_v36, %v7627_v48  ;;  %v7824_v26 = vsub.f32 %v9301_v53, %v2820_v22  ;;  %v9305_v43 = vld [vmem:[#allocation96_spill] sm:$0xff]  ;;  %v9307_v33 = vld [vmem:[#allocation139_spill] sm:$0xff] }
 0x37e   : > { %v7827_v39 = vsub.f32 %v9302_v9, %v2821_v63  ;;  %v2688_v60 = vadd.f32 %v2624_v54, %v9303_v62  ;;  %v7832_v23 = vsub.f32 %v9305_v43, %v2824_v42  ;;  %v7835_v34 = vsub.f32 %v9306_v13, %v2825_v50  ;;  %v2504_v63 = vpop.permute.xlu1 %2503  ;;  %v9309_v42 = vld [vmem:[#allocation140_spill] sm:$0xff]  ;;  %v9311_v13 = vld [vmem:[#allocation142_spill] sm:$0xff] }
 0x37f   : > { %v2689_v35 = vadd.f32 %v2625_v52, %v9304_v20  ;;  %v7838_v32 = vadd.f32 %v2420_v11, %v9307_v33  ;;  %v2828_v48 = vmul.f32 2.0, %v2700_v0  ;;  %v2640_v22 = vmul.f32 %v2532_v12, %v9273_v2  ;;  %v9313_v11 = vld [vmem:[#allocation143_spill] sm:$0xff] }
 0x380   : > { %v2641_v36 = vmul.f32 %v2532_v12, %v9274_v24  ;;  %v2816_v53 = vmul.f32 2.0, %v2688_v60  ;;  %v2626_v54 = vmul.f32 %v2504_v63, %v9273_v2  ;;  %v2627_v52 = vmul.f32 %v2504_v63, %v9274_v24  ;;  %v2540_v0 = vpop.permute.xlu0 %2539 }
 0x381   : > { %9308 = vst [vmem:[#allocation45_spill] sm:$0xff] %v7838_v32  ;;  %v2817_v9 = vmul.f32 2.0, %v2689_v35  ;;  %v7845_v62 = vadd.f32 %v2421_v14, %v9309_v42  ;;  %v7848_v50 = vadd.f32 %v2424_v47, %v9311_v13  ;;  %v7851_v20 = vadd.f32 %v2425_v16, %v9313_v11  ;;  %v9315_v42 = vld [vmem:[#allocation28_spill] sm:$0xff]  ;;  %v9316_v13 = vld [vmem:[#allocation121_spill] sm:$0xff] }
 0x382   : > { %v2829_v43 = vmul.f32 2.0, %v2701_v61  ;;  %v2690_v35 = vadd.f32 %v2626_v54, %v7552_v51  ;;  %v2691_v60 = vadd.f32 %v2627_v52, %v7555_v38  ;;  %v2704_v14 = vadd.f32 %v2640_v22, %v7638_v18  ;;  %v2512_v63 = vpop.permute.xlu1 %2511  ;;  %v9317_v54 = vld [vmem:[#allocation69_spill] sm:$0xff] }
 0x383   : > { %9310 = vst [vmem:[#allocation141_spill] sm:$0xff] %v7845_v62  ;;  %9312 = vst [vmem:[#allocation126_spill] sm:$0xff] %v7848_v50  ;;  %v2705_v47 = vadd.f32 %v2641_v36, %v7641_v25  ;;  %v7862_v16 = vsub.f32 %v9315_v42, %v2816_v53  ;;  %v7865_v11 = vsub.f32 %v9316_v13, %v2817_v9 }
 0x384   : > { %9314 = vst [vmem:[#allocation127_spill] sm:$0xff] %v7851_v20  ;;  %v2818_v12 = vmul.f32 2.0, %v2690_v35  ;;  %v2819_v61 = vmul.f32 2.0, %v2691_v60  ;;  %v2644_v51 = vmul.f32 %v2540_v0, %v9273_v2  ;;  %v7869_v38 = vsub.f32 %v9317_v54, %v2828_v48  ;;  %v2548_v22 = vpop.permute.xlu0 %2547  ;;  %v9318_v60 = vld [vmem:[#allocation57_spill] sm:$0xff]  ;;  %v9319_v54 = vld [vmem:[#allocation30_spill] sm:$0xff]  ;;  %v9320_v20 = vld [vmem:[#allocation72_spill] sm:$0xff] }
 0x385   : > { %v2630_v52 = vmul.f32 %v2512_v63, %v9273_v2  ;;  %v2631_v18 = vmul.f32 %v2512_v63, %v9274_v24  ;;  %v2945_v25 = vmin.f32 %v7862_v16, %v7865_v11  ;;  %v2645_v53 = vmul.f32 %v2540_v0, %v9274_v24 }
 0x386   : > { %v2648_v9 = vmul.f32 %v2548_v22, %v9273_v2  ;;  %v2649_v35 = vmul.f32 %v2548_v22, %v9274_v24  ;;  %v7881_v48 = vsub.f32 %v9318_v60, %v2829_v43  ;;  %v2520_v13 = vpop.permute.xlu1 %2519  ;;  %v2882_v33 = vsub.f32 %v9319_v54, %v2818_v12 }
 0x387   : > { %v2694_v42 = vadd.f32 %v2630_v52, %v7526_v29  ;;  %v2695_v63 = vadd.f32 %v2631_v18, %v7533_v8  ;;  %2946 = vmin.xlane.f32.xlu0 %v2945_v25  ;;  %v2883_v50 = vsub.f32 %v9320_v20, %v2819_v61  ;;  %v7887_v36 = vmul.f32 2.0, %v2704_v14  ;;  %v9321_v25 = vld [vmem:[#allocation51_spill] sm:$0xff] }
 0x388   : > { %v2708_v0 = vadd.f32 %v2644_v51, %v7654_v46  ;;  %v2634_v62 = vmul.f32 %v2520_v13, %v9273_v2  ;;  %v2635_v22 = vmul.f32 %v2520_v13, %v9274_v24  ;;  %v2556_v32 = vpop.permute.xlu0 %2555  ;;  %v3038_v8 = vmin.f32 %v7769_v21, %v2882_v33 }
 0x389   : > { %v2822_v43 = vmul.f32 2.0, %v2694_v42  ;;  %v2823_v60 = vmul.f32 2.0, %v2695_v63  ;;  %v2948_v29 = vmin.f32 %v2882_v33, %v2883_v50  ;;  %v7893_v52 = vmul.f32 2.0, %v2705_v47 }
 0x38a   : > { %v2709_v12 = vadd.f32 %v2645_v53, %v7657_v4  ;;  %v2712_v20 = vadd.f32 %v2648_v9, %v7682_v57  ;;  %v2698_v14 = vadd.f32 %v2634_v62, %v7546_v31  ;;  %v2713_v46 = vadd.f32 %v2649_v35, %v7689_v27  ;;  %v2528_v18 = vpop.permute.xlu1 %2527  ;;  %v9322_v62 = vld [vmem:[#allocation73_spill] sm:$0xff] }
 0x38b   : > { %v2699_v61 = vadd.f32 %v2635_v22, %v7549_v30  ;;  %2949 = vmin.xlane.f32.xlu0 %v2948_v29  ;;  %v3075_v51 = vmin.f32 %v7772_v6, %v2883_v50  ;;  %v2886_v42 = vsub.f32 %v9321_v25, %v2822_v43  ;;  %v2652_v21 = vmul.f32 %v2556_v32, %v9273_v2 }
 0x38c   : > { %v2653_v33 = vmul.f32 %v2556_v32, %v9274_v24  ;;  %v2638_v4 = vmul.f32 %v2528_v18, %v9273_v2  ;;  %v2639_v57 = vmul.f32 %v2528_v18, %v9274_v24  ;;  %v7906_v47 = vmul.f32 2.0, %v2708_v0  ;;  %v2564_v27 = vpop.permute.xlu0 %2563 }
 0x38d   : > { %v2826_v31 = vmul.f32 2.0, %v2698_v14  ;;  %v2887_v30 = vsub.f32 %v9322_v62, %v2823_v60  ;;  %v3040_v53 = vmin.f32 %v3038_v8, %v2886_v42  ;;  %v7909_v9 = vmul.f32 2.0, %v2709_v12  ;;  %v9324_v14 = vld [vmem:[#allocation52_spill] sm:$0xff] }
 0x38e   : > { %v2702_v6 = vadd.f32 %v2638_v4, %v7558_v1  ;;  %v2703_v50 = vadd.f32 %v2639_v57, %v7561_v49  ;;  %v2656_v35 = vmul.f32 %v2564_v27, %v9273_v2  ;;  %v7914_v32 = vmul.f32 2.0, %v2712_v20  ;;  %v2536_v22 = vpop.permute.xlu1 %2535 }
 0x38f   : > { %v2827_v63 = vmul.f32 2.0, %v2699_v61  ;;  %v2954_v13 = vmin.f32 %v2886_v42, %v2887_v30  ;;  %v3077_v54 = vmin.f32 %v3075_v51, %v2887_v30  ;;  %v9323_v0 = vmin.f32 %v7824_v26, %v7827_v39  ;;  %v9325_v42 = vld [vmem:[#allocation83_spill] sm:$0xff] }
 0x390   : > { %v7919_v43 = vmul.f32 2.0, %v2713_v46  ;;  %v2716_v60 = vadd.f32 %v2652_v21, %v7704_v28  ;;  %v2717_v1 = vadd.f32 %v2653_v33, %v7711_v15  ;;  %v2657_v49 = vmul.f32 %v2564_v27, %v9274_v24  ;;  %v2572_v20 = vpop.permute.xlu0 %2571 }
 0x391   : > { %2952 = vmin.xlane.f32.xlu0 %v9323_v0  ;;  %2955 = vmin.xlane.f32.xlu1 %v2954_v13  ;;  %v3076_v29 = vmin.f32 %v7865_v11, %v7827_v39  ;;  %v2642_v8 = vmul.f32 %v2536_v22, %v9273_v2  ;;  %v2643_v12 = vmul.f32 %v2536_v22, %v9274_v24  ;;  %v2830_v51 = vmul.f32 2.0, %v2702_v6 }
 0x392   : > { %v2890_v61 = vsub.f32 %v9324_v14, %v2826_v31  ;;  %v2831_v46 = vmul.f32 2.0, %v2703_v50  ;;  %v2720_v18 = vadd.f32 %v2656_v35, %v7722_v37  ;;  %v2660_v28 = vmul.f32 %v2572_v20, %v9273_v2  ;;  %v2544_v33 = vpop.permute.xlu1 %2543 }
 0x393   : > { %v2706_v15 = vadd.f32 %v2642_v8, %v7580_v17  ;;  %v2661_v25 = vmul.f32 %v2572_v20, %v9274_v24  ;;  %v2891_v21 = vsub.f32 %v9325_v42, %v2827_v63  ;;  %v9326_v11 = vmin.f32 %v7832_v23, %v7835_v34  ;;  %v9331_v42 = vld [vmem:[#allocation86_spill] sm:$0xff] }
 0x394   : > { %v3042_v39 = vmin.f32 %v3040_v53, %v2890_v61  ;;  %v7937_v4 = vmul.f32 2.0, %v2716_v60  ;;  %v2707_v57 = vadd.f32 %v2643_v12, %v7599_v3  ;;  %v9327_v37 = vmin.f32 %v7862_v16, %v7824_v26  ;;  %v2580_v6 = vpop.permute.xlu0 %2579  ;;  %v9329_v16 = vld [vmem:[#allocation76_spill] sm:$0xff] }
 0x395   : > { %2958 = vmin.xlane.f32.xlu0 %v9326_v11  ;;  %v3078_v17 = vmin.f32 %v3076_v29, %v7835_v34  ;;  %v7945_v27 = vmul.f32 2.0, %v2717_v1  ;;  %v2721_v62 = vadd.f32 %v2657_v49, %v7725_v56  ;;  %v2960_v30 = vmin.f32 %v2890_v61, %v2891_v21  ;;  %v9332_v11 = vld [vmem:[#allocation108_spill] sm:$0xff] }
 0x396   : > { %v3041_v31 = vmin.f32 %v9327_v37, %v7832_v23  ;;  %v3079_v53 = vmin.f32 %v3077_v54, %v2891_v21  ;;  %v7948_v50 = vmul.f32 2.0, %v2720_v18  ;;  %v2724_v35 = vadd.f32 %v2660_v28, %v7746_v41  ;;  %v9328_v23 = vld [vmem:[#allocation116_spill] sm:$0xff]  ;;  %v2552_v56 = vpop.permute.xlu1 %2551 }
 0x397   : > { %v2646_v3 = vmul.f32 %v2544_v33, %v9273_v2  ;;  %v2647_v63 = vmul.f32 %v2544_v33, %v9274_v24  ;;  %v2834_v13 = vmul.f32 2.0, %v2706_v15  ;;  %v2725_v26 = vadd.f32 %v2661_v25, %v7755_v19  ;;  %2961 = vmin.xlane.f32.xlu1 %v2960_v30  ;;  %v9330_v25 = vld [vmem:[#allocation60_spill] sm:$0xff] }
 0x398   : > { %v2894_v34 = vsub.f32 %v9328_v23, %v2830_v51  ;;  %v2895_v0 = vsub.f32 %v9329_v16, %v2831_v46  ;;  %v2835_v22 = vmul.f32 2.0, %v2707_v57  ;;  %v2664_v54 = vmul.f32 %v2580_v6, %v9273_v2  ;;  %v2588_v8 = vpop.permute.xlu0 %2587  ;;  %v9333_v57 = vld [vmem:[#allocation109_spill] sm:$0xff] }
 0x399   : > { %v2963_v60 = vmin.f32 %v7869_v38, %v7881_v48  ;;  %v3043_v41 = vmin.f32 %v3041_v31, %v7869_v38  ;;  %v7960_v1 = vmul.f32 2.0, %v2721_v62  ;;  %v2665_v49 = vmul.f32 %v2580_v6, %v9274_v24  ;;  %v9334_v6 = vld [vmem:[#allocation74_spill] sm:$0xff] }
 0x39a   : > { %v2966_v29 = vmin.f32 %v2894_v34, %v2895_v0  ;;  %v3044_v19 = vmin.f32 %v3042_v39, %v2894_v34  ;;  %v2710_v12 = vadd.f32 %v2646_v3, %v7614_v44  ;;  %v2711_v20 = vadd.f32 %v2647_v63, %v7621_v5  ;;  %v2560_v28 = vpop.permute.xlu1 %2559 }
 0x39b   : > { %v3081_v14 = vmin.f32 %v3079_v53, %v2895_v0  ;;  %v3080_v61 = vmin.f32 %v3078_v17, %v7881_v48  ;;  %2964 = vmin.xlane.f32.xlu0 %v2963_v60  ;;  %v7966_v51 = vmul.f32 2.0, %v2724_v35  ;;  %v7968_v46 = vmul.f32 2.0, %v2725_v26  ;;  %v9335_v0 = vld [vmem:[#allocation36_spill] sm:$0xff] }
 0x39c   : > { %2967 = vmin.xlane.f32.xlu1 %v2966_v29  ;;  %v2650_v38 = vmul.f32 %v2552_v56, %v9273_v2  ;;  %v2651_v18 = vmul.f32 %v2552_v56, %v9274_v24  ;;  %v2728_v15 = vadd.f32 %v2664_v54, %v7764_v59  ;;  %v2668_v44 = vmul.f32 %v2588_v8, %v9273_v2  ;;  %v2596_v31 = vpop.permute.xlu0 %2595  ;;  %v9337_v60 = vld [vmem:[#allocation32_spill] sm:$0xff] }
 0x39d   : > { %v2898_v5 = vsub.f32 %v9330_v25, %v2834_v13  ;;  %v2899_v21 = vsub.f32 %v9331_v42, %v2835_v22  ;;  %v2729_v48 = vadd.f32 %v2665_v49, %v7775_v58  ;;  %v2669_v39 = vmul.f32 %v2588_v8, %v9274_v24  ;;  %v9336_v22 = vld [vmem:[#allocation49_spill] sm:$0xff] }
 0x39e   : > { %v2896_v33 = vsub.f32 %v9332_v11, %v7887_v36  ;;  %v2897_v37 = vsub.f32 %v9333_v57, %v7893_v52  ;;  %v2838_v17 = vmul.f32 2.0, %v2710_v12  ;;  %v2839_v62 = vmul.f32 2.0, %v2711_v20  ;;  %v2568_v58 = vpop.permute.xlu1 %2567  ;;  %v9341_v57 = vld [vmem:[#allocation39_spill] sm:$0xff] }
 0x39f   : > { %v2972_v59 = vmin.f32 %v2898_v5, %v2899_v21  ;;  %v3046_v30 = vmin.f32 %v3044_v19, %v2898_v5  ;;  %v2714_v53 = vadd.f32 %v2650_v38, %v7632_v40  ;;  %v2715_v35 = vadd.f32 %v2651_v18, %v9334_v6 }
 0x3a0   : > { %v3083_v3 = vmin.f32 %v3081_v14, %v2899_v21  ;;  %v2969_v63 = vmin.f32 %v2896_v33, %v2897_v37  ;;  %v7984_v13 = vmul.f32 2.0, %v2728_v15  ;;  %v2732_v26 = vadd.f32 %v2668_v44, %v7794_v10  ;;  %v9338_v10 = vld [vmem:[#allocation112_spill] sm:$0xff]  ;;  %v2604_v12 = vpop.permute.xlu0 %2603  ;;  %v9339_v15 = vld [vmem:[#allocation150_spill] sm:$0xff] }
 0x3a1   : > { %2973 = vmin.xlane.f32.xlu1 %v2972_v59  ;;  %v3045_v36 = vmin.f32 %v3043_v41, %v2896_v33  ;;  %v3082_v23 = vmin.f32 %v3080_v61, %v2897_v37  ;;  %v2733_v52 = vadd.f32 %v2669_v39, %v7797_v55  ;;  %v2654_v34 = vmul.f32 %v2560_v28, %v9273_v2  ;;  %v9343_v59 = vld [vmem:[#allocation113_spill] sm:$0xff] }
 0x3a2   : > { %2970 = vmin.xlane.f32.xlu0 %v2969_v63  ;;  %v2655_v16 = vmul.f32 %v2560_v28, %v9274_v24  ;;  %v2672_v40 = vmul.f32 %v2596_v31, %v9273_v2  ;;  %v2902_v56 = vsub.f32 %v9335_v0, %v2838_v17  ;;  %v2903_v54 = vsub.f32 %v9336_v22, %v2839_v62  ;;  %v2576_v20 = vpop.permute.xlu1 %2575  ;;  %v9347_v0 = vld [vmem:[#allocation45_spill] sm:$0xff] }
 0x3a3   : > { %v2900_v49 = vsub.f32 %v9337_v60, %v7906_v47  ;;  %v2901_v41 = vsub.f32 %v9338_v10, %v7909_v9  ;;  %v7997_v29 = vmul.f32 2.0, %v2729_v48  ;;  %v2842_v55 = vmul.f32 2.0, %v2714_v53  ;;  %v9340_v47 = vld [vmem:[#allocation151_spill] sm:$0xff]  ;;  %v9348_v22 = vld [vmem:[#allocation141_spill] sm:$0xff] }
 0x3a4   : > { %v2843_v19 = vmul.f32 2.0, %v2715_v35  ;;  %v2673_v8 = vmul.f32 %v2596_v31, %v9274_v24  ;;  %v2978_v14 = vmin.f32 %v2902_v56, %v2903_v54  ;;  %v3048_v61 = vmin.f32 %v3046_v30, %v2902_v56  ;;  %v9344_v53 = vld [vmem:[#allocation31_spill] sm:$0xff] }
 0x3a5   : > { %v3085_v38 = vmin.f32 %v3083_v3, %v2903_v54  ;;  %v2975_v18 = vmin.f32 %v2900_v49, %v2901_v41  ;;  %v8000_v28 = vmul.f32 2.0, %v2732_v26  ;;  %v2718_v44 = vadd.f32 %v2654_v34, %v9339_v15  ;;  %v2612_v26 = vpop.permute.xlu0 %2611 }
 0x3a6   : > { %v2719_v25 = vadd.f32 %v2655_v16, %v9340_v47  ;;  %v2736_v9 = vadd.f32 %v2672_v40, %v7810_v7  ;;  %v8005_v5 = vmul.f32 2.0, %v2733_v52  ;;  %2979 = vmin.xlane.f32.xlu1 %v2978_v14  ;;  %v3047_v42 = vmin.f32 %v3045_v36, %v2900_v49  ;;  %v2584_v31 = vpop.permute.xlu1 %2583  ;;  %v9342_v7 = vld [vmem:[#allocation98_spill] sm:$0xff]  ;;  %v9345_v36 = vld [vmem:[#allocation152_spill] sm:$0xff] }
 0x3a7   : > { %v3084_v21 = vmin.f32 %v3082_v23, %v2901_v41  ;;  %2976 = vmin.xlane.f32.xlu0 %v2975_v18  ;;  %v2658_v48 = vmul.f32 %v2568_v58, %v9273_v2  ;;  %v2659_v39 = vmul.f32 %v2568_v58, %v9274_v24  ;;  %v2676_v11 = vmul.f32 %v2604_v12, %v9273_v2  ;;  %v9351_v18 = vld [vmem:[#allocation75_spill] sm:$0xff] }
 0x3a8   : > { %v2677_v33 = vmul.f32 %v2604_v12, %v9274_v24  ;;  %v2906_v37 = vsub.f32 %v9341_v57, %v2842_v55  ;;  %v2737_v17 = vadd.f32 %v2673_v8, %v7813_v45  ;;  %v2907_v62 = vsub.f32 %v9342_v7, %v2843_v19  ;;  %v9346_v45 = vld [vmem:[#allocation46_spill] sm:$0xff] }
 0x3a9   : > { %v2904_v30 = vsub.f32 %v9343_v59, %v7914_v32  ;;  %v2905_v6 = vsub.f32 %v9344_v53, %v7919_v43  ;;  %v2846_v35 = vmul.f32 2.0, %v2718_v44  ;;  %v2847_v3 = vmul.f32 2.0, %v2719_v25  ;;  %v9349_v19 = vld [vmem:[#allocation90_spill] sm:$0xff]  ;;  %v9352_v44 = vld [vmem:[#allocation33_spill] sm:$0xff]  ;;  %v9356_v59 = vld [vmem:[#allocation127_spill] sm:$0xff] }
 0x3aa   : > { %v8018_v63 = vmul.f32 2.0, %v2736_v9  ;;  %v3050_v58 = vmin.f32 %v3048_v61, %v2906_v37  ;;  %v2722_v23 = vadd.f32 %v2658_v48, %v9345_v36  ;;  %v2984_v52 = vmin.f32 %v2906_v37, %v2907_v62  ;;  %v9350_v12 = vld [vmem:[#allocation94_spill] sm:$0xff]  ;;  %v2592_v61 = vpop.permute.xlu1 %2591  ;;  %v9358_v36 = vld [vmem:[#allocation103_spill] sm:$0xff] }
 0x3ab   : > { %v3087_v34 = vmin.f32 %v3085_v38, %v2907_v62  ;;  %v2981_v16 = vmin.f32 %v2904_v30, %v2905_v6  ;;  %v2723_v40 = vadd.f32 %v2659_v39, %v9346_v45  ;;  %v2740_v56 = vadd.f32 %v2676_v11, %v9347_v0  ;;  %v9353_v25 = vld [vmem:[#allocation82_spill] sm:$0xff]  ;;  %v2620_v39 = vpop.permute.xlu0 %2619  ;;  %v9354_v11 = vld [vmem:[#allocation44_spill] sm:$0xff] }
 0x3ac   : > { %v2741_v32 = vadd.f32 %v2677_v33, %v9348_v22  ;;  %v3049_v54 = vmin.f32 %v3047_v42, %v2904_v30  ;;  %v8024_v60 = vmul.f32 2.0, %v2737_v17  ;;  %2985 = vmin.xlane.f32.xlu1 %v2984_v52  ;;  %v3086_v43 = vmin.f32 %v3084_v21, %v2905_v6  ;;  %v9355_v57 = vld [vmem:[#allocation126_spill] sm:$0xff]  ;;  %v9359_v52 = vld [vmem:[#allocation117_spill] sm:$0xff] }
 0x3ad   : > { %2982 = vmin.xlane.f32.xlu0 %v2981_v16  ;;  %v2662_v49 = vmul.f32 %v2576_v20, %v9273_v2  ;;  %v2663_v10 = vmul.f32 %v2576_v20, %v9274_v24  ;;  %v2680_v41 = vmul.f32 %v2612_v26, %v9273_v2  ;;  %v2681_v55 = vmul.f32 %v2612_v26, %v9274_v24  ;;  %v9360_v16 = vld [vmem:[#allocation35_spill] sm:$0xff]  ;;  %v9361_v22 = vld [vmem:[#allocation133_spill] sm:$0xff] }
 0x3ae   : > { %v2910_v8 = vsub.f32 %v9349_v19, %v2846_v35  ;;  %v2911_v14 = vsub.f32 %v9350_v12, %v2847_v3  ;;  %v2850_v38 = vmul.f32 2.0, %v2722_v23  ;;  %v2908_v47 = vsub.f32 %v9352_v44, %v7937_v4  ;;  %v9364_v44 = vld [vmem:[#allocation104_spill] sm:$0xff] }
 0x3af   : > { %v2726_v15 = vadd.f32 %v2662_v49, %v9351_v18  ;;  %v2909_v9 = vsub.f32 %v9353_v25, %v7945_v27  ;;  %v2851_v42 = vmul.f32 2.0, %v2723_v40  ;;  %v8037_v20 = vmul.f32 2.0, %v2740_v56  ;;  %v2600_v40 = vpop.permute.xlu1 %2599  ;;  %v9365_v25 = vld [vmem:[#allocation65_spill] sm:$0xff] }
 0x3b0   : > { %v2990_v21 = vmin.f32 %v2910_v8, %v2911_v14  ;;  %v3052_v48 = vmin.f32 %v3050_v58, %v2910_v8  ;;  %v2727_v33 = vadd.f32 %v2663_v10, %v9354_v11  ;;  %v2744_v37 = vadd.f32 %v2680_v41, %v9355_v57  ;;  %v9357_v58 = vld [vmem:[#allocation101_spill] sm:$0xff]  ;;  %v9363_v8 = vld [vmem:[#allocation47_spill] sm:$0xff] }
 0x3b1   : > { %v3089_v17 = vmin.f32 %v3087_v34, %v2911_v14  ;;  %v2987_v7 = vmin.f32 %v2908_v47, %v2909_v9  ;;  %v8041_v62 = vmul.f32 2.0, %v2741_v32  ;;  %v2745_v30 = vadd.f32 %v2681_v55, %v9356_v59  ;;  %v9368_v11 = vld [vmem:[#allocation61_spill] sm:$0xff] }
 0x3b2   : > { %2991 = vmin.xlane.f32.xlu1 %v2990_v21  ;;  %v3051_v4 = vmin.f32 %v3049_v54, %v2908_v47  ;;  %v3088_v53 = vmin.f32 %v3086_v43, %v2909_v9  ;;  %v2854_v27 = vmul.f32 2.0, %v2726_v15  ;;  %v2666_v6 = vmul.f32 %v2584_v31, %v9273_v2  ;;  %v9362_v54 = vld [vmem:[#allocation134_spill] sm:$0xff] }
 0x3b3   : > { %2988 = vmin.xlane.f32.xlu0 %v2987_v7  ;;  %v2667_v35 = vmul.f32 %v2584_v31, %v9274_v24  ;;  %v2684_v3 = vmul.f32 %v2620_v39, %v9273_v2  ;;  %v2914_v26 = vsub.f32 %v9357_v58, %v2850_v38  ;;  %v2915_v23 = vsub.f32 %v9358_v36, %v2851_v42  ;;  %v9366_v42 = vld [vmem:[#allocation77_spill] sm:$0xff]  ;;  %v9369_v7 = vld [vmem:[#allocation118_spill] sm:$0xff] }
 0x3b4   : > { %v2912_v34 = vsub.f32 %v9359_v52, %v7948_v50  ;;  %v2913_v45 = vsub.f32 %v9360_v16, %v7960_v1  ;;  %v2855_v0 = vmul.f32 2.0, %v2727_v33  ;;  %v8053_v56 = vmul.f32 2.0, %v2744_v37  ;;  %v9372_v36 = vld [vmem:[#allocation13_spill] sm:$0xff]  ;;  %v9373_v52 = vld [vmem:[#allocation99_spill] sm:$0xff] }
 0x3b5   : > { %v2730_v32 = vadd.f32 %v2666_v6, %v9361_v22  ;;  %v2731_v31 = vadd.f32 %v2667_v35, %v9362_v54  ;;  %v2996_v43 = vmin.f32 %v2914_v26, %v2915_v23  ;;  %v3054_v49 = vmin.f32 %v3052_v48, %v2914_v26  ;;  %v9367_v48 = vld [vmem:[#allocation124_spill] sm:$0xff]  ;;  %v9371_v26 = vld [vmem:[#allocation138_spill] sm:$0xff]  ;;  %v9374_v16 = vld [vmem:[#allocation87_spill] sm:$0xff] }
 0x3b6   : > { %v3091_v10 = vmin.f32 %v3089_v17, %v2915_v23  ;;  %v2993_v41 = vmin.f32 %v2912_v34, %v2913_v45  ;;  %v8057_v55 = vmul.f32 2.0, %v2745_v30  ;;  %v2685_v50 = vmul.f32 %v2620_v39, %v9274_v24  ;;  %v2608_v17 = vpop.permute.xlu1 %2607 }
 0x3b7   : > { %v2858_v19 = vmul.f32 2.0, %v2730_v32  ;;  %v8061_v12 = vadd.f32 %v2684_v3, %v9363_v8  ;;  %v2859_v1 = vmul.f32 2.0, %v2731_v31  ;;  %2997 = vmin.xlane.f32.xlu1 %v2996_v43  ;;  %v3053_v14 = vmin.f32 %v3051_v4, %v2912_v34  ;;  %v9370_v3 = vld [vmem:[#allocation137_spill] sm:$0xff]  ;;  %v9376_v32 = vld [vmem:[#allocation48_spill] sm:$0xff] }
 0x3b8   : > { %v3090_v38 = vmin.f32 %v3088_v53, %v2913_v45  ;;  %2994 = vmin.xlane.f32.xlu0 %v2993_v41  ;;  %v2670_v18 = vmul.f32 %v2592_v61, %v9273_v2  ;;  %v2671_v15 = vmul.f32 %v2592_v61, %v9274_v24  ;;  %v2918_v47 = vsub.f32 %v9364_v44, %v2854_v27  ;;  %v9379_v44 = vld [vmem:[#allocation100_spill] sm:$0xff] }
 0x3b9   : > { %v2919_v9 = vsub.f32 %v9365_v25, %v2855_v0  ;;  %v2916_v21 = vsub.f32 %v9366_v42, %v7966_v51  ;;  %v2917_v33 = vsub.f32 %v9368_v11, %v7968_v46  ;;  %v2674_v57 = vmul.f32 %v2600_v40, %v9273_v2 }
 0x3ba   : > { %v2734_v39 = vadd.f32 %v2670_v18, %v9367_v48  ;;  %v2675_v37 = vmul.f32 %v2600_v40, %v9274_v24  ;;  %v2735_v59 = vadd.f32 %v2671_v15, %v9369_v7  ;;  %v3056_v30 = vmin.f32 %v3054_v49, %v2918_v47  ;;  %v9375_v40 = vld [vmem:[#allocation80_spill] sm:$0xff] }
 0x3bb   : > { %v3002_v61 = vmin.f32 %v2918_v47, %v2919_v9  ;;  %v3093_v4 = vmin.f32 %v3091_v10, %v2919_v9  ;;  %v2999_v27 = vmin.f32 %v2916_v21, %v2917_v33  ;;  %v3055_v6 = vmin.f32 %v3053_v14, %v2916_v21  ;;  %v2616_v14 = vpop.permute.xlu1 %2615  ;;  %v9381_v9 = vld [vmem:[#allocation81_spill] sm:$0xff]  ;;  %v9382_v21 = vld [vmem:[#allocation50_spill] sm:$0xff] }
 0x3bc   : > { %v2862_v53 = vmul.f32 2.0, %v2734_v39  ;;  %v3092_v35 = vmin.f32 %v3090_v38, %v2917_v33  ;;  %v2863_v51 = vmul.f32 2.0, %v2735_v59  ;;  %v2738_v58 = vadd.f32 %v2674_v57, %v9370_v3  ;;  %v9377_v38 = vld [vmem:[#allocation27_spill] sm:$0xff] }
 0x3bd   : > { %3003 = vmin.xlane.f32.xlu1 %v3002_v61  ;;  %v2739_v46 = vadd.f32 %v2675_v37, %v9371_v26  ;;  %v2922_v23 = vsub.f32 %v9372_v36, %v2858_v19  ;;  %3000 = vmin.xlane.f32.xlu0 %v2999_v27  ;;  %v2923_v34 = vsub.f32 %v9373_v52, %v2859_v1  ;;  %v9384_v27 = vld [vmem:[#allocation42_spill] sm:$0xff]  ;;  %v9387_v3 = vld [vmem:[#allocation91_spill] sm:$0xff]  ;;  %v9388_v26 = vld [vmem:[#allocation120_spill] sm:$0xff] }
 0x3be   : > { %v2920_v45 = vsub.f32 %v9374_v16, %v7984_v13  ;;  %v2921_v0 = vsub.f32 %v9375_v40, %v7997_v29  ;;  %v2678_v22 = vmul.f32 %v2608_v17, %v9273_v2  ;;  %v2749_v54 = vadd.f32 %v2685_v50, %v9376_v32  ;;  %v9378_v13 = vld [vmem:[#allocation125_spill] sm:$0xff] }
 0x3bf   : > { %v2866_v31 = vmul.f32 2.0, %v2738_v58  ;;  %v3058_v43 = vmin.f32 %v3056_v30, %v2922_v23  ;;  %v2679_v49 = vmul.f32 %v2608_v17, %v9274_v24  ;;  %v3008_v10 = vmin.f32 %v2922_v23, %v2923_v34  ;;  %v9380_v50 = vld [vmem:[#allocation41_spill] sm:$0xff]  ;;  %v9389_v23 = vld [vmem:[#allocation71_spill] sm:$0xff] }
 0x3c0   : > { %v3095_v41 = vmin.f32 %v3093_v4, %v2923_v34  ;;  %v3005_v19 = vmin.f32 %v2920_v45, %v2921_v0  ;;  %v3057_v8 = vmin.f32 %v3055_v6, %v2920_v45  ;;  %v3094_v1 = vmin.f32 %v3092_v35, %v2921_v0  ;;  %v9383_v4 = vld [vmem:[#allocation130_spill] sm:$0xff] }
 0x3c1   : > { %v2742_v18 = vadd.f32 %v2678_v22, %v9377_v38  ;;  %v2743_v15 = vadd.f32 %v2679_v49, %v9378_v13  ;;  %v2926_v29 = vsub.f32 %v9379_v44, %v2862_v53  ;;  %v2867_v47 = vmul.f32 2.0, %v2739_v46  ;;  %3009 = vmin.xlane.f32.xlu1 %v3008_v10  ;;  %v9390_v22 = vld [vmem:[#allocation25_spill] sm:$0xff]  ;;  %v9392_v49 = vld [vmem:[#allocation102_spill] sm:$0xff] }
 0x3c2   : > { %3006 = vmin.xlane.f32.xlu0 %v3005_v19  ;;  %v2927_v25 = vsub.f32 %v9380_v50, %v2863_v51  ;;  %v2924_v42 = vsub.f32 %v9381_v9, %v8000_v28  ;;  %v2925_v48 = vsub.f32 %v9382_v21, %v8005_v5  ;;  %v2682_v57 = vmul.f32 %v2616_v14, %v9273_v2  ;;  %v9385_v5 = vld [vmem:[#allocation70_spill] sm:$0xff]  ;;  %v9386_v51 = vld [vmem:[#allocation40_spill] sm:$0xff]  ;;  %v9398_v21 = vld [vmem:[#allocation97_spill] sm:$0xff] }
 0x3c3   : > { %v2870_v39 = vmul.f32 2.0, %v2742_v18  ;;  %v2871_v11 = vmul.f32 2.0, %v2743_v15  ;;  %v3060_v33 = vmin.f32 %v3058_v43, %v2926_v29  ;;  %v2683_v30 = vmul.f32 %v2616_v14, %v9274_v24  ;;  %v9395_v18 = vld [vmem:[#allocation12_spill] sm:$0xff] }
 0x3c4   : > { %v3014_v37 = vmin.f32 %v2926_v29, %v2927_v25  ;;  %v3097_v17 = vmin.f32 %v3095_v41, %v2927_v25  ;;  %v3011_v7 = vmin.f32 %v2924_v42, %v2925_v48  ;;  %v3059_v59 = vmin.f32 %v3057_v8, %v2924_v42  ;;  %v9393_v41 = vld [vmem:[#allocation92_spill] sm:$0xff] }
 0x3c5   : > { %v3096_v61 = vmin.f32 %v3094_v1, %v2925_v48  ;;  %v2746_v53 = vadd.f32 %v2682_v57, %v9383_v4  ;;  %v2930_v6 = vsub.f32 %v9384_v27, %v2866_v31  ;;  %v2876_v28 = vmul.f32 2.0, %v8061_v12  ;;  %v9394_v1 = vld [vmem:[#allocation43_spill] sm:$0xff]  ;;  %v9397_v9 = vld [vmem:[#allocation64_spill] sm:$0xff] }
 0x3c6   : > { %3015 = vmin.xlane.f32.xlu1 %v3014_v37  ;;  %3012 = vmin.xlane.f32.xlu0 %v3011_v7  ;;  %v2931_v35 = vsub.f32 %v9385_v5, %v2867_v47  ;;  %v2928_v2 = vsub.f32 %v9386_v51, %v8018_v63  ;;  %v2929_v58 = vsub.f32 %v9387_v3, %v8024_v60  ;;  %v2877_v43 = vmul.f32 2.0, %v2749_v54  ;;  %v9391_v63 = vld [vmem:[#allocation95_spill] sm:$0xff] }
 0x3c7   : > { %v2747_v46 = vadd.f32 %v2683_v30, %v9388_v26  ;;  %v2874_v36 = vmul.f32 2.0, %v2746_v53  ;;  %v3062_v24 = vmin.f32 %v3060_v33, %v2930_v6  ;;  %v2934_v52 = vsub.f32 %v9389_v23, %v2870_v39 }
 0x3c8   : > { %v3020_v34 = vmin.f32 %v2930_v6, %v2931_v35  ;;  %v3099_v16 = vmin.f32 %v3097_v17, %v2931_v35  ;;  %v3017_v45 = vmin.f32 %v2928_v2, %v2929_v58  ;;  %v3061_v12 = vmin.f32 %v3059_v59, %v2928_v2 }
 0x3c9   : > { %v2875_v40 = vmul.f32 2.0, %v2747_v46  ;;  %v3098_v0 = vmin.f32 %v3096_v61, %v2929_v58  ;;  %v2935_v32 = vsub.f32 %v9390_v22, %v2871_v11  ;;  %v3064_v31 = vmin.f32 %v3062_v24, %v2934_v52 }
 0x3ca   : > { %3021 = vmin.xlane.f32.xlu1 %v3020_v34  ;;  %3018 = vmin.xlane.f32.xlu0 %v3017_v45  ;;  %v2932_v60 = vsub.f32 %v9391_v63, %v8037_v20  ;;  %v2933_v10 = vsub.f32 %v9392_v49, %v8041_v62  ;;  %v2938_v19 = vsub.f32 %v9393_v41, %v2874_v36  ;;  %v9396_v20 = vld [vmem:[#allocation14_spill] sm:$0xff] }
 0x3cb   : > { %v3026_v8 = vmin.f32 %v2934_v52, %v2935_v32  ;;  %v3101_v14 = vmin.f32 %v3099_v16, %v2935_v32  ;;  %v2939_v38 = vsub.f32 %v9394_v1, %v2875_v40  ;;  %v2936_v13 = vsub.f32 %v9395_v18, %v8053_v56 }
 0x3cc   : > { %v3023_v15 = vmin.f32 %v2932_v60, %v2933_v10  ;;  %v3063_v44 = vmin.f32 %v3061_v12, %v2932_v60  ;;  %v3100_v54 = vmin.f32 %v3098_v0, %v2933_v10  ;;  %v3066_v29 = vmin.f32 %v3064_v31, %v2938_v19 }
 0x3cd   : > { %v3032_v47 = vmin.f32 %v2938_v19, %v2939_v38  ;;  %v3103_v50 = vmin.f32 %v3101_v14, %v2939_v38  ;;  %v2937_v25 = vsub.f32 %v9396_v20, %v8057_v55  ;;  %v2940_v62 = vsub.f32 %v9397_v9, %v2876_v28 }
 0x3ce   : > { %3027 = vmin.xlane.f32.xlu1 %v3026_v8  ;;  %3024 = vmin.xlane.f32.xlu0 %v3023_v15  ;;  %v3065_v42 = vmin.f32 %v3063_v44, %v2936_v13  ;;  %v2941_v48 = vsub.f32 %v9398_v21, %v2877_v43  ;;  %v9400_v15 = vlaneseq (!%p8125_p11) }
 0x3cf   : > { %v3102_v39 = vmin.f32 %v3100_v54, %v2937_v25  ;;  %v3029_v11 = vmin.f32 %v2936_v13, %v2937_v25  ;;  %v4579_v54 = vmov (!%p8125_p11), 0.0  }
 0x3d0   : > { %v3035_v33 = vmin.f32 %v2940_v62, %v2941_v48  ;;  %v3067_v56 = vmin.f32 %v3065_v42, %v2940_v62  ;;  %vm8196_vm3 = vcmp.lt.s32.totalorder (!%p8125_p11), %v9400_v15, 256  ;;  %3119 = vst.msk [vmem:[#allocation6] sm:$0xff] (!%p8125_p11), %vm3118_vm2, %v4579_v54  ;;  %3120 = vst.msk [vmem:[#allocation6 + $0x8] sm:$0xff] (!%p8125_p11), %vm3118_vm2, %v4579_v54 }
 0x3d1   : > { %v3104_v57 = vmin.f32 %v3102_v39, %v2941_v48  ;;  %3121 = vst.msk [vmem:[#allocation6 + $0x10] sm:$0xff] (!%p8125_p11), %vm3118_vm2, %v4579_v54  ;;  %3122 = vst.msk [vmem:[#allocation6 + $0x18] sm:$0xff] (!%p8125_p11), %vm3118_vm2, %v4579_v54 }
 0x3d2   : > { %3033 = vmin.xlane.f32.xlu1 %v3032_v47  ;;  %3030 = vmin.xlane.f32.xlu0 %v3029_v11  ;;  %v3068_v37 = vmin.f32 %v3066_v29, %v3067_v56  ;;  %3123 = vst.msk [vmem:[#allocation6 + $0x20] sm:$0xff] (!%p8125_p11), %vm3118_vm2, %v4579_v54  ;;  %3124 = vst.msk [vmem:[#allocation6 + $0x28] sm:$0xff] (!%p8125_p11), %vm3118_vm2, %v4579_v54 }
 0x3d3   : > { %v3105_v17 = vmin.f32 %v3103_v50, %v3104_v57  ;;  %3125 = vst.msk [vmem:[#allocation6 + $0x30] sm:$0xff] (!%p8125_p11), %vm3118_vm2, %v4579_v54  ;;  %3126 = vst.msk [vmem:[#allocation6 + $0x38] sm:$0xff] (!%p8125_p11), %vm3118_vm2, %v4579_v54 }
 0x3d4   : > { %v3069_v7 = vrot.slane %v3068_v37, 4  ;;  %3127 = vst.msk [vmem:[#allocation6 + $0x40] sm:$0xff] (!%p8125_p11), %vm3118_vm2, %v4579_v54  ;;  %3128 = vst.msk [vmem:[#allocation6 + $0x48] sm:$0xff] (!%p8125_p11), %vm3118_vm2, %v4579_v54 }
 0x3d5   : > { %v3106_v55 = vrot.slane %v3105_v17, 4  ;;  %3129 = vst.msk [vmem:[#allocation6 + $0x50] sm:$0xff] (!%p8125_p11), %vm3118_vm2, %v4579_v54  ;;  %3130 = vst.msk [vmem:[#allocation6 + $0x58] sm:$0xff] (!%p8125_p11), %vm3118_vm2, %v4579_v54 }
 0x3d6   : > { %v3070_v59 = vmin.f32 %v3068_v37, %v3069_v7  ;;  %3036 = vmin.xlane.f32.xlu0 %v3035_v33  ;;  %3131 = vst.msk [vmem:[#allocation6 + $0x60] sm:$0xff] (!%p8125_p11), %vm3118_vm2, %v4579_v54  ;;  %3132 = vst.msk [vmem:[#allocation6 + $0x68] sm:$0xff] (!%p8125_p11), %vm3118_vm2, %v4579_v54 }
 0x3d7   : > { %v3107_v61 = vmin.f32 %v3105_v17, %v3106_v55  ;;  %3133 = vst.msk [vmem:[#allocation6 + $0x70] sm:$0xff] (!%p8125_p11), %vm3118_vm2, %v4579_v54  ;;  %3134 = vst.msk [vmem:[#allocation6 + $0x78] sm:$0xff] (!%p8125_p11), %vm3118_vm2, %v4579_v54 }
 0x3d8   : > { %v3071_v30 = vrot.slane %v3070_v59, 2  ;;  %3135 = vst.msk [vmem:[#allocation6 + $0x80] sm:$0xff] (!%p8125_p11), %vm3118_vm2, %v4579_v54  ;;  %3136 = vst.msk [vmem:[#allocation6 + $0x88] sm:$0xff] (!%p8125_p11), %vm3118_vm2, %v4579_v54 }
 0x3d9   : > { %v3108_v4 = vrot.slane %v3107_v61, 2  ;;  %3137 = vst.msk [vmem:[#allocation6 + $0x90] sm:$0xff] (!%p8125_p11), %vm3118_vm2, %v4579_v54  ;;  %3138 = vst.msk [vmem:[#allocation6 + $0x98] sm:$0xff] (!%p8125_p11), %vm3118_vm2, %v4579_v54 }
 0x3da   : > { %v3072_v53 = vmin.f32 %v3070_v59, %v3071_v30  ;;  %3139 = vst.msk [vmem:[#allocation6 + $0xa0] sm:$0xff] (!%p8125_p11), %vm3118_vm2, %v4579_v54  ;;  %3140 = vst.msk [vmem:[#allocation6 + $0xa8] sm:$0xff] (!%p8125_p11), %vm3118_vm2, %v4579_v54 }
 0x3db   : > { %v3109_v27 = vmin.f32 %v3107_v61, %v3108_v4  ;;  %3141 = vst.msk [vmem:[#allocation6 + $0xb0] sm:$0xff] (!%p8125_p11), %vm3118_vm2, %v4579_v54  ;;  %3142 = vst.msk [vmem:[#allocation6 + $0xb8] sm:$0xff] (!%p8125_p11), %vm3118_vm2, %v4579_v54 }
 0x3dc   : > { %v3073_v6 = vrot.slane %v3072_v53, 1  ;;  %3143 = vst.msk [vmem:[#allocation6 + $0xc0] sm:$0xff] (!%p8125_p11), %vm3118_vm2, %v4579_v54  ;;  %3144 = vst.msk [vmem:[#allocation6 + $0xc8] sm:$0xff] (!%p8125_p11), %vm3118_vm2, %v4579_v54 }
 0x3dd   : > { %v3110_v28 = vrot.slane %v3109_v27, 1  ;;  %3145 = vst.msk [vmem:[#allocation6 + $0xd0] sm:$0xff] (!%p8125_p11), %vm3118_vm2, %v4579_v54  ;;  %3146 = vst.msk [vmem:[#allocation6 + $0xd8] sm:$0xff] (!%p8125_p11), %vm3118_vm2, %v4579_v54 }
 0x3de   : > { %v8119_v5 = vmin.f32 %v3072_v53, %v3073_v6  ;;  %3147 = vst.msk [vmem:[#allocation6 + $0xe0] sm:$0xff] (!%p8125_p11), %vm3118_vm2, %v4579_v54  ;;  %3148 = vst.msk [vmem:[#allocation6 + $0xe8] sm:$0xff] (!%p8125_p11), %vm3118_vm2, %v4579_v54 }
 0x3df   : > { %v8121_v35 = vmin.f32 %v3109_v27, %v3110_v28  ;;  %3149 = vst.msk [vmem:[#allocation6 + $0xf0] sm:$0xff] (!%p8125_p11), %vm3118_vm2, %v4579_v54  ;;  %3150 = vst.msk [vmem:[#allocation6 + $0xf8] sm:$0xff] (!%p8125_p11), %vm3118_vm2, %v4579_v54 }
 0x3e0   : > { %3155 = vst.msk [vmem:[#allocation7] sm:$0x3] (!%p8125_p11), %vm8196_vm3, %v4579_v54 }
 0x407   : > { %v8129_v51 = vpop.xlane.xlu1 %2943 }
 0x414   : > { %v8131_v2 = vpop.xlane.xlu0 %2946 }
 0x418   : > { %v8133_v3 = vpop.xlane.xlu0 %2949 }
 0x41e   : > { %v8135_v58 = vpop.xlane.xlu0 %2952  ;;  %v8137_v26 = vpop.xlane.xlu1 %2955 }
 0x422   : > { %v8139_v46 = vpop.xlane.xlu0 %2958 }
 0x424   : > { %v8141_v36 = vpop.xlane.xlu1 %2961 }
 0x428   : > { %v8143_v24 = vpop.xlane.xlu0 %2964 }
 0x429   : > { %v8145_v23 = vpop.xlane.xlu1 %2967 }
 0x42e   : > { %v8147_v52 = vpop.xlane.xlu1 %2973 }
 0x42f   : > { %v8149_v34 = vpop.xlane.xlu0 %2970 }
 0x433   : > { %v8151_v16 = vpop.xlane.xlu1 %2979 }
 0x434   : > { %v8153_v45 = vpop.xlane.xlu0 %2976 }
 0x439   : > { %v8155_v12 = vpop.xlane.xlu1 %2985 }
 0x43a   : > { %v8157_v40 = vpop.xlane.xlu0 %2982 }
 0x43f   : > { %v8159_v0 = vpop.xlane.xlu1 %2991 }
 0x440   : > { %v8161_v22 = vpop.xlane.xlu0 %2988 }
 0x444   : > { %v8163_v32 = vpop.xlane.xlu1 %2997 }
 0x445   : > { %v8165_v31 = vpop.xlane.xlu0 %2994 }
 0x44a   : > { %v8167_v43 = vpop.xlane.xlu1 %3003  ;;  %v8169_v63 = vpop.xlane.xlu0 %3000 }
 0x44e   : > { %v8171_v60 = vpop.xlane.xlu1 %3009 }
 0x44f   : > { %v8173_v49 = vpop.xlane.xlu0 %3006 }
 0x453   : > { %v8175_v10 = vpop.xlane.xlu1 %3015  ;;  %v8177_v41 = vpop.xlane.xlu0 %3012 }
 0x457   : > { %v8179_v19 = vpop.xlane.xlu1 %3021  ;;  %v8181_v8 = vpop.xlane.xlu0 %3018 }
 0x45b   : > { %v8183_v14 = vpop.xlane.xlu1 %3027  ;;  %v8185_v1 = vpop.xlane.xlu0 %3024 }
 0x45d   : > { %3117 = sbr.rel (%p8125_p11) target bundleno = 1124 (0x464), region = 36 }
 0x45f   : > { %v8187_v38 = vpop.xlane.xlu1 %3033  ;;  %v8189_v18 = vpop.xlane.xlu0 %3030 }
 0x463   : > { %v8191_v13 = vpop.xlane.xlu0 %3036 }
 0x464 PF: > { %p4209_p12 = scmp.ne.s32.totalorder %s4550_s12, 0 }
 0x465   : > { %vm3159_vm4 = vcmask (!%p4209_p12), 7168   ;;  %v9403_v29 = vld [vmem:[#allocation16_spill] sm:$0xff] (!%p4209_p12)  ;;  %v9404_v47 = vld [vmem:[#allocation54_spill] sm:$0xff] (!%p4209_p12)  ;;  %v9406_v20 = vld [vmem:[#allocation17_spill] sm:$0xff] (!%p4209_p12) }
 0x466   : > { %3158 = sbr.rel (%p4209_p12) target bundleno = 1158 (0x486), region = 40  ;;  %3160 = vst.msk [vmem:[#allocation2] sm:$0xff] (!%p4209_p12), %vm3159_vm4, %v9403_v29  ;;  %3161 = vst.msk [vmem:[#allocation2 + $0x8] sm:$0xff] (!%p4209_p12), %vm3159_vm4, %v9404_v47  ;;  %v9405_v50 = vld [vmem:[#allocation18_spill] sm:$0xff] (!%p4209_p12)  ;;  %v9407_v25 = vld [vmem:[#allocation107_spill] sm:$0xff] (!%p4209_p12) }
 0x467   : > { %3162 = vst.msk [vmem:[#allocation2 + $0x10] sm:$0xff] (!%p4209_p12), %vm3159_vm4, %v9405_v50  ;;  %3163 = vst.msk [vmem:[#allocation2 + $0x18] sm:$0xff] (!%p4209_p12), %vm3159_vm4, %v9406_v20  ;;  %v9408_v9 = vld [vmem:[#allocation105_spill] sm:$0xff] (!%p4209_p12)  ;;  %v9409_v62 = vld [vmem:[#allocation56_spill] sm:$0xff] (!%p4209_p12) }
 0x468   : > { %3164 = vst.msk [vmem:[#allocation2 + $0x20] sm:$0xff] (!%p4209_p12), %vm3159_vm4, %v9407_v25  ;;  %3165 = vst.msk [vmem:[#allocation2 + $0x28] sm:$0xff] (!%p4209_p12), %vm3159_vm4, %v9408_v9  ;;  %v9410_v42 = vld [vmem:[#allocation53_spill] sm:$0xff] (!%p4209_p12)  ;;  %v9411_v21 = vld [vmem:[#allocation22_spill] sm:$0xff] (!%p4209_p12) }
 0x469   : > { %3166 = vst.msk [vmem:[#allocation2 + $0x30] sm:$0xff] (!%p4209_p12), %vm3159_vm4, %v9409_v62  ;;  %3167 = vst.msk [vmem:[#allocation2 + $0x38] sm:$0xff] (!%p4209_p12), %vm3159_vm4, %v9410_v42  ;;  %v9412_v48 = vld [vmem:[#allocation106_spill] sm:$0xff] (!%p4209_p12)  ;;  %v9414_v11 = vld [vmem:[#allocation55_spill] sm:$0xff] (!%p4209_p12) }
 0x46a   : > { %3168 = vst.msk [vmem:[#allocation2 + $0x40] sm:$0xff] (!%p4209_p12), %vm3159_vm4, %v9411_v21  ;;  %3169 = vst.msk [vmem:[#allocation2 + $0x48] sm:$0xff] (!%p4209_p12), %vm3159_vm4, %v9412_v48  ;;  %v9413_v39 = vld [vmem:[#allocation110_spill] sm:$0xff] (!%p4209_p12)  ;;  %v9415_v33 = vld [vmem:[#allocation111_spill] sm:$0xff] (!%p4209_p12) }
 0x46b   : > { %3170 = vst.msk [vmem:[#allocation2 + $0x50] sm:$0xff] (!%p4209_p12), %vm3159_vm4, %v9413_v39  ;;  %3171 = vst.msk [vmem:[#allocation2 + $0x58] sm:$0xff] (!%p4209_p12), %vm3159_vm4, %v9414_v11  ;;  %v9416_v56 = vld [vmem:[#allocation19_spill] sm:$0xff] (!%p4209_p12)  ;;  %v9418_v37 = vld [vmem:[#allocation20_spill] sm:$0xff] (!%p4209_p12) }
 0x46c   : > { %3172 = vst.msk [vmem:[#allocation2 + $0x60] sm:$0xff] (!%p4209_p12), %vm3159_vm4, %v9415_v33  ;;  %3173 = vst.msk [vmem:[#allocation2 + $0x68] sm:$0xff] (!%p4209_p12), %vm3159_vm4, %v9416_v56  ;;  %v9417_v57 = vld [vmem:[#allocation115_spill] sm:$0xff] (!%p4209_p12)  ;;  %v9419_v17 = vld [vmem:[#allocation21_spill] sm:$0xff] (!%p4209_p12) }
 0x46d   : > { %3174 = vst.msk [vmem:[#allocation2 + $0x70] sm:$0xff] %vm3159_vm4, %v9417_v57  ;;  %3175 = vst.msk [vmem:[#allocation2 + $0x78] sm:$0xff] %vm3159_vm4, %v9418_v37  ;;  %v9420_v7 = vld [vmem:[#allocation58_spill] sm:$0xff]  ;;  %v9421_v55 = vld [vmem:[#allocation63_spill] sm:$0xff] }
 0x46e   : > { %3176 = vst.msk [vmem:[#allocation2 + $0x80] sm:$0xff] %vm3159_vm4, %v9419_v17  ;;  %3177 = vst.msk [vmem:[#allocation2 + $0x88] sm:$0xff] %vm3159_vm4, %v9420_v7  ;;  %v9422_v59 = vld [vmem:[#allocation59_spill] sm:$0xff]  ;;  %v9423_v61 = vld [vmem:[#allocation26_spill] sm:$0xff] }
 0x46f   : > { %3178 = vst.msk [vmem:[#allocation2 + $0x90] sm:$0xff] %vm3159_vm4, %v9421_v55  ;;  %3179 = vst.msk [vmem:[#allocation2 + $0x98] sm:$0xff] %vm3159_vm4, %v9422_v59  ;;  %v9424_v30 = vld [vmem:[#allocation114_spill] sm:$0xff]  ;;  %v9425_v4 = vld [vmem:[#allocation85_spill] sm:$0xff] }
 0x470   : > { %3180 = vst.msk [vmem:[#allocation2 + $0xa0] sm:$0xff] %vm3159_vm4, %v9423_v61  ;;  %3181 = vst.msk [vmem:[#allocation2 + $0xa8] sm:$0xff] %vm3159_vm4, %v9424_v30  ;;  %v9426_v53 = vld [vmem:[#allocation62_spill] sm:$0xff]  ;;  %v9428_v6 = vld [vmem:[#allocation24_spill] sm:$0xff] }
 0x471   : > { %3182 = vst.msk [vmem:[#allocation2 + $0xb0] sm:$0xff] %vm3159_vm4, %v9425_v4  ;;  %3183 = vst.msk [vmem:[#allocation2 + $0xb8] sm:$0xff] %vm3159_vm4, %v9426_v53  ;;  %v9427_v27 = vld [vmem:[#allocation66_spill] sm:$0xff]  ;;  %v9429_v28 = vld [vmem:[#allocation89_spill] sm:$0xff] }
 0x472   : > { %3184 = vst.msk [vmem:[#allocation2 + $0xc0] sm:$0xff] %vm3159_vm4, %v9427_v27  ;;  %3185 = vst.msk [vmem:[#allocation2 + $0xc8] sm:$0xff] %vm3159_vm4, %v9428_v6  ;;  %v9430_v15 = vld [vmem:[#allocation23_spill] sm:$0xff]  ;;  %v9432_v54 = vld [vmem:[#allocation84_spill] sm:$0xff] }
 0x473   : > { %3186 = vst.msk [vmem:[#allocation2 + $0xd0] sm:$0xff] %vm3159_vm4, %v9429_v28  ;;  %3187 = vst.msk [vmem:[#allocation2 + $0xd8] sm:$0xff] %vm3159_vm4, %v9430_v15  ;;  %v9431_v44 = vld [vmem:[#allocation67_spill] sm:$0xff]  ;;  %v9434_v47 = vld [vmem:[#allocation88_spill] sm:$0xff] }
 0x474   : > { %3188 = vst.msk [vmem:[#allocation2 + $0xe0] sm:$0xff] %vm3159_vm4, %v9431_v44  ;;  %3189 = vst.msk [vmem:[#allocation2 + $0xe8] sm:$0xff] %vm3159_vm4, %v9432_v54  ;;  %v9433_v29 = vld [vmem:[#allocation123_spill] sm:$0xff] }
 0x475   : > { %3190 = vst.msk [vmem:[#allocation2 + $0xf0] sm:$0xff] %vm3159_vm4, %v9433_v29  ;;  %3191 = vst.msk [vmem:[#allocation2 + $0xf8] sm:$0xff] %vm3159_vm4, %v9434_v47 }
 0x476   : > { %3192 = vst.msk [vmem:[#allocation3] sm:$0xff] %vm3159_vm4, %v8129_v51  ;;  %3193 = vst.msk [vmem:[#allocation3 + $0x8] sm:$0xff] %vm3159_vm4, %v8131_v2 }
 0x477   : > { %3194 = vst.msk [vmem:[#allocation3 + $0x10] sm:$0xff] %vm3159_vm4, %v8133_v3  ;;  %3195 = vst.msk [vmem:[#allocation3 + $0x18] sm:$0xff] %vm3159_vm4, %v8135_v58 }
 0x478   : > { %3196 = vst.msk [vmem:[#allocation3 + $0x20] sm:$0xff] %vm3159_vm4, %v8137_v26  ;;  %3197 = vst.msk [vmem:[#allocation3 + $0x28] sm:$0xff] %vm3159_vm4, %v8139_v46 }
 0x479   : > { %3198 = vst.msk [vmem:[#allocation3 + $0x30] sm:$0xff] %vm3159_vm4, %v8141_v36  ;;  %3199 = vst.msk [vmem:[#allocation3 + $0x38] sm:$0xff] %vm3159_vm4, %v8143_v24 }
 0x47a   : > { %3200 = vst.msk [vmem:[#allocation3 + $0x40] sm:$0xff] %vm3159_vm4, %v8145_v23  ;;  %3201 = vst.msk [vmem:[#allocation3 + $0x48] sm:$0xff] %vm3159_vm4, %v8149_v34 }
 0x47b   : > { %3202 = vst.msk [vmem:[#allocation3 + $0x50] sm:$0xff] %vm3159_vm4, %v8147_v52  ;;  %3203 = vst.msk [vmem:[#allocation3 + $0x58] sm:$0xff] %vm3159_vm4, %v8153_v45 }
 0x47c   : > { %3204 = vst.msk [vmem:[#allocation3 + $0x60] sm:$0xff] %vm3159_vm4, %v8151_v16  ;;  %3205 = vst.msk [vmem:[#allocation3 + $0x68] sm:$0xff] %vm3159_vm4, %v8157_v40 }
 0x47d   : > { %3206 = vst.msk [vmem:[#allocation3 + $0x70] sm:$0xff] %vm3159_vm4, %v8155_v12  ;;  %3207 = vst.msk [vmem:[#allocation3 + $0x78] sm:$0xff] %vm3159_vm4, %v8161_v22 }
 0x47e   : > { %3208 = vst.msk [vmem:[#allocation3 + $0x80] sm:$0xff] %vm3159_vm4, %v8159_v0  ;;  %3209 = vst.msk [vmem:[#allocation3 + $0x88] sm:$0xff] %vm3159_vm4, %v8165_v31 }
 0x47f   : > { %3210 = vst.msk [vmem:[#allocation3 + $0x90] sm:$0xff] %vm3159_vm4, %v8163_v32  ;;  %3211 = vst.msk [vmem:[#allocation3 + $0x98] sm:$0xff] %vm3159_vm4, %v8169_v63 }
 0x480   : > { %3212 = vst.msk [vmem:[#allocation3 + $0xa0] sm:$0xff] %vm3159_vm4, %v8167_v43  ;;  %3213 = vst.msk [vmem:[#allocation3 + $0xa8] sm:$0xff] %vm3159_vm4, %v8173_v49 }
 0x481   : > { %3214 = vst.msk [vmem:[#allocation3 + $0xb0] sm:$0xff] %vm3159_vm4, %v8171_v60  ;;  %3215 = vst.msk [vmem:[#allocation3 + $0xb8] sm:$0xff] %vm3159_vm4, %v8177_v41 }
 0x482   : > { %3216 = vst.msk [vmem:[#allocation3 + $0xc0] sm:$0xff] %vm3159_vm4, %v8175_v10  ;;  %3217 = vst.msk [vmem:[#allocation3 + $0xc8] sm:$0xff] %vm3159_vm4, %v8181_v8 }
 0x483   : > { %3218 = vst.msk [vmem:[#allocation3 + $0xd0] sm:$0xff] %vm3159_vm4, %v8179_v19  ;;  %3219 = vst.msk [vmem:[#allocation3 + $0xd8] sm:$0xff] %vm3159_vm4, %v8185_v1 }
 0x484   : > { %3220 = vst.msk [vmem:[#allocation3 + $0xe0] sm:$0xff] %vm3159_vm4, %v8183_v14  ;;  %3221 = vst.msk [vmem:[#allocation3 + $0xe8] sm:$0xff] %vm3159_vm4, %v8189_v18 }
 0x485   : > { %3222 = vst.msk [vmem:[#allocation3 + $0xf0] sm:$0xff] %vm3159_vm4, %v8187_v38  ;;  %3223 = vst.msk [vmem:[#allocation3 + $0xf8] sm:$0xff] %vm3159_vm4, %v8191_v13 }
 0x486 PF: > { %p4210_p13 = scmp.le.s32.totalorder %s4550_s12, 0 }
 0x487   : > { %v3228_v50 = vld [vmem:[#allocation2] sm:$0xff] (!%p4210_p13)  ;;  %vm3292_vm5 = vcmask (!%p4210_p13), 7168   ;;  %v3229_v20 = vld [vmem:[#allocation2 + $0x8] sm:$0xff] (!%p4210_p13)  ;;  %v3230_v25 = vld [vmem:[#allocation2 + $0x10] sm:$0xff] (!%p4210_p13) }
 0x488   : > { %3227 = sbr.rel (%p4210_p13) target bundleno = 1203 (0x4b3), region = 44  ;;  %v9435_v9 = vld [vmem:[#allocation16_spill] sm:$0xff] (!%p4210_p13)  ;;  %v9436_v42 = vld [vmem:[#allocation54_spill] sm:$0xff] (!%p4210_p13)  ;;  %v9438_v57 = vld [vmem:[#allocation17_spill] sm:$0xff] (!%p4210_p13) }
 0x489   : > { %v3260_v62 = vadd.f32 (!%p4210_p13), %v3228_v50, %v9435_v9  ;;  %v3261_v21 = vadd.f32 (!%p4210_p13), %v3229_v20, %v9436_v42  ;;  %v9437_v48 = vld [vmem:[#allocation18_spill] sm:$0xff] (!%p4210_p13)  ;;  %v3231_v11 = vld [vmem:[#allocation2 + $0x18] sm:$0xff] (!%p4210_p13)  ;;  %v9439_v17 = vld [vmem:[#allocation107_spill] sm:$0xff] (!%p4210_p13) }
 0x48a   : > { %v3262_v39 = vadd.f32 (!%p4210_p13), %v3230_v25, %v9437_v48  ;;  %v3232_v33 = vld [vmem:[#allocation2 + $0x20] sm:$0xff] (!%p4210_p13)  ;;  %v3233_v56 = vld [vmem:[#allocation2 + $0x28] sm:$0xff] (!%p4210_p13)  ;;  %v3263_v37 = vadd.f32 (!%p4210_p13), %v3231_v11, %v9438_v57  ;;  %v3234_v61 = vld [vmem:[#allocation2 + $0x30] sm:$0xff] (!%p4210_p13) }
 0x48b   : > { %v3264_v7 = vadd.f32 (!%p4210_p13), %v3232_v33, %v9439_v17  ;;  %v9440_v55 = vld [vmem:[#allocation105_spill] sm:$0xff] (!%p4210_p13)  ;;  %3293 = vst.msk [vmem:[#allocation2] sm:$0xff] (!%p4210_p13), %vm3292_vm5, %v3260_v62  ;;  %3294 = vst.msk [vmem:[#allocation2 + $0x8] sm:$0xff] (!%p4210_p13), %vm3292_vm5, %v3261_v21  ;;  %v9441_v53 = vld [vmem:[#allocation56_spill] sm:$0xff] (!%p4210_p13) }
 0x48c   : > { %v3265_v59 = vadd.f32 (!%p4210_p13), %v3233_v56, %v9440_v55  ;;  %v3235_v30 = vld [vmem:[#allocation2 + $0x38] sm:$0xff] (!%p4210_p13)  ;;  %v3236_v4 = vld [vmem:[#allocation2 + $0x40] sm:$0xff] (!%p4210_p13)  ;;  %3295 = vst.msk [vmem:[#allocation2 + $0x10] sm:$0xff] (!%p4210_p13), %vm3292_vm5, %v3262_v39  ;;  %v3266_v27 = vadd.f32 (!%p4210_p13), %v3234_v61, %v9441_v53  ;;  %v3237_v54 = vld [vmem:[#allocation2 + $0x48] sm:$0xff] (!%p4210_p13) }
 0x48d   : > { %v9442_v6 = vld [vmem:[#allocation53_spill] sm:$0xff] (!%p4210_p13)  ;;  %v9443_v15 = vld [vmem:[#allocation22_spill] sm:$0xff] (!%p4210_p13)  ;;  %v3238_v29 = vld [vmem:[#allocation2 + $0x50] sm:$0xff] (!%p4210_p13)  ;;  %3296 = vst.msk [vmem:[#allocation2 + $0x18] sm:$0xff] (!%p4210_p13), %vm3292_vm5, %v3263_v37 }
 0x48e   : > { %v3267_v28 = vadd.f32 (!%p4210_p13), %v3235_v30, %v9442_v6  ;;  %v3268_v44 = vadd.f32 (!%p4210_p13), %v3236_v4, %v9443_v15  ;;  %v3239_v47 = vld [vmem:[#allocation2 + $0x58] sm:$0xff] (!%p4210_p13)  ;;  %3297 = vst.msk [vmem:[#allocation2 + $0x20] sm:$0xff] (!%p4210_p13), %vm3292_vm5, %v3264_v7  ;;  %3298 = vst.msk [vmem:[#allocation2 + $0x28] sm:$0xff] (!%p4210_p13), %vm3292_vm5, %v3265_v59  ;;  %v9444_v50 = vld [vmem:[#allocation106_spill] sm:$0xff] (!%p4210_p13) }
 0x48f   : > { %v3269_v20 = vadd.f32 %v3237_v54, %v9444_v50  ;;  %v9445_v25 = vld [vmem:[#allocation110_spill] sm:$0xff]  ;;  %v9446_v62 = vld [vmem:[#allocation55_spill] sm:$0xff]  ;;  %3299 = vst.msk [vmem:[#allocation2 + $0x30] sm:$0xff] %vm3292_vm5, %v3266_v27  ;;  %v3243_v7 = vld [vmem:[#allocation2 + $0x78] sm:$0xff] }
 0x490   : > { %v3270_v9 = vadd.f32 %v3238_v29, %v9445_v25  ;;  %v3271_v42 = vadd.f32 %v3239_v47, %v9446_v62  ;;  %v3240_v21 = vld [vmem:[#allocation2 + $0x60] sm:$0xff]  ;;  %v3241_v48 = vld [vmem:[#allocation2 + $0x68] sm:$0xff]  ;;  %v3242_v39 = vld [vmem:[#allocation2 + $0x70] sm:$0xff]  ;;  %3300 = vst.msk [vmem:[#allocation2 + $0x38] sm:$0xff] %vm3292_vm5, %v3267_v28 }
 0x491   : > { %3301 = vst.msk [vmem:[#allocation2 + $0x40] sm:$0xff] %vm3292_vm5, %v3268_v44  ;;  %v9447_v11 = vld [vmem:[#allocation111_spill] sm:$0xff]  ;;  %v3244_v55 = vld [vmem:[#allocation2 + $0x80] sm:$0xff]  ;;  %3302 = vst.msk [vmem:[#allocation2 + $0x48] sm:$0xff] %vm3292_vm5, %v3269_v20 }
 0x492   : > { %v3272_v33 = vadd.f32 %v3240_v21, %v9447_v11  ;;  %v9448_v56 = vld [vmem:[#allocation19_spill] sm:$0xff]  ;;  %3303 = vst.msk [vmem:[#allocation2 + $0x50] sm:$0xff] %vm3292_vm5, %v3270_v9  ;;  %3304 = vst.msk [vmem:[#allocation2 + $0x58] sm:$0xff] %vm3292_vm5, %v3271_v42  ;;  %v9450_v61 = vld [vmem:[#allocation20_spill] sm:$0xff] }
 0x493   : > { %v3273_v57 = vadd.f32 %v3241_v48, %v9448_v56  ;;  %v9449_v37 = vld [vmem:[#allocation115_spill] sm:$0xff]  ;;  %v3275_v30 = vadd.f32 %v3243_v7, %v9450_v61  ;;  %v9451_v4 = vld [vmem:[#allocation21_spill] sm:$0xff]  ;;  %v9452_v27 = vld [vmem:[#allocation58_spill] sm:$0xff] }
 0x494   : > { %v3274_v17 = vadd.f32 %v3242_v39, %v9449_v37  ;;  %v3245_v59 = vld [vmem:[#allocation2 + $0x88] sm:$0xff]  ;;  %v3276_v53 = vadd.f32 %v3244_v55, %v9451_v4  ;;  %v3246_v28 = vld [vmem:[#allocation2 + $0x90] sm:$0xff]  ;;  %v3247_v15 = vld [vmem:[#allocation2 + $0x98] sm:$0xff]  ;;  %3305 = vst.msk [vmem:[#allocation2 + $0x60] sm:$0xff] %vm3292_vm5, %v3272_v33 }
 0x495   : > { %v3277_v6 = vadd.f32 %v3245_v59, %v9452_v27  ;;  %v3248_v44 = vld [vmem:[#allocation2 + $0xa0] sm:$0xff]  ;;  %3306 = vst.msk [vmem:[#allocation2 + $0x68] sm:$0xff] %vm3292_vm5, %v3273_v57  ;;  %v9453_v54 = vld [vmem:[#allocation63_spill] sm:$0xff]  ;;  %v3251_v42 = vld [vmem:[#allocation2 + $0xb8] sm:$0xff] }
 0x496   : > { %3307 = vst.msk [vmem:[#allocation2 + $0x70] sm:$0xff] %vm3292_vm5, %v3274_v17  ;;  %v3278_v29 = vadd.f32 %v3246_v28, %v9453_v54  ;;  %v9454_v47 = vld [vmem:[#allocation59_spill] sm:$0xff]  ;;  %v9455_v20 = vld [vmem:[#allocation26_spill] sm:$0xff]  ;;  %3308 = vst.msk [vmem:[#allocation2 + $0x78] sm:$0xff] %vm3292_vm5, %v3275_v30 }
 0x497   : > { %v3279_v50 = vadd.f32 %v3247_v15, %v9454_v47  ;;  %v3280_v25 = vadd.f32 %v3248_v44, %v9455_v20  ;;  %v3249_v9 = vld [vmem:[#allocation2 + $0xa8] sm:$0xff]  ;;  %v3250_v62 = vld [vmem:[#allocation2 + $0xb0] sm:$0xff]  ;;  %3309 = vst.msk [vmem:[#allocation2 + $0x80] sm:$0xff] %vm3292_vm5, %v3276_v53  ;;  %3310 = vst.msk [vmem:[#allocation2 + $0x88] sm:$0xff] %vm3292_vm5, %v3277_v6 }
 0x498   : > { %v9456_v21 = vld [vmem:[#allocation114_spill] sm:$0xff]  ;;  %v9457_v39 = vld [vmem:[#allocation85_spill] sm:$0xff]  ;;  %v3254_v17 = vld [vmem:[#allocation2 + $0xd0] sm:$0xff]  ;;  %3311 = vst.msk [vmem:[#allocation2 + $0x90] sm:$0xff] %vm3292_vm5, %v3278_v29 }
 0x499   : > { %v3281_v48 = vadd.f32 %v3249_v9, %v9456_v21  ;;  %v3282_v11 = vadd.f32 %v3250_v62, %v9457_v39  ;;  %v9458_v33 = vld [vmem:[#allocation62_spill] sm:$0xff]  ;;  %3312 = vst.msk [vmem:[#allocation2 + $0x98] sm:$0xff] %vm3292_vm5, %v3279_v50  ;;  %3313 = vst.msk [vmem:[#allocation2 + $0xa0] sm:$0xff] %vm3292_vm5, %v3280_v25  ;;  %v9460_v59 = vld [vmem:[#allocation24_spill] sm:$0xff] }
 0x49a   : > { %v3283_v56 = vadd.f32 %v3251_v42, %v9458_v33  ;;  %v3252_v57 = vld [vmem:[#allocation2 + $0xc0] sm:$0xff]  ;;  %v3253_v37 = vld [vmem:[#allocation2 + $0xc8] sm:$0xff]  ;;  %v3255_v53 = vld [vmem:[#allocation2 + $0xd8] sm:$0xff] }
 0x49b   : > { %v9459_v7 = vld [vmem:[#allocation66_spill] sm:$0xff]  ;;  %v3285_v61 = vadd.f32 %v3253_v37, %v9460_v59  ;;  %v9461_v30 = vld [vmem:[#allocation89_spill] sm:$0xff]  ;;  %3314 = vst.msk [vmem:[#allocation2 + $0xa8] sm:$0xff] %vm3292_vm5, %v3281_v48  ;;  %3315 = vst.msk [vmem:[#allocation2 + $0xb0] sm:$0xff] %vm3292_vm5, %v3282_v11 }
 0x49c   : > { %v3284_v55 = vadd.f32 %v3252_v57, %v9459_v7  ;;  %v3286_v4 = vadd.f32 %v3254_v17, %v9461_v30  ;;  %v3256_v27 = vld [vmem:[#allocation2 + $0xe0] sm:$0xff]  ;;  %v3257_v6 = vld [vmem:[#allocation2 + $0xe8] sm:$0xff]  ;;  %3316 = vst.msk [vmem:[#allocation2 + $0xb8] sm:$0xff] %vm3292_vm5, %v3283_v56  ;;  %v9464_v29 = vld [vmem:[#allocation84_spill] sm:$0xff] }
 0x49d   : > { %v9462_v28 = vld [vmem:[#allocation23_spill] sm:$0xff]  ;;  %v3289_v47 = vadd.f32 %v3257_v6, %v9464_v29  ;;  %v3259_v20 = vld [vmem:[#allocation2 + $0xf8] sm:$0xff]  ;;  %v3325_v25 = vld [vmem:[#allocation3] sm:$0xff]  ;;  %3318 = vst.msk [vmem:[#allocation2 + $0xc8] sm:$0xff] %vm3292_vm5, %v3285_v61 }
 0x49e   : > { %v3287_v15 = vadd.f32 %v3255_v53, %v9462_v28  ;;  %v9463_v44 = vld [vmem:[#allocation67_spill] sm:$0xff]  ;;  %3317 = vst.msk [vmem:[#allocation2 + $0xc0] sm:$0xff] %vm3292_vm5, %v3284_v55  ;;  %3319 = vst.msk [vmem:[#allocation2 + $0xd0] sm:$0xff] %vm3292_vm5, %v3286_v4  ;;  %v9466_v42 = vld [vmem:[#allocation88_spill] sm:$0xff]  ;;  %v3357_v48 = vmin.f32 %v3325_v25, %v8129_v51 }
 0x49f   : > { %v3288_v54 = vadd.f32 %v3256_v27, %v9463_v44  ;;  %v3258_v50 = vld [vmem:[#allocation2 + $0xf0] sm:$0xff]  ;;  %v3291_v21 = vadd.f32 %v3259_v20, %v9466_v42  ;;  %v3326_v39 = vld [vmem:[#allocation3 + $0x8] sm:$0xff]  ;;  %v3328_v33 = vld [vmem:[#allocation3 + $0x18] sm:$0xff]  ;;  %3322 = vst.msk [vmem:[#allocation2 + $0xe8] sm:$0xff] %vm3292_vm5, %v3289_v47 }
 0x4a0   : > { %v9465_v9 = vld [vmem:[#allocation123_spill] sm:$0xff]  ;;  %3320 = vst.msk [vmem:[#allocation2 + $0xd8] sm:$0xff] %vm3292_vm5, %v3287_v15  ;;  %v3358_v56 = vmin.f32 %v3326_v39, %v8131_v2  ;;  %v3360_v37 = vmin.f32 %v3328_v33, %v8135_v58  ;;  %v3329_v17 = vld [vmem:[#allocation3 + $0x20] sm:$0xff]  ;;  %3389 = vst.msk [vmem:[#allocation3] sm:$0xff] %vm3292_vm5, %v3357_v48 }
 0x4a1   : > { %v3290_v62 = vadd.f32 %v3258_v50, %v9465_v9  ;;  %v3327_v11 = vld [vmem:[#allocation3 + $0x10] sm:$0xff]  ;;  %3321 = vst.msk [vmem:[#allocation2 + $0xe0] sm:$0xff] %vm3292_vm5, %v3288_v54  ;;  %v3330_v7 = vld [vmem:[#allocation3 + $0x28] sm:$0xff]  ;;  %3324 = vst.msk [vmem:[#allocation2 + $0xf8] sm:$0xff] %vm3292_vm5, %v3291_v21  ;;  %v3361_v51 = vmin.f32 %v3329_v17, %v8137_v26 }
 0x4a2   : > { %v3359_v57 = vmin.f32 %v3327_v11, %v8133_v3  ;;  %v3331_v55 = vld [vmem:[#allocation3 + $0x30] sm:$0xff]  ;;  %v3362_v59 = vmin.f32 %v3330_v7, %v8139_v46  ;;  %v3332_v2 = vld [vmem:[#allocation3 + $0x38] sm:$0xff]  ;;  %v3333_v30 = vld [vmem:[#allocation3 + $0x40] sm:$0xff]  ;;  %3390 = vst.msk [vmem:[#allocation3 + $0x8] sm:$0xff] %vm3292_vm5, %v3358_v56 }
 0x4a3   : > { %3323 = vst.msk [vmem:[#allocation2 + $0xf0] sm:$0xff] %vm3292_vm5, %v3290_v62  ;;  %v3363_v61 = vmin.f32 %v3331_v55, %v8141_v36  ;;  %v3334_v3 = vld [vmem:[#allocation3 + $0x48] sm:$0xff]  ;;  %3392 = vst.msk [vmem:[#allocation3 + $0x18] sm:$0xff] %vm3292_vm5, %v3360_v37  ;;  %v3364_v58 = vmin.f32 %v3332_v2, %v8143_v24  ;;  %v3365_v4 = vmin.f32 %v3333_v30, %v8145_v23  ;;  %v3335_v26 = vld [vmem:[#allocation3 + $0x50] sm:$0xff] }
 0x4a4   : > { %3391 = vst.msk [vmem:[#allocation3 + $0x10] sm:$0xff] %vm3292_vm5, %v3359_v57  ;;  %v3366_v53 = vmin.f32 %v3334_v3, %v8149_v34  ;;  %v3336_v27 = vld [vmem:[#allocation3 + $0x58] sm:$0xff]  ;;  %v3337_v46 = vld [vmem:[#allocation3 + $0x60] sm:$0xff]  ;;  %3393 = vst.msk [vmem:[#allocation3 + $0x20] sm:$0xff] %vm3292_vm5, %v3361_v51  ;;  %v3367_v36 = vmin.f32 %v3335_v26, %v8147_v52 }
 0x4a5   : > { %3394 = vst.msk [vmem:[#allocation3 + $0x28] sm:$0xff] %vm3292_vm5, %v3362_v59  ;;  %3395 = vst.msk [vmem:[#allocation3 + $0x30] sm:$0xff] %vm3292_vm5, %v3363_v61  ;;  %v3368_v6 = vmin.f32 %v3336_v27, %v8153_v45  ;;  %v3369_v28 = vmin.f32 %v3337_v46, %v8151_v16  ;;  %v3338_v24 = vld [vmem:[#allocation3 + $0x68] sm:$0xff]  ;;  %v3339_v15 = vld [vmem:[#allocation3 + $0x70] sm:$0xff] }
 0x4a6   : > { %v3340_v23 = vld [vmem:[#allocation3 + $0x78] sm:$0xff]  ;;  %3396 = vst.msk [vmem:[#allocation3 + $0x38] sm:$0xff] %vm3292_vm5, %v3364_v58  ;;  %3397 = vst.msk [vmem:[#allocation3 + $0x40] sm:$0xff] %vm3292_vm5, %v3365_v4  ;;  %v3370_v34 = vmin.f32 %v3338_v24, %v8157_v40  ;;  %v3371_v44 = vmin.f32 %v3339_v15, %v8155_v12  ;;  %v3341_v52 = vld [vmem:[#allocation3 + $0x80] sm:$0xff] }
 0x4a7   : > { %3398 = vst.msk [vmem:[#allocation3 + $0x48] sm:$0xff] %vm3292_vm5, %v3366_v53  ;;  %v3372_v54 = vmin.f32 %v3340_v23, %v8161_v22  ;;  %v3342_v29 = vld [vmem:[#allocation3 + $0x88] sm:$0xff]  ;;  %v3343_v45 = vld [vmem:[#allocation3 + $0x90] sm:$0xff]  ;;  %3399 = vst.msk [vmem:[#allocation3 + $0x50] sm:$0xff] %vm3292_vm5, %v3367_v36  ;;  %v3373_v16 = vmin.f32 %v3341_v52, %v8159_v0 }
 0x4a8   : > { %3400 = vst.msk [vmem:[#allocation3 + $0x58] sm:$0xff] %vm3292_vm5, %v3368_v6  ;;  %3401 = vst.msk [vmem:[#allocation3 + $0x60] sm:$0xff] %vm3292_vm5, %v3369_v28  ;;  %v3374_v47 = vmin.f32 %v3342_v29, %v8165_v31  ;;  %v3375_v50 = vmin.f32 %v3343_v45, %v8163_v32  ;;  %v3344_v40 = vld [vmem:[#allocation3 + $0x98] sm:$0xff]  ;;  %v3345_v20 = vld [vmem:[#allocation3 + $0xa0] sm:$0xff] }
 0x4a9   : > { %v3346_v12 = vld [vmem:[#allocation3 + $0xa8] sm:$0xff]  ;;  %3402 = vst.msk [vmem:[#allocation3 + $0x68] sm:$0xff] %vm3292_vm5, %v3370_v34  ;;  %3403 = vst.msk [vmem:[#allocation3 + $0x70] sm:$0xff] %vm3292_vm5, %v3371_v44  ;;  %v3376_v22 = vmin.f32 %v3344_v40, %v8169_v63  ;;  %v3377_v25 = vmin.f32 %v3345_v20, %v8167_v43  ;;  %v3347_v0 = vld [vmem:[#allocation3 + $0xb0] sm:$0xff] }
 0x4aa   : > { %3404 = vst.msk [vmem:[#allocation3 + $0x78] sm:$0xff] %vm3292_vm5, %v3372_v54  ;;  %v3378_v9 = vmin.f32 %v3346_v12, %v8173_v49  ;;  %v3348_v62 = vld [vmem:[#allocation3 + $0xb8] sm:$0xff]  ;;  %v3349_v31 = vld [vmem:[#allocation3 + $0xc0] sm:$0xff]  ;;  %3405 = vst.msk [vmem:[#allocation3 + $0x80] sm:$0xff] %vm3292_vm5, %v3373_v16  ;;  %v3379_v32 = vmin.f32 %v3347_v0, %v8171_v60 }
 0x4ab   : > { %3406 = vst.msk [vmem:[#allocation3 + $0x88] sm:$0xff] %vm3292_vm5, %v3374_v47  ;;  %3407 = vst.msk [vmem:[#allocation3 + $0x90] sm:$0xff] %vm3292_vm5, %v3375_v50  ;;  %v3380_v42 = vmin.f32 %v3348_v62, %v8177_v41  ;;  %v3381_v21 = vmin.f32 %v3349_v31, %v8175_v10  ;;  %v3350_v63 = vld [vmem:[#allocation3 + $0xc8] sm:$0xff]  ;;  %v3351_v48 = vld [vmem:[#allocation3 + $0xd0] sm:$0xff] }
 0x4ac   : > { %v3352_v43 = vld [vmem:[#allocation3 + $0xd8] sm:$0xff]  ;;  %3408 = vst.msk [vmem:[#allocation3 + $0x98] sm:$0xff] %vm3292_vm5, %v3376_v22  ;;  %3409 = vst.msk [vmem:[#allocation3 + $0xa0] sm:$0xff] %vm3292_vm5, %v3377_v25  ;;  %v3382_v49 = vmin.f32 %v3350_v63, %v8181_v8  ;;  %v3383_v39 = vmin.f32 %v3351_v48, %v8179_v19  ;;  %v3353_v60 = vld [vmem:[#allocation3 + $0xe0] sm:$0xff] }
 0x4ad   : > { %3410 = vst.msk [vmem:[#allocation3 + $0xa8] sm:$0xff] %vm3292_vm5, %v3378_v9  ;;  %v3384_v11 = vmin.f32 %v3352_v43, %v8185_v1  ;;  %v3354_v33 = vld [vmem:[#allocation3 + $0xe8] sm:$0xff]  ;;  %v3355_v41 = vld [vmem:[#allocation3 + $0xf0] sm:$0xff]  ;;  %3411 = vst.msk [vmem:[#allocation3 + $0xb0] sm:$0xff] %vm3292_vm5, %v3379_v32  ;;  %v3385_v10 = vmin.f32 %v3353_v60, %v8183_v14 }
 0x4ae   : > { %3412 = vst.msk [vmem:[#allocation3 + $0xb8] sm:$0xff] %vm3292_vm5, %v3380_v42  ;;  %3413 = vst.msk [vmem:[#allocation3 + $0xc0] sm:$0xff] %vm3292_vm5, %v3381_v21  ;;  %v3386_v56 = vmin.f32 %v3354_v33, %v8189_v18  ;;  %v3387_v57 = vmin.f32 %v3355_v41, %v8187_v38  ;;  %v3356_v8 = vld [vmem:[#allocation3 + $0xf8] sm:$0xff] }
 0x4af   : > { %3414 = vst.msk [vmem:[#allocation3 + $0xc8] sm:$0xff] %vm3292_vm5, %v3382_v49  ;;  %3415 = vst.msk [vmem:[#allocation3 + $0xd0] sm:$0xff] %vm3292_vm5, %v3383_v39  ;;  %v3388_v19 = vmin.f32 %v3356_v8, %v8191_v13 }
 0x4b0   : > { %3416 = vst.msk [vmem:[#allocation3 + $0xd8] sm:$0xff] %vm3292_vm5, %v3384_v11  ;;  %3417 = vst.msk [vmem:[#allocation3 + $0xe0] sm:$0xff] %vm3292_vm5, %v3385_v10 }
 0x4b1   : > { %3418 = vst.msk [vmem:[#allocation3 + $0xe8] sm:$0xff] %vm3292_vm5, %v3386_v56  ;;  %3419 = vst.msk [vmem:[#allocation3 + $0xf0] sm:$0xff] %vm3292_vm5, %v3387_v57 }
 0x4b2   : > { %3420 = vst.msk [vmem:[#allocation3 + $0xf8] sm:$0xff] %vm3292_vm5, %v3388_v19 }
 0x4b3 PF: > { %p4211_p0 = scmp.ne.s32.totalorder %s4554_s13, 0 }
 0x4b4   : > { %v4580_v14 = vmov (!%p4211_p0), 1966171168   ;;  %v9467_v38 = vld [vmem:[#allocation68_spill] sm:$0xff] (!%p4211_p0)  ;;  %v9468_v18 = vld [vmem:[#allocation15_spill] sm:$0xff] (!%p4211_p0)  ;;  %v3451_v17 = vcombine.low (!%p4211_p0), %v8119_v5, %v8121_v35  ;;  %v9469_v7 = vld [vmem:[#allocation34_spill] sm:$0xff] (!%p4211_p0)  ;;  %v9470_v61 = vlaneseq (!%p4211_p0)  ;;  %s3443_s27 = scalar_lea.vmem (!%p4211_p0), [#allocation4], %s5015_s4 }
 0x4b5   : > { %3423 = sbr.rel (%p4211_p0) target bundleno = 1216 (0x4c0), region = 48  ;;  %v3428_v1 = vunpack.c.l.s4 (!%p4211_p0), %v4580_v14  ;;  %v3426_v37 = vcombine.low (!%p4211_p0), %v9468_v18, %v9467_v38  ;;  %s3467_s28 = scalar_lea.vmem (!%p4211_p0), [#allocation5], %s5015_s4 }
 0x4b6   : > { %vm3446_vm6 = vcmp.lt.s32.totalorder (!%p4211_p0), %v9470_v61, 256 }
 0x4b7   : > { %v3429_v13 = vunpack.c.0.s8 (!%p4211_p0), %v3428_v1 }
 0x4b9   : > { %v3432_v55 = vsub.s32 (!%p4211_p0), %v3429_v13, %v9469_v7 }
 0x4bb   : > { %v3433_v51 = vrot.slane (!%p4211_p0), %v3426_v37, %v3432_v55  ;;  %v3458_v59 = vrot.slane (!%p4211_p0), %v3451_v17, %v3432_v55 }
 0x4bd   : > { %v3440_v2 = vrot.slane %v3433_v51, %v3432_v55  ;;  %v3465_v30 = vrot.slane %v3458_v59, %v3432_v55 }
 0x4bf   : > { %3448 = vst.msk [vmem:[%s3443_s27] sm:$0x3] %vm3446_vm6, %v3440_v2  ;;  %3468 = vst.msk [vmem:[%s3467_s28] sm:$0x3] %vm3446_vm6, %v3465_v30 }
 0x4c0 PF: > { %p4213_p1 = scmp.le.s32.totalorder %s4554_s13, 0 }
 0x4c1   : > { %v4581_v3 = vmov (!%p4213_p1), 1966171168   ;;  %v9471_v4 = vld [vmem:[#allocation68_spill] sm:$0xff] (!%p4213_p1)  ;;  %v9472_v53 = vld [vmem:[#allocation15_spill] sm:$0xff] (!%p4213_p1)  ;;  %v3504_v46 = vcombine.low (!%p4213_p1), %v8119_v5, %v8121_v35  ;;  %v9473_v36 = vld [vmem:[#allocation34_spill] sm:$0xff] (!%p4213_p1)  ;;  %s3474_s29 = scalar_lea.vmem (!%p4213_p1), [#allocation4], %s5015_s4  ;;  %v9474_v54 = vlaneseq (!%p4213_p1) }
 0x4c2   : > { %3472 = sbr.rel (%p4213_p1) target bundleno = 1231 (0x4cf), region = 52  ;;  %v3480_v58 = vunpack.c.l.s4 (!%p4213_p1), %v4581_v3  ;;  %v3478_v26 = vcombine.low (!%p4213_p1), %v9472_v53, %v9471_v4  ;;  %s3500_s30 = scalar_lea.vmem (!%p4213_p1), [#allocation5], %s5015_s4 }
 0x4c3   : > { %vm3497_vm7 = vcmp.lt.s32.totalorder (!%p4213_p1), %v9474_v54, 256 }
 0x4c4   : > { %v3481_v27 = vunpack.c.0.s8 (!%p4213_p1), %v3480_v58 }
 0x4c6   : > { %v3484_v6 = vsub.s32 (!%p4213_p1), %v3481_v27, %v9473_v36  ;;  %v3475_v15 = vld [vmem:[%s3474_s29] sm:$0x3] (!%p4213_p1) }
 0x4c7   : > { %v3501_v23 = vld [vmem:[%s3500_s30] sm:$0x3] (!%p4213_p1) }
 0x4c8   : > { %v3485_v28 = vrot.slane (!%p4213_p1), %v3478_v26, %v3484_v6  ;;  %v3511_v24 = vrot.slane (!%p4213_p1), %v3504_v46, %v3484_v6 }
 0x4ca   : > { %v3492_v34 = vrot.slane %v3485_v28, %v3484_v6  ;;  %v3518_v44 = vrot.slane %v3511_v24, %v3484_v6 }
 0x4cc   : > { %v3494_v52 = vadd.f32 %v3492_v34, %v3475_v15  ;;  %v3520_v29 = vmin.f32 %v3501_v23, %v3518_v44 }
 0x4ce   : > { %3499 = vst.msk [vmem:[%s3474_s29] sm:$0x3] %vm3497_vm7, %v3494_v52  ;;  %3521 = vst.msk [vmem:[%s3500_s30] sm:$0x3] %vm3497_vm7, %v3520_v29 }
 0x4cf PF: > { %p3522_p2 = scmp.eq.s32.totalorder %s4550_s12, 1  ;;  %p4215_p3 = scmp.ne.s32.totalorder %s4550_s12, 1 }
 0x4d0   : > { %v3526_v5 = vld [vmem:[#allocation2] sm:$0xff] (!%p4215_p3)  ;;  %v3527_v47 = vld [vmem:[#allocation2 + $0x8] sm:$0xff] (!%p4215_p3)  ;;  %vm3878_vm8 = vcmask (!%p4215_p3), 7168   ;;  %v3528_v22 = vld [vmem:[#allocation2 + $0x10] sm:$0xff] (!%p4215_p3)  ;;  %v4582_v31 = vmov (!%p4215_p3), 0.0  }
 0x4d1   : > { %3525 = sbr.rel (%p4215_p3) target bundleno = 1299 (0x513), region = 56  ;;  %v3718_v35 = vld [vmem:[#allocation3] sm:$0xff] (!%p4215_p3)  ;;  %v3558_v45 = vmul.f32 (!%p4215_p3), 0.001953125, %v3526_v5  ;;  %v3719_v50 = vld [vmem:[#allocation3 + $0x8] sm:$0xff] (!%p4215_p3)  ;;  %v3559_v20 = vmul.f32 (!%p4215_p3), 0.001953125, %v3527_v47  ;;  %v3720_v25 = vld [vmem:[#allocation3 + $0x10] sm:$0xff] (!%p4215_p3) }
 0x4d2   : > { %v4248_v16 = vadd.f32 (!%p4215_p3), -0.01, %v3718_v35  ;;  %v3686_v40 = vld [vmem:[#allocation6] sm:$0xff] (!%p4215_p3)  ;;  %v4249_v12 = vadd.f32 (!%p4215_p3), -0.01, %v3719_v50  ;;  %v3560_v0 = vmul.f32 (!%p4215_p3), 0.001953125, %v3528_v22 }
 0x4d3   : > { %vm3590_vm9 = vcmp.gt.f32.partialorder (!%p4215_p3), %v3558_v45, 0.005  ;;  %v4250_v62 = vadd.f32 (!%p4215_p3), -0.01, %v3720_v25  ;;  %vm3591_vm10 = vcmp.gt.f32.partialorder (!%p4215_p3), %v3559_v20, 0.005 }
 0x4d4   : > { %v3782_v9 = vmax.f32 (!%p4215_p3), %v4248_v16, 0.0  ;;  %v4216_v32 = vsel (!%p4215_p3), %vm3590_vm9, 1.0, %v4582_v31  ;;  %v3687_v42 = vld [vmem:[#allocation6 + $0x8] sm:$0xff] (!%p4215_p3)  ;;  %v3783_v21 = vmax.f32 (!%p4215_p3), %v4249_v12, 0.0  ;;  %v3529_v63 = vld [vmem:[#allocation2 + $0x18] sm:$0xff] (!%p4215_p3)  ;;  %v4217_v43 = vsel (!%p4215_p3), %vm3591_vm10, 1.0, %v4582_v31 }
 0x4d5   : > { %vm3592_vm11 = vcmp.gt.f32.partialorder (!%p4215_p3), %v3560_v0, 0.005  ;;  %v3784_v49 = vmax.f32 (!%p4215_p3), %v4250_v62, 0.0  ;;  %v3721_v39 = vld [vmem:[#allocation3 + $0x18] sm:$0xff] (!%p4215_p3)  ;;  %v3530_v11 = vld [vmem:[#allocation2 + $0x20] sm:$0xff] (!%p4215_p3)  ;;  %v3561_v10 = vmul.f32 (!%p4215_p3), 0.001953125, %v3529_v63 }
 0x4d6   : > { %v3814_v48 = vmul.f32 (!%p4215_p3), %v4216_v32, %v3782_v9  ;;  %v3815_v60 = vmul.f32 (!%p4215_p3), %v4217_v43, %v3783_v21  ;;  %v4218_v33 = vsel (!%p4215_p3), %vm3592_vm11, 1.0, %v4582_v31  ;;  %v3688_v41 = vld [vmem:[#allocation6 + $0x10] sm:$0xff] (!%p4215_p3)  ;;  %v4251_v56 = vadd.f32 (!%p4215_p3), -0.01, %v3721_v39  ;;  %v3722_v57 = vld [vmem:[#allocation3 + $0x20] sm:$0xff] (!%p4215_p3)  ;;  %v3531_v38 = vld [vmem:[#allocation2 + $0x28] sm:$0xff] (!%p4215_p3) }
 0x4d7   : > { %v3816_v19 = vmul.f32 (!%p4215_p3), %v4218_v33, %v3784_v49  ;;  %v3562_v14 = vmul.f32 (!%p4215_p3), 0.001953125, %v3530_v11  ;;  %v4252_v1 = vadd.f32 (!%p4215_p3), -0.01, %v3722_v57  ;;  %v3723_v18 = vld [vmem:[#allocation3 + $0x28] sm:$0xff] (!%p4215_p3)  ;;  %vm3593_vm12 = vcmp.gt.f32.partialorder (!%p4215_p3), %v3561_v10, 0.005 }
 0x4d8   : > { %v3846_v8 = vadd.f32 %v3814_v48, %v3686_v40  ;;  %v3847_v37 = vadd.f32 %v3815_v60, %v3687_v42  ;;  %v3689_v13 = vld [vmem:[#allocation6 + $0x18] sm:$0xff]  ;;  %v3785_v17 = vmax.f32 %v4251_v56, 0.0  ;;  %v3563_v7 = vmul.f32 0.001953125, %v3531_v38  ;;  %v3532_v55 = vld [vmem:[#allocation2 + $0x30] sm:$0xff]  ;;  %v3533_v30 = vld [vmem:[#allocation2 + $0x38] sm:$0xff] }
 0x4d9   : > { %v3848_v51 = vadd.f32 %v3816_v19, %v3688_v41  ;;  %v4219_v59 = vsel %vm3593_vm12, 1.0, %v4582_v31  ;;  %vm3594_vm13 = vcmp.gt.f32.partialorder %v3562_v14, 0.005  ;;  %v3786_v61 = vmax.f32 %v4252_v1, 0.0  ;;  %v3724_v2 = vld [vmem:[#allocation3 + $0x30] sm:$0xff]  ;;  %v3690_v4 = vld [vmem:[#allocation6 + $0x20] sm:$0xff] }
 0x4da   : > { %3879 = vst.msk [vmem:[#allocation6] sm:$0xff] %vm3878_vm8, %v3846_v8  ;;  %3880 = vst.msk [vmem:[#allocation6 + $0x8] sm:$0xff] %vm3878_vm8, %v3847_v37  ;;  %v3817_v3 = vmul.f32 %v4219_v59, %v3785_v17  ;;  %v4220_v58 = vsel %vm3594_vm13, 1.0, %v4582_v31  ;;  %vm3595_vm14 = vcmp.gt.f32.partialorder %v3563_v7, 0.005  ;;  %v3564_v46 = vmul.f32 0.001953125, %v3532_v55 }
 0x4db   : > { %v4253_v53 = vadd.f32 -0.01, %v3723_v18  ;;  %3881 = vst.msk [vmem:[#allocation6 + $0x10] sm:$0xff] %vm3878_vm8, %v3848_v51  ;;  %v3818_v26 = vmul.f32 %v4220_v58, %v3786_v61  ;;  %v4221_v27 = vsel %vm3595_vm14, 1.0, %v4582_v31  ;;  %v4254_v36 = vadd.f32 -0.01, %v3724_v2 }
 0x4dc   : > { %v3725_v6 = vld [vmem:[#allocation3 + $0x38] sm:$0xff]  ;;  %v3534_v28 = vld [vmem:[#allocation2 + $0x40] sm:$0xff]  ;;  %v3849_v24 = vadd.f32 %v3817_v3, %v3689_v13  ;;  %v3691_v15 = vld [vmem:[#allocation6 + $0x28] sm:$0xff]  ;;  %v3565_v34 = vmul.f32 0.001953125, %v3533_v30  ;;  %vm3596_vm15 = vcmp.gt.f32.partialorder %v3564_v46, 0.005 }
 0x4dd   : > { %v3787_v23 = vmax.f32 %v4253_v53, 0.0  ;;  %v4255_v44 = vadd.f32 -0.01, %v3725_v6  ;;  %v3726_v54 = vld [vmem:[#allocation3 + $0x40] sm:$0xff]  ;;  %v3850_v52 = vadd.f32 %v3818_v26, %v3690_v4  ;;  %v3692_v29 = vld [vmem:[#allocation6 + $0x30] sm:$0xff]  ;;  %v3788_v5 = vmax.f32 %v4254_v36, 0.0 }
 0x4de   : > { %v3566_v35 = vmul.f32 0.001953125, %v3534_v28  ;;  %v3535_v45 = vld [vmem:[#allocation2 + $0x48] sm:$0xff]  ;;  %3882 = vst.msk [vmem:[#allocation6 + $0x18] sm:$0xff] %vm3878_vm8, %v3849_v24  ;;  %v4222_v47 = vsel %vm3596_vm15, 1.0, %v4582_v31  ;;  %vm3597_vm0 = vcmp.gt.f32.partialorder %v3565_v34, 0.005 }
 0x4df   : > { %v3819_v16 = vmul.f32 %v4221_v27, %v3787_v23  ;;  %v3789_v50 = vmax.f32 %v4255_v44, 0.0  ;;  %v3727_v40 = vld [vmem:[#allocation3 + $0x48] sm:$0xff]  ;;  %v3536_v20 = vld [vmem:[#allocation2 + $0x50] sm:$0xff]  ;;  %3883 = vst.msk [vmem:[#allocation6 + $0x20] sm:$0xff] %vm3878_vm8, %v3850_v52  ;;  %v3820_v12 = vmul.f32 %v4222_v47, %v3788_v5  ;;  %v4223_v22 = vsel %vm3597_vm0, 1.0, %v4582_v31  ;;  %v3693_v25 = vld [vmem:[#allocation6 + $0x38] sm:$0xff] }
 0x4e0   : > { %vm3598_vm1 = vcmp.gt.f32.partialorder %v3566_v35, 0.005  ;;  %v4256_v9 = vadd.f32 -0.01, %v3726_v54  ;;  %v3567_v42 = vmul.f32 0.001953125, %v3535_v45  ;;  %v3728_v21 = vld [vmem:[#allocation3 + $0x50] sm:$0xff] }
 0x4e1   : > { %v3851_v0 = vadd.f32 %v3819_v16, %v3691_v15  ;;  %v3821_v62 = vmul.f32 %v4223_v22, %v3789_v50  ;;  %v4224_v32 = vsel %vm3598_vm1, 1.0, %v4582_v31  ;;  %v3537_v63 = vld [vmem:[#allocation2 + $0x58] sm:$0xff]  ;;  %v3852_v48 = vadd.f32 %v3820_v12, %v3692_v29  ;;  %v3694_v43 = vld [vmem:[#allocation6 + $0x40] sm:$0xff]  ;;  %v3695_v41 = vld [vmem:[#allocation6 + $0x48] sm:$0xff] }
 0x4e2   : > { %v3790_v49 = vmax.f32 %v4256_v9, 0.0  ;;  %v4257_v39 = vadd.f32 -0.01, %v3727_v40  ;;  %v3568_v11 = vmul.f32 0.001953125, %v3536_v20  ;;  %v3729_v60 = vld [vmem:[#allocation3 + $0x58] sm:$0xff]  ;;  %v3569_v56 = vmul.f32 0.001953125, %v3537_v63 }
 0x4e3   : > { %3884 = vst.msk [vmem:[#allocation6 + $0x28] sm:$0xff] %vm3878_vm8, %v3851_v0  ;;  %v3853_v33 = vadd.f32 %v3821_v62, %v3693_v25  ;;  %vm3599_vm2 = vcmp.gt.f32.partialorder %v3567_v42, 0.005  ;;  %v4258_v10 = vadd.f32 -0.01, %v3728_v21  ;;  %v3538_v57 = vld [vmem:[#allocation2 + $0x60] sm:$0xff] }
 0x4e4   : > { %3885 = vst.msk [vmem:[#allocation6 + $0x30] sm:$0xff] %vm3878_vm8, %v3852_v48  ;;  %v3822_v8 = vmul.f32 %v4224_v32, %v3790_v49  ;;  %v4225_v19 = vsel %vm3599_vm2, 1.0, %v4582_v31  ;;  %v3791_v14 = vmax.f32 %v4257_v39, 0.0  ;;  %vm3600_vm3 = vcmp.gt.f32.partialorder %v3568_v11, 0.005  ;;  %v3730_v1 = vld [vmem:[#allocation3 + $0x60] sm:$0xff] }
 0x4e5   : > { %v3539_v38 = vld [vmem:[#allocation2 + $0x68] sm:$0xff]  ;;  %3886 = vst.msk [vmem:[#allocation6 + $0x38] sm:$0xff] %vm3878_vm8, %v3853_v33  ;;  %v4226_v18 = vsel %vm3600_vm3, 1.0, %v4582_v31  ;;  %v3792_v37 = vmax.f32 %v4258_v10, 0.0  ;;  %vm3601_vm4 = vcmp.gt.f32.partialorder %v3569_v56, 0.005 }
 0x4e6   : > { %v4259_v13 = vadd.f32 -0.01, %v3729_v60  ;;  %v3854_v17 = vadd.f32 %v3822_v8, %v3694_v43  ;;  %v3823_v7 = vmul.f32 %v4225_v19, %v3791_v14  ;;  %v3696_v55 = vld [vmem:[#allocation6 + $0x50] sm:$0xff]  ;;  %v4227_v51 = vsel %vm3601_vm4, 1.0, %v4582_v31  ;;  %v3731_v61 = vld [vmem:[#allocation3 + $0x68] sm:$0xff]  ;;  %v3540_v2 = vld [vmem:[#allocation2 + $0x70] sm:$0xff] }
 0x4e7   : > { %v3570_v59 = vmul.f32 0.001953125, %v3538_v57  ;;  %v3824_v30 = vmul.f32 %v4226_v18, %v3792_v37  ;;  %v3697_v3 = vld [vmem:[#allocation6 + $0x58] sm:$0xff]  ;;  %v4260_v4 = vadd.f32 -0.01, %v3730_v1  ;;  %v3571_v53 = vmul.f32 0.001953125, %v3539_v38  ;;  %v3698_v27 = vld [vmem:[#allocation6 + $0x60] sm:$0xff] }
 0x4e8   : > { %v3793_v58 = vmax.f32 %v4259_v13, 0.0  ;;  %3887 = vst.msk [vmem:[#allocation6 + $0x40] sm:$0xff] %vm3878_vm8, %v3854_v17  ;;  %v3855_v26 = vadd.f32 %v3823_v7, %v3695_v41  ;;  %v4261_v46 = vadd.f32 -0.01, %v3731_v61  ;;  %v3572_v36 = vmul.f32 0.001953125, %v3540_v2  ;;  %v3541_v6 = vld [vmem:[#allocation2 + $0x78] sm:$0xff] }
 0x4e9   : > { %vm3602_vm5 = vcmp.gt.f32.partialorder %v3570_v59, 0.005  ;;  %v3856_v28 = vadd.f32 %v3824_v30, %v3696_v55  ;;  %v3794_v23 = vmax.f32 %v4260_v4, 0.0  ;;  %v3732_v34 = vld [vmem:[#allocation3 + $0x70] sm:$0xff]  ;;  %v3733_v44 = vld [vmem:[#allocation3 + $0x78] sm:$0xff]  ;;  %v3542_v54 = vld [vmem:[#allocation2 + $0x80] sm:$0xff] }
 0x4ea   : > { %v3825_v24 = vmul.f32 %v4227_v51, %v3793_v58  ;;  %v4228_v15 = vsel %vm3602_vm5, 1.0, %v4582_v31  ;;  %3888 = vst.msk [vmem:[#allocation6 + $0x48] sm:$0xff] %vm3878_vm8, %v3855_v26  ;;  %vm3603_vm6 = vcmp.gt.f32.partialorder %v3571_v53, 0.005  ;;  %v3795_v52 = vmax.f32 %v4261_v46, 0.0  ;;  %v3699_v16 = vld [vmem:[#allocation6 + $0x68] sm:$0xff] }
 0x4eb   : > { %vm3604_vm7 = vcmp.gt.f32.partialorder %v3572_v36, 0.005  ;;  %v3573_v29 = vmul.f32 0.001953125, %v3541_v6  ;;  %3889 = vst.msk [vmem:[#allocation6 + $0x50] sm:$0xff] %vm3878_vm8, %v3856_v28  ;;  %v3826_v35 = vmul.f32 %v4228_v15, %v3794_v23  ;;  %v4229_v45 = vsel %vm3603_vm6, 1.0, %v4582_v31  ;;  %v3734_v50 = vld [vmem:[#allocation3 + $0x80] sm:$0xff] }
 0x4ec   : > { %v3857_v5 = vadd.f32 %v3825_v24, %v3697_v3  ;;  %v4230_v47 = vsel %vm3604_vm7, 1.0, %v4582_v31  ;;  %v3543_v40 = vld [vmem:[#allocation2 + $0x88] sm:$0xff]  ;;  %v3827_v20 = vmul.f32 %v4229_v45, %v3795_v52  ;;  %v4262_v12 = vadd.f32 -0.01, %v3732_v34  ;;  %v3700_v9 = vld [vmem:[#allocation6 + $0x70] sm:$0xff]  ;;  %v3701_v48 = vld [vmem:[#allocation6 + $0x78] sm:$0xff] }
 0x4ed   : > { %vm3605_vm9 = vcmp.gt.f32.partialorder %v3573_v29, 0.005  ;;  %v4263_v22 = vadd.f32 -0.01, %v3733_v44  ;;  %v3858_v25 = vadd.f32 %v3826_v35, %v3698_v27  ;;  %v3574_v62 = vmul.f32 0.001953125, %v3542_v54  ;;  %v3735_v42 = vld [vmem:[#allocation3 + $0x88] sm:$0xff] }
 0x4ee   : > { %3890 = vst.msk [vmem:[#allocation6 + $0x58] sm:$0xff] %vm3878_vm8, %v3857_v5  ;;  %v4231_v0 = vsel %vm3605_vm9, 1.0, %v4582_v31  ;;  %v4264_v32 = vadd.f32 -0.01, %v3734_v50  ;;  %v3859_v21 = vadd.f32 %v3827_v20, %v3699_v16  ;;  %v3796_v63 = vmax.f32 %v4262_v12, 0.0  ;;  %v3544_v39 = vld [vmem:[#allocation2 + $0x90] sm:$0xff] }
 0x4ef   : > { %v3797_v43 = vmax.f32 %v4263_v22, 0.0  ;;  %v3575_v49 = vmul.f32 0.001953125, %v3543_v40  ;;  %v3736_v11 = vld [vmem:[#allocation3 + $0x90] sm:$0xff]  ;;  %3891 = vst.msk [vmem:[#allocation6 + $0x60] sm:$0xff] %vm3878_vm8, %v3858_v25  ;;  %vm3606_vm10 = vcmp.gt.f32.partialorder %v3574_v62, 0.005 }
 0x4f0   : > { %v3798_v60 = vmax.f32 %v4264_v32, 0.0  ;;  %v4265_v33 = vadd.f32 -0.01, %v3735_v42  ;;  %v3576_v41 = vmul.f32 0.001953125, %v3544_v39  ;;  %3892 = vst.msk [vmem:[#allocation6 + $0x68] sm:$0xff] %vm3878_vm8, %v3859_v21  ;;  %v3828_v10 = vmul.f32 %v4230_v47, %v3796_v63  ;;  %v3702_v8 = vld [vmem:[#allocation6 + $0x80] sm:$0xff] }
 0x4f1   : > { %v3829_v56 = vmul.f32 %v4231_v0, %v3797_v43  ;;  %v4232_v57 = vsel %vm3606_vm10, 1.0, %v4582_v31  ;;  %vm3607_vm11 = vcmp.gt.f32.partialorder %v3575_v49, 0.005  ;;  %v3545_v19 = vld [vmem:[#allocation2 + $0x98] sm:$0xff]  ;;  %v3546_v37 = vld [vmem:[#allocation2 + $0xa0] sm:$0xff]  ;;  %v3703_v7 = vld [vmem:[#allocation6 + $0x88] sm:$0xff] }
 0x4f2   : > { %v3737_v14 = vld [vmem:[#allocation3 + $0x98] sm:$0xff]  ;;  %v3830_v1 = vmul.f32 %v4232_v57, %v3798_v60  ;;  %v4233_v38 = vsel %vm3607_vm11, 1.0, %v4582_v31  ;;  %v3799_v18 = vmax.f32 %v4265_v33, 0.0  ;;  %vm3608_vm12 = vcmp.gt.f32.partialorder %v3576_v41, 0.005  ;;  %v3738_v59 = vld [vmem:[#allocation3 + $0xa0] sm:$0xff] }
 0x4f3   : > { %v3860_v13 = vadd.f32 %v3828_v10, %v3700_v9  ;;  %v3861_v17 = vadd.f32 %v3829_v56, %v3701_v48  ;;  %v4234_v55 = vsel %vm3608_vm12, 1.0, %v4582_v31  ;;  %v4266_v51 = vadd.f32 -0.01, %v3736_v11  ;;  %v3547_v61 = vld [vmem:[#allocation2 + $0xa8] sm:$0xff]  ;;  %v3704_v3 = vld [vmem:[#allocation6 + $0x90] sm:$0xff]  ;;  %v3705_v27 = vld [vmem:[#allocation6 + $0x98] sm:$0xff] }
 0x4f4   : > { %v3862_v2 = vadd.f32 %v3830_v1, %v3702_v8  ;;  %v3831_v30 = vmul.f32 %v4233_v38, %v3799_v18  ;;  %v3577_v58 = vmul.f32 0.001953125, %v3545_v19  ;;  %v4267_v4 = vadd.f32 -0.01, %v3737_v14  ;;  %v3739_v53 = vld [vmem:[#allocation3 + $0xa8] sm:$0xff]  ;;  %v3548_v34 = vld [vmem:[#allocation2 + $0xb0] sm:$0xff]  ;;  %v3549_v5 = vld [vmem:[#allocation2 + $0xb8] sm:$0xff] }
 0x4f5   : > { %3893 = vst.msk [vmem:[#allocation6 + $0x70] sm:$0xff] %vm3878_vm8, %v3860_v13  ;;  %3894 = vst.msk [vmem:[#allocation6 + $0x78] sm:$0xff] %vm3878_vm8, %v3861_v17  ;;  %v3800_v26 = vmax.f32 %v4266_v51, 0.0  ;;  %v3578_v46 = vmul.f32 0.001953125, %v3546_v37  ;;  %v4268_v36 = vadd.f32 -0.01, %v3738_v59 }
 0x4f6   : > { %v3579_v6 = vmul.f32 0.001953125, %v3547_v61  ;;  %3895 = vst.msk [vmem:[#allocation6 + $0x80] sm:$0xff] %vm3878_vm8, %v3862_v2  ;;  %v3863_v28 = vadd.f32 %v3831_v30, %v3703_v7  ;;  %vm3609_vm13 = vcmp.gt.f32.partialorder %v3577_v58, 0.005  ;;  %v3801_v24 = vmax.f32 %v4267_v4, 0.0  ;;  %v3706_v15 = vld [vmem:[#allocation6 + $0xa0] sm:$0xff] }
 0x4f7   : > { %v4269_v23 = vadd.f32 -0.01, %v3739_v53  ;;  %v3832_v44 = vmul.f32 %v4234_v55, %v3800_v26  ;;  %v4235_v54 = vsel %vm3609_vm13, 1.0, %v4582_v31  ;;  %vm3610_vm14 = vcmp.gt.f32.partialorder %v3578_v46, 0.005  ;;  %v3740_v29 = vld [vmem:[#allocation3 + $0xb0] sm:$0xff] }
 0x4f8   : > { %v3802_v52 = vmax.f32 %v4268_v36, 0.0  ;;  %3896 = vst.msk [vmem:[#allocation6 + $0x88] sm:$0xff] %vm3878_vm8, %v3863_v28  ;;  %v3833_v35 = vmul.f32 %v4235_v54, %v3801_v24  ;;  %v4236_v45 = vsel %vm3610_vm14, 1.0, %v4582_v31  ;;  %vm3611_vm15 = vcmp.gt.f32.partialorder %v3579_v6, 0.005  ;;  %v3741_v47 = vld [vmem:[#allocation3 + $0xb8] sm:$0xff] }
 0x4f9   : > { %v3803_v16 = vmax.f32 %v4269_v23, 0.0  ;;  %v3550_v50 = vld [vmem:[#allocation2 + $0xc0] sm:$0xff]  ;;  %v3864_v40 = vadd.f32 %v3832_v44, %v3704_v3  ;;  %v4237_v12 = vsel %vm3611_vm15, 1.0, %v4582_v31  ;;  %v3707_v22 = vld [vmem:[#allocation6 + $0xa8] sm:$0xff]  ;;  %v3580_v25 = vmul.f32 0.001953125, %v3548_v34  ;;  %v3551_v21 = vld [vmem:[#allocation2 + $0xc8] sm:$0xff] }
 0x4fa   : > { %v3834_v20 = vmul.f32 %v4236_v45, %v3802_v52  ;;  %v3865_v9 = vadd.f32 %v3833_v35, %v3705_v27  ;;  %v4270_v62 = vadd.f32 -0.01, %v3740_v29  ;;  %v3581_v32 = vmul.f32 0.001953125, %v3549_v5  ;;  %v3742_v42 = vld [vmem:[#allocation3 + $0xc0] sm:$0xff]  ;;  %v3743_v63 = vld [vmem:[#allocation3 + $0xc8] sm:$0xff]  ;;  %v3708_v43 = vld [vmem:[#allocation6 + $0xb0] sm:$0xff] }
 0x4fb   : > { %v3835_v0 = vmul.f32 %v4237_v12, %v3803_v16  ;;  %3897 = vst.msk [vmem:[#allocation6 + $0x90] sm:$0xff] %vm3878_vm8, %v3864_v40  ;;  %vm3612_vm0 = vcmp.gt.f32.partialorder %v3580_v25, 0.005  ;;  %v4271_v49 = vadd.f32 -0.01, %v3741_v47  ;;  %v3582_v39 = vmul.f32 0.001953125, %v3550_v50 }
 0x4fc   : > { %v3866_v48 = vadd.f32 %v3834_v20, %v3706_v15  ;;  %v3552_v11 = vld [vmem:[#allocation2 + $0xd0] sm:$0xff]  ;;  %3898 = vst.msk [vmem:[#allocation6 + $0x98] sm:$0xff] %vm3878_vm8, %v3865_v9  ;;  %v4238_v33 = vsel %vm3612_vm0, 1.0, %v4582_v31  ;;  %v3804_v41 = vmax.f32 %v4270_v62, 0.0  ;;  %vm3613_vm1 = vcmp.gt.f32.partialorder %v3581_v32, 0.005 }
 0x4fd   : > { %v3867_v60 = vadd.f32 %v3835_v0, %v3707_v22  ;;  %v3744_v10 = vld [vmem:[#allocation3 + $0xd0] sm:$0xff]  ;;  %v3553_v56 = vld [vmem:[#allocation2 + $0xd8] sm:$0xff]  ;;  %v4239_v57 = vsel %vm3613_vm1, 1.0, %v4582_v31  ;;  %v3805_v8 = vmax.f32 %v4271_v49, 0.0  ;;  %vm3614_vm2 = vcmp.gt.f32.partialorder %v3582_v39, 0.005 }
 0x4fe   : > { %3899 = vst.msk [vmem:[#allocation6 + $0xa0] sm:$0xff] %vm3878_vm8, %v3866_v48  ;;  %v4272_v19 = vadd.f32 -0.01, %v3742_v42  ;;  %v3836_v14 = vmul.f32 %v4238_v33, %v3804_v41  ;;  %v3709_v1 = vld [vmem:[#allocation6 + $0xb8] sm:$0xff]  ;;  %v4240_v38 = vsel %vm3614_vm2, 1.0, %v4582_v31  ;;  %v3583_v18 = vmul.f32 0.001953125, %v3551_v21 }
 0x4ff   : > { %3900 = vst.msk [vmem:[#allocation6 + $0xa8] sm:$0xff] %vm3878_vm8, %v3867_v60  ;;  %v4273_v37 = vadd.f32 -0.01, %v3743_v63  ;;  %v3837_v13 = vmul.f32 %v4239_v57, %v3805_v8  ;;  %v3710_v17 = vld [vmem:[#allocation6 + $0xc0] sm:$0xff]  ;;  %v3584_v55 = vmul.f32 0.001953125, %v3552_v11  ;;  %v3585_v2 = vmul.f32 0.001953125, %v3553_v56 }
 0x500   : > { %v3806_v7 = vmax.f32 %v4272_v19, 0.0  ;;  %v4274_v51 = vadd.f32 -0.01, %v3744_v10  ;;  %v3868_v59 = vadd.f32 %v3836_v14, %v3708_v43  ;;  %vm3615_vm3 = vcmp.gt.f32.partialorder %v3583_v18, 0.005  ;;  %v3745_v30 = vld [vmem:[#allocation3 + $0xd8] sm:$0xff] }
 0x501   : > { %v3807_v61 = vmax.f32 %v4273_v37, 0.0  ;;  %v3554_v3 = vld [vmem:[#allocation2 + $0xe0] sm:$0xff]  ;;  %v3869_v58 = vadd.f32 %v3837_v13, %v3709_v1  ;;  %v4241_v53 = vsel %vm3615_vm3, 1.0, %v4582_v31  ;;  %v3711_v26 = vld [vmem:[#allocation6 + $0xc8] sm:$0xff]  ;;  %vm3616_vm4 = vcmp.gt.f32.partialorder %v3584_v55, 0.005 }
 0x502   : > { %v3838_v4 = vmul.f32 %v4240_v38, %v3806_v7  ;;  %v3746_v27 = vld [vmem:[#allocation3 + $0xe0] sm:$0xff]  ;;  %v3555_v46 = vld [vmem:[#allocation2 + $0xe8] sm:$0xff]  ;;  %3901 = vst.msk [vmem:[#allocation6 + $0xb0] sm:$0xff] %vm3878_vm8, %v3868_v59  ;;  %v4242_v6 = vsel %vm3616_vm4, 1.0, %v4582_v31  ;;  %v3808_v28 = vmax.f32 %v4274_v51, 0.0  ;;  %v3556_v15 = vld [vmem:[#allocation2 + $0xf0] sm:$0xff] }
 0x503   : > { %v3839_v36 = vmul.f32 %v4241_v53, %v3807_v61  ;;  %vm3617_vm5 = vcmp.gt.f32.partialorder %v3585_v2, 0.005  ;;  %v3747_v24 = vld [vmem:[#allocation3 + $0xe8] sm:$0xff]  ;;  %3902 = vst.msk [vmem:[#allocation6 + $0xb8] sm:$0xff] %vm3878_vm8, %v3869_v58  ;;  %v3712_v34 = vld [vmem:[#allocation6 + $0xd0] sm:$0xff]  ;;  %v3586_v52 = vmul.f32 0.001953125, %v3554_v3 }
 0x504   : > { %v3870_v23 = vadd.f32 %v3838_v4, %v3710_v17  ;;  %v4243_v44 = vsel %vm3617_vm5, 1.0, %v4582_v31  ;;  %v4275_v54 = vadd.f32 -0.01, %v3745_v30  ;;  %v3840_v5 = vmul.f32 %v4242_v6, %v3808_v28  ;;  %v3748_v16 = vld [vmem:[#allocation3 + $0xf0] sm:$0xff]  ;;  %v3557_v47 = vld [vmem:[#allocation2 + $0xf8] sm:$0xff]  ;;  %v3713_v22 = vld [vmem:[#allocation6 + $0xd8] sm:$0xff] }
 0x505   : > { %v3871_v29 = vadd.f32 %v3839_v36, %v3711_v26  ;;  %v4276_v35 = vadd.f32 -0.01, %v3746_v27  ;;  %v3587_v45 = vmul.f32 0.001953125, %v3555_v46  ;;  %vm3618_vm6 = vcmp.gt.f32.partialorder %v3586_v52, 0.005  ;;  %v3749_v0 = vld [vmem:[#allocation3 + $0xf8] sm:$0xff] }
 0x506   : > { %3903 = vst.msk [vmem:[#allocation6 + $0xc0] sm:$0xff] %vm3878_vm8, %v3870_v23  ;;  %v3809_v50 = vmax.f32 %v4275_v54, 0.0  ;;  %v4277_v40 = vadd.f32 -0.01, %v3747_v24  ;;  %v3588_v20 = vmul.f32 0.001953125, %v3556_v15  ;;  %v3872_v12 = vadd.f32 %v3840_v5, %v3712_v34  ;;  %v3714_v32 = vld [vmem:[#allocation6 + $0xe0] sm:$0xff] }
 0x507   : > { %3904 = vst.msk [vmem:[#allocation6 + $0xc8] sm:$0xff] %vm3878_vm8, %v3871_v29  ;;  %v4244_v25 = vsel %vm3618_vm6, 1.0, %v4582_v31  ;;  %v3810_v9 = vmax.f32 %v4276_v35, 0.0  ;;  %vm3619_vm7 = vcmp.gt.f32.partialorder %v3587_v45, 0.005  ;;  %v3715_v48 = vld [vmem:[#allocation6 + $0xe8] sm:$0xff] }
 0x508   : > { %v3841_v62 = vmul.f32 %v4243_v44, %v3809_v50  ;;  %v4245_v42 = vsel %vm3619_vm7, 1.0, %v4582_v31  ;;  %v3811_v21 = vmax.f32 %v4277_v40, 0.0  ;;  %vm3620_vm9 = vcmp.gt.f32.partialorder %v3588_v20, 0.005  ;;  %3905 = vst.msk [vmem:[#allocation6 + $0xd0] sm:$0xff] %vm3878_vm8, %v3872_v12  ;;  %v3716_v57 = vld [vmem:[#allocation6 + $0xf0] sm:$0xff] }
 0x509   : > { %v3842_v63 = vmul.f32 %v4244_v25, %v3810_v9  ;;  %v4278_v43 = vadd.f32 -0.01, %v3748_v16  ;;  %v3589_v49 = vmul.f32 0.001953125, %v3557_v47  ;;  %v4246_v60 = vsel %vm3620_vm9, 1.0, %v4582_v31  ;;  %v3717_v1 = vld [vmem:[#allocation6 + $0xf8] sm:$0xff] }
 0x50a   : > { %v3873_v39 = vadd.f32 %v3841_v62, %v3713_v22  ;;  %v3843_v11 = vmul.f32 %v4245_v42, %v3811_v21  ;;  %v4279_v33 = vadd.f32 -0.01, %v3749_v0 }
 0x50b   : > { %v3874_v41 = vadd.f32 %v3842_v63, %v3714_v32  ;;  %v3812_v10 = vmax.f32 %v4278_v43, 0.0  ;;  %vm3621_vm10 = vcmp.gt.f32.partialorder %v3589_v49, 0.005 }
 0x50c   : > { %3906 = vst.msk [vmem:[#allocation6 + $0xd8] sm:$0xff] %vm3878_vm8, %v3873_v39  ;;  %v3875_v56 = vadd.f32 %v3843_v11, %v3715_v48  ;;  %v4247_v8 = vsel %vm3621_vm10, 1.0, %v4582_v31  ;;  %v3813_v19 = vmax.f32 %v4279_v33, 0.0 }
 0x50d   : > { %3907 = vst.msk [vmem:[#allocation6 + $0xe0] sm:$0xff] %vm3878_vm8, %v3874_v41  ;;  %v3844_v14 = vmul.f32 %v4246_v60, %v3812_v10 }
 0x50e   : > { %3908 = vst.msk [vmem:[#allocation6 + $0xe8] sm:$0xff] %vm3878_vm8, %v3875_v56  ;;  %v3845_v38 = vmul.f32 %v4247_v8, %v3813_v19 }
 0x50f   : > { %v3876_v18 = vadd.f32 %v3844_v14, %v3716_v57 }
 0x510   : > { %v3877_v37 = vadd.f32 %v3845_v38, %v3717_v1 }
 0x511   : > { %3909 = vst.msk [vmem:[#allocation6 + $0xf0] sm:$0xff] %vm3878_vm8, %v3876_v18 }
 0x512   : > { %3910 = vst.msk [vmem:[#allocation6 + $0xf8] sm:$0xff] %vm3878_vm8, %v3877_v37 }
 0x513 PF: > { %p3911_p4 = scmp.eq.s32.totalorder %s4554_s13, 1  ;;  %p4280_p5 = scmp.ne.s32.totalorder %s4554_s13, 1 }
 0x514   : > { %s3916_s5 = scalar_lea.vmem (!%p4280_p5), [#allocation4], %s5015_s4  ;;  %s3923_s6 = scalar_lea.vmem (!%p4280_p5), [#allocation5], %s5015_s4  ;;  %v4583_v51 = vmov (!%p4280_p5), 0.0   ;;  %v3922_v61 = vld [vmem:[#allocation7] sm:$0x3] (!%p4280_p5)  ;;  %v9475_v30 = vlaneseq (!%p4280_p5) }
 0x515   : > { %3914 = sbr.rel (%p4280_p5) target bundleno = 1312 (0x520), region = 60  ;;  %v3917_v31 = vld [vmem:[%s3916_s5] sm:$0x3] (!%p4280_p5) }
 0x516   : > { %v3924_v13 = vld [vmem:[%s3923_s6] sm:$0x3] (!%p4280_p5)  ;;  %v3918_v17 = vmul.f32 (!%p4280_p5), 0.001953125, %v3917_v31  ;;  %vm3931_vm8 = vcmp.lt.s32.totalorder (!%p4280_p5), %v9475_v30, 256 }
 0x517   : > { %v4283_v7 = vadd.f32 (!%p4280_p5), -0.01, %v3924_v13 }
 0x518   : > { %vm3919_vm11 = vcmp.gt.f32.partialorder (!%p4280_p5), %v3918_v17, 0.005 }
 0x519   : > { %v3926_v55 = vmax.f32 (!%p4280_p5), %v4283_v7, 0.0  ;;  %v4282_v59 = vsel (!%p4280_p5), %vm3919_vm11, 1.0, %v4583_v51 }
 0x51b   : > { %v3927_v2 = vmul.f32 (!%p4280_p5), %v4282_v59, %v3926_v55 }
 0x51d   : > { %v3928_v3 = vadd.f32 %v3927_v2, %v3922_v61 }
 0x51f   : > { %3933 = vst.msk [vmem:[#allocation7] sm:$0x3] %vm3931_vm8, %v3928_v3 }
 0x520 PF: > { %p3934_p6 = pnand %p3911_p4, %p3522_p2 }
 0x521   : > { %v3938_v58 = vld [vmem:[#allocation6] sm:$0xff] (!%p3934_p6)  ;;  %v3939_v4 = vld [vmem:[#allocation6 + $0x8] sm:$0xff] (!%p3934_p6)  ;;  %v3940_v53 = vld [vmem:[#allocation6 + $0x10] sm:$0xff] (!%p3934_p6)  ;;  %vm3970_vm12 = vcmask (!%p3934_p6), 7168   ;;  %vm4058_vm13 = vcmask (!%p3934_p6), 1040384   ;;  %s4284_s12 = sshll.u32 (!%p3934_p6), %s4558_s14, 7 }
 0x522   : > { %3937 = sbr.rel (%p3934_p6) target bundleno = 1586 (0x632), region = 64  ;;  %v3941_v26 = vld [vmem:[#allocation6 + $0x18] sm:$0xff] (!%p3934_p6)  ;;  %v3971_v27 = vsel (!%p3934_p6), %vm3970_vm12, %v3938_v58, 0.0  ;;  %v3972_v46 = vsel (!%p3934_p6), %vm3970_vm12, %v3939_v4, 0.0  ;;  %v3974_v36 = vsel (!%p3934_p6), %vm3970_vm12, %v3940_v53, 0.0  ;;  %v3942_v6 = vld [vmem:[#allocation6 + $0x20] sm:$0xff] (!%p3934_p6) }
 0x523   : > { %v3973_v28 = vadd.f32 (!%p3934_p6), %v3972_v46, %v3971_v27  ;;  %v3976_v24 = vsel (!%p3934_p6), %vm3970_vm12, %v3941_v26, 0.0  ;;  %v3943_v15 = vld [vmem:[#allocation6 + $0x28] sm:$0xff] (!%p3934_p6)  ;;  %v3978_v34 = vsel (!%p3934_p6), %vm3970_vm12, %v3942_v6, 0.0  ;;  %v3944_v44 = vld [vmem:[#allocation6 + $0x30] sm:$0xff] (!%p3934_p6)  ;;  %v3945_v29 = vld [vmem:[#allocation6 + $0x38] sm:$0xff] (!%p3934_p6)  ;;  %s4044_s4 = scalar_lea.smem (!%p3934_p6), [#allocation8], %s4284_s12 }
 0x524   : > { %v3980_v52 = vsel (!%p3934_p6), %vm3970_vm12, %v3943_v15, 0.0  ;;  %v3982_v35 = vsel (!%p3934_p6), %vm3970_vm12, %v3944_v44, 0.0  ;;  %v3946_v45 = vld [vmem:[#allocation6 + $0x40] sm:$0xff] (!%p3934_p6)  ;;  %v3984_v47 = vsel (!%p3934_p6), %vm3970_vm12, %v3945_v29, 0.0  ;;  %v3947_v50 = vld [vmem:[#allocation6 + $0x48] sm:$0xff] (!%p3934_p6)  ;;  %v3948_v12 = vld [vmem:[#allocation6 + $0x50] sm:$0xff] (!%p3934_p6) }
 0x525   : > { %v3975_v23 = vadd.f32 (!%p3934_p6), %v3974_v36, %v3973_v28  ;;  %v3986_v20 = vsel (!%p3934_p6), %vm3970_vm12, %v3946_v45, 0.0  ;;  %v3988_v25 = vsel (!%p3934_p6), %vm3970_vm12, %v3947_v50, 0.0  ;;  %v3949_v9 = vld [vmem:[#allocation6 + $0x58] sm:$0xff] (!%p3934_p6)  ;;  %v3990_v62 = vsel (!%p3934_p6), %vm3970_vm12, %v3948_v12, 0.0  ;;  %v3950_v32 = vld [vmem:[#allocation6 + $0x60] sm:$0xff] (!%p3934_p6)  ;;  %v3951_v63 = vld [vmem:[#allocation6 + $0x68] sm:$0xff] (!%p3934_p6) }
 0x526   : > { %v3992_v21 = vsel (!%p3934_p6), %vm3970_vm12, %v3949_v9, 0.0  ;;  %v3994_v43 = vsel (!%p3934_p6), %vm3970_vm12, %v3950_v32, 0.0  ;;  %v3952_v49 = vld [vmem:[#allocation6 + $0x70] sm:$0xff] (!%p3934_p6)  ;;  %v3996_v11 = vsel (!%p3934_p6), %vm3970_vm12, %v3951_v63, 0.0  ;;  %v3953_v60 = vld [vmem:[#allocation6 + $0x78] sm:$0xff] (!%p3934_p6)  ;;  %v3954_v10 = vld [vmem:[#allocation6 + $0x80] sm:$0xff] (!%p3934_p6) }
 0x527   : > { %v3977_v54 = vadd.f32 (!%p3934_p6), %v3976_v24, %v3975_v23  ;;  %v3998_v41 = vsel (!%p3934_p6), %vm3970_vm12, %v3952_v49, 0.0  ;;  %v4000_v57 = vsel (!%p3934_p6), %vm3970_vm12, %v3953_v60, 0.0  ;;  %v3955_v8 = vld [vmem:[#allocation6 + $0x88] sm:$0xff] (!%p3934_p6)  ;;  %v4002_v14 = vsel (!%p3934_p6), %vm3970_vm12, %v3954_v10, 0.0  ;;  %v3956_v1 = vld [vmem:[#allocation6 + $0x90] sm:$0xff] (!%p3934_p6)  ;;  %v3957_v37 = vld [vmem:[#allocation6 + $0x98] sm:$0xff] (!%p3934_p6) }
 0x528   : > { %v4004_v18 = vsel (!%p3934_p6), %vm3970_vm12, %v3955_v8, 0.0  ;;  %v4006_v13 = vsel (!%p3934_p6), %vm3970_vm12, %v3956_v1, 0.0  ;;  %v3958_v17 = vld [vmem:[#allocation6 + $0xa0] sm:$0xff] (!%p3934_p6)  ;;  %v4008_v55 = vsel (!%p3934_p6), %vm3970_vm12, %v3957_v37, 0.0  ;;  %v3959_v51 = vld [vmem:[#allocation6 + $0xa8] sm:$0xff] (!%p3934_p6)  ;;  %v3960_v2 = vld [vmem:[#allocation6 + $0xb0] sm:$0xff] (!%p3934_p6) }
 0x529   : > { %v3979_v5 = vadd.f32 %v3978_v34, %v3977_v54  ;;  %v4010_v61 = vsel %vm3970_vm12, %v3958_v17, 0.0  ;;  %v4012_v3 = vsel %vm3970_vm12, %v3959_v51, 0.0  ;;  %v3961_v58 = vld [vmem:[#allocation6 + $0xb8] sm:$0xff]  ;;  %v4014_v53 = vsel %vm3970_vm12, %v3960_v2, 0.0  ;;  %v3962_v26 = vld [vmem:[#allocation6 + $0xc0] sm:$0xff]  ;;  %v3963_v36 = vld [vmem:[#allocation6 + $0xc8] sm:$0xff] }
 0x52a   : > { %v4016_v46 = vsel %vm3970_vm12, %v3961_v58, 0.0  ;;  %v4018_v28 = vsel %vm3970_vm12, %v3962_v26, 0.0  ;;  %v3964_v24 = vld [vmem:[#allocation6 + $0xd0] sm:$0xff]  ;;  %v4020_v23 = vsel %vm3970_vm12, %v3963_v36, 0.0  ;;  %v3965_v34 = vld [vmem:[#allocation6 + $0xd8] sm:$0xff]  ;;  %s4148_s7 = scalar_lea.smem %s4044_s4, 1 [#allocation8] }
 0x52b   : > { %v3981_v16 = vadd.f32 %v3980_v52, %v3979_v5  ;;  %v4022_v54 = vsel %vm3970_vm12, %v3964_v24, 0.0  ;;  %v3966_v52 = vld [vmem:[#allocation6 + $0xe0] sm:$0xff]  ;;  %v4024_v5 = vsel %vm3970_vm12, %v3965_v34, 0.0  ;;  %v3969_v12 = vld [vmem:[#allocation6 + $0xf8] sm:$0xff] }
 0x52c   : > { %v9476_v9 = vld [vmem:[#allocation37_spill] sm:$0xff] }
 0x52d   : > { %v3983_v40 = vadd.f32 %v3982_v35, %v3981_v16  ;;  %v3967_v35 = vld [vmem:[#allocation6 + $0xe8] sm:$0xff]  ;;  %v4026_v16 = vsel %vm3970_vm12, %v3966_v52, 0.0 }
 0x52f   : > { %v3985_v22 = vadd.f32 %v3984_v47, %v3983_v40  ;;  %v3968_v47 = vld [vmem:[#allocation6 + $0xf0] sm:$0xff]  ;;  %v4046_v40 = vld [vmem:[#allocation7] sm:$0x3] }
 0x531   : > { %v3987_v0 = vadd.f32 %v3986_v20, %v3985_v22  ;;  %v4028_v20 = vsel %vm3970_vm12, %v3967_v35, 0.0 }
 0x533   : > { %v3989_v42 = vadd.f32 %v3988_v25, %v3987_v0  ;;  %v4030_v25 = vsel %vm3970_vm12, %v3968_v47, 0.0  ;;  %v4051_v0 = vrot.slane %v4046_v40, %v9476_v9 }
 0x535   : > { %v3991_v48 = vadd.f32 %v3990_v62, %v3989_v42  ;;  %v9477_v62 = vld [vmem:[#allocation38_spill] sm:$0xff] }
 0x536   : > { %v4055_v32 = vrot.slane %v4046_v40, %v9477_v62 }
 0x537   : > { %v3993_v39 = vadd.f32 %v3992_v21, %v3991_v48  ;;  %v4032_v21 = vsel %vm3970_vm12, %v3969_v12, 0.0  ;;  %v4059_v48 = vsel %vm4058_vm13, %v4051_v0, 0.0 }
 0x539   : > { %v3995_v33 = vadd.f32 %v3994_v43, %v3993_v39  ;;  %v4060_v43 = vsel %vm4058_vm13, %v4055_v32, 0.0 }
 0x53a   : > { %v4061_v39 = vadd.f32 %v4060_v43, %v4059_v48 }
 0x53b   : > { %v3997_v56 = vadd.f32 %v3996_v11, %v3995_v33 }
 0x53d   : > { %v3999_v19 = vadd.f32 %v3998_v41, %v3997_v56 }
 0x53f   : > { %v4001_v38 = vadd.f32 %v4000_v57, %v3999_v19 }
 0x541   : > { %v4003_v31 = vadd.f32 %v4002_v14, %v4001_v38 }
 0x543   : > { %v4005_v7 = vadd.f32 %v4004_v18, %v4003_v31 }
 0x545   : > { %v4007_v59 = vadd.f32 %v4006_v13, %v4005_v7 }
 0x547   : > { %v4009_v30 = vadd.f32 %v4008_v55, %v4007_v59 }
 0x549   : > { %v4011_v4 = vadd.f32 %v4010_v61, %v4009_v30 }
 0x54b   : > { %v4013_v27 = vadd.f32 %v4012_v3, %v4011_v4 }
 0x54d   : > { %v4015_v6 = vadd.f32 %v4014_v53, %v4013_v27 }
 0x54f   : > { %v4017_v15 = vadd.f32 %v4016_v46, %v4015_v6 }
 0x551   : > { %v4019_v44 = vadd.f32 %v4018_v28, %v4017_v15 }
 0x553   : > { %v4021_v29 = vadd.f32 %v4020_v23, %v4019_v44 }
 0x555   : > { %v4023_v45 = vadd.f32 %v4022_v54, %v4021_v29 }
 0x557   : > { %v4025_v50 = vadd.f32 %v4024_v5, %v4023_v45 }
 0x559   : > { %v4027_v22 = vadd.f32 %v4026_v16, %v4025_v50 }
 0x55b   : > { %v4029_v42 = vadd.f32 %v4028_v20, %v4027_v22 }
 0x55d   : > { %v4031_v63 = vadd.f32 %v4030_v25, %v4029_v42 }
 0x55f   : > { %v4033_v49 = vadd.f32 %v4032_v21, %v4031_v63 }
 0x561   : > { %4034 = vadd.xlane.f32.xlu0 %v4033_v49 }
 0x565   : > { %4062 = vadd.xlane.f32.xlu0 %v4061_v39 }
 0x5ee   : > { %v4035_v11 = vpop.xlane.xlu0 %4034 }
 0x5ef   : > { %v4036_v60 = vrot.slane %v4035_v11, 4 }
 0x5f1   : > { %v4037_v33 = vadd.f32 %v4036_v60, %v4035_v11 }
 0x5f2   : > { %v4063_v41 = vpop.xlane.xlu0 %4062 }
 0x5f3   : > { %v4038_v10 = vrot.slane %v4037_v33, 2  ;;  %v4064_v56 = vrot.slane %v4063_v41, 4 }
 0x5f5   : > { %v4065_v57 = vadd.f32 %v4064_v56, %v4063_v41  ;;  %v4039_v8 = vadd.f32 %v4038_v10, %v4037_v33 }
 0x5f7   : > { %v4066_v19 = vrot.slane %v4065_v57, 2  ;;  %v4040_v14 = vrot.slane %v4039_v8, 1 }
 0x5f9   : > { %v4067_v1 = vadd.f32 %v4066_v19, %v4065_v57  ;;  %v4041_v38 = vadd.f32 %v4040_v14, %v4039_v8 }
 0x5fb   : > { %4290 = vpush %v4041_v38  ;;  %v4068_v18 = vrot.slane %v4067_v1, 1 }
 0x5fd   : > { %v4069_v37 = vadd.f32 %v4068_v18, %v4067_v1 }
 0x5ff   : > { %4292 = vpush %v4069_v37 }
 0x62c   : > { %s4291_s13 = spop %4290 }
 0x62d   : > { %4045 = sst [smem:[%s4044_s4]] %s4291_s13 }
 0x630   : > { %s4293_s8 = spop %4292 }
 0x631   : > { %4073 = sst [smem:[%s4148_s7]] %s4293_s8 }
 0x632 PF: > { %p4298_p7 = scmp.eq.s32.totalorder %s4196_s19, 7  ;;  %s4504_s11 = scalar_lea.hbm %s8658_s3, 32 }
 0x633   : > { %p4505_p8 = scmp.ne.s32.totalorder %s8658_s3, %s4504_s11  ;;  %p4510_p11 = scmp.lt.u32.totalorder %s4504_s11, %s8658_s3 }
 0x635   : > { %p4506_p9 = pnand %p4505_p8, %p4298_p7 }
 0x637   : > { %p4507_p10 = pneg %p4506_p9 }
 0x639   : > { %p4512_p12 = pnand %p4510_p11, %p4507_p10 }
 0x63b   : > { %4515 = shalt.err (!%p4512_p12)
}
 0x63c   : > { %s4584_s26 = smov [#allocation8]  }
 0x63d   : > { %4295 = dma.smem_to_hbm (%p4298_p7), %s4584_s26, 32, %s8658_s3, [#allocation9]  }
 0x63e   : > { %4545 = dma.done.wait (%p4298_p7), [#allocation9], 32  }
 0x63f   : > { %4547 = vsyncadd (%p4298_p7), [#allocation9], 4294967264 }
 0x640   : > { %4087 = sfence }
 0x641 PF: > { %s14_s18 = sadd.s32 1, %s4574_s18   ;;  %s9478_s12 = smov %s4562_s15 }
 0x642   : > { %p11_p13 = scmp.ge.s32.totalorder %s14_s18, 10   ;;  %s9479_s13 = smov %s4566_s16 }
 0x643   : > { %s9480_s14 = smov %s4570_s17  ;;  %s9481_s15 = smov %s9485_s20 }
 0x644   : > { %s9482_s16 = smov %s9489_s21  ;;  %s9483_s17 = smov %s9493_s22 }
 0x645   :  { %13 = sbr.rel (!%p11_p13) target bundleno = 4 (0x4), region = 105 }
 0x64c   :  { %4093 = vsyncpa [#allocation9], 1 }
 0x64d   :  { %4095 = vsyncpa [#allocation9 + $0x1], 1 }

</bundles_post_ra>
